<compile_context>
chip_gen: v7x
topology: tpu7x:2x2x1
jax: 0.10.0
libtpu: 0.0.40
codegen_flags: <defaults>
</compile_context>

<pallas_src>
import functools

import jax
import jax.numpy as jnp
from jax.experimental import pallas as pl
from jax.experimental.pallas import tpu as pltpu

# ---------------- configuration (args.*) ----------------
KERNEL = 3          # args.kernel
DILATION = 1        # args.dilation
HIDDEN_SIZE = 2     # args.hidden_size
PAD = DILATION * (KERNEL - 1) // 2 + 1   # ReplicationPad1d amount
LEAKY_SLOPE = 0.01


# ---------------- Pallas kernel ----------------
def _lifting_kernel(xe_ref, xo_ref,
                    w1p_ref, b1p_ref, w2p_ref, b2p_ref,
                    w1u_ref, b1u_ref, w2u_ref, b2u_ref,
                    c_ref, d_ref, pad_ref,
                    *, BT, C, H, L):
    L1 = L + 2 * PAD - DILATION * (KERNEL - 1)   # length after conv1
    L2 = L1 - 2                                   # length after conv2 (== L)
    Lp = L + 2 * PAD

    def fill_padded(rows):
        # Replication-pad each (BT, L) channel row into the (BT, C, Lp) VMEM scratch.
        for cc in range(C):
            row = rows[cc]
            pad_ref[:, cc, PAD:PAD + L] = row
            pad_ref[:, cc, 0:PAD] = jnp.broadcast_to(row[:, 0:1], (BT, PAD))
            pad_ref[:, cc, PAD + L:Lp] = jnp.broadcast_to(row[:, L - 1:L], (BT, PAD))

    def branch(rows, w1_ref, b1_ref, w2_ref, b2_ref):
        # Conv1d(C -> H, KERNEL, dilation) over replication-padded input, as VPU FMAs.
        fill_padded(rows)
        # Hoist the C*K shifted lane-dense windows; each is read once and reused.
        win1 = [[pad_ref[:, cc, j * DILATION:j * DILATION + L1] for j in range(KERNEL)]
                for cc in range(C)]
        h_rows = []
        for hh in range(H):
            acc = jnp.zeros((BT, L1), jnp.float32)
            for cc in range(C):
                base = (hh * C + cc) * KERNEL
                for j in range(KERNEL):
                    acc = acc + w1_ref[base + j] * win1[cc][j]   # scalar (SMEM) * vector
            acc = acc + b1_ref[hh]
            # LeakyReLU(0.01); Dropout is the identity in eval mode.
            h_rows.append(jnp.where(acc > 0, acc, LEAKY_SLOPE * acc))

        # Conv1d(H -> C, kernel=3), no padding, as VPU FMAs on register rows.
        win2 = [[h_rows[hh][:, j:j + L2] for j in range(3)] for hh in range(H)]
        out_rows = []
        for cc in range(C):
            acc = jnp.zeros((BT, L2), jnp.float32)
            for hh in range(H):
                base = (cc * H + hh) * 3
                for j in range(3):
                    acc = acc + w2_ref[base + j] * win2[hh][j]
            acc = acc + b2_ref[cc]
            out_rows.append(jnp.tanh(acc))
        return out_rows

    xe = xe_ref[...].astype(jnp.float32)   # (BT, C, L)
    xo = xo_ref[...].astype(jnp.float32)
    xe_rows = [xe[:, cc, :] for cc in range(C)]
    xo_rows = [xo[:, cc, :] for cc in range(C)]

    p_rows = branch(xe_rows, w1p_ref, b1p_ref, w2p_ref, b2p_ref)
    d_rows = [xo_rows[cc] - p_rows[cc] for cc in range(C)]
    u_rows = branch(d_rows, w1u_ref, b1u_ref, w2u_ref, b2u_ref)
    c_rows = [xe_rows[cc] + u_rows[cc] for cc in range(C)]

    for cc in range(C):
        d_ref[:, cc, :] = d_rows[cc].astype(d_ref.dtype)
        c_ref[:, cc, :] = c_rows[cc].astype(c_ref.dtype)


def _pick_batch_tile(B, C, L):
    # Largest divisor of B whose per-step slab stays modest (v7x has only 64 MiB physical /
    # 32 MiB default scoped VMEM); prefers BT*C >= 8 so blocks are sublane-dense.
    budget = 2 * 1024 * 1024   # bytes per (BT, C, L) f32 operand slab
    bt = 1
    for cand in range(1, B + 1):
        if B % cand == 0 and cand * C * max(L, 128) * 4 <= budget:
            bt = cand
    return bt


def lifting_scheme_level(x, params):
    """x: (B, T, C) float32.  Returns (c, d), each (B, C, T//2)."""
    B, T, C = x.shape
    assert T % 2 == 0, "sequence length must be even"
    assert (DILATION * (KERNEL - 1)) % 2 == 0, (
        "dilation*(kernel-1) must be even so conv output length matches L")
    L = T // 2
    H = C * HIDDEN_SIZE
    Lp = L + 2 * PAD
    L1 = L + 2 * PAD - DILATION * (KERNEL - 1)

    # splitting + permute (glue, plain JAX/XLA)
    xe = jnp.transpose(x[:, ::2, :], (0, 2, 1)).astype(jnp.float32)   # (B, C, L)
    xo = jnp.transpose(x[:, 1::2, :], (0, 2, 1)).astype(jnp.float32)  # (B, C, L)

    # Flatten conv weights/biases for scalar (SMEM) access inside the kernel:
    #   w1 (H, C, K): idx = (hh*C + cc)*K + j ;  w2 (C, H, 3): idx = (cc*H + hh)*3 + j
    w1p = params["P_w1"].reshape(-1).astype(jnp.float32)
    w2p = params["P_w2"].reshape(-1).astype(jnp.float32)
    w1u = params["U_w1"].reshape(-1).astype(jnp.float32)
    w2u = params["U_w2"].reshape(-1).astype(jnp.float32)
    b1p = params["P_b1"].reshape(-1).astype(jnp.float32)
    b2p = params["P_b2"].reshape(-1).astype(jnp.float32)
    b1u = params["U_b1"].reshape(-1).astype(jnp.float32)
    b2u = params["U_b2"].reshape(-1).astype(jnp.float32)

    BT = _pick_batch_tile(B, C, L)
    kernel = functools.partial(_lifting_kernel, BT=BT, C=C, H=H, L=L)

    def batch_block():
        return pl.BlockSpec((BT, C, L), lambda i: (i, 0, 0))
    smem_spec = pl.BlockSpec(memory_space=pltpu.MemorySpace.SMEM)

    # Rough per-step VMEM budget (input/output blocks are double-buffered by the pipeline).
    block_bytes = BT * C * L * 4
    vmem_est = 8 * block_bytes + BT * C * Lp * 4 + 4 * BT * H * L1 * 4 + (1 << 20)
    vmem_limit = int(min(max(vmem_est, 4 << 20), 32 << 20))

    c, d = pl.pallas_call(
        kernel,
        out_shape=(jax.ShapeDtypeStruct((B, C, L), jnp.float32),
                   jax.ShapeDtypeStruct((B, C, L), jnp.float32)),
        grid=(B // BT,),
        in_specs=[
            batch_block(), batch_block(),
            smem_spec, smem_spec, smem_spec, smem_spec,
            smem_spec, smem_spec, smem_spec, smem_spec,
        ],
        out_specs=(batch_block(), batch_block()),
        scratch_shapes=[pltpu.VMEM((BT, C, Lp), jnp.float32)],
        compiler_params=pltpu.CompilerParams(
            dimension_semantics=("parallel",),
            vmem_limit_bytes=vmem_limit),
    )(xe, xo, w1p, b1p, w2p, b2p, w1u, b1u, w2u, b2u)
    return c, d


# ---------------- pure-JAX reference (for verification) ----------------
def _conv1d_ref(x, w, b, dil):
    # x: (B, Cin, Lp), w: (Cout, Cin, K), b: (Cout,)
    K = w.shape[-1]
    Lout = x.shape[-1] - dil * (K - 1)
    out = jnp.broadcast_to(b[None, :, None], (x.shape[0], w.shape[0], Lout)).astype(jnp.float32)
    for j in range(K):
        out = out + jnp.einsum("hc,bcl->bhl", w[:, :, j], x[:, :, j * dil:j * dil + Lout])
    return out


def _branch_ref(x, w1, b1, w2, b2):
    xp = jnp.pad(x, ((0, 0), (0, 0), (PAD, PAD)), mode="edge")
    h = _conv1d_ref(xp, w1, b1, DILATION)
    h = jnp.where(h > 0, h, LEAKY_SLOPE * h)
    return jnp.tanh(_conv1d_ref(h, w2, b2, 1))


def reference(x, params):
    xe = jnp.transpose(x[:, ::2, :], (0, 2, 1))
    xo = jnp.transpose(x[:, 1::2, :], (0, 2, 1))
    d = xo - _branch_ref(xe, params["P_w1"], params["P_b1"], params["P_w2"], params["P_b2"])
    c = xe + _branch_ref(d, params["U_w1"], params["U_b1"], params["U_w2"], params["U_b2"])
    return c, d


# ---------------- deterministic parameter init ----------------
def init_params(key, C, H):
    def u(k, shape, fan_in):
        bound = 1.0 / jnp.sqrt(fan_in)
        return jax.random.uniform(k, shape, jnp.float32, -bound, bound)

    ks = jax.random.split(key, 8)
    return {
        "P_w1": u(ks[0], (H, C, KERNEL), C * KERNEL),
        "P_b1": u(ks[1], (H,), C * KERNEL),
        "P_w2": u(ks[2], (C, H, 3), H * 3),
        "P_b2": u(ks[3], (C,), H * 3),
        "U_w1": u(ks[4], (H, C, KERNEL), C * KERNEL),
        "U_b1": u(ks[5], (H,), C * KERNEL),
        "U_w2": u(ks[6], (C, H, 3), H * 3),
        "U_b2": u(ks[7], (C,), H * 3),
    }


if __name__ == "__main__":
    B, T, C = 2, 16, 4
    H = C * HIDDEN_SIZE

    key = jax.random.PRNGKey(0)
    kx, kp = jax.random.split(key)
    x = jax.random.normal(kx, (B, T, C), jnp.float32)
    params = init_params(kp, C, H)

    c, d = lifting_scheme_level(x, params)
    jax.block_until_ready((c, d))

    c_exp, d_exp = reference(x, params)
    assert c.shape == (B, C, T // 2) and d.shape == (B, C, T // 2)
    assert jnp.allclose(c, c_exp, atol=1e-5, rtol=1e-5)
    assert jnp.allclose(d, d_exp, atol=1e-5, rtol=1e-5)

    print("KERNEL_OK")
</pallas_src>

<mosaic_0001>
module attributes {stable_mosaic.version = 11 : i64} {
  func.func @_lifting_kernel(%arg0: i32, %arg1: memref<2x4x8xf32, #tpu.memory_space<vmem>>, %arg2: memref<2x4x8xf32, #tpu.memory_space<vmem>>, %arg3: memref<96xf32, #tpu.memory_space<smem>>, %arg4: memref<8xf32, #tpu.memory_space<smem>>, %arg5: memref<96xf32, #tpu.memory_space<smem>>, %arg6: memref<4xf32, #tpu.memory_space<smem>>, %arg7: memref<96xf32, #tpu.memory_space<smem>>, %arg8: memref<8xf32, #tpu.memory_space<smem>>, %arg9: memref<96xf32, #tpu.memory_space<smem>>, %arg10: memref<4xf32, #tpu.memory_space<smem>>, %arg11: memref<2x4x8xf32, #tpu.memory_space<vmem>>, %arg12: memref<2x4x8xf32, #tpu.memory_space<vmem>>, %arg13: memref<2x4x12xf32, #tpu.memory_space<vmem>>) attributes {dimension_semantics = [#tpu.dimension_semantics<parallel>], iteration_bounds = array<i64: 1>, scalar_prefetch = 0 : i64, scratch_operands = 1 : i64, tpu.core_type = #tpu.core_type<tc>, window_params = [{transform_indices = @transform_0, window_bounds = array<i64: 2, 4, 8>}, {transform_indices = @transform_1, window_bounds = array<i64: 2, 4, 8>}, {transform_indices = @transform_2, window_bounds = array<i64: 96>}, {transform_indices = @transform_3, window_bounds = array<i64: 8>}, {transform_indices = @transform_4, window_bounds = array<i64: 96>}, {transform_indices = @transform_5, window_bounds = array<i64: 4>}, {transform_indices = @transform_6, window_bounds = array<i64: 96>}, {transform_indices = @transform_7, window_bounds = array<i64: 8>}, {transform_indices = @transform_8, window_bounds = array<i64: 96>}, {transform_indices = @transform_9, window_bounds = array<i64: 4>}, {transform_indices = @transform_10, window_bounds = array<i64: 2, 4, 8>}, {transform_indices = @transform_11, window_bounds = array<i64: 2, 4, 8>}]} {
    %c0 = arith.constant 0 : index
    %c0_0 = arith.constant 0 : index
    %c0_1 = arith.constant 0 : index
    %0 = vector.load %arg1[%c0, %c0_0, %c0_1] : memref<2x4x8xf32, #tpu.memory_space<vmem>>, vector<2x4x8xf32>
    %c0_2 = arith.constant 0 : index
    %c0_3 = arith.constant 0 : index
    %c0_4 = arith.constant 0 : index
    %1 = vector.load %arg2[%c0_2, %c0_3, %c0_4] : memref<2x4x8xf32, #tpu.memory_space<vmem>>, vector<2x4x8xf32>
    %2 = vector.extract_strided_slice %0 {offsets = [0, 0, 0], sizes = [2, 1, 8], strides = [1, 1, 1]} : vector<2x4x8xf32> to vector<2x1x8xf32>
    %3 = vector.shape_cast %2 : vector<2x1x8xf32> to vector<2x8xf32>
    %4 = vector.extract_strided_slice %0 {offsets = [0, 1, 0], sizes = [2, 1, 8], strides = [1, 1, 1]} : vector<2x4x8xf32> to vector<2x1x8xf32>
    %5 = vector.shape_cast %4 : vector<2x1x8xf32> to vector<2x8xf32>
    %6 = vector.extract_strided_slice %0 {offsets = [0, 2, 0], sizes = [2, 1, 8], strides = [1, 1, 1]} : vector<2x4x8xf32> to vector<2x1x8xf32>
    %7 = vector.shape_cast %6 : vector<2x1x8xf32> to vector<2x8xf32>
    %8 = vector.extract_strided_slice %0 {offsets = [0, 3, 0], sizes = [2, 1, 8], strides = [1, 1, 1]} : vector<2x4x8xf32> to vector<2x1x8xf32>
    %9 = vector.shape_cast %8 : vector<2x1x8xf32> to vector<2x8xf32>
    %10 = vector.extract_strided_slice %1 {offsets = [0, 0, 0], sizes = [2, 1, 8], strides = [1, 1, 1]} : vector<2x4x8xf32> to vector<2x1x8xf32>
    %11 = vector.shape_cast %10 : vector<2x1x8xf32> to vector<2x8xf32>
    %12 = vector.extract_strided_slice %1 {offsets = [0, 1, 0], sizes = [2, 1, 8], strides = [1, 1, 1]} : vector<2x4x8xf32> to vector<2x1x8xf32>
    %13 = vector.shape_cast %12 : vector<2x1x8xf32> to vector<2x8xf32>
    %14 = vector.extract_strided_slice %1 {offsets = [0, 2, 0], sizes = [2, 1, 8], strides = [1, 1, 1]} : vector<2x4x8xf32> to vector<2x1x8xf32>
    %15 = vector.shape_cast %14 : vector<2x1x8xf32> to vector<2x8xf32>
    %16 = vector.extract_strided_slice %1 {offsets = [0, 3, 0], sizes = [2, 1, 8], strides = [1, 1, 1]} : vector<2x4x8xf32> to vector<2x1x8xf32>
    %17 = vector.shape_cast %16 : vector<2x1x8xf32> to vector<2x8xf32>
    %c0_5 = arith.constant 0 : index
    %c0_6 = arith.constant 0 : index
    %c2 = arith.constant 2 : index
    %18 = vector.load %arg13[%c0_5, %c0_6, %c2] : memref<2x4x12xf32, #tpu.memory_space<vmem>>, vector<2x1x8xf32>
    %19 = vector.shape_cast %18 : vector<2x1x8xf32> to vector<2x8xf32>
    %20 = vector.shape_cast %3 : vector<2x8xf32> to vector<2x1x8xf32>
    tpu.vector_store %arg13[%c0_5, %c0_6, %c2], %20 {strides = array<i32>} : memref<2x4x12xf32, #tpu.memory_space<vmem>>, vector<2x1x8xf32>,
    %21 = vector.extract_strided_slice %3 {offsets = [0, 0], sizes = [2, 1], strides = [1, 1]} : vector<2x8xf32> to vector<2x1xf32>
    %22 = vector.shape_cast %21 : vector<2x1xf32> to vector<2x1xf32>
    %23 = vector.broadcast %22 : vector<2x1xf32> to vector<2x2xf32>
    %c0_7 = arith.constant 0 : index
    %c0_8 = arith.constant 0 : index
    %c0_9 = arith.constant 0 : index
    %24 = vector.load %arg13[%c0_7, %c0_8, %c0_9] : memref<2x4x12xf32, #tpu.memory_space<vmem>>, vector<2x1x2xf32>
    %25 = vector.shape_cast %24 : vector<2x1x2xf32> to vector<2x2xf32>
    %26 = vector.shape_cast %23 : vector<2x2xf32> to vector<2x1x2xf32>
    tpu.vector_store %arg13[%c0_7, %c0_8, %c0_9], %26 {strides = array<i32>} : memref<2x4x12xf32, #tpu.memory_space<vmem>>, vector<2x1x2xf32>,
    %27 = vector.extract_strided_slice %3 {offsets = [0, 7], sizes = [2, 1], strides = [1, 1]} : vector<2x8xf32> to vector<2x1xf32>
    %28 = vector.shape_cast %27 : vector<2x1xf32> to vector<2x1xf32>
    %29 = vector.broadcast %28 : vector<2x1xf32> to vector<2x2xf32>
    %c0_10 = arith.constant 0 : index
    %c0_11 = arith.constant 0 : index
    %c10 = arith.constant 10 : index
    %30 = vector.load %arg13[%c0_10, %c0_11, %c10] : memref<2x4x12xf32, #tpu.memory_space<vmem>>, vector<2x1x2xf32>
    %31 = vector.shape_cast %30 : vector<2x1x2xf32> to vector<2x2xf32>
    %32 = vector.shape_cast %29 : vector<2x2xf32> to vector<2x1x2xf32>
    tpu.vector_store %arg13[%c0_10, %c0_11, %c10], %32 {strides = array<i32>} : memref<2x4x12xf32, #tpu.memory_space<vmem>>, vector<2x1x2xf32>,
    %c0_12 = arith.constant 0 : index
    %c1 = arith.constant 1 : index
    %c2_13 = arith.constant 2 : index
    %33 = vector.load %arg13[%c0_12, %c1, %c2_13] : memref<2x4x12xf32, #tpu.memory_space<vmem>>, vector<2x1x8xf32>
    %34 = vector.shape_cast %33 : vector<2x1x8xf32> to vector<2x8xf32>
    %35 = vector.shape_cast %5 : vector<2x8xf32> to vector<2x1x8xf32>
    tpu.vector_store %arg13[%c0_12, %c1, %c2_13], %35 {strides = array<i32>} : memref<2x4x12xf32, #tpu.memory_space<vmem>>, vector<2x1x8xf32>,
    %36 = vector.extract_strided_slice %5 {offsets = [0, 0], sizes = [2, 1], strides = [1, 1]} : vector<2x8xf32> to vector<2x1xf32>
    %37 = vector.shape_cast %36 : vector<2x1xf32> to vector<2x1xf32>
    %38 = vector.broadcast %37 : vector<2x1xf32> to vector<2x2xf32>
    %c0_14 = arith.constant 0 : index
    %c1_15 = arith.constant 1 : index
    %c0_16 = arith.constant 0 : index
    %39 = vector.load %arg13[%c0_14, %c1_15, %c0_16] : memref<2x4x12xf32, #tpu.memory_space<vmem>>, vector<2x1x2xf32>
    %40 = vector.shape_cast %39 : vector<2x1x2xf32> to vector<2x2xf32>
    %41 = vector.shape_cast %38 : vector<2x2xf32> to vector<2x1x2xf32>
    tpu.vector_store %arg13[%c0_14, %c1_15, %c0_16], %41 {strides = array<i32>} : memref<2x4x12xf32, #tpu.memory_space<vmem>>, vector<2x1x2xf32>,
    %42 = vector.extract_strided_slice %5 {offsets = [0, 7], sizes = [2, 1], strides = [1, 1]} : vector<2x8xf32> to vector<2x1xf32>
    %43 = vector.shape_cast %42 : vector<2x1xf32> to vector<2x1xf32>
    %44 = vector.broadcast %43 : vector<2x1xf32> to vector<2x2xf32>
    %c0_17 = arith.constant 0 : index
    %c1_18 = arith.constant 1 : index
    %c10_19 = arith.constant 10 : index
    %45 = vector.load %arg13[%c0_17, %c1_18, %c10_19] : memref<2x4x12xf32, #tpu.memory_space<vmem>>, vector<2x1x2xf32>
    %46 = vector.shape_cast %45 : vector<2x1x2xf32> to vector<2x2xf32>
    %47 = vector.shape_cast %44 : vector<2x2xf32> to vector<2x1x2xf32>
    tpu.vector_store %arg13[%c0_17, %c1_18, %c10_19], %47 {strides = array<i32>} : memref<2x4x12xf32, #tpu.memory_space<vmem>>, vector<2x1x2xf32>,
    %c0_20 = arith.constant 0 : index
    %c2_21 = arith.constant 2 : index
    %c2_22 = arith.constant 2 : index
    %48 = vector.load %arg13[%c0_20, %c2_21, %c2_22] : memref<2x4x12xf32, #tpu.memory_space<vmem>>, vector<2x1x8xf32>
    %49 = vector.shape_cast %48 : vector<2x1x8xf32> to vector<2x8xf32>
    %50 = vector.shape_cast %7 : vector<2x8xf32> to vector<2x1x8xf32>
    tpu.vector_store %arg13[%c0_20, %c2_21, %c2_22], %50 {strides = array<i32>} : memref<2x4x12xf32, #tpu.memory_space<vmem>>, vector<2x1x8xf32>,
    %51 = vector.extract_strided_slice %7 {offsets = [0, 0], sizes = [2, 1], strides = [1, 1]} : vector<2x8xf32> to vector<2x1xf32>
    %52 = vector.shape_cast %51 : vector<2x1xf32> to vector<2x1xf32>
    %53 = vector.broadcast %52 : vector<2x1xf32> to vector<2x2xf32>
    %c0_23 = arith.constant 0 : index
    %c2_24 = arith.constant 2 : index
    %c0_25 = arith.constant 0 : index
    %54 = vector.load %arg13[%c0_23, %c2_24, %c0_25] : memref<2x4x12xf32, #tpu.memory_space<vmem>>, vector<2x1x2xf32>
    %55 = vector.shape_cast %54 : vector<2x1x2xf32> to vector<2x2xf32>
    %56 = vector.shape_cast %53 : vector<2x2xf32> to vector<2x1x2xf32>
    tpu.vector_store %arg13[%c0_23, %c2_24, %c0_25], %56 {strides = array<i32>} : memref<2x4x12xf32, #tpu.memory_space<vmem>>, vector<2x1x2xf32>,
    %57 = vector.extract_strided_slice %7 {offsets = [0, 7], sizes = [2, 1], strides = [1, 1]} : vector<2x8xf32> to vector<2x1xf32>
    %58 = vector.shape_cast %57 : vector<2x1xf32> to vector<2x1xf32>
    %59 = vector.broadcast %58 : vector<2x1xf32> to vector<2x2xf32>
    %c0_26 = arith.constant 0 : index
    %c2_27 = arith.constant 2 : index
    %c10_28 = arith.constant 10 : index
    %60 = vector.load %arg13[%c0_26, %c2_27, %c10_28] : memref<2x4x12xf32, #tpu.memory_space<vmem>>, vector<2x1x2xf32>
    %61 = vector.shape_cast %60 : vector<2x1x2xf32> to vector<2x2xf32>
    %62 = vector.shape_cast %59 : vector<2x2xf32> to vector<2x1x2xf32>
    tpu.vector_store %arg13[%c0_26, %c2_27, %c10_28], %62 {strides = array<i32>} : memref<2x4x12xf32, #tpu.memory_space<vmem>>, vector<2x1x2xf32>,
    %c0_29 = arith.constant 0 : index
    %c3 = arith.constant 3 : index
    %c2_30 = arith.constant 2 : index
    %63 = vector.load %arg13[%c0_29, %c3, %c2_30] : memref<2x4x12xf32, #tpu.memory_space<vmem>>, vector<2x1x8xf32>
    %64 = vector.shape_cast %63 : vector<2x1x8xf32> to vector<2x8xf32>
    %65 = vector.shape_cast %9 : vector<2x8xf32> to vector<2x1x8xf32>
    tpu.vector_store %arg13[%c0_29, %c3, %c2_30], %65 {strides = array<i32>} : memref<2x4x12xf32, #tpu.memory_space<vmem>>, vector<2x1x8xf32>,
    %66 = vector.extract_strided_slice %9 {offsets = [0, 0], sizes = [2, 1], strides = [1, 1]} : vector<2x8xf32> to vector<2x1xf32>
    %67 = vector.shape_cast %66 : vector<2x1xf32> to vector<2x1xf32>
    %68 = vector.broadcast %67 : vector<2x1xf32> to vector<2x2xf32>
    %c0_31 = arith.constant 0 : index
    %c3_32 = arith.constant 3 : index
    %c0_33 = arith.constant 0 : index
    %69 = vector.load %arg13[%c0_31, %c3_32, %c0_33] : memref<2x4x12xf32, #tpu.memory_space<vmem>>, vector<2x1x2xf32>
    %70 = vector.shape_cast %69 : vector<2x1x2xf32> to vector<2x2xf32>
    %71 = vector.shape_cast %68 : vector<2x2xf32> to vector<2x1x2xf32>
    tpu.vector_store %arg13[%c0_31, %c3_32, %c0_33], %71 {strides = array<i32>} : memref<2x4x12xf32, #tpu.memory_space<vmem>>, vector<2x1x2xf32>,
    %72 = vector.extract_strided_slice %9 {offsets = [0, 7], sizes = [2, 1], strides = [1, 1]} : vector<2x8xf32> to vector<2x1xf32>
    %73 = vector.shape_cast %72 : vector<2x1xf32> to vector<2x1xf32>
    %74 = vector.broadcast %73 : vector<2x1xf32> to vector<2x2xf32>
    %c0_34 = arith.constant 0 : index
    %c3_35 = arith.constant 3 : index
    %c10_36 = arith.constant 10 : index
    %75 = vector.load %arg13[%c0_34, %c3_35, %c10_36] : memref<2x4x12xf32, #tpu.memory_space<vmem>>, vector<2x1x2xf32>
    %76 = vector.shape_cast %75 : vector<2x1x2xf32> to vector<2x2xf32>
    %77 = vector.shape_cast %74 : vector<2x2xf32> to vector<2x1x2xf32>
    tpu.vector_store %arg13[%c0_34, %c3_35, %c10_36], %77 {strides = array<i32>} : memref<2x4x12xf32, #tpu.memory_space<vmem>>, vector<2x1x2xf32>,
    %c0_37 = arith.constant 0 : index
    %c0_38 = arith.constant 0 : index
    %c0_39 = arith.constant 0 : index
    %78 = vector.load %arg13[%c0_37, %c0_38, %c0_39] : memref<2x4x12xf32, #tpu.memory_space<vmem>>, vector<2x1x10xf32>
    %79 = vector.shape_cast %78 : vector<2x1x10xf32> to vector<2x10xf32>
    %c0_40 = arith.constant 0 : index
    %c0_41 = arith.constant 0 : index
    %c1_42 = arith.constant 1 : index
    %80 = vector.load %arg13[%c0_40, %c0_41, %c1_42] : memref<2x4x12xf32, #tpu.memory_space<vmem>>, vector<2x1x10xf32>
    %81 = vector.shape_cast %80 : vector<2x1x10xf32> to vector<2x10xf32>
    %c0_43 = arith.constant 0 : index
    %c0_44 = arith.constant 0 : index
    %c2_45 = arith.constant 2 : index
    %82 = vector.load %arg13[%c0_43, %c0_44, %c2_45] : memref<2x4x12xf32, #tpu.memory_space<vmem>>, vector<2x1x10xf32>
    %83 = vector.shape_cast %82 : vector<2x1x10xf32> to vector<2x10xf32>
    %c0_46 = arith.constant 0 : index
    %c1_47 = arith.constant 1 : index
    %c0_48 = arith.constant 0 : index
    %84 = vector.load %arg13[%c0_46, %c1_47, %c0_48] : memref<2x4x12xf32, #tpu.memory_space<vmem>>, vector<2x1x10xf32>
    %85 = vector.shape_cast %84 : vector<2x1x10xf32> to vector<2x10xf32>
    %c0_49 = arith.constant 0 : index
    %c1_50 = arith.constant 1 : index
    %c1_51 = arith.constant 1 : index
    %86 = vector.load %arg13[%c0_49, %c1_50, %c1_51] : memref<2x4x12xf32, #tpu.memory_space<vmem>>, vector<2x1x10xf32>
    %87 = vector.shape_cast %86 : vector<2x1x10xf32> to vector<2x10xf32>
    %c0_52 = arith.constant 0 : index
    %c1_53 = arith.constant 1 : index
    %c2_54 = arith.constant 2 : index
    %88 = vector.load %arg13[%c0_52, %c1_53, %c2_54] : memref<2x4x12xf32, #tpu.memory_space<vmem>>, vector<2x1x10xf32>
    %89 = vector.shape_cast %88 : vector<2x1x10xf32> to vector<2x10xf32>
    %c0_55 = arith.constant 0 : index
    %c2_56 = arith.constant 2 : index
    %c0_57 = arith.constant 0 : index
    %90 = vector.load %arg13[%c0_55, %c2_56, %c0_57] : memref<2x4x12xf32, #tpu.memory_space<vmem>>, vector<2x1x10xf32>
    %91 = vector.shape_cast %90 : vector<2x1x10xf32> to vector<2x10xf32>
    %c0_58 = arith.constant 0 : index
    %c2_59 = arith.constant 2 : index
    %c1_60 = arith.constant 1 : index
    %92 = vector.load %arg13[%c0_58, %c2_59, %c1_60] : memref<2x4x12xf32, #tpu.memory_space<vmem>>, vector<2x1x10xf32>
    %93 = vector.shape_cast %92 : vector<2x1x10xf32> to vector<2x10xf32>
    %c0_61 = arith.constant 0 : index
    %c2_62 = arith.constant 2 : index
    %c2_63 = arith.constant 2 : index
    %94 = vector.load %arg13[%c0_61, %c2_62, %c2_63] : memref<2x4x12xf32, #tpu.memory_space<vmem>>, vector<2x1x10xf32>
    %95 = vector.shape_cast %94 : vector<2x1x10xf32> to vector<2x10xf32>
    %c0_64 = arith.constant 0 : index
    %c3_65 = arith.constant 3 : index
    %c0_66 = arith.constant 0 : index
    %96 = vector.load %arg13[%c0_64, %c3_65, %c0_66] : memref<2x4x12xf32, #tpu.memory_space<vmem>>, vector<2x1x10xf32>
    %97 = vector.shape_cast %96 : vector<2x1x10xf32> to vector<2x10xf32>
    %c0_67 = arith.constant 0 : index
    %c3_68 = arith.constant 3 : index
    %c1_69 = arith.constant 1 : index
    %98 = vector.load %arg13[%c0_67, %c3_68, %c1_69] : memref<2x4x12xf32, #tpu.memory_space<vmem>>, vector<2x1x10xf32>
    %99 = vector.shape_cast %98 : vector<2x1x10xf32> to vector<2x10xf32>
    %c0_70 = arith.constant 0 : index
    %c3_71 = arith.constant 3 : index
    %c2_72 = arith.constant 2 : index
    %100 = vector.load %arg13[%c0_70, %c3_71, %c2_72] : memref<2x4x12xf32, #tpu.memory_space<vmem>>, vector<2x1x10xf32>
    %101 = vector.shape_cast %100 : vector<2x1x10xf32> to vector<2x10xf32>
    %cst = arith.constant 0.000000e+00 : f32
    %102 = vector.broadcast %cst : f32 to vector<2x10xf32>
    %c0_73 = arith.constant 0 : index
    %103 = memref.load %arg3[%c0_73] : memref<96xf32, #tpu.memory_space<smem>>
    %104 = vector.broadcast %103 : f32 to vector<2x10xf32>
    %105 = arith.mulf %104, %79 : vector<2x10xf32>
    %106 = arith.addf %102, %105 : vector<2x10xf32>
    %c1_74 = arith.constant 1 : index
    %107 = memref.load %arg3[%c1_74] : memref<96xf32, #tpu.memory_space<smem>>
    %108 = vector.broadcast %107 : f32 to vector<2x10xf32>
    %109 = arith.mulf %108, %81 : vector<2x10xf32>
    %110 = arith.addf %106, %109 : vector<2x10xf32>
    %c2_75 = arith.constant 2 : index
    %111 = memref.load %arg3[%c2_75] : memref<96xf32, #tpu.memory_space<smem>>
    %112 = vector.broadcast %111 : f32 to vector<2x10xf32>
    %113 = arith.mulf %112, %83 : vector<2x10xf32>
    %114 = arith.addf %110, %113 : vector<2x10xf32>
    %c3_76 = arith.constant 3 : index
    %115 = memref.load %arg3[%c3_76] : memref<96xf32, #tpu.memory_space<smem>>
    %116 = vector.broadcast %115 : f32 to vector<2x10xf32>
    %117 = arith.mulf %116, %85 : vector<2x10xf32>
    %118 = arith.addf %114, %117 : vector<2x10xf32>
    %c4 = arith.constant 4 : index
    %119 = memref.load %arg3[%c4] : memref<96xf32, #tpu.memory_space<smem>>
    %120 = vector.broadcast %119 : f32 to vector<2x10xf32>
    %121 = arith.mulf %120, %87 : vector<2x10xf32>
    %122 = arith.addf %118, %121 : vector<2x10xf32>
    %c5 = arith.constant 5 : index
    %123 = memref.load %arg3[%c5] : memref<96xf32, #tpu.memory_space<smem>>
    %124 = vector.broadcast %123 : f32 to vector<2x10xf32>
    %125 = arith.mulf %124, %89 : vector<2x10xf32>
    %126 = arith.addf %122, %125 : vector<2x10xf32>
    %c6 = arith.constant 6 : index
    %127 = memref.load %arg3[%c6] : memref<96xf32, #tpu.memory_space<smem>>
    %128 = vector.broadcast %127 : f32 to vector<2x10xf32>
    %129 = arith.mulf %128, %91 : vector<2x10xf32>
    %130 = arith.addf %126, %129 : vector<2x10xf32>
    %c7 = arith.constant 7 : index
    %131 = memref.load %arg3[%c7] : memref<96xf32, #tpu.memory_space<smem>>
    %132 = vector.broadcast %131 : f32 to vector<2x10xf32>
    %133 = arith.mulf %132, %93 : vector<2x10xf32>
    %134 = arith.addf %130, %133 : vector<2x10xf32>
    %c8 = arith.constant 8 : index
    %135 = memref.load %arg3[%c8] : memref<96xf32, #tpu.memory_space<smem>>
    %136 = vector.broadcast %135 : f32 to vector<2x10xf32>
    %137 = arith.mulf %136, %95 : vector<2x10xf32>
    %138 = arith.addf %134, %137 : vector<2x10xf32>
    %c9 = arith.constant 9 : index
    %139 = memref.load %arg3[%c9] : memref<96xf32, #tpu.memory_space<smem>>
    %140 = vector.broadcast %139 : f32 to vector<2x10xf32>
    %141 = arith.mulf %140, %97 : vector<2x10xf32>
    %142 = arith.addf %138, %141 : vector<2x10xf32>
    %c10_77 = arith.constant 10 : index
    %143 = memref.load %arg3[%c10_77] : memref<96xf32, #tpu.memory_space<smem>>
    %144 = vector.broadcast %143 : f32 to vector<2x10xf32>
    %145 = arith.mulf %144, %99 : vector<2x10xf32>
    %146 = arith.addf %142, %145 : vector<2x10xf32>
    %c11 = arith.constant 11 : index
    %147 = memref.load %arg3[%c11] : memref<96xf32, #tpu.memory_space<smem>>
    %148 = vector.broadcast %147 : f32 to vector<2x10xf32>
    %149 = arith.mulf %148, %101 : vector<2x10xf32>
    %150 = arith.addf %146, %149 : vector<2x10xf32>
    %c0_78 = arith.constant 0 : index
    %151 = memref.load %arg4[%c0_78] : memref<8xf32, #tpu.memory_space<smem>>
    %152 = vector.broadcast %151 : f32 to vector<2x10xf32>
    %153 = arith.addf %150, %152 : vector<2x10xf32>
    %cst_79 = arith.constant 0.000000e+00 : f32
    %154 = vector.broadcast %cst_79 : f32 to vector<2x10xf32>
    %155 = arith.cmpf ogt, %153, %154 : vector<2x10xf32>
    %cst_80 = arith.constant 0.00999999977 : f32
    %156 = vector.broadcast %cst_80 : f32 to vector<2x10xf32>
    %157 = arith.mulf %156, %153 : vector<2x10xf32>
    %158 = arith.select %155, %153, %157 : vector<2x10xi1>, vector<2x10xf32>
    %cst_81 = arith.constant 0.000000e+00 : f32
    %159 = vector.broadcast %cst_81 : f32 to vector<2x10xf32>
    %c12 = arith.constant 12 : index
    %160 = memref.load %arg3[%c12] : memref<96xf32, #tpu.memory_space<smem>>
    %161 = vector.broadcast %160 : f32 to vector<2x10xf32>
    %162 = arith.mulf %161, %79 : vector<2x10xf32>
    %163 = arith.addf %159, %162 : vector<2x10xf32>
    %c13 = arith.constant 13 : index
    %164 = memref.load %arg3[%c13] : memref<96xf32, #tpu.memory_space<smem>>
    %165 = vector.broadcast %164 : f32 to vector<2x10xf32>
    %166 = arith.mulf %165, %81 : vector<2x10xf32>
    %167 = arith.addf %163, %166 : vector<2x10xf32>
    %c14 = arith.constant 14 : index
    %168 = memref.load %arg3[%c14] : memref<96xf32, #tpu.memory_space<smem>>
    %169 = vector.broadcast %168 : f32 to vector<2x10xf32>
    %170 = arith.mulf %169, %83 : vector<2x10xf32>
    %171 = arith.addf %167, %170 : vector<2x10xf32>
    %c15 = arith.constant 15 : index
    %172 = memref.load %arg3[%c15] : memref<96xf32, #tpu.memory_space<smem>>
    %173 = vector.broadcast %172 : f32 to vector<2x10xf32>
    %174 = arith.mulf %173, %85 : vector<2x10xf32>
    %175 = arith.addf %171, %174 : vector<2x10xf32>
    %c16 = arith.constant 16 : index
    %176 = memref.load %arg3[%c16] : memref<96xf32, #tpu.memory_space<smem>>
    %177 = vector.broadcast %176 : f32 to vector<2x10xf32>
    %178 = arith.mulf %177, %87 : vector<2x10xf32>
    %179 = arith.addf %175, %178 : vector<2x10xf32>
    %c17 = arith.constant 17 : index
    %180 = memref.load %arg3[%c17] : memref<96xf32, #tpu.memory_space<smem>>
    %181 = vector.broadcast %180 : f32 to vector<2x10xf32>
    %182 = arith.mulf %181, %89 : vector<2x10xf32>
    %183 = arith.addf %179, %182 : vector<2x10xf32>
    %c18 = arith.constant 18 : index
    %184 = memref.load %arg3[%c18] : memref<96xf32, #tpu.memory_space<smem>>
    %185 = vector.broadcast %184 : f32 to vector<2x10xf32>
    %186 = arith.mulf %185, %91 : vector<2x10xf32>
    %187 = arith.addf %183, %186 : vector<2x10xf32>
    %c19 = arith.constant 19 : index
    %188 = memref.load %arg3[%c19] : memref<96xf32, #tpu.memory_space<smem>>
    %189 = vector.broadcast %188 : f32 to vector<2x10xf32>
    %190 = arith.mulf %189, %93 : vector<2x10xf32>
    %191 = arith.addf %187, %190 : vector<2x10xf32>
    %c20 = arith.constant 20 : index
    %192 = memref.load %arg3[%c20] : memref<96xf32, #tpu.memory_space<smem>>
    %193 = vector.broadcast %192 : f32 to vector<2x10xf32>
    %194 = arith.mulf %193, %95 : vector<2x10xf32>
    %195 = arith.addf %191, %194 : vector<2x10xf32>
    %c21 = arith.constant 21 : index
    %196 = memref.load %arg3[%c21] : memref<96xf32, #tpu.memory_space<smem>>
    %197 = vector.broadcast %196 : f32 to vector<2x10xf32>
    %198 = arith.mulf %197, %97 : vector<2x10xf32>
    %199 = arith.addf %195, %198 : vector<2x10xf32>
    %c22 = arith.constant 22 : index
    %200 = memref.load %arg3[%c22] : memref<96xf32, #tpu.memory_space<smem>>
    %201 = vector.broadcast %200 : f32 to vector<2x10xf32>
    %202 = arith.mulf %201, %99 : vector<2x10xf32>
    %203 = arith.addf %199, %202 : vector<2x10xf32>
    %c23 = arith.constant 23 : index
    %204 = memref.load %arg3[%c23] : memref<96xf32, #tpu.memory_space<smem>>
    %205 = vector.broadcast %204 : f32 to vector<2x10xf32>
    %206 = arith.mulf %205, %101 : vector<2x10xf32>
    %207 = arith.addf %203, %206 : vector<2x10xf32>
    %c1_82 = arith.constant 1 : index
    %208 = memref.load %arg4[%c1_82] : memref<8xf32, #tpu.memory_space<smem>>
    %209 = vector.broadcast %208 : f32 to vector<2x10xf32>
    %210 = arith.addf %207, %209 : vector<2x10xf32>
    %cst_83 = arith.constant 0.000000e+00 : f32
    %211 = vector.broadcast %cst_83 : f32 to vector<2x10xf32>
    %212 = arith.cmpf ogt, %210, %211 : vector<2x10xf32>
    %cst_84 = arith.constant 0.00999999977 : f32
    %213 = vector.broadcast %cst_84 : f32 to vector<2x10xf32>
    %214 = arith.mulf %213, %210 : vector<2x10xf32>
    %215 = arith.select %212, %210, %214 : vector<2x10xi1>, vector<2x10xf32>
    %cst_85 = arith.constant 0.000000e+00 : f32
    %216 = vector.broadcast %cst_85 : f32 to vector<2x10xf32>
    %c24 = arith.constant 24 : index
    %217 = memref.load %arg3[%c24] : memref<96xf32, #tpu.memory_space<smem>>
    %218 = vector.broadcast %217 : f32 to vector<2x10xf32>
    %219 = arith.mulf %218, %79 : vector<2x10xf32>
    %220 = arith.addf %216, %219 : vector<2x10xf32>
    %c25 = arith.constant 25 : index
    %221 = memref.load %arg3[%c25] : memref<96xf32, #tpu.memory_space<smem>>
    %222 = vector.broadcast %221 : f32 to vector<2x10xf32>
    %223 = arith.mulf %222, %81 : vector<2x10xf32>
    %224 = arith.addf %220, %223 : vector<2x10xf32>
    %c26 = arith.constant 26 : index
    %225 = memref.load %arg3[%c26] : memref<96xf32, #tpu.memory_space<smem>>
    %226 = vector.broadcast %225 : f32 to vector<2x10xf32>
    %227 = arith.mulf %226, %83 : vector<2x10xf32>
    %228 = arith.addf %224, %227 : vector<2x10xf32>
    %c27 = arith.constant 27 : index
    %229 = memref.load %arg3[%c27] : memref<96xf32, #tpu.memory_space<smem>>
    %230 = vector.broadcast %229 : f32 to vector<2x10xf32>
    %231 = arith.mulf %230, %85 : vector<2x10xf32>
    %232 = arith.addf %228, %231 : vector<2x10xf32>
    %c28 = arith.constant 28 : index
    %233 = memref.load %arg3[%c28] : memref<96xf32, #tpu.memory_space<smem>>
    %234 = vector.broadcast %233 : f32 to vector<2x10xf32>
    %235 = arith.mulf %234, %87 : vector<2x10xf32>
    %236 = arith.addf %232, %235 : vector<2x10xf32>
    %c29 = arith.constant 29 : index
    %237 = memref.load %arg3[%c29] : memref<96xf32, #tpu.memory_space<smem>>
    %238 = vector.broadcast %237 : f32 to vector<2x10xf32>
    %239 = arith.mulf %238, %89 : vector<2x10xf32>
    %240 = arith.addf %236, %239 : vector<2x10xf32>
    %c30 = arith.constant 30 : index
    %241 = memref.load %arg3[%c30] : memref<96xf32, #tpu.memory_space<smem>>
    %242 = vector.broadcast %241 : f32 to vector<2x10xf32>
    %243 = arith.mulf %242, %91 : vector<2x10xf32>
    %244 = arith.addf %240, %243 : vector<2x10xf32>
    %c31 = arith.constant 31 : index
    %245 = memref.load %arg3[%c31] : memref<96xf32, #tpu.memory_space<smem>>
    %246 = vector.broadcast %245 : f32 to vector<2x10xf32>
    %247 = arith.mulf %246, %93 : vector<2x10xf32>
    %248 = arith.addf %244, %247 : vector<2x10xf32>
    %c32 = arith.constant 32 : index
    %249 = memref.load %arg3[%c32] : memref<96xf32, #tpu.memory_space<smem>>
    %250 = vector.broadcast %249 : f32 to vector<2x10xf32>
    %251 = arith.mulf %250, %95 : vector<2x10xf32>
    %252 = arith.addf %248, %251 : vector<2x10xf32>
    %c33 = arith.constant 33 : index
    %253 = memref.load %arg3[%c33] : memref<96xf32, #tpu.memory_space<smem>>
    %254 = vector.broadcast %253 : f32 to vector<2x10xf32>
    %255 = arith.mulf %254, %97 : vector<2x10xf32>
    %256 = arith.addf %252, %255 : vector<2x10xf32>
    %c34 = arith.constant 34 : index
    %257 = memref.load %arg3[%c34] : memref<96xf32, #tpu.memory_space<smem>>
    %258 = vector.broadcast %257 : f32 to vector<2x10xf32>
    %259 = arith.mulf %258, %99 : vector<2x10xf32>
    %260 = arith.addf %256, %259 : vector<2x10xf32>
    %c35 = arith.constant 35 : index
    %261 = memref.load %arg3[%c35] : memref<96xf32, #tpu.memory_space<smem>>
    %262 = vector.broadcast %261 : f32 to vector<2x10xf32>
    %263 = arith.mulf %262, %101 : vector<2x10xf32>
    %264 = arith.addf %260, %263 : vector<2x10xf32>
    %c2_86 = arith.constant 2 : index
    %265 = memref.load %arg4[%c2_86] : memref<8xf32, #tpu.memory_space<smem>>
    %266 = vector.broadcast %265 : f32 to vector<2x10xf32>
    %267 = arith.addf %264, %266 : vector<2x10xf32>
    %cst_87 = arith.constant 0.000000e+00 : f32
    %268 = vector.broadcast %cst_87 : f32 to vector<2x10xf32>
    %269 = arith.cmpf ogt, %267, %268 : vector<2x10xf32>
    %cst_88 = arith.constant 0.00999999977 : f32
    %270 = vector.broadcast %cst_88 : f32 to vector<2x10xf32>
    %271 = arith.mulf %270, %267 : vector<2x10xf32>
    %272 = arith.select %269, %267, %271 : vector<2x10xi1>, vector<2x10xf32>
    %cst_89 = arith.constant 0.000000e+00 : f32
    %273 = vector.broadcast %cst_89 : f32 to vector<2x10xf32>
    %c36 = arith.constant 36 : index
    %274 = memref.load %arg3[%c36] : memref<96xf32, #tpu.memory_space<smem>>
    %275 = vector.broadcast %274 : f32 to vector<2x10xf32>
    %276 = arith.mulf %275, %79 : vector<2x10xf32>
    %277 = arith.addf %273, %276 : vector<2x10xf32>
    %c37 = arith.constant 37 : index
    %278 = memref.load %arg3[%c37] : memref<96xf32, #tpu.memory_space<smem>>
    %279 = vector.broadcast %278 : f32 to vector<2x10xf32>
    %280 = arith.mulf %279, %81 : vector<2x10xf32>
    %281 = arith.addf %277, %280 : vector<2x10xf32>
    %c38 = arith.constant 38 : index
    %282 = memref.load %arg3[%c38] : memref<96xf32, #tpu.memory_space<smem>>
    %283 = vector.broadcast %282 : f32 to vector<2x10xf32>
    %284 = arith.mulf %283, %83 : vector<2x10xf32>
    %285 = arith.addf %281, %284 : vector<2x10xf32>
    %c39 = arith.constant 39 : index
    %286 = memref.load %arg3[%c39] : memref<96xf32, #tpu.memory_space<smem>>
    %287 = vector.broadcast %286 : f32 to vector<2x10xf32>
    %288 = arith.mulf %287, %85 : vector<2x10xf32>
    %289 = arith.addf %285, %288 : vector<2x10xf32>
    %c40 = arith.constant 40 : index
    %290 = memref.load %arg3[%c40] : memref<96xf32, #tpu.memory_space<smem>>
    %291 = vector.broadcast %290 : f32 to vector<2x10xf32>
    %292 = arith.mulf %291, %87 : vector<2x10xf32>
    %293 = arith.addf %289, %292 : vector<2x10xf32>
    %c41 = arith.constant 41 : index
    %294 = memref.load %arg3[%c41] : memref<96xf32, #tpu.memory_space<smem>>
    %295 = vector.broadcast %294 : f32 to vector<2x10xf32>
    %296 = arith.mulf %295, %89 : vector<2x10xf32>
    %297 = arith.addf %293, %296 : vector<2x10xf32>
    %c42 = arith.constant 42 : index
    %298 = memref.load %arg3[%c42] : memref<96xf32, #tpu.memory_space<smem>>
    %299 = vector.broadcast %298 : f32 to vector<2x10xf32>
    %300 = arith.mulf %299, %91 : vector<2x10xf32>
    %301 = arith.addf %297, %300 : vector<2x10xf32>
    %c43 = arith.constant 43 : index
    %302 = memref.load %arg3[%c43] : memref<96xf32, #tpu.memory_space<smem>>
    %303 = vector.broadcast %302 : f32 to vector<2x10xf32>
    %304 = arith.mulf %303, %93 : vector<2x10xf32>
    %305 = arith.addf %301, %304 : vector<2x10xf32>
    %c44 = arith.constant 44 : index
    %306 = memref.load %arg3[%c44] : memref<96xf32, #tpu.memory_space<smem>>
    %307 = vector.broadcast %306 : f32 to vector<2x10xf32>
    %308 = arith.mulf %307, %95 : vector<2x10xf32>
    %309 = arith.addf %305, %308 : vector<2x10xf32>
    %c45 = arith.constant 45 : index
    %310 = memref.load %arg3[%c45] : memref<96xf32, #tpu.memory_space<smem>>
    %311 = vector.broadcast %310 : f32 to vector<2x10xf32>
    %312 = arith.mulf %311, %97 : vector<2x10xf32>
    %313 = arith.addf %309, %312 : vector<2x10xf32>
    %c46 = arith.constant 46 : index
    %314 = memref.load %arg3[%c46] : memref<96xf32, #tpu.memory_space<smem>>
    %315 = vector.broadcast %314 : f32 to vector<2x10xf32>
    %316 = arith.mulf %315, %99 : vector<2x10xf32>
    %317 = arith.addf %313, %316 : vector<2x10xf32>
    %c47 = arith.constant 47 : index
    %318 = memref.load %arg3[%c47] : memref<96xf32, #tpu.memory_space<smem>>
    %319 = vector.broadcast %318 : f32 to vector<2x10xf32>
    %320 = arith.mulf %319, %101 : vector<2x10xf32>
    %321 = arith.addf %317, %320 : vector<2x10xf32>
    %c3_90 = arith.constant 3 : index
    %322 = memref.load %arg4[%c3_90] : memref<8xf32, #tpu.memory_space<smem>>
    %323 = vector.broadcast %322 : f32 to vector<2x10xf32>
    %324 = arith.addf %321, %323 : vector<2x10xf32>
    %cst_91 = arith.constant 0.000000e+00 : f32
    %325 = vector.broadcast %cst_91 : f32 to vector<2x10xf32>
    %326 = arith.cmpf ogt, %324, %325 : vector<2x10xf32>
    %cst_92 = arith.constant 0.00999999977 : f32
    %327 = vector.broadcast %cst_92 : f32 to vector<2x10xf32>
    %328 = arith.mulf %327, %324 : vector<2x10xf32>
    %329 = arith.select %326, %324, %328 : vector<2x10xi1>, vector<2x10xf32>
    %cst_93 = arith.constant 0.000000e+00 : f32
    %330 = vector.broadcast %cst_93 : f32 to vector<2x10xf32>
    %c48 = arith.constant 48 : index
    %331 = memref.load %arg3[%c48] : memref<96xf32, #tpu.memory_space<smem>>
    %332 = vector.broadcast %331 : f32 to vector<2x10xf32>
    %333 = arith.mulf %332, %79 : vector<2x10xf32>
    %334 = arith.addf %330, %333 : vector<2x10xf32>
    %c49 = arith.constant 49 : index
    %335 = memref.load %arg3[%c49] : memref<96xf32, #tpu.memory_space<smem>>
    %336 = vector.broadcast %335 : f32 to vector<2x10xf32>
    %337 = arith.mulf %336, %81 : vector<2x10xf32>
    %338 = arith.addf %334, %337 : vector<2x10xf32>
    %c50 = arith.constant 50 : index
    %339 = memref.load %arg3[%c50] : memref<96xf32, #tpu.memory_space<smem>>
    %340 = vector.broadcast %339 : f32 to vector<2x10xf32>
    %341 = arith.mulf %340, %83 : vector<2x10xf32>
    %342 = arith.addf %338, %341 : vector<2x10xf32>
    %c51 = arith.constant 51 : index
    %343 = memref.load %arg3[%c51] : memref<96xf32, #tpu.memory_space<smem>>
    %344 = vector.broadcast %343 : f32 to vector<2x10xf32>
    %345 = arith.mulf %344, %85 : vector<2x10xf32>
    %346 = arith.addf %342, %345 : vector<2x10xf32>
    %c52 = arith.constant 52 : index
    %347 = memref.load %arg3[%c52] : memref<96xf32, #tpu.memory_space<smem>>
    %348 = vector.broadcast %347 : f32 to vector<2x10xf32>
    %349 = arith.mulf %348, %87 : vector<2x10xf32>
    %350 = arith.addf %346, %349 : vector<2x10xf32>
    %c53 = arith.constant 53 : index
    %351 = memref.load %arg3[%c53] : memref<96xf32, #tpu.memory_space<smem>>
    %352 = vector.broadcast %351 : f32 to vector<2x10xf32>
    %353 = arith.mulf %352, %89 : vector<2x10xf32>
    %354 = arith.addf %350, %353 : vector<2x10xf32>
    %c54 = arith.constant 54 : index
    %355 = memref.load %arg3[%c54] : memref<96xf32, #tpu.memory_space<smem>>
    %356 = vector.broadcast %355 : f32 to vector<2x10xf32>
    %357 = arith.mulf %356, %91 : vector<2x10xf32>
    %358 = arith.addf %354, %357 : vector<2x10xf32>
    %c55 = arith.constant 55 : index
    %359 = memref.load %arg3[%c55] : memref<96xf32, #tpu.memory_space<smem>>
    %360 = vector.broadcast %359 : f32 to vector<2x10xf32>
    %361 = arith.mulf %360, %93 : vector<2x10xf32>
    %362 = arith.addf %358, %361 : vector<2x10xf32>
    %c56 = arith.constant 56 : index
    %363 = memref.load %arg3[%c56] : memref<96xf32, #tpu.memory_space<smem>>
    %364 = vector.broadcast %363 : f32 to vector<2x10xf32>
    %365 = arith.mulf %364, %95 : vector<2x10xf32>
    %366 = arith.addf %362, %365 : vector<2x10xf32>
    %c57 = arith.constant 57 : index
    %367 = memref.load %arg3[%c57] : memref<96xf32, #tpu.memory_space<smem>>
    %368 = vector.broadcast %367 : f32 to vector<2x10xf32>
    %369 = arith.mulf %368, %97 : vector<2x10xf32>
    %370 = arith.addf %366, %369 : vector<2x10xf32>
    %c58 = arith.constant 58 : index
    %371 = memref.load %arg3[%c58] : memref<96xf32, #tpu.memory_space<smem>>
    %372 = vector.broadcast %371 : f32 to vector<2x10xf32>
    %373 = arith.mulf %372, %99 : vector<2x10xf32>
    %374 = arith.addf %370, %373 : vector<2x10xf32>
    %c59 = arith.constant 59 : index
    %375 = memref.load %arg3[%c59] : memref<96xf32, #tpu.memory_space<smem>>
    %376 = vector.broadcast %375 : f32 to vector<2x10xf32>
    %377 = arith.mulf %376, %101 : vector<2x10xf32>
    %378 = arith.addf %374, %377 : vector<2x10xf32>
    %c4_94 = arith.constant 4 : index
    %379 = memref.load %arg4[%c4_94] : memref<8xf32, #tpu.memory_space<smem>>
    %380 = vector.broadcast %379 : f32 to vector<2x10xf32>
    %381 = arith.addf %378, %380 : vector<2x10xf32>
    %cst_95 = arith.constant 0.000000e+00 : f32
    %382 = vector.broadcast %cst_95 : f32 to vector<2x10xf32>
    %383 = arith.cmpf ogt, %381, %382 : vector<2x10xf32>
    %cst_96 = arith.constant 0.00999999977 : f32
    %384 = vector.broadcast %cst_96 : f32 to vector<2x10xf32>
    %385 = arith.mulf %384, %381 : vector<2x10xf32>
    %386 = arith.select %383, %381, %385 : vector<2x10xi1>, vector<2x10xf32>
    %cst_97 = arith.constant 0.000000e+00 : f32
    %387 = vector.broadcast %cst_97 : f32 to vector<2x10xf32>
    %c60 = arith.constant 60 : index
    %388 = memref.load %arg3[%c60] : memref<96xf32, #tpu.memory_space<smem>>
    %389 = vector.broadcast %388 : f32 to vector<2x10xf32>
    %390 = arith.mulf %389, %79 : vector<2x10xf32>
    %391 = arith.addf %387, %390 : vector<2x10xf32>
    %c61 = arith.constant 61 : index
    %392 = memref.load %arg3[%c61] : memref<96xf32, #tpu.memory_space<smem>>
    %393 = vector.broadcast %392 : f32 to vector<2x10xf32>
    %394 = arith.mulf %393, %81 : vector<2x10xf32>
    %395 = arith.addf %391, %394 : vector<2x10xf32>
    %c62 = arith.constant 62 : index
    %396 = memref.load %arg3[%c62] : memref<96xf32, #tpu.memory_space<smem>>
    %397 = vector.broadcast %396 : f32 to vector<2x10xf32>
    %398 = arith.mulf %397, %83 : vector<2x10xf32>
    %399 = arith.addf %395, %398 : vector<2x10xf32>
    %c63 = arith.constant 63 : index
    %400 = memref.load %arg3[%c63] : memref<96xf32, #tpu.memory_space<smem>>
    %401 = vector.broadcast %400 : f32 to vector<2x10xf32>
    %402 = arith.mulf %401, %85 : vector<2x10xf32>
    %403 = arith.addf %399, %402 : vector<2x10xf32>
    %c64 = arith.constant 64 : index
    %404 = memref.load %arg3[%c64] : memref<96xf32, #tpu.memory_space<smem>>
    %405 = vector.broadcast %404 : f32 to vector<2x10xf32>
    %406 = arith.mulf %405, %87 : vector<2x10xf32>
    %407 = arith.addf %403, %406 : vector<2x10xf32>
    %c65 = arith.constant 65 : index
    %408 = memref.load %arg3[%c65] : memref<96xf32, #tpu.memory_space<smem>>
    %409 = vector.broadcast %408 : f32 to vector<2x10xf32>
    %410 = arith.mulf %409, %89 : vector<2x10xf32>
    %411 = arith.addf %407, %410 : vector<2x10xf32>
    %c66 = arith.constant 66 : index
    %412 = memref.load %arg3[%c66] : memref<96xf32, #tpu.memory_space<smem>>
    %413 = vector.broadcast %412 : f32 to vector<2x10xf32>
    %414 = arith.mulf %413, %91 : vector<2x10xf32>
    %415 = arith.addf %411, %414 : vector<2x10xf32>
    %c67 = arith.constant 67 : index
    %416 = memref.load %arg3[%c67] : memref<96xf32, #tpu.memory_space<smem>>
    %417 = vector.broadcast %416 : f32 to vector<2x10xf32>
    %418 = arith.mulf %417, %93 : vector<2x10xf32>
    %419 = arith.addf %415, %418 : vector<2x10xf32>
    %c68 = arith.constant 68 : index
    %420 = memref.load %arg3[%c68] : memref<96xf32, #tpu.memory_space<smem>>
    %421 = vector.broadcast %420 : f32 to vector<2x10xf32>
    %422 = arith.mulf %421, %95 : vector<2x10xf32>
    %423 = arith.addf %419, %422 : vector<2x10xf32>
    %c69 = arith.constant 69 : index
    %424 = memref.load %arg3[%c69] : memref<96xf32, #tpu.memory_space<smem>>
    %425 = vector.broadcast %424 : f32 to vector<2x10xf32>
    %426 = arith.mulf %425, %97 : vector<2x10xf32>
    %427 = arith.addf %423, %426 : vector<2x10xf32>
    %c70 = arith.constant 70 : index
    %428 = memref.load %arg3[%c70] : memref<96xf32, #tpu.memory_space<smem>>
    %429 = vector.broadcast %428 : f32 to vector<2x10xf32>
    %430 = arith.mulf %429, %99 : vector<2x10xf32>
    %431 = arith.addf %427, %430 : vector<2x10xf32>
    %c71 = arith.constant 71 : index
    %432 = memref.load %arg3[%c71] : memref<96xf32, #tpu.memory_space<smem>>
    %433 = vector.broadcast %432 : f32 to vector<2x10xf32>
    %434 = arith.mulf %433, %101 : vector<2x10xf32>
    %435 = arith.addf %431, %434 : vector<2x10xf32>
    %c5_98 = arith.constant 5 : index
    %436 = memref.load %arg4[%c5_98] : memref<8xf32, #tpu.memory_space<smem>>
    %437 = vector.broadcast %436 : f32 to vector<2x10xf32>
    %438 = arith.addf %435, %437 : vector<2x10xf32>
    %cst_99 = arith.constant 0.000000e+00 : f32
    %439 = vector.broadcast %cst_99 : f32 to vector<2x10xf32>
    %440 = arith.cmpf ogt, %438, %439 : vector<2x10xf32>
    %cst_100 = arith.constant 0.00999999977 : f32
    %441 = vector.broadcast %cst_100 : f32 to vector<2x10xf32>
    %442 = arith.mulf %441, %438 : vector<2x10xf32>
    %443 = arith.select %440, %438, %442 : vector<2x10xi1>, vector<2x10xf32>
    %cst_101 = arith.constant 0.000000e+00 : f32
    %444 = vector.broadcast %cst_101 : f32 to vector<2x10xf32>
    %c72 = arith.constant 72 : index
    %445 = memref.load %arg3[%c72] : memref<96xf32, #tpu.memory_space<smem>>
    %446 = vector.broadcast %445 : f32 to vector<2x10xf32>
    %447 = arith.mulf %446, %79 : vector<2x10xf32>
    %448 = arith.addf %444, %447 : vector<2x10xf32>
    %c73 = arith.constant 73 : index
    %449 = memref.load %arg3[%c73] : memref<96xf32, #tpu.memory_space<smem>>
    %450 = vector.broadcast %449 : f32 to vector<2x10xf32>
    %451 = arith.mulf %450, %81 : vector<2x10xf32>
    %452 = arith.addf %448, %451 : vector<2x10xf32>
    %c74 = arith.constant 74 : index
    %453 = memref.load %arg3[%c74] : memref<96xf32, #tpu.memory_space<smem>>
    %454 = vector.broadcast %453 : f32 to vector<2x10xf32>
    %455 = arith.mulf %454, %83 : vector<2x10xf32>
    %456 = arith.addf %452, %455 : vector<2x10xf32>
    %c75 = arith.constant 75 : index
    %457 = memref.load %arg3[%c75] : memref<96xf32, #tpu.memory_space<smem>>
    %458 = vector.broadcast %457 : f32 to vector<2x10xf32>
    %459 = arith.mulf %458, %85 : vector<2x10xf32>
    %460 = arith.addf %456, %459 : vector<2x10xf32>
    %c76 = arith.constant 76 : index
    %461 = memref.load %arg3[%c76] : memref<96xf32, #tpu.memory_space<smem>>
    %462 = vector.broadcast %461 : f32 to vector<2x10xf32>
    %463 = arith.mulf %462, %87 : vector<2x10xf32>
    %464 = arith.addf %460, %463 : vector<2x10xf32>
    %c77 = arith.constant 77 : index
    %465 = memref.load %arg3[%c77] : memref<96xf32, #tpu.memory_space<smem>>
    %466 = vector.broadcast %465 : f32 to vector<2x10xf32>
    %467 = arith.mulf %466, %89 : vector<2x10xf32>
    %468 = arith.addf %464, %467 : vector<2x10xf32>
    %c78 = arith.constant 78 : index
    %469 = memref.load %arg3[%c78] : memref<96xf32, #tpu.memory_space<smem>>
    %470 = vector.broadcast %469 : f32 to vector<2x10xf32>
    %471 = arith.mulf %470, %91 : vector<2x10xf32>
    %472 = arith.addf %468, %471 : vector<2x10xf32>
    %c79 = arith.constant 79 : index
    %473 = memref.load %arg3[%c79] : memref<96xf32, #tpu.memory_space<smem>>
    %474 = vector.broadcast %473 : f32 to vector<2x10xf32>
    %475 = arith.mulf %474, %93 : vector<2x10xf32>
    %476 = arith.addf %472, %475 : vector<2x10xf32>
    %c80 = arith.constant 80 : index
    %477 = memref.load %arg3[%c80] : memref<96xf32, #tpu.memory_space<smem>>
    %478 = vector.broadcast %477 : f32 to vector<2x10xf32>
    %479 = arith.mulf %478, %95 : vector<2x10xf32>
    %480 = arith.addf %476, %479 : vector<2x10xf32>
    %c81 = arith.constant 81 : index
    %481 = memref.load %arg3[%c81] : memref<96xf32, #tpu.memory_space<smem>>
    %482 = vector.broadcast %481 : f32 to vector<2x10xf32>
    %483 = arith.mulf %482, %97 : vector<2x10xf32>
    %484 = arith.addf %480, %483 : vector<2x10xf32>
    %c82 = arith.constant 82 : index
    %485 = memref.load %arg3[%c82] : memref<96xf32, #tpu.memory_space<smem>>
    %486 = vector.broadcast %485 : f32 to vector<2x10xf32>
    %487 = arith.mulf %486, %99 : vector<2x10xf32>
    %488 = arith.addf %484, %487 : vector<2x10xf32>
    %c83 = arith.constant 83 : index
    %489 = memref.load %arg3[%c83] : memref<96xf32, #tpu.memory_space<smem>>
    %490 = vector.broadcast %489 : f32 to vector<2x10xf32>
    %491 = arith.mulf %490, %101 : vector<2x10xf32>
    %492 = arith.addf %488, %491 : vector<2x10xf32>
    %c6_102 = arith.constant 6 : index
    %493 = memref.load %arg4[%c6_102] : memref<8xf32, #tpu.memory_space<smem>>
    %494 = vector.broadcast %493 : f32 to vector<2x10xf32>
    %495 = arith.addf %492, %494 : vector<2x10xf32>
    %cst_103 = arith.constant 0.000000e+00 : f32
    %496 = vector.broadcast %cst_103 : f32 to vector<2x10xf32>
    %497 = arith.cmpf ogt, %495, %496 : vector<2x10xf32>
    %cst_104 = arith.constant 0.00999999977 : f32
    %498 = vector.broadcast %cst_104 : f32 to vector<2x10xf32>
    %499 = arith.mulf %498, %495 : vector<2x10xf32>
    %500 = arith.select %497, %495, %499 : vector<2x10xi1>, vector<2x10xf32>
    %cst_105 = arith.constant 0.000000e+00 : f32
    %501 = vector.broadcast %cst_105 : f32 to vector<2x10xf32>
    %c84 = arith.constant 84 : index
    %502 = memref.load %arg3[%c84] : memref<96xf32, #tpu.memory_space<smem>>
    %503 = vector.broadcast %502 : f32 to vector<2x10xf32>
    %504 = arith.mulf %503, %79 : vector<2x10xf32>
    %505 = arith.addf %501, %504 : vector<2x10xf32>
    %c85 = arith.constant 85 : index
    %506 = memref.load %arg3[%c85] : memref<96xf32, #tpu.memory_space<smem>>
    %507 = vector.broadcast %506 : f32 to vector<2x10xf32>
    %508 = arith.mulf %507, %81 : vector<2x10xf32>
    %509 = arith.addf %505, %508 : vector<2x10xf32>
    %c86 = arith.constant 86 : index
    %510 = memref.load %arg3[%c86] : memref<96xf32, #tpu.memory_space<smem>>
    %511 = vector.broadcast %510 : f32 to vector<2x10xf32>
    %512 = arith.mulf %511, %83 : vector<2x10xf32>
    %513 = arith.addf %509, %512 : vector<2x10xf32>
    %c87 = arith.constant 87 : index
    %514 = memref.load %arg3[%c87] : memref<96xf32, #tpu.memory_space<smem>>
    %515 = vector.broadcast %514 : f32 to vector<2x10xf32>
    %516 = arith.mulf %515, %85 : vector<2x10xf32>
    %517 = arith.addf %513, %516 : vector<2x10xf32>
    %c88 = arith.constant 88 : index
    %518 = memref.load %arg3[%c88] : memref<96xf32, #tpu.memory_space<smem>>
    %519 = vector.broadcast %518 : f32 to vector<2x10xf32>
    %520 = arith.mulf %519, %87 : vector<2x10xf32>
    %521 = arith.addf %517, %520 : vector<2x10xf32>
    %c89 = arith.constant 89 : index
    %522 = memref.load %arg3[%c89] : memref<96xf32, #tpu.memory_space<smem>>
    %523 = vector.broadcast %522 : f32 to vector<2x10xf32>
    %524 = arith.mulf %523, %89 : vector<2x10xf32>
    %525 = arith.addf %521, %524 : vector<2x10xf32>
    %c90 = arith.constant 90 : index
    %526 = memref.load %arg3[%c90] : memref<96xf32, #tpu.memory_space<smem>>
    %527 = vector.broadcast %526 : f32 to vector<2x10xf32>
    %528 = arith.mulf %527, %91 : vector<2x10xf32>
    %529 = arith.addf %525, %528 : vector<2x10xf32>
    %c91 = arith.constant 91 : index
    %530 = memref.load %arg3[%c91] : memref<96xf32, #tpu.memory_space<smem>>
    %531 = vector.broadcast %530 : f32 to vector<2x10xf32>
    %532 = arith.mulf %531, %93 : vector<2x10xf32>
    %533 = arith.addf %529, %532 : vector<2x10xf32>
    %c92 = arith.constant 92 : index
    %534 = memref.load %arg3[%c92] : memref<96xf32, #tpu.memory_space<smem>>
    %535 = vector.broadcast %534 : f32 to vector<2x10xf32>
    %536 = arith.mulf %535, %95 : vector<2x10xf32>
    %537 = arith.addf %533, %536 : vector<2x10xf32>
    %c93 = arith.constant 93 : index
    %538 = memref.load %arg3[%c93] : memref<96xf32, #tpu.memory_space<smem>>
    %539 = vector.broadcast %538 : f32 to vector<2x10xf32>
    %540 = arith.mulf %539, %97 : vector<2x10xf32>
    %541 = arith.addf %537, %540 : vector<2x10xf32>
    %c94 = arith.constant 94 : index
    %542 = memref.load %arg3[%c94] : memref<96xf32, #tpu.memory_space<smem>>
    %543 = vector.broadcast %542 : f32 to vector<2x10xf32>
    %544 = arith.mulf %543, %99 : vector<2x10xf32>
    %545 = arith.addf %541, %544 : vector<2x10xf32>
    %c95 = arith.constant 95 : index
    %546 = memref.load %arg3[%c95] : memref<96xf32, #tpu.memory_space<smem>>
    %547 = vector.broadcast %546 : f32 to vector<2x10xf32>
    %548 = arith.mulf %547, %101 : vector<2x10xf32>
    %549 = arith.addf %545, %548 : vector<2x10xf32>
    %c7_106 = arith.constant 7 : index
    %550 = memref.load %arg4[%c7_106] : memref<8xf32, #tpu.memory_space<smem>>
    %551 = vector.broadcast %550 : f32 to vector<2x10xf32>
    %552 = arith.addf %549, %551 : vector<2x10xf32>
    %cst_107 = arith.constant 0.000000e+00 : f32
    %553 = vector.broadcast %cst_107 : f32 to vector<2x10xf32>
    %554 = arith.cmpf ogt, %552, %553 : vector<2x10xf32>
    %cst_108 = arith.constant 0.00999999977 : f32
    %555 = vector.broadcast %cst_108 : f32 to vector<2x10xf32>
    %556 = arith.mulf %555, %552 : vector<2x10xf32>
    %557 = arith.select %554, %552, %556 : vector<2x10xi1>, vector<2x10xf32>
    %558 = vector.extract_strided_slice %158 {offsets = [0, 0], sizes = [2, 8], strides = [1, 1]} : vector<2x10xf32> to vector<2x8xf32>
    %559 = vector.extract_strided_slice %158 {offsets = [0, 1], sizes = [2, 8], strides = [1, 1]} : vector<2x10xf32> to vector<2x8xf32>
    %560 = vector.extract_strided_slice %158 {offsets = [0, 2], sizes = [2, 8], strides = [1, 1]} : vector<2x10xf32> to vector<2x8xf32>
    %561 = vector.extract_strided_slice %215 {offsets = [0, 0], sizes = [2, 8], strides = [1, 1]} : vector<2x10xf32> to vector<2x8xf32>
    %562 = vector.extract_strided_slice %215 {offsets = [0, 1], sizes = [2, 8], strides = [1, 1]} : vector<2x10xf32> to vector<2x8xf32>
    %563 = vector.extract_strided_slice %215 {offsets = [0, 2], sizes = [2, 8], strides = [1, 1]} : vector<2x10xf32> to vector<2x8xf32>
    %564 = vector.extract_strided_slice %272 {offsets = [0, 0], sizes = [2, 8], strides = [1, 1]} : vector<2x10xf32> to vector<2x8xf32>
    %565 = vector.extract_strided_slice %272 {offsets = [0, 1], sizes = [2, 8], strides = [1, 1]} : vector<2x10xf32> to vector<2x8xf32>
    %566 = vector.extract_strided_slice %272 {offsets = [0, 2], sizes = [2, 8], strides = [1, 1]} : vector<2x10xf32> to vector<2x8xf32>
    %567 = vector.extract_strided_slice %329 {offsets = [0, 0], sizes = [2, 8], strides = [1, 1]} : vector<2x10xf32> to vector<2x8xf32>
    %568 = vector.extract_strided_slice %329 {offsets = [0, 1], sizes = [2, 8], strides = [1, 1]} : vector<2x10xf32> to vector<2x8xf32>
    %569 = vector.extract_strided_slice %329 {offsets = [0, 2], sizes = [2, 8], strides = [1, 1]} : vector<2x10xf32> to vector<2x8xf32>
    %570 = vector.extract_strided_slice %386 {offsets = [0, 0], sizes = [2, 8], strides = [1, 1]} : vector<2x10xf32> to vector<2x8xf32>
    %571 = vector.extract_strided_slice %386 {offsets = [0, 1], sizes = [2, 8], strides = [1, 1]} : vector<2x10xf32> to vector<2x8xf32>
    %572 = vector.extract_strided_slice %386 {offsets = [0, 2], sizes = [2, 8], strides = [1, 1]} : vector<2x10xf32> to vector<2x8xf32>
    %573 = vector.extract_strided_slice %443 {offsets = [0, 0], sizes = [2, 8], strides = [1, 1]} : vector<2x10xf32> to vector<2x8xf32>
    %574 = vector.extract_strided_slice %443 {offsets = [0, 1], sizes = [2, 8], strides = [1, 1]} : vector<2x10xf32> to vector<2x8xf32>
    %575 = vector.extract_strided_slice %443 {offsets = [0, 2], sizes = [2, 8], strides = [1, 1]} : vector<2x10xf32> to vector<2x8xf32>
    %576 = vector.extract_strided_slice %500 {offsets = [0, 0], sizes = [2, 8], strides = [1, 1]} : vector<2x10xf32> to vector<2x8xf32>
    %577 = vector.extract_strided_slice %500 {offsets = [0, 1], sizes = [2, 8], strides = [1, 1]} : vector<2x10xf32> to vector<2x8xf32>
    %578 = vector.extract_strided_slice %500 {offsets = [0, 2], sizes = [2, 8], strides = [1, 1]} : vector<2x10xf32> to vector<2x8xf32>
    %579 = vector.extract_strided_slice %557 {offsets = [0, 0], sizes = [2, 8], strides = [1, 1]} : vector<2x10xf32> to vector<2x8xf32>
    %580 = vector.extract_strided_slice %557 {offsets = [0, 1], sizes = [2, 8], strides = [1, 1]} : vector<2x10xf32> to vector<2x8xf32>
    %581 = vector.extract_strided_slice %557 {offsets = [0, 2], sizes = [2, 8], strides = [1, 1]} : vector<2x10xf32> to vector<2x8xf32>
    %cst_109 = arith.constant 0.000000e+00 : f32
    %582 = vector.broadcast %cst_109 : f32 to vector<2x8xf32>
    %c0_110 = arith.constant 0 : index
    %583 = memref.load %arg5[%c0_110] : memref<96xf32, #tpu.memory_space<smem>>
    %584 = vector.broadcast %583 : f32 to vector<2x8xf32>
    %585 = arith.mulf %584, %558 : vector<2x8xf32>
    %586 = arith.addf %582, %585 : vector<2x8xf32>
    %c1_111 = arith.constant 1 : index
    %587 = memref.load %arg5[%c1_111] : memref<96xf32, #tpu.memory_space<smem>>
    %588 = vector.broadcast %587 : f32 to vector<2x8xf32>
    %589 = arith.mulf %588, %559 : vector<2x8xf32>
    %590 = arith.addf %586, %589 : vector<2x8xf32>
    %c2_112 = arith.constant 2 : index
    %591 = memref.load %arg5[%c2_112] : memref<96xf32, #tpu.memory_space<smem>>
    %592 = vector.broadcast %591 : f32 to vector<2x8xf32>
    %593 = arith.mulf %592, %560 : vector<2x8xf32>
    %594 = arith.addf %590, %593 : vector<2x8xf32>
    %c3_113 = arith.constant 3 : index
    %595 = memref.load %arg5[%c3_113] : memref<96xf32, #tpu.memory_space<smem>>
    %596 = vector.broadcast %595 : f32 to vector<2x8xf32>
    %597 = arith.mulf %596, %561 : vector<2x8xf32>
    %598 = arith.addf %594, %597 : vector<2x8xf32>
    %c4_114 = arith.constant 4 : index
    %599 = memref.load %arg5[%c4_114] : memref<96xf32, #tpu.memory_space<smem>>
    %600 = vector.broadcast %599 : f32 to vector<2x8xf32>
    %601 = arith.mulf %600, %562 : vector<2x8xf32>
    %602 = arith.addf %598, %601 : vector<2x8xf32>
    %c5_115 = arith.constant 5 : index
    %603 = memref.load %arg5[%c5_115] : memref<96xf32, #tpu.memory_space<smem>>
    %604 = vector.broadcast %603 : f32 to vector<2x8xf32>
    %605 = arith.mulf %604, %563 : vector<2x8xf32>
    %606 = arith.addf %602, %605 : vector<2x8xf32>
    %c6_116 = arith.constant 6 : index
    %607 = memref.load %arg5[%c6_116] : memref<96xf32, #tpu.memory_space<smem>>
    %608 = vector.broadcast %607 : f32 to vector<2x8xf32>
    %609 = arith.mulf %608, %564 : vector<2x8xf32>
    %610 = arith.addf %606, %609 : vector<2x8xf32>
    %c7_117 = arith.constant 7 : index
    %611 = memref.load %arg5[%c7_117] : memref<96xf32, #tpu.memory_space<smem>>
    %612 = vector.broadcast %611 : f32 to vector<2x8xf32>
    %613 = arith.mulf %612, %565 : vector<2x8xf32>
    %614 = arith.addf %610, %613 : vector<2x8xf32>
    %c8_118 = arith.constant 8 : index
    %615 = memref.load %arg5[%c8_118] : memref<96xf32, #tpu.memory_space<smem>>
    %616 = vector.broadcast %615 : f32 to vector<2x8xf32>
    %617 = arith.mulf %616, %566 : vector<2x8xf32>
    %618 = arith.addf %614, %617 : vector<2x8xf32>
    %c9_119 = arith.constant 9 : index
    %619 = memref.load %arg5[%c9_119] : memref<96xf32, #tpu.memory_space<smem>>
    %620 = vector.broadcast %619 : f32 to vector<2x8xf32>
    %621 = arith.mulf %620, %567 : vector<2x8xf32>
    %622 = arith.addf %618, %621 : vector<2x8xf32>
    %c10_120 = arith.constant 10 : index
    %623 = memref.load %arg5[%c10_120] : memref<96xf32, #tpu.memory_space<smem>>
    %624 = vector.broadcast %623 : f32 to vector<2x8xf32>
    %625 = arith.mulf %624, %568 : vector<2x8xf32>
    %626 = arith.addf %622, %625 : vector<2x8xf32>
    %c11_121 = arith.constant 11 : index
    %627 = memref.load %arg5[%c11_121] : memref<96xf32, #tpu.memory_space<smem>>
    %628 = vector.broadcast %627 : f32 to vector<2x8xf32>
    %629 = arith.mulf %628, %569 : vector<2x8xf32>
    %630 = arith.addf %626, %629 : vector<2x8xf32>
    %c12_122 = arith.constant 12 : index
    %631 = memref.load %arg5[%c12_122] : memref<96xf32, #tpu.memory_space<smem>>
    %632 = vector.broadcast %631 : f32 to vector<2x8xf32>
    %633 = arith.mulf %632, %570 : vector<2x8xf32>
    %634 = arith.addf %630, %633 : vector<2x8xf32>
    %c13_123 = arith.constant 13 : index
    %635 = memref.load %arg5[%c13_123] : memref<96xf32, #tpu.memory_space<smem>>
    %636 = vector.broadcast %635 : f32 to vector<2x8xf32>
    %637 = arith.mulf %636, %571 : vector<2x8xf32>
    %638 = arith.addf %634, %637 : vector<2x8xf32>
    %c14_124 = arith.constant 14 : index
    %639 = memref.load %arg5[%c14_124] : memref<96xf32, #tpu.memory_space<smem>>
    %640 = vector.broadcast %639 : f32 to vector<2x8xf32>
    %641 = arith.mulf %640, %572 : vector<2x8xf32>
    %642 = arith.addf %638, %641 : vector<2x8xf32>
    %c15_125 = arith.constant 15 : index
    %643 = memref.load %arg5[%c15_125] : memref<96xf32, #tpu.memory_space<smem>>
    %644 = vector.broadcast %643 : f32 to vector<2x8xf32>
    %645 = arith.mulf %644, %573 : vector<2x8xf32>
    %646 = arith.addf %642, %645 : vector<2x8xf32>
    %c16_126 = arith.constant 16 : index
    %647 = memref.load %arg5[%c16_126] : memref<96xf32, #tpu.memory_space<smem>>
    %648 = vector.broadcast %647 : f32 to vector<2x8xf32>
    %649 = arith.mulf %648, %574 : vector<2x8xf32>
    %650 = arith.addf %646, %649 : vector<2x8xf32>
    %c17_127 = arith.constant 17 : index
    %651 = memref.load %arg5[%c17_127] : memref<96xf32, #tpu.memory_space<smem>>
    %652 = vector.broadcast %651 : f32 to vector<2x8xf32>
    %653 = arith.mulf %652, %575 : vector<2x8xf32>
    %654 = arith.addf %650, %653 : vector<2x8xf32>
    %c18_128 = arith.constant 18 : index
    %655 = memref.load %arg5[%c18_128] : memref<96xf32, #tpu.memory_space<smem>>
    %656 = vector.broadcast %655 : f32 to vector<2x8xf32>
    %657 = arith.mulf %656, %576 : vector<2x8xf32>
    %658 = arith.addf %654, %657 : vector<2x8xf32>
    %c19_129 = arith.constant 19 : index
    %659 = memref.load %arg5[%c19_129] : memref<96xf32, #tpu.memory_space<smem>>
    %660 = vector.broadcast %659 : f32 to vector<2x8xf32>
    %661 = arith.mulf %660, %577 : vector<2x8xf32>
    %662 = arith.addf %658, %661 : vector<2x8xf32>
    %c20_130 = arith.constant 20 : index
    %663 = memref.load %arg5[%c20_130] : memref<96xf32, #tpu.memory_space<smem>>
    %664 = vector.broadcast %663 : f32 to vector<2x8xf32>
    %665 = arith.mulf %664, %578 : vector<2x8xf32>
    %666 = arith.addf %662, %665 : vector<2x8xf32>
    %c21_131 = arith.constant 21 : index
    %667 = memref.load %arg5[%c21_131] : memref<96xf32, #tpu.memory_space<smem>>
    %668 = vector.broadcast %667 : f32 to vector<2x8xf32>
    %669 = arith.mulf %668, %579 : vector<2x8xf32>
    %670 = arith.addf %666, %669 : vector<2x8xf32>
    %c22_132 = arith.constant 22 : index
    %671 = memref.load %arg5[%c22_132] : memref<96xf32, #tpu.memory_space<smem>>
    %672 = vector.broadcast %671 : f32 to vector<2x8xf32>
    %673 = arith.mulf %672, %580 : vector<2x8xf32>
    %674 = arith.addf %670, %673 : vector<2x8xf32>
    %c23_133 = arith.constant 23 : index
    %675 = memref.load %arg5[%c23_133] : memref<96xf32, #tpu.memory_space<smem>>
    %676 = vector.broadcast %675 : f32 to vector<2x8xf32>
    %677 = arith.mulf %676, %581 : vector<2x8xf32>
    %678 = arith.addf %674, %677 : vector<2x8xf32>
    %c0_134 = arith.constant 0 : index
    %679 = memref.load %arg6[%c0_134] : memref<4xf32, #tpu.memory_space<smem>>
    %680 = vector.broadcast %679 : f32 to vector<2x8xf32>
    %681 = arith.addf %678, %680 : vector<2x8xf32>
    %682 = math.tanh %681 : vector<2x8xf32>
    %cst_135 = arith.constant 0.000000e+00 : f32
    %683 = vector.broadcast %cst_135 : f32 to vector<2x8xf32>
    %c24_136 = arith.constant 24 : index
    %684 = memref.load %arg5[%c24_136] : memref<96xf32, #tpu.memory_space<smem>>
    %685 = vector.broadcast %684 : f32 to vector<2x8xf32>
    %686 = arith.mulf %685, %558 : vector<2x8xf32>
    %687 = arith.addf %683, %686 : vector<2x8xf32>
    %c25_137 = arith.constant 25 : index
    %688 = memref.load %arg5[%c25_137] : memref<96xf32, #tpu.memory_space<smem>>
    %689 = vector.broadcast %688 : f32 to vector<2x8xf32>
    %690 = arith.mulf %689, %559 : vector<2x8xf32>
    %691 = arith.addf %687, %690 : vector<2x8xf32>
    %c26_138 = arith.constant 26 : index
    %692 = memref.load %arg5[%c26_138] : memref<96xf32, #tpu.memory_space<smem>>
    %693 = vector.broadcast %692 : f32 to vector<2x8xf32>
    %694 = arith.mulf %693, %560 : vector<2x8xf32>
    %695 = arith.addf %691, %694 : vector<2x8xf32>
    %c27_139 = arith.constant 27 : index
    %696 = memref.load %arg5[%c27_139] : memref<96xf32, #tpu.memory_space<smem>>
    %697 = vector.broadcast %696 : f32 to vector<2x8xf32>
    %698 = arith.mulf %697, %561 : vector<2x8xf32>
    %699 = arith.addf %695, %698 : vector<2x8xf32>
    %c28_140 = arith.constant 28 : index
    %700 = memref.load %arg5[%c28_140] : memref<96xf32, #tpu.memory_space<smem>>
    %701 = vector.broadcast %700 : f32 to vector<2x8xf32>
    %702 = arith.mulf %701, %562 : vector<2x8xf32>
    %703 = arith.addf %699, %702 : vector<2x8xf32>
    %c29_141 = arith.constant 29 : index
    %704 = memref.load %arg5[%c29_141] : memref<96xf32, #tpu.memory_space<smem>>
    %705 = vector.broadcast %704 : f32 to vector<2x8xf32>
    %706 = arith.mulf %705, %563 : vector<2x8xf32>
    %707 = arith.addf %703, %706 : vector<2x8xf32>
    %c30_142 = arith.constant 30 : index
    %708 = memref.load %arg5[%c30_142] : memref<96xf32, #tpu.memory_space<smem>>
    %709 = vector.broadcast %708 : f32 to vector<2x8xf32>
    %710 = arith.mulf %709, %564 : vector<2x8xf32>
    %711 = arith.addf %707, %710 : vector<2x8xf32>
    %c31_143 = arith.constant 31 : index
    %712 = memref.load %arg5[%c31_143] : memref<96xf32, #tpu.memory_space<smem>>
    %713 = vector.broadcast %712 : f32 to vector<2x8xf32>
    %714 = arith.mulf %713, %565 : vector<2x8xf32>
    %715 = arith.addf %711, %714 : vector<2x8xf32>
    %c32_144 = arith.constant 32 : index
    %716 = memref.load %arg5[%c32_144] : memref<96xf32, #tpu.memory_space<smem>>
    %717 = vector.broadcast %716 : f32 to vector<2x8xf32>
    %718 = arith.mulf %717, %566 : vector<2x8xf32>
    %719 = arith.addf %715, %718 : vector<2x8xf32>
    %c33_145 = arith.constant 33 : index
    %720 = memref.load %arg5[%c33_145] : memref<96xf32, #tpu.memory_space<smem>>
    %721 = vector.broadcast %720 : f32 to vector<2x8xf32>
    %722 = arith.mulf %721, %567 : vector<2x8xf32>
    %723 = arith.addf %719, %722 : vector<2x8xf32>
    %c34_146 = arith.constant 34 : index
    %724 = memref.load %arg5[%c34_146] : memref<96xf32, #tpu.memory_space<smem>>
    %725 = vector.broadcast %724 : f32 to vector<2x8xf32>
    %726 = arith.mulf %725, %568 : vector<2x8xf32>
    %727 = arith.addf %723, %726 : vector<2x8xf32>
    %c35_147 = arith.constant 35 : index
    %728 = memref.load %arg5[%c35_147] : memref<96xf32, #tpu.memory_space<smem>>
    %729 = vector.broadcast %728 : f32 to vector<2x8xf32>
    %730 = arith.mulf %729, %569 : vector<2x8xf32>
    %731 = arith.addf %727, %730 : vector<2x8xf32>
    %c36_148 = arith.constant 36 : index
    %732 = memref.load %arg5[%c36_148] : memref<96xf32, #tpu.memory_space<smem>>
    %733 = vector.broadcast %732 : f32 to vector<2x8xf32>
    %734 = arith.mulf %733, %570 : vector<2x8xf32>
    %735 = arith.addf %731, %734 : vector<2x8xf32>
    %c37_149 = arith.constant 37 : index
    %736 = memref.load %arg5[%c37_149] : memref<96xf32, #tpu.memory_space<smem>>
    %737 = vector.broadcast %736 : f32 to vector<2x8xf32>
    %738 = arith.mulf %737, %571 : vector<2x8xf32>
    %739 = arith.addf %735, %738 : vector<2x8xf32>
    %c38_150 = arith.constant 38 : index
    %740 = memref.load %arg5[%c38_150] : memref<96xf32, #tpu.memory_space<smem>>
    %741 = vector.broadcast %740 : f32 to vector<2x8xf32>
    %742 = arith.mulf %741, %572 : vector<2x8xf32>
    %743 = arith.addf %739, %742 : vector<2x8xf32>
    %c39_151 = arith.constant 39 : index
    %744 = memref.load %arg5[%c39_151] : memref<96xf32, #tpu.memory_space<smem>>
    %745 = vector.broadcast %744 : f32 to vector<2x8xf32>
    %746 = arith.mulf %745, %573 : vector<2x8xf32>
    %747 = arith.addf %743, %746 : vector<2x8xf32>
    %c40_152 = arith.constant 40 : index
    %748 = memref.load %arg5[%c40_152] : memref<96xf32, #tpu.memory_space<smem>>
    %749 = vector.broadcast %748 : f32 to vector<2x8xf32>
    %750 = arith.mulf %749, %574 : vector<2x8xf32>
    %751 = arith.addf %747, %750 : vector<2x8xf32>
    %c41_153 = arith.constant 41 : index
    %752 = memref.load %arg5[%c41_153] : memref<96xf32, #tpu.memory_space<smem>>
    %753 = vector.broadcast %752 : f32 to vector<2x8xf32>
    %754 = arith.mulf %753, %575 : vector<2x8xf32>
    %755 = arith.addf %751, %754 : vector<2x8xf32>
    %c42_154 = arith.constant 42 : index
    %756 = memref.load %arg5[%c42_154] : memref<96xf32, #tpu.memory_space<smem>>
    %757 = vector.broadcast %756 : f32 to vector<2x8xf32>
    %758 = arith.mulf %757, %576 : vector<2x8xf32>
    %759 = arith.addf %755, %758 : vector<2x8xf32>
    %c43_155 = arith.constant 43 : index
    %760 = memref.load %arg5[%c43_155] : memref<96xf32, #tpu.memory_space<smem>>
    %761 = vector.broadcast %760 : f32 to vector<2x8xf32>
    %762 = arith.mulf %761, %577 : vector<2x8xf32>
    %763 = arith.addf %759, %762 : vector<2x8xf32>
    %c44_156 = arith.constant 44 : index
    %764 = memref.load %arg5[%c44_156] : memref<96xf32, #tpu.memory_space<smem>>
    %765 = vector.broadcast %764 : f32 to vector<2x8xf32>
    %766 = arith.mulf %765, %578 : vector<2x8xf32>
    %767 = arith.addf %763, %766 : vector<2x8xf32>
    %c45_157 = arith.constant 45 : index
    %768 = memref.load %arg5[%c45_157] : memref<96xf32, #tpu.memory_space<smem>>
    %769 = vector.broadcast %768 : f32 to vector<2x8xf32>
    %770 = arith.mulf %769, %579 : vector<2x8xf32>
    %771 = arith.addf %767, %770 : vector<2x8xf32>
    %c46_158 = arith.constant 46 : index
    %772 = memref.load %arg5[%c46_158] : memref<96xf32, #tpu.memory_space<smem>>
    %773 = vector.broadcast %772 : f32 to vector<2x8xf32>
    %774 = arith.mulf %773, %580 : vector<2x8xf32>
    %775 = arith.addf %771, %774 : vector<2x8xf32>
    %c47_159 = arith.constant 47 : index
    %776 = memref.load %arg5[%c47_159] : memref<96xf32, #tpu.memory_space<smem>>
    %777 = vector.broadcast %776 : f32 to vector<2x8xf32>
    %778 = arith.mulf %777, %581 : vector<2x8xf32>
    %779 = arith.addf %775, %778 : vector<2x8xf32>
    %c1_160 = arith.constant 1 : index
    %780 = memref.load %arg6[%c1_160] : memref<4xf32, #tpu.memory_space<smem>>
    %781 = vector.broadcast %780 : f32 to vector<2x8xf32>
    %782 = arith.addf %779, %781 : vector<2x8xf32>
    %783 = math.tanh %782 : vector<2x8xf32>
    %cst_161 = arith.constant 0.000000e+00 : f32
    %784 = vector.broadcast %cst_161 : f32 to vector<2x8xf32>
    %c48_162 = arith.constant 48 : index
    %785 = memref.load %arg5[%c48_162] : memref<96xf32, #tpu.memory_space<smem>>
    %786 = vector.broadcast %785 : f32 to vector<2x8xf32>
    %787 = arith.mulf %786, %558 : vector<2x8xf32>
    %788 = arith.addf %784, %787 : vector<2x8xf32>
    %c49_163 = arith.constant 49 : index
    %789 = memref.load %arg5[%c49_163] : memref<96xf32, #tpu.memory_space<smem>>
    %790 = vector.broadcast %789 : f32 to vector<2x8xf32>
    %791 = arith.mulf %790, %559 : vector<2x8xf32>
    %792 = arith.addf %788, %791 : vector<2x8xf32>
    %c50_164 = arith.constant 50 : index
    %793 = memref.load %arg5[%c50_164] : memref<96xf32, #tpu.memory_space<smem>>
    %794 = vector.broadcast %793 : f32 to vector<2x8xf32>
    %795 = arith.mulf %794, %560 : vector<2x8xf32>
    %796 = arith.addf %792, %795 : vector<2x8xf32>
    %c51_165 = arith.constant 51 : index
    %797 = memref.load %arg5[%c51_165] : memref<96xf32, #tpu.memory_space<smem>>
    %798 = vector.broadcast %797 : f32 to vector<2x8xf32>
    %799 = arith.mulf %798, %561 : vector<2x8xf32>
    %800 = arith.addf %796, %799 : vector<2x8xf32>
    %c52_166 = arith.constant 52 : index
    %801 = memref.load %arg5[%c52_166] : memref<96xf32, #tpu.memory_space<smem>>
    %802 = vector.broadcast %801 : f32 to vector<2x8xf32>
    %803 = arith.mulf %802, %562 : vector<2x8xf32>
    %804 = arith.addf %800, %803 : vector<2x8xf32>
    %c53_167 = arith.constant 53 : index
    %805 = memref.load %arg5[%c53_167] : memref<96xf32, #tpu.memory_space<smem>>
    %806 = vector.broadcast %805 : f32 to vector<2x8xf32>
    %807 = arith.mulf %806, %563 : vector<2x8xf32>
    %808 = arith.addf %804, %807 : vector<2x8xf32>
    %c54_168 = arith.constant 54 : index
    %809 = memref.load %arg5[%c54_168] : memref<96xf32, #tpu.memory_space<smem>>
    %810 = vector.broadcast %809 : f32 to vector<2x8xf32>
    %811 = arith.mulf %810, %564 : vector<2x8xf32>
    %812 = arith.addf %808, %811 : vector<2x8xf32>
    %c55_169 = arith.constant 55 : index
    %813 = memref.load %arg5[%c55_169] : memref<96xf32, #tpu.memory_space<smem>>
    %814 = vector.broadcast %813 : f32 to vector<2x8xf32>
    %815 = arith.mulf %814, %565 : vector<2x8xf32>
    %816 = arith.addf %812, %815 : vector<2x8xf32>
    %c56_170 = arith.constant 56 : index
    %817 = memref.load %arg5[%c56_170] : memref<96xf32, #tpu.memory_space<smem>>
    %818 = vector.broadcast %817 : f32 to vector<2x8xf32>
    %819 = arith.mulf %818, %566 : vector<2x8xf32>
    %820 = arith.addf %816, %819 : vector<2x8xf32>
    %c57_171 = arith.constant 57 : index
    %821 = memref.load %arg5[%c57_171] : memref<96xf32, #tpu.memory_space<smem>>
    %822 = vector.broadcast %821 : f32 to vector<2x8xf32>
    %823 = arith.mulf %822, %567 : vector<2x8xf32>
    %824 = arith.addf %820, %823 : vector<2x8xf32>
    %c58_172 = arith.constant 58 : index
    %825 = memref.load %arg5[%c58_172] : memref<96xf32, #tpu.memory_space<smem>>
    %826 = vector.broadcast %825 : f32 to vector<2x8xf32>
    %827 = arith.mulf %826, %568 : vector<2x8xf32>
    %828 = arith.addf %824, %827 : vector<2x8xf32>
    %c59_173 = arith.constant 59 : index
    %829 = memref.load %arg5[%c59_173] : memref<96xf32, #tpu.memory_space<smem>>
    %830 = vector.broadcast %829 : f32 to vector<2x8xf32>
    %831 = arith.mulf %830, %569 : vector<2x8xf32>
    %832 = arith.addf %828, %831 : vector<2x8xf32>
    %c60_174 = arith.constant 60 : index
    %833 = memref.load %arg5[%c60_174] : memref<96xf32, #tpu.memory_space<smem>>
    %834 = vector.broadcast %833 : f32 to vector<2x8xf32>
    %835 = arith.mulf %834, %570 : vector<2x8xf32>
    %836 = arith.addf %832, %835 : vector<2x8xf32>
    %c61_175 = arith.constant 61 : index
    %837 = memref.load %arg5[%c61_175] : memref<96xf32, #tpu.memory_space<smem>>
    %838 = vector.broadcast %837 : f32 to vector<2x8xf32>
    %839 = arith.mulf %838, %571 : vector<2x8xf32>
    %840 = arith.addf %836, %839 : vector<2x8xf32>
    %c62_176 = arith.constant 62 : index
    %841 = memref.load %arg5[%c62_176] : memref<96xf32, #tpu.memory_space<smem>>
    %842 = vector.broadcast %841 : f32 to vector<2x8xf32>
    %843 = arith.mulf %842, %572 : vector<2x8xf32>
    %844 = arith.addf %840, %843 : vector<2x8xf32>
    %c63_177 = arith.constant 63 : index
    %845 = memref.load %arg5[%c63_177] : memref<96xf32, #tpu.memory_space<smem>>
    %846 = vector.broadcast %845 : f32 to vector<2x8xf32>
    %847 = arith.mulf %846, %573 : vector<2x8xf32>
    %848 = arith.addf %844, %847 : vector<2x8xf32>
    %c64_178 = arith.constant 64 : index
    %849 = memref.load %arg5[%c64_178] : memref<96xf32, #tpu.memory_space<smem>>
    %850 = vector.broadcast %849 : f32 to vector<2x8xf32>
    %851 = arith.mulf %850, %574 : vector<2x8xf32>
    %852 = arith.addf %848, %851 : vector<2x8xf32>
    %c65_179 = arith.constant 65 : index
    %853 = memref.load %arg5[%c65_179] : memref<96xf32, #tpu.memory_space<smem>>
    %854 = vector.broadcast %853 : f32 to vector<2x8xf32>
    %855 = arith.mulf %854, %575 : vector<2x8xf32>
    %856 = arith.addf %852, %855 : vector<2x8xf32>
    %c66_180 = arith.constant 66 : index
    %857 = memref.load %arg5[%c66_180] : memref<96xf32, #tpu.memory_space<smem>>
    %858 = vector.broadcast %857 : f32 to vector<2x8xf32>
    %859 = arith.mulf %858, %576 : vector<2x8xf32>
    %860 = arith.addf %856, %859 : vector<2x8xf32>
    %c67_181 = arith.constant 67 : index
    %861 = memref.load %arg5[%c67_181] : memref<96xf32, #tpu.memory_space<smem>>
    %862 = vector.broadcast %861 : f32 to vector<2x8xf32>
    %863 = arith.mulf %862, %577 : vector<2x8xf32>
    %864 = arith.addf %860, %863 : vector<2x8xf32>
    %c68_182 = arith.constant 68 : index
    %865 = memref.load %arg5[%c68_182] : memref<96xf32, #tpu.memory_space<smem>>
    %866 = vector.broadcast %865 : f32 to vector<2x8xf32>
    %867 = arith.mulf %866, %578 : vector<2x8xf32>
    %868 = arith.addf %864, %867 : vector<2x8xf32>
    %c69_183 = arith.constant 69 : index
    %869 = memref.load %arg5[%c69_183] : memref<96xf32, #tpu.memory_space<smem>>
    %870 = vector.broadcast %869 : f32 to vector<2x8xf32>
    %871 = arith.mulf %870, %579 : vector<2x8xf32>
    %872 = arith.addf %868, %871 : vector<2x8xf32>
    %c70_184 = arith.constant 70 : index
    %873 = memref.load %arg5[%c70_184] : memref<96xf32, #tpu.memory_space<smem>>
    %874 = vector.broadcast %873 : f32 to vector<2x8xf32>
    %875 = arith.mulf %874, %580 : vector<2x8xf32>
    %876 = arith.addf %872, %875 : vector<2x8xf32>
    %c71_185 = arith.constant 71 : index
    %877 = memref.load %arg5[%c71_185] : memref<96xf32, #tpu.memory_space<smem>>
    %878 = vector.broadcast %877 : f32 to vector<2x8xf32>
    %879 = arith.mulf %878, %581 : vector<2x8xf32>
    %880 = arith.addf %876, %879 : vector<2x8xf32>
    %c2_186 = arith.constant 2 : index
    %881 = memref.load %arg6[%c2_186] : memref<4xf32, #tpu.memory_space<smem>>
    %882 = vector.broadcast %881 : f32 to vector<2x8xf32>
    %883 = arith.addf %880, %882 : vector<2x8xf32>
    %884 = math.tanh %883 : vector<2x8xf32>
    %cst_187 = arith.constant 0.000000e+00 : f32
    %885 = vector.broadcast %cst_187 : f32 to vector<2x8xf32>
    %c72_188 = arith.constant 72 : index
    %886 = memref.load %arg5[%c72_188] : memref<96xf32, #tpu.memory_space<smem>>
    %887 = vector.broadcast %886 : f32 to vector<2x8xf32>
    %888 = arith.mulf %887, %558 : vector<2x8xf32>
    %889 = arith.addf %885, %888 : vector<2x8xf32>
    %c73_189 = arith.constant 73 : index
    %890 = memref.load %arg5[%c73_189] : memref<96xf32, #tpu.memory_space<smem>>
    %891 = vector.broadcast %890 : f32 to vector<2x8xf32>
    %892 = arith.mulf %891, %559 : vector<2x8xf32>
    %893 = arith.addf %889, %892 : vector<2x8xf32>
    %c74_190 = arith.constant 74 : index
    %894 = memref.load %arg5[%c74_190] : memref<96xf32, #tpu.memory_space<smem>>
    %895 = vector.broadcast %894 : f32 to vector<2x8xf32>
    %896 = arith.mulf %895, %560 : vector<2x8xf32>
    %897 = arith.addf %893, %896 : vector<2x8xf32>
    %c75_191 = arith.constant 75 : index
    %898 = memref.load %arg5[%c75_191] : memref<96xf32, #tpu.memory_space<smem>>
    %899 = vector.broadcast %898 : f32 to vector<2x8xf32>
    %900 = arith.mulf %899, %561 : vector<2x8xf32>
    %901 = arith.addf %897, %900 : vector<2x8xf32>
    %c76_192 = arith.constant 76 : index
    %902 = memref.load %arg5[%c76_192] : memref<96xf32, #tpu.memory_space<smem>>
    %903 = vector.broadcast %902 : f32 to vector<2x8xf32>
    %904 = arith.mulf %903, %562 : vector<2x8xf32>
    %905 = arith.addf %901, %904 : vector<2x8xf32>
    %c77_193 = arith.constant 77 : index
    %906 = memref.load %arg5[%c77_193] : memref<96xf32, #tpu.memory_space<smem>>
    %907 = vector.broadcast %906 : f32 to vector<2x8xf32>
    %908 = arith.mulf %907, %563 : vector<2x8xf32>
    %909 = arith.addf %905, %908 : vector<2x8xf32>
    %c78_194 = arith.constant 78 : index
    %910 = memref.load %arg5[%c78_194] : memref<96xf32, #tpu.memory_space<smem>>
    %911 = vector.broadcast %910 : f32 to vector<2x8xf32>
    %912 = arith.mulf %911, %564 : vector<2x8xf32>
    %913 = arith.addf %909, %912 : vector<2x8xf32>
    %c79_195 = arith.constant 79 : index
    %914 = memref.load %arg5[%c79_195] : memref<96xf32, #tpu.memory_space<smem>>
    %915 = vector.broadcast %914 : f32 to vector<2x8xf32>
    %916 = arith.mulf %915, %565 : vector<2x8xf32>
    %917 = arith.addf %913, %916 : vector<2x8xf32>
    %c80_196 = arith.constant 80 : index
    %918 = memref.load %arg5[%c80_196] : memref<96xf32, #tpu.memory_space<smem>>
    %919 = vector.broadcast %918 : f32 to vector<2x8xf32>
    %920 = arith.mulf %919, %566 : vector<2x8xf32>
    %921 = arith.addf %917, %920 : vector<2x8xf32>
    %c81_197 = arith.constant 81 : index
    %922 = memref.load %arg5[%c81_197] : memref<96xf32, #tpu.memory_space<smem>>
    %923 = vector.broadcast %922 : f32 to vector<2x8xf32>
    %924 = arith.mulf %923, %567 : vector<2x8xf32>
    %925 = arith.addf %921, %924 : vector<2x8xf32>
    %c82_198 = arith.constant 82 : index
    %926 = memref.load %arg5[%c82_198] : memref<96xf32, #tpu.memory_space<smem>>
    %927 = vector.broadcast %926 : f32 to vector<2x8xf32>
    %928 = arith.mulf %927, %568 : vector<2x8xf32>
    %929 = arith.addf %925, %928 : vector<2x8xf32>
    %c83_199 = arith.constant 83 : index
    %930 = memref.load %arg5[%c83_199] : memref<96xf32, #tpu.memory_space<smem>>
    %931 = vector.broadcast %930 : f32 to vector<2x8xf32>
    %932 = arith.mulf %931, %569 : vector<2x8xf32>
    %933 = arith.addf %929, %932 : vector<2x8xf32>
    %c84_200 = arith.constant 84 : index
    %934 = memref.load %arg5[%c84_200] : memref<96xf32, #tpu.memory_space<smem>>
    %935 = vector.broadcast %934 : f32 to vector<2x8xf32>
    %936 = arith.mulf %935, %570 : vector<2x8xf32>
    %937 = arith.addf %933, %936 : vector<2x8xf32>
    %c85_201 = arith.constant 85 : index
    %938 = memref.load %arg5[%c85_201] : memref<96xf32, #tpu.memory_space<smem>>
    %939 = vector.broadcast %938 : f32 to vector<2x8xf32>
    %940 = arith.mulf %939, %571 : vector<2x8xf32>
    %941 = arith.addf %937, %940 : vector<2x8xf32>
    %c86_202 = arith.constant 86 : index
    %942 = memref.load %arg5[%c86_202] : memref<96xf32, #tpu.memory_space<smem>>
    %943 = vector.broadcast %942 : f32 to vector<2x8xf32>
    %944 = arith.mulf %943, %572 : vector<2x8xf32>
    %945 = arith.addf %941, %944 : vector<2x8xf32>
    %c87_203 = arith.constant 87 : index
    %946 = memref.load %arg5[%c87_203] : memref<96xf32, #tpu.memory_space<smem>>
    %947 = vector.broadcast %946 : f32 to vector<2x8xf32>
    %948 = arith.mulf %947, %573 : vector<2x8xf32>
    %949 = arith.addf %945, %948 : vector<2x8xf32>
    %c88_204 = arith.constant 88 : index
    %950 = memref.load %arg5[%c88_204] : memref<96xf32, #tpu.memory_space<smem>>
    %951 = vector.broadcast %950 : f32 to vector<2x8xf32>
    %952 = arith.mulf %951, %574 : vector<2x8xf32>
    %953 = arith.addf %949, %952 : vector<2x8xf32>
    %c89_205 = arith.constant 89 : index
    %954 = memref.load %arg5[%c89_205] : memref<96xf32, #tpu.memory_space<smem>>
    %955 = vector.broadcast %954 : f32 to vector<2x8xf32>
    %956 = arith.mulf %955, %575 : vector<2x8xf32>
    %957 = arith.addf %953, %956 : vector<2x8xf32>
    %c90_206 = arith.constant 90 : index
    %958 = memref.load %arg5[%c90_206] : memref<96xf32, #tpu.memory_space<smem>>
    %959 = vector.broadcast %958 : f32 to vector<2x8xf32>
    %960 = arith.mulf %959, %576 : vector<2x8xf32>
    %961 = arith.addf %957, %960 : vector<2x8xf32>
    %c91_207 = arith.constant 91 : index
    %962 = memref.load %arg5[%c91_207] : memref<96xf32, #tpu.memory_space<smem>>
    %963 = vector.broadcast %962 : f32 to vector<2x8xf32>
    %964 = arith.mulf %963, %577 : vector<2x8xf32>
    %965 = arith.addf %961, %964 : vector<2x8xf32>
    %c92_208 = arith.constant 92 : index
    %966 = memref.load %arg5[%c92_208] : memref<96xf32, #tpu.memory_space<smem>>
    %967 = vector.broadcast %966 : f32 to vector<2x8xf32>
    %968 = arith.mulf %967, %578 : vector<2x8xf32>
    %969 = arith.addf %965, %968 : vector<2x8xf32>
    %c93_209 = arith.constant 93 : index
    %970 = memref.load %arg5[%c93_209] : memref<96xf32, #tpu.memory_space<smem>>
    %971 = vector.broadcast %970 : f32 to vector<2x8xf32>
    %972 = arith.mulf %971, %579 : vector<2x8xf32>
    %973 = arith.addf %969, %972 : vector<2x8xf32>
    %c94_210 = arith.constant 94 : index
    %974 = memref.load %arg5[%c94_210] : memref<96xf32, #tpu.memory_space<smem>>
    %975 = vector.broadcast %974 : f32 to vector<2x8xf32>
    %976 = arith.mulf %975, %580 : vector<2x8xf32>
    %977 = arith.addf %973, %976 : vector<2x8xf32>
    %c95_211 = arith.constant 95 : index
    %978 = memref.load %arg5[%c95_211] : memref<96xf32, #tpu.memory_space<smem>>
    %979 = vector.broadcast %978 : f32 to vector<2x8xf32>
    %980 = arith.mulf %979, %581 : vector<2x8xf32>
    %981 = arith.addf %977, %980 : vector<2x8xf32>
    %c3_212 = arith.constant 3 : index
    %982 = memref.load %arg6[%c3_212] : memref<4xf32, #tpu.memory_space<smem>>
    %983 = vector.broadcast %982 : f32 to vector<2x8xf32>
    %984 = arith.addf %981, %983 : vector<2x8xf32>
    %985 = math.tanh %984 : vector<2x8xf32>
    %986 = arith.subf %11, %682 : vector<2x8xf32>
    %987 = arith.subf %13, %783 : vector<2x8xf32>
    %988 = arith.subf %15, %884 : vector<2x8xf32>
    %989 = arith.subf %17, %985 : vector<2x8xf32>
    %c0_213 = arith.constant 0 : index
    %c0_214 = arith.constant 0 : index
    %c2_215 = arith.constant 2 : index
    %990 = vector.load %arg13[%c0_213, %c0_214, %c2_215] : memref<2x4x12xf32, #tpu.memory_space<vmem>>, vector<2x1x8xf32>
    %991 = vector.shape_cast %990 : vector<2x1x8xf32> to vector<2x8xf32>
    %992 = vector.shape_cast %986 : vector<2x8xf32> to vector<2x1x8xf32>
    tpu.vector_store %arg13[%c0_213, %c0_214, %c2_215], %992 {strides = array<i32>} : memref<2x4x12xf32, #tpu.memory_space<vmem>>, vector<2x1x8xf32>,
    %993 = vector.extract_strided_slice %986 {offsets = [0, 0], sizes = [2, 1], strides = [1, 1]} : vector<2x8xf32> to vector<2x1xf32>
    %994 = vector.shape_cast %993 : vector<2x1xf32> to vector<2x1xf32>
    %995 = vector.broadcast %994 : vector<2x1xf32> to vector<2x2xf32>
    %c0_216 = arith.constant 0 : index
    %c0_217 = arith.constant 0 : index
    %c0_218 = arith.constant 0 : index
    %996 = vector.load %arg13[%c0_216, %c0_217, %c0_218] : memref<2x4x12xf32, #tpu.memory_space<vmem>>, vector<2x1x2xf32>
    %997 = vector.shape_cast %996 : vector<2x1x2xf32> to vector<2x2xf32>
    %998 = vector.shape_cast %995 : vector<2x2xf32> to vector<2x1x2xf32>
    tpu.vector_store %arg13[%c0_216, %c0_217, %c0_218], %998 {strides = array<i32>} : memref<2x4x12xf32, #tpu.memory_space<vmem>>, vector<2x1x2xf32>,
    %999 = vector.extract_strided_slice %986 {offsets = [0, 7], sizes = [2, 1], strides = [1, 1]} : vector<2x8xf32> to vector<2x1xf32>
    %1000 = vector.shape_cast %999 : vector<2x1xf32> to vector<2x1xf32>
    %1001 = vector.broadcast %1000 : vector<2x1xf32> to vector<2x2xf32>
    %c0_219 = arith.constant 0 : index
    %c0_220 = arith.constant 0 : index
    %c10_221 = arith.constant 10 : index
    %1002 = vector.load %arg13[%c0_219, %c0_220, %c10_221] : memref<2x4x12xf32, #tpu.memory_space<vmem>>, vector<2x1x2xf32>
    %1003 = vector.shape_cast %1002 : vector<2x1x2xf32> to vector<2x2xf32>
    %1004 = vector.shape_cast %1001 : vector<2x2xf32> to vector<2x1x2xf32>
    tpu.vector_store %arg13[%c0_219, %c0_220, %c10_221], %1004 {strides = array<i32>} : memref<2x4x12xf32, #tpu.memory_space<vmem>>, vector<2x1x2xf32>,
    %c0_222 = arith.constant 0 : index
    %c1_223 = arith.constant 1 : index
    %c2_224 = arith.constant 2 : index
    %1005 = vector.load %arg13[%c0_222, %c1_223, %c2_224] : memref<2x4x12xf32, #tpu.memory_space<vmem>>, vector<2x1x8xf32>
    %1006 = vector.shape_cast %1005 : vector<2x1x8xf32> to vector<2x8xf32>
    %1007 = vector.shape_cast %987 : vector<2x8xf32> to vector<2x1x8xf32>
    tpu.vector_store %arg13[%c0_222, %c1_223, %c2_224], %1007 {strides = array<i32>} : memref<2x4x12xf32, #tpu.memory_space<vmem>>, vector<2x1x8xf32>,
    %1008 = vector.extract_strided_slice %987 {offsets = [0, 0], sizes = [2, 1], strides = [1, 1]} : vector<2x8xf32> to vector<2x1xf32>
    %1009 = vector.shape_cast %1008 : vector<2x1xf32> to vector<2x1xf32>
    %1010 = vector.broadcast %1009 : vector<2x1xf32> to vector<2x2xf32>
    %c0_225 = arith.constant 0 : index
    %c1_226 = arith.constant 1 : index
    %c0_227 = arith.constant 0 : index
    %1011 = vector.load %arg13[%c0_225, %c1_226, %c0_227] : memref<2x4x12xf32, #tpu.memory_space<vmem>>, vector<2x1x2xf32>
    %1012 = vector.shape_cast %1011 : vector<2x1x2xf32> to vector<2x2xf32>
    %1013 = vector.shape_cast %1010 : vector<2x2xf32> to vector<2x1x2xf32>
    tpu.vector_store %arg13[%c0_225, %c1_226, %c0_227], %1013 {strides = array<i32>} : memref<2x4x12xf32, #tpu.memory_space<vmem>>, vector<2x1x2xf32>,
    %1014 = vector.extract_strided_slice %987 {offsets = [0, 7], sizes = [2, 1], strides = [1, 1]} : vector<2x8xf32> to vector<2x1xf32>
    %1015 = vector.shape_cast %1014 : vector<2x1xf32> to vector<2x1xf32>
    %1016 = vector.broadcast %1015 : vector<2x1xf32> to vector<2x2xf32>
    %c0_228 = arith.constant 0 : index
    %c1_229 = arith.constant 1 : index
    %c10_230 = arith.constant 10 : index
    %1017 = vector.load %arg13[%c0_228, %c1_229, %c10_230] : memref<2x4x12xf32, #tpu.memory_space<vmem>>, vector<2x1x2xf32>
    %1018 = vector.shape_cast %1017 : vector<2x1x2xf32> to vector<2x2xf32>
    %1019 = vector.shape_cast %1016 : vector<2x2xf32> to vector<2x1x2xf32>
    tpu.vector_store %arg13[%c0_228, %c1_229, %c10_230], %1019 {strides = array<i32>} : memref<2x4x12xf32, #tpu.memory_space<vmem>>, vector<2x1x2xf32>,
    %c0_231 = arith.constant 0 : index
    %c2_232 = arith.constant 2 : index
    %c2_233 = arith.constant 2 : index
    %1020 = vector.load %arg13[%c0_231, %c2_232, %c2_233] : memref<2x4x12xf32, #tpu.memory_space<vmem>>, vector<2x1x8xf32>
    %1021 = vector.shape_cast %1020 : vector<2x1x8xf32> to vector<2x8xf32>
    %1022 = vector.shape_cast %988 : vector<2x8xf32> to vector<2x1x8xf32>
    tpu.vector_store %arg13[%c0_231, %c2_232, %c2_233], %1022 {strides = array<i32>} : memref<2x4x12xf32, #tpu.memory_space<vmem>>, vector<2x1x8xf32>,
    %1023 = vector.extract_strided_slice %988 {offsets = [0, 0], sizes = [2, 1], strides = [1, 1]} : vector<2x8xf32> to vector<2x1xf32>
    %1024 = vector.shape_cast %1023 : vector<2x1xf32> to vector<2x1xf32>
    %1025 = vector.broadcast %1024 : vector<2x1xf32> to vector<2x2xf32>
    %c0_234 = arith.constant 0 : index
    %c2_235 = arith.constant 2 : index
    %c0_236 = arith.constant 0 : index
    %1026 = vector.load %arg13[%c0_234, %c2_235, %c0_236] : memref<2x4x12xf32, #tpu.memory_space<vmem>>, vector<2x1x2xf32>
    %1027 = vector.shape_cast %1026 : vector<2x1x2xf32> to vector<2x2xf32>
    %1028 = vector.shape_cast %1025 : vector<2x2xf32> to vector<2x1x2xf32>
    tpu.vector_store %arg13[%c0_234, %c2_235, %c0_236], %1028 {strides = array<i32>} : memref<2x4x12xf32, #tpu.memory_space<vmem>>, vector<2x1x2xf32>,
    %1029 = vector.extract_strided_slice %988 {offsets = [0, 7], sizes = [2, 1], strides = [1, 1]} : vector<2x8xf32> to vector<2x1xf32>
    %1030 = vector.shape_cast %1029 : vector<2x1xf32> to vector<2x1xf32>
    %1031 = vector.broadcast %1030 : vector<2x1xf32> to vector<2x2xf32>
    %c0_237 = arith.constant 0 : index
    %c2_238 = arith.constant 2 : index
    %c10_239 = arith.constant 10 : index
    %1032 = vector.load %arg13[%c0_237, %c2_238, %c10_239] : memref<2x4x12xf32, #tpu.memory_space<vmem>>, vector<2x1x2xf32>
    %1033 = vector.shape_cast %1032 : vector<2x1x2xf32> to vector<2x2xf32>
    %1034 = vector.shape_cast %1031 : vector<2x2xf32> to vector<2x1x2xf32>
    tpu.vector_store %arg13[%c0_237, %c2_238, %c10_239], %1034 {strides = array<i32>} : memref<2x4x12xf32, #tpu.memory_space<vmem>>, vector<2x1x2xf32>,
    %c0_240 = arith.constant 0 : index
    %c3_241 = arith.constant 3 : index
    %c2_242 = arith.constant 2 : index
    %1035 = vector.load %arg13[%c0_240, %c3_241, %c2_242] : memref<2x4x12xf32, #tpu.memory_space<vmem>>, vector<2x1x8xf32>
    %1036 = vector.shape_cast %1035 : vector<2x1x8xf32> to vector<2x8xf32>
    %1037 = vector.shape_cast %989 : vector<2x8xf32> to vector<2x1x8xf32>
    tpu.vector_store %arg13[%c0_240, %c3_241, %c2_242], %1037 {strides = array<i32>} : memref<2x4x12xf32, #tpu.memory_space<vmem>>, vector<2x1x8xf32>,
    %1038 = vector.extract_strided_slice %989 {offsets = [0, 0], sizes = [2, 1], strides = [1, 1]} : vector<2x8xf32> to vector<2x1xf32>
    %1039 = vector.shape_cast %1038 : vector<2x1xf32> to vector<2x1xf32>
    %1040 = vector.broadcast %1039 : vector<2x1xf32> to vector<2x2xf32>
    %c0_243 = arith.constant 0 : index
    %c3_244 = arith.constant 3 : index
    %c0_245 = arith.constant 0 : index
    %1041 = vector.load %arg13[%c0_243, %c3_244, %c0_245] : memref<2x4x12xf32, #tpu.memory_space<vmem>>, vector<2x1x2xf32>
    %1042 = vector.shape_cast %1041 : vector<2x1x2xf32> to vector<2x2xf32>
    %1043 = vector.shape_cast %1040 : vector<2x2xf32> to vector<2x1x2xf32>
    tpu.vector_store %arg13[%c0_243, %c3_244, %c0_245], %1043 {strides = array<i32>} : memref<2x4x12xf32, #tpu.memory_space<vmem>>, vector<2x1x2xf32>,
    %1044 = vector.extract_strided_slice %989 {offsets = [0, 7], sizes = [2, 1], strides = [1, 1]} : vector<2x8xf32> to vector<2x1xf32>
    %1045 = vector.shape_cast %1044 : vector<2x1xf32> to vector<2x1xf32>
    %1046 = vector.broadcast %1045 : vector<2x1xf32> to vector<2x2xf32>
    %c0_246 = arith.constant 0 : index
    %c3_247 = arith.constant 3 : index
    %c10_248 = arith.constant 10 : index
    %1047 = vector.load %arg13[%c0_246, %c3_247, %c10_248] : memref<2x4x12xf32, #tpu.memory_space<vmem>>, vector<2x1x2xf32>
    %1048 = vector.shape_cast %1047 : vector<2x1x2xf32> to vector<2x2xf32>
    %1049 = vector.shape_cast %1046 : vector<2x2xf32> to vector<2x1x2xf32>
    tpu.vector_store %arg13[%c0_246, %c3_247, %c10_248], %1049 {strides = array<i32>} : memref<2x4x12xf32, #tpu.memory_space<vmem>>, vector<2x1x2xf32>,
    %c0_249 = arith.constant 0 : index
    %c0_250 = arith.constant 0 : index
    %c0_251 = arith.constant 0 : index
    %1050 = vector.load %arg13[%c0_249, %c0_250, %c0_251] : memref<2x4x12xf32, #tpu.memory_space<vmem>>, vector<2x1x10xf32>
    %1051 = vector.shape_cast %1050 : vector<2x1x10xf32> to vector<2x10xf32>
    %c0_252 = arith.constant 0 : index
    %c0_253 = arith.constant 0 : index
    %c1_254 = arith.constant 1 : index
    %1052 = vector.load %arg13[%c0_252, %c0_253, %c1_254] : memref<2x4x12xf32, #tpu.memory_space<vmem>>, vector<2x1x10xf32>
    %1053 = vector.shape_cast %1052 : vector<2x1x10xf32> to vector<2x10xf32>
    %c0_255 = arith.constant 0 : index
    %c0_256 = arith.constant 0 : index
    %c2_257 = arith.constant 2 : index
    %1054 = vector.load %arg13[%c0_255, %c0_256, %c2_257] : memref<2x4x12xf32, #tpu.memory_space<vmem>>, vector<2x1x10xf32>
    %1055 = vector.shape_cast %1054 : vector<2x1x10xf32> to vector<2x10xf32>
    %c0_258 = arith.constant 0 : index
    %c1_259 = arith.constant 1 : index
    %c0_260 = arith.constant 0 : index
    %1056 = vector.load %arg13[%c0_258, %c1_259, %c0_260] : memref<2x4x12xf32, #tpu.memory_space<vmem>>, vector<2x1x10xf32>
    %1057 = vector.shape_cast %1056 : vector<2x1x10xf32> to vector<2x10xf32>
    %c0_261 = arith.constant 0 : index
    %c1_262 = arith.constant 1 : index
    %c1_263 = arith.constant 1 : index
    %1058 = vector.load %arg13[%c0_261, %c1_262, %c1_263] : memref<2x4x12xf32, #tpu.memory_space<vmem>>, vector<2x1x10xf32>
    %1059 = vector.shape_cast %1058 : vector<2x1x10xf32> to vector<2x10xf32>
    %c0_264 = arith.constant 0 : index
    %c1_265 = arith.constant 1 : index
    %c2_266 = arith.constant 2 : index
    %1060 = vector.load %arg13[%c0_264, %c1_265, %c2_266] : memref<2x4x12xf32, #tpu.memory_space<vmem>>, vector<2x1x10xf32>
    %1061 = vector.shape_cast %1060 : vector<2x1x10xf32> to vector<2x10xf32>
    %c0_267 = arith.constant 0 : index
    %c2_268 = arith.constant 2 : index
    %c0_269 = arith.constant 0 : index
    %1062 = vector.load %arg13[%c0_267, %c2_268, %c0_269] : memref<2x4x12xf32, #tpu.memory_space<vmem>>, vector<2x1x10xf32>
    %1063 = vector.shape_cast %1062 : vector<2x1x10xf32> to vector<2x10xf32>
    %c0_270 = arith.constant 0 : index
    %c2_271 = arith.constant 2 : index
    %c1_272 = arith.constant 1 : index
    %1064 = vector.load %arg13[%c0_270, %c2_271, %c1_272] : memref<2x4x12xf32, #tpu.memory_space<vmem>>, vector<2x1x10xf32>
    %1065 = vector.shape_cast %1064 : vector<2x1x10xf32> to vector<2x10xf32>
    %c0_273 = arith.constant 0 : index
    %c2_274 = arith.constant 2 : index
    %c2_275 = arith.constant 2 : index
    %1066 = vector.load %arg13[%c0_273, %c2_274, %c2_275] : memref<2x4x12xf32, #tpu.memory_space<vmem>>, vector<2x1x10xf32>
    %1067 = vector.shape_cast %1066 : vector<2x1x10xf32> to vector<2x10xf32>
    %c0_276 = arith.constant 0 : index
    %c3_277 = arith.constant 3 : index
    %c0_278 = arith.constant 0 : index
    %1068 = vector.load %arg13[%c0_276, %c3_277, %c0_278] : memref<2x4x12xf32, #tpu.memory_space<vmem>>, vector<2x1x10xf32>
    %1069 = vector.shape_cast %1068 : vector<2x1x10xf32> to vector<2x10xf32>
    %c0_279 = arith.constant 0 : index
    %c3_280 = arith.constant 3 : index
    %c1_281 = arith.constant 1 : index
    %1070 = vector.load %arg13[%c0_279, %c3_280, %c1_281] : memref<2x4x12xf32, #tpu.memory_space<vmem>>, vector<2x1x10xf32>
    %1071 = vector.shape_cast %1070 : vector<2x1x10xf32> to vector<2x10xf32>
    %c0_282 = arith.constant 0 : index
    %c3_283 = arith.constant 3 : index
    %c2_284 = arith.constant 2 : index
    %1072 = vector.load %arg13[%c0_282, %c3_283, %c2_284] : memref<2x4x12xf32, #tpu.memory_space<vmem>>, vector<2x1x10xf32>
    %1073 = vector.shape_cast %1072 : vector<2x1x10xf32> to vector<2x10xf32>
    %cst_285 = arith.constant 0.000000e+00 : f32
    %1074 = vector.broadcast %cst_285 : f32 to vector<2x10xf32>
    %c0_286 = arith.constant 0 : index
    %1075 = memref.load %arg7[%c0_286] : memref<96xf32, #tpu.memory_space<smem>>
    %1076 = vector.broadcast %1075 : f32 to vector<2x10xf32>
    %1077 = arith.mulf %1076, %1051 : vector<2x10xf32>
    %1078 = arith.addf %1074, %1077 : vector<2x10xf32>
    %c1_287 = arith.constant 1 : index
    %1079 = memref.load %arg7[%c1_287] : memref<96xf32, #tpu.memory_space<smem>>
    %1080 = vector.broadcast %1079 : f32 to vector<2x10xf32>
    %1081 = arith.mulf %1080, %1053 : vector<2x10xf32>
    %1082 = arith.addf %1078, %1081 : vector<2x10xf32>
    %c2_288 = arith.constant 2 : index
    %1083 = memref.load %arg7[%c2_288] : memref<96xf32, #tpu.memory_space<smem>>
    %1084 = vector.broadcast %1083 : f32 to vector<2x10xf32>
    %1085 = arith.mulf %1084, %1055 : vector<2x10xf32>
    %1086 = arith.addf %1082, %1085 : vector<2x10xf32>
    %c3_289 = arith.constant 3 : index
    %1087 = memref.load %arg7[%c3_289] : memref<96xf32, #tpu.memory_space<smem>>
    %1088 = vector.broadcast %1087 : f32 to vector<2x10xf32>
    %1089 = arith.mulf %1088, %1057 : vector<2x10xf32>
    %1090 = arith.addf %1086, %1089 : vector<2x10xf32>
    %c4_290 = arith.constant 4 : index
    %1091 = memref.load %arg7[%c4_290] : memref<96xf32, #tpu.memory_space<smem>>
    %1092 = vector.broadcast %1091 : f32 to vector<2x10xf32>
    %1093 = arith.mulf %1092, %1059 : vector<2x10xf32>
    %1094 = arith.addf %1090, %1093 : vector<2x10xf32>
    %c5_291 = arith.constant 5 : index
    %1095 = memref.load %arg7[%c5_291] : memref<96xf32, #tpu.memory_space<smem>>
    %1096 = vector.broadcast %1095 : f32 to vector<2x10xf32>
    %1097 = arith.mulf %1096, %1061 : vector<2x10xf32>
    %1098 = arith.addf %1094, %1097 : vector<2x10xf32>
    %c6_292 = arith.constant 6 : index
    %1099 = memref.load %arg7[%c6_292] : memref<96xf32, #tpu.memory_space<smem>>
    %1100 = vector.broadcast %1099 : f32 to vector<2x10xf32>
    %1101 = arith.mulf %1100, %1063 : vector<2x10xf32>
    %1102 = arith.addf %1098, %1101 : vector<2x10xf32>
    %c7_293 = arith.constant 7 : index
    %1103 = memref.load %arg7[%c7_293] : memref<96xf32, #tpu.memory_space<smem>>
    %1104 = vector.broadcast %1103 : f32 to vector<2x10xf32>
    %1105 = arith.mulf %1104, %1065 : vector<2x10xf32>
    %1106 = arith.addf %1102, %1105 : vector<2x10xf32>
    %c8_294 = arith.constant 8 : index
    %1107 = memref.load %arg7[%c8_294] : memref<96xf32, #tpu.memory_space<smem>>
    %1108 = vector.broadcast %1107 : f32 to vector<2x10xf32>
    %1109 = arith.mulf %1108, %1067 : vector<2x10xf32>
    %1110 = arith.addf %1106, %1109 : vector<2x10xf32>
    %c9_295 = arith.constant 9 : index
    %1111 = memref.load %arg7[%c9_295] : memref<96xf32, #tpu.memory_space<smem>>
    %1112 = vector.broadcast %1111 : f32 to vector<2x10xf32>
    %1113 = arith.mulf %1112, %1069 : vector<2x10xf32>
    %1114 = arith.addf %1110, %1113 : vector<2x10xf32>
    %c10_296 = arith.constant 10 : index
    %1115 = memref.load %arg7[%c10_296] : memref<96xf32, #tpu.memory_space<smem>>
    %1116 = vector.broadcast %1115 : f32 to vector<2x10xf32>
    %1117 = arith.mulf %1116, %1071 : vector<2x10xf32>
    %1118 = arith.addf %1114, %1117 : vector<2x10xf32>
    %c11_297 = arith.constant 11 : index
    %1119 = memref.load %arg7[%c11_297] : memref<96xf32, #tpu.memory_space<smem>>
    %1120 = vector.broadcast %1119 : f32 to vector<2x10xf32>
    %1121 = arith.mulf %1120, %1073 : vector<2x10xf32>
    %1122 = arith.addf %1118, %1121 : vector<2x10xf32>
    %c0_298 = arith.constant 0 : index
    %1123 = memref.load %arg8[%c0_298] : memref<8xf32, #tpu.memory_space<smem>>
    %1124 = vector.broadcast %1123 : f32 to vector<2x10xf32>
    %1125 = arith.addf %1122, %1124 : vector<2x10xf32>
    %cst_299 = arith.constant 0.000000e+00 : f32
    %1126 = vector.broadcast %cst_299 : f32 to vector<2x10xf32>
    %1127 = arith.cmpf ogt, %1125, %1126 : vector<2x10xf32>
    %cst_300 = arith.constant 0.00999999977 : f32
    %1128 = vector.broadcast %cst_300 : f32 to vector<2x10xf32>
    %1129 = arith.mulf %1128, %1125 : vector<2x10xf32>
    %1130 = arith.select %1127, %1125, %1129 : vector<2x10xi1>, vector<2x10xf32>
    %cst_301 = arith.constant 0.000000e+00 : f32
    %1131 = vector.broadcast %cst_301 : f32 to vector<2x10xf32>
    %c12_302 = arith.constant 12 : index
    %1132 = memref.load %arg7[%c12_302] : memref<96xf32, #tpu.memory_space<smem>>
    %1133 = vector.broadcast %1132 : f32 to vector<2x10xf32>
    %1134 = arith.mulf %1133, %1051 : vector<2x10xf32>
    %1135 = arith.addf %1131, %1134 : vector<2x10xf32>
    %c13_303 = arith.constant 13 : index
    %1136 = memref.load %arg7[%c13_303] : memref<96xf32, #tpu.memory_space<smem>>
    %1137 = vector.broadcast %1136 : f32 to vector<2x10xf32>
    %1138 = arith.mulf %1137, %1053 : vector<2x10xf32>
    %1139 = arith.addf %1135, %1138 : vector<2x10xf32>
    %c14_304 = arith.constant 14 : index
    %1140 = memref.load %arg7[%c14_304] : memref<96xf32, #tpu.memory_space<smem>>
    %1141 = vector.broadcast %1140 : f32 to vector<2x10xf32>
    %1142 = arith.mulf %1141, %1055 : vector<2x10xf32>
    %1143 = arith.addf %1139, %1142 : vector<2x10xf32>
    %c15_305 = arith.constant 15 : index
    %1144 = memref.load %arg7[%c15_305] : memref<96xf32, #tpu.memory_space<smem>>
    %1145 = vector.broadcast %1144 : f32 to vector<2x10xf32>
    %1146 = arith.mulf %1145, %1057 : vector<2x10xf32>
    %1147 = arith.addf %1143, %1146 : vector<2x10xf32>
    %c16_306 = arith.constant 16 : index
    %1148 = memref.load %arg7[%c16_306] : memref<96xf32, #tpu.memory_space<smem>>
    %1149 = vector.broadcast %1148 : f32 to vector<2x10xf32>
    %1150 = arith.mulf %1149, %1059 : vector<2x10xf32>
    %1151 = arith.addf %1147, %1150 : vector<2x10xf32>
    %c17_307 = arith.constant 17 : index
    %1152 = memref.load %arg7[%c17_307] : memref<96xf32, #tpu.memory_space<smem>>
    %1153 = vector.broadcast %1152 : f32 to vector<2x10xf32>
    %1154 = arith.mulf %1153, %1061 : vector<2x10xf32>
    %1155 = arith.addf %1151, %1154 : vector<2x10xf32>
    %c18_308 = arith.constant 18 : index
    %1156 = memref.load %arg7[%c18_308] : memref<96xf32, #tpu.memory_space<smem>>
    %1157 = vector.broadcast %1156 : f32 to vector<2x10xf32>
    %1158 = arith.mulf %1157, %1063 : vector<2x10xf32>
    %1159 = arith.addf %1155, %1158 : vector<2x10xf32>
    %c19_309 = arith.constant 19 : index
    %1160 = memref.load %arg7[%c19_309] : memref<96xf32, #tpu.memory_space<smem>>
    %1161 = vector.broadcast %1160 : f32 to vector<2x10xf32>
    %1162 = arith.mulf %1161, %1065 : vector<2x10xf32>
    %1163 = arith.addf %1159, %1162 : vector<2x10xf32>
    %c20_310 = arith.constant 20 : index
    %1164 = memref.load %arg7[%c20_310] : memref<96xf32, #tpu.memory_space<smem>>
    %1165 = vector.broadcast %1164 : f32 to vector<2x10xf32>
    %1166 = arith.mulf %1165, %1067 : vector<2x10xf32>
    %1167 = arith.addf %1163, %1166 : vector<2x10xf32>
    %c21_311 = arith.constant 21 : index
    %1168 = memref.load %arg7[%c21_311] : memref<96xf32, #tpu.memory_space<smem>>
    %1169 = vector.broadcast %1168 : f32 to vector<2x10xf32>
    %1170 = arith.mulf %1169, %1069 : vector<2x10xf32>
    %1171 = arith.addf %1167, %1170 : vector<2x10xf32>
    %c22_312 = arith.constant 22 : index
    %1172 = memref.load %arg7[%c22_312] : memref<96xf32, #tpu.memory_space<smem>>
    %1173 = vector.broadcast %1172 : f32 to vector<2x10xf32>
    %1174 = arith.mulf %1173, %1071 : vector<2x10xf32>
    %1175 = arith.addf %1171, %1174 : vector<2x10xf32>
    %c23_313 = arith.constant 23 : index
    %1176 = memref.load %arg7[%c23_313] : memref<96xf32, #tpu.memory_space<smem>>
    %1177 = vector.broadcast %1176 : f32 to vector<2x10xf32>
    %1178 = arith.mulf %1177, %1073 : vector<2x10xf32>
    %1179 = arith.addf %1175, %1178 : vector<2x10xf32>
    %c1_314 = arith.constant 1 : index
    %1180 = memref.load %arg8[%c1_314] : memref<8xf32, #tpu.memory_space<smem>>
    %1181 = vector.broadcast %1180 : f32 to vector<2x10xf32>
    %1182 = arith.addf %1179, %1181 : vector<2x10xf32>
    %cst_315 = arith.constant 0.000000e+00 : f32
    %1183 = vector.broadcast %cst_315 : f32 to vector<2x10xf32>
    %1184 = arith.cmpf ogt, %1182, %1183 : vector<2x10xf32>
    %cst_316 = arith.constant 0.00999999977 : f32
    %1185 = vector.broadcast %cst_316 : f32 to vector<2x10xf32>
    %1186 = arith.mulf %1185, %1182 : vector<2x10xf32>
    %1187 = arith.select %1184, %1182, %1186 : vector<2x10xi1>, vector<2x10xf32>
    %cst_317 = arith.constant 0.000000e+00 : f32
    %1188 = vector.broadcast %cst_317 : f32 to vector<2x10xf32>
    %c24_318 = arith.constant 24 : index
    %1189 = memref.load %arg7[%c24_318] : memref<96xf32, #tpu.memory_space<smem>>
    %1190 = vector.broadcast %1189 : f32 to vector<2x10xf32>
    %1191 = arith.mulf %1190, %1051 : vector<2x10xf32>
    %1192 = arith.addf %1188, %1191 : vector<2x10xf32>
    %c25_319 = arith.constant 25 : index
    %1193 = memref.load %arg7[%c25_319] : memref<96xf32, #tpu.memory_space<smem>>
    %1194 = vector.broadcast %1193 : f32 to vector<2x10xf32>
    %1195 = arith.mulf %1194, %1053 : vector<2x10xf32>
    %1196 = arith.addf %1192, %1195 : vector<2x10xf32>
    %c26_320 = arith.constant 26 : index
    %1197 = memref.load %arg7[%c26_320] : memref<96xf32, #tpu.memory_space<smem>>
    %1198 = vector.broadcast %1197 : f32 to vector<2x10xf32>
    %1199 = arith.mulf %1198, %1055 : vector<2x10xf32>
    %1200 = arith.addf %1196, %1199 : vector<2x10xf32>
    %c27_321 = arith.constant 27 : index
    %1201 = memref.load %arg7[%c27_321] : memref<96xf32, #tpu.memory_space<smem>>
    %1202 = vector.broadcast %1201 : f32 to vector<2x10xf32>
    %1203 = arith.mulf %1202, %1057 : vector<2x10xf32>
    %1204 = arith.addf %1200, %1203 : vector<2x10xf32>
    %c28_322 = arith.constant 28 : index
    %1205 = memref.load %arg7[%c28_322] : memref<96xf32, #tpu.memory_space<smem>>
    %1206 = vector.broadcast %1205 : f32 to vector<2x10xf32>
    %1207 = arith.mulf %1206, %1059 : vector<2x10xf32>
    %1208 = arith.addf %1204, %1207 : vector<2x10xf32>
    %c29_323 = arith.constant 29 : index
    %1209 = memref.load %arg7[%c29_323] : memref<96xf32, #tpu.memory_space<smem>>
    %1210 = vector.broadcast %1209 : f32 to vector<2x10xf32>
    %1211 = arith.mulf %1210, %1061 : vector<2x10xf32>
    %1212 = arith.addf %1208, %1211 : vector<2x10xf32>
    %c30_324 = arith.constant 30 : index
    %1213 = memref.load %arg7[%c30_324] : memref<96xf32, #tpu.memory_space<smem>>
    %1214 = vector.broadcast %1213 : f32 to vector<2x10xf32>
    %1215 = arith.mulf %1214, %1063 : vector<2x10xf32>
    %1216 = arith.addf %1212, %1215 : vector<2x10xf32>
    %c31_325 = arith.constant 31 : index
    %1217 = memref.load %arg7[%c31_325] : memref<96xf32, #tpu.memory_space<smem>>
    %1218 = vector.broadcast %1217 : f32 to vector<2x10xf32>
    %1219 = arith.mulf %1218, %1065 : vector<2x10xf32>
    %1220 = arith.addf %1216, %1219 : vector<2x10xf32>
    %c32_326 = arith.constant 32 : index
    %1221 = memref.load %arg7[%c32_326] : memref<96xf32, #tpu.memory_space<smem>>
    %1222 = vector.broadcast %1221 : f32 to vector<2x10xf32>
    %1223 = arith.mulf %1222, %1067 : vector<2x10xf32>
    %1224 = arith.addf %1220, %1223 : vector<2x10xf32>
    %c33_327 = arith.constant 33 : index
    %1225 = memref.load %arg7[%c33_327] : memref<96xf32, #tpu.memory_space<smem>>
    %1226 = vector.broadcast %1225 : f32 to vector<2x10xf32>
    %1227 = arith.mulf %1226, %1069 : vector<2x10xf32>
    %1228 = arith.addf %1224, %1227 : vector<2x10xf32>
    %c34_328 = arith.constant 34 : index
    %1229 = memref.load %arg7[%c34_328] : memref<96xf32, #tpu.memory_space<smem>>
    %1230 = vector.broadcast %1229 : f32 to vector<2x10xf32>
    %1231 = arith.mulf %1230, %1071 : vector<2x10xf32>
    %1232 = arith.addf %1228, %1231 : vector<2x10xf32>
    %c35_329 = arith.constant 35 : index
    %1233 = memref.load %arg7[%c35_329] : memref<96xf32, #tpu.memory_space<smem>>
    %1234 = vector.broadcast %1233 : f32 to vector<2x10xf32>
    %1235 = arith.mulf %1234, %1073 : vector<2x10xf32>
    %1236 = arith.addf %1232, %1235 : vector<2x10xf32>
    %c2_330 = arith.constant 2 : index
    %1237 = memref.load %arg8[%c2_330] : memref<8xf32, #tpu.memory_space<smem>>
    %1238 = vector.broadcast %1237 : f32 to vector<2x10xf32>
    %1239 = arith.addf %1236, %1238 : vector<2x10xf32>
    %cst_331 = arith.constant 0.000000e+00 : f32
    %1240 = vector.broadcast %cst_331 : f32 to vector<2x10xf32>
    %1241 = arith.cmpf ogt, %1239, %1240 : vector<2x10xf32>
    %cst_332 = arith.constant 0.00999999977 : f32
    %1242 = vector.broadcast %cst_332 : f32 to vector<2x10xf32>
    %1243 = arith.mulf %1242, %1239 : vector<2x10xf32>
    %1244 = arith.select %1241, %1239, %1243 : vector<2x10xi1>, vector<2x10xf32>
    %cst_333 = arith.constant 0.000000e+00 : f32
    %1245 = vector.broadcast %cst_333 : f32 to vector<2x10xf32>
    %c36_334 = arith.constant 36 : index
    %1246 = memref.load %arg7[%c36_334] : memref<96xf32, #tpu.memory_space<smem>>
    %1247 = vector.broadcast %1246 : f32 to vector<2x10xf32>
    %1248 = arith.mulf %1247, %1051 : vector<2x10xf32>
    %1249 = arith.addf %1245, %1248 : vector<2x10xf32>
    %c37_335 = arith.constant 37 : index
    %1250 = memref.load %arg7[%c37_335] : memref<96xf32, #tpu.memory_space<smem>>
    %1251 = vector.broadcast %1250 : f32 to vector<2x10xf32>
    %1252 = arith.mulf %1251, %1053 : vector<2x10xf32>
    %1253 = arith.addf %1249, %1252 : vector<2x10xf32>
    %c38_336 = arith.constant 38 : index
    %1254 = memref.load %arg7[%c38_336] : memref<96xf32, #tpu.memory_space<smem>>
    %1255 = vector.broadcast %1254 : f32 to vector<2x10xf32>
    %1256 = arith.mulf %1255, %1055 : vector<2x10xf32>
    %1257 = arith.addf %1253, %1256 : vector<2x10xf32>
    %c39_337 = arith.constant 39 : index
    %1258 = memref.load %arg7[%c39_337] : memref<96xf32, #tpu.memory_space<smem>>
    %1259 = vector.broadcast %1258 : f32 to vector<2x10xf32>
    %1260 = arith.mulf %1259, %1057 : vector<2x10xf32>
    %1261 = arith.addf %1257, %1260 : vector<2x10xf32>
    %c40_338 = arith.constant 40 : index
    %1262 = memref.load %arg7[%c40_338] : memref<96xf32, #tpu.memory_space<smem>>
    %1263 = vector.broadcast %1262 : f32 to vector<2x10xf32>
    %1264 = arith.mulf %1263, %1059 : vector<2x10xf32>
    %1265 = arith.addf %1261, %1264 : vector<2x10xf32>
    %c41_339 = arith.constant 41 : index
    %1266 = memref.load %arg7[%c41_339] : memref<96xf32, #tpu.memory_space<smem>>
    %1267 = vector.broadcast %1266 : f32 to vector<2x10xf32>
    %1268 = arith.mulf %1267, %1061 : vector<2x10xf32>
    %1269 = arith.addf %1265, %1268 : vector<2x10xf32>
    %c42_340 = arith.constant 42 : index
    %1270 = memref.load %arg7[%c42_340] : memref<96xf32, #tpu.memory_space<smem>>
    %1271 = vector.broadcast %1270 : f32 to vector<2x10xf32>
    %1272 = arith.mulf %1271, %1063 : vector<2x10xf32>
    %1273 = arith.addf %1269, %1272 : vector<2x10xf32>
    %c43_341 = arith.constant 43 : index
    %1274 = memref.load %arg7[%c43_341] : memref<96xf32, #tpu.memory_space<smem>>
    %1275 = vector.broadcast %1274 : f32 to vector<2x10xf32>
    %1276 = arith.mulf %1275, %1065 : vector<2x10xf32>
    %1277 = arith.addf %1273, %1276 : vector<2x10xf32>
    %c44_342 = arith.constant 44 : index
    %1278 = memref.load %arg7[%c44_342] : memref<96xf32, #tpu.memory_space<smem>>
    %1279 = vector.broadcast %1278 : f32 to vector<2x10xf32>
    %1280 = arith.mulf %1279, %1067 : vector<2x10xf32>
    %1281 = arith.addf %1277, %1280 : vector<2x10xf32>
    %c45_343 = arith.constant 45 : index
    %1282 = memref.load %arg7[%c45_343] : memref<96xf32, #tpu.memory_space<smem>>
    %1283 = vector.broadcast %1282 : f32 to vector<2x10xf32>
    %1284 = arith.mulf %1283, %1069 : vector<2x10xf32>
    %1285 = arith.addf %1281, %1284 : vector<2x10xf32>
    %c46_344 = arith.constant 46 : index
    %1286 = memref.load %arg7[%c46_344] : memref<96xf32, #tpu.memory_space<smem>>
    %1287 = vector.broadcast %1286 : f32 to vector<2x10xf32>
    %1288 = arith.mulf %1287, %1071 : vector<2x10xf32>
    %1289 = arith.addf %1285, %1288 : vector<2x10xf32>
    %c47_345 = arith.constant 47 : index
    %1290 = memref.load %arg7[%c47_345] : memref<96xf32, #tpu.memory_space<smem>>
    %1291 = vector.broadcast %1290 : f32 to vector<2x10xf32>
    %1292 = arith.mulf %1291, %1073 : vector<2x10xf32>
    %1293 = arith.addf %1289, %1292 : vector<2x10xf32>
    %c3_346 = arith.constant 3 : index
    %1294 = memref.load %arg8[%c3_346] : memref<8xf32, #tpu.memory_space<smem>>
    %1295 = vector.broadcast %1294 : f32 to vector<2x10xf32>
    %1296 = arith.addf %1293, %1295 : vector<2x10xf32>
    %cst_347 = arith.constant 0.000000e+00 : f32
    %1297 = vector.broadcast %cst_347 : f32 to vector<2x10xf32>
    %1298 = arith.cmpf ogt, %1296, %1297 : vector<2x10xf32>
    %cst_348 = arith.constant 0.00999999977 : f32
    %1299 = vector.broadcast %cst_348 : f32 to vector<2x10xf32>
    %1300 = arith.mulf %1299, %1296 : vector<2x10xf32>
    %1301 = arith.select %1298, %1296, %1300 : vector<2x10xi1>, vector<2x10xf32>
    %cst_349 = arith.constant 0.000000e+00 : f32
    %1302 = vector.broadcast %cst_349 : f32 to vector<2x10xf32>
    %c48_350 = arith.constant 48 : index
    %1303 = memref.load %arg7[%c48_350] : memref<96xf32, #tpu.memory_space<smem>>
    %1304 = vector.broadcast %1303 : f32 to vector<2x10xf32>
    %1305 = arith.mulf %1304, %1051 : vector<2x10xf32>
    %1306 = arith.addf %1302, %1305 : vector<2x10xf32>
    %c49_351 = arith.constant 49 : index
    %1307 = memref.load %arg7[%c49_351] : memref<96xf32, #tpu.memory_space<smem>>
    %1308 = vector.broadcast %1307 : f32 to vector<2x10xf32>
    %1309 = arith.mulf %1308, %1053 : vector<2x10xf32>
    %1310 = arith.addf %1306, %1309 : vector<2x10xf32>
    %c50_352 = arith.constant 50 : index
    %1311 = memref.load %arg7[%c50_352] : memref<96xf32, #tpu.memory_space<smem>>
    %1312 = vector.broadcast %1311 : f32 to vector<2x10xf32>
    %1313 = arith.mulf %1312, %1055 : vector<2x10xf32>
    %1314 = arith.addf %1310, %1313 : vector<2x10xf32>
    %c51_353 = arith.constant 51 : index
    %1315 = memref.load %arg7[%c51_353] : memref<96xf32, #tpu.memory_space<smem>>
    %1316 = vector.broadcast %1315 : f32 to vector<2x10xf32>
    %1317 = arith.mulf %1316, %1057 : vector<2x10xf32>
    %1318 = arith.addf %1314, %1317 : vector<2x10xf32>
    %c52_354 = arith.constant 52 : index
    %1319 = memref.load %arg7[%c52_354] : memref<96xf32, #tpu.memory_space<smem>>
    %1320 = vector.broadcast %1319 : f32 to vector<2x10xf32>
    %1321 = arith.mulf %1320, %1059 : vector<2x10xf32>
    %1322 = arith.addf %1318, %1321 : vector<2x10xf32>
    %c53_355 = arith.constant 53 : index
    %1323 = memref.load %arg7[%c53_355] : memref<96xf32, #tpu.memory_space<smem>>
    %1324 = vector.broadcast %1323 : f32 to vector<2x10xf32>
    %1325 = arith.mulf %1324, %1061 : vector<2x10xf32>
    %1326 = arith.addf %1322, %1325 : vector<2x10xf32>
    %c54_356 = arith.constant 54 : index
    %1327 = memref.load %arg7[%c54_356] : memref<96xf32, #tpu.memory_space<smem>>
    %1328 = vector.broadcast %1327 : f32 to vector<2x10xf32>
    %1329 = arith.mulf %1328, %1063 : vector<2x10xf32>
    %1330 = arith.addf %1326, %1329 : vector<2x10xf32>
    %c55_357 = arith.constant 55 : index
    %1331 = memref.load %arg7[%c55_357] : memref<96xf32, #tpu.memory_space<smem>>
    %1332 = vector.broadcast %1331 : f32 to vector<2x10xf32>
    %1333 = arith.mulf %1332, %1065 : vector<2x10xf32>
    %1334 = arith.addf %1330, %1333 : vector<2x10xf32>
    %c56_358 = arith.constant 56 : index
    %1335 = memref.load %arg7[%c56_358] : memref<96xf32, #tpu.memory_space<smem>>
    %1336 = vector.broadcast %1335 : f32 to vector<2x10xf32>
    %1337 = arith.mulf %1336, %1067 : vector<2x10xf32>
    %1338 = arith.addf %1334, %1337 : vector<2x10xf32>
    %c57_359 = arith.constant 57 : index
    %1339 = memref.load %arg7[%c57_359] : memref<96xf32, #tpu.memory_space<smem>>
    %1340 = vector.broadcast %1339 : f32 to vector<2x10xf32>
    %1341 = arith.mulf %1340, %1069 : vector<2x10xf32>
    %1342 = arith.addf %1338, %1341 : vector<2x10xf32>
    %c58_360 = arith.constant 58 : index
    %1343 = memref.load %arg7[%c58_360] : memref<96xf32, #tpu.memory_space<smem>>
    %1344 = vector.broadcast %1343 : f32 to vector<2x10xf32>
    %1345 = arith.mulf %1344, %1071 : vector<2x10xf32>
    %1346 = arith.addf %1342, %1345 : vector<2x10xf32>
    %c59_361 = arith.constant 59 : index
    %1347 = memref.load %arg7[%c59_361] : memref<96xf32, #tpu.memory_space<smem>>
    %1348 = vector.broadcast %1347 : f32 to vector<2x10xf32>
    %1349 = arith.mulf %1348, %1073 : vector<2x10xf32>
    %1350 = arith.addf %1346, %1349 : vector<2x10xf32>
    %c4_362 = arith.constant 4 : index
    %1351 = memref.load %arg8[%c4_362] : memref<8xf32, #tpu.memory_space<smem>>
    %1352 = vector.broadcast %1351 : f32 to vector<2x10xf32>
    %1353 = arith.addf %1350, %1352 : vector<2x10xf32>
    %cst_363 = arith.constant 0.000000e+00 : f32
    %1354 = vector.broadcast %cst_363 : f32 to vector<2x10xf32>
    %1355 = arith.cmpf ogt, %1353, %1354 : vector<2x10xf32>
    %cst_364 = arith.constant 0.00999999977 : f32
    %1356 = vector.broadcast %cst_364 : f32 to vector<2x10xf32>
    %1357 = arith.mulf %1356, %1353 : vector<2x10xf32>
    %1358 = arith.select %1355, %1353, %1357 : vector<2x10xi1>, vector<2x10xf32>
    %cst_365 = arith.constant 0.000000e+00 : f32
    %1359 = vector.broadcast %cst_365 : f32 to vector<2x10xf32>
    %c60_366 = arith.constant 60 : index
    %1360 = memref.load %arg7[%c60_366] : memref<96xf32, #tpu.memory_space<smem>>
    %1361 = vector.broadcast %1360 : f32 to vector<2x10xf32>
    %1362 = arith.mulf %1361, %1051 : vector<2x10xf32>
    %1363 = arith.addf %1359, %1362 : vector<2x10xf32>
    %c61_367 = arith.constant 61 : index
    %1364 = memref.load %arg7[%c61_367] : memref<96xf32, #tpu.memory_space<smem>>
    %1365 = vector.broadcast %1364 : f32 to vector<2x10xf32>
    %1366 = arith.mulf %1365, %1053 : vector<2x10xf32>
    %1367 = arith.addf %1363, %1366 : vector<2x10xf32>
    %c62_368 = arith.constant 62 : index
    %1368 = memref.load %arg7[%c62_368] : memref<96xf32, #tpu.memory_space<smem>>
    %1369 = vector.broadcast %1368 : f32 to vector<2x10xf32>
    %1370 = arith.mulf %1369, %1055 : vector<2x10xf32>
    %1371 = arith.addf %1367, %1370 : vector<2x10xf32>
    %c63_369 = arith.constant 63 : index
    %1372 = memref.load %arg7[%c63_369] : memref<96xf32, #tpu.memory_space<smem>>
    %1373 = vector.broadcast %1372 : f32 to vector<2x10xf32>
    %1374 = arith.mulf %1373, %1057 : vector<2x10xf32>
    %1375 = arith.addf %1371, %1374 : vector<2x10xf32>
    %c64_370 = arith.constant 64 : index
    %1376 = memref.load %arg7[%c64_370] : memref<96xf32, #tpu.memory_space<smem>>
    %1377 = vector.broadcast %1376 : f32 to vector<2x10xf32>
    %1378 = arith.mulf %1377, %1059 : vector<2x10xf32>
    %1379 = arith.addf %1375, %1378 : vector<2x10xf32>
    %c65_371 = arith.constant 65 : index
    %1380 = memref.load %arg7[%c65_371] : memref<96xf32, #tpu.memory_space<smem>>
    %1381 = vector.broadcast %1380 : f32 to vector<2x10xf32>
    %1382 = arith.mulf %1381, %1061 : vector<2x10xf32>
    %1383 = arith.addf %1379, %1382 : vector<2x10xf32>
    %c66_372 = arith.constant 66 : index
    %1384 = memref.load %arg7[%c66_372] : memref<96xf32, #tpu.memory_space<smem>>
    %1385 = vector.broadcast %1384 : f32 to vector<2x10xf32>
    %1386 = arith.mulf %1385, %1063 : vector<2x10xf32>
    %1387 = arith.addf %1383, %1386 : vector<2x10xf32>
    %c67_373 = arith.constant 67 : index
    %1388 = memref.load %arg7[%c67_373] : memref<96xf32, #tpu.memory_space<smem>>
    %1389 = vector.broadcast %1388 : f32 to vector<2x10xf32>
    %1390 = arith.mulf %1389, %1065 : vector<2x10xf32>
    %1391 = arith.addf %1387, %1390 : vector<2x10xf32>
    %c68_374 = arith.constant 68 : index
    %1392 = memref.load %arg7[%c68_374] : memref<96xf32, #tpu.memory_space<smem>>
    %1393 = vector.broadcast %1392 : f32 to vector<2x10xf32>
    %1394 = arith.mulf %1393, %1067 : vector<2x10xf32>
    %1395 = arith.addf %1391, %1394 : vector<2x10xf32>
    %c69_375 = arith.constant 69 : index
    %1396 = memref.load %arg7[%c69_375] : memref<96xf32, #tpu.memory_space<smem>>
    %1397 = vector.broadcast %1396 : f32 to vector<2x10xf32>
    %1398 = arith.mulf %1397, %1069 : vector<2x10xf32>
    %1399 = arith.addf %1395, %1398 : vector<2x10xf32>
    %c70_376 = arith.constant 70 : index
    %1400 = memref.load %arg7[%c70_376] : memref<96xf32, #tpu.memory_space<smem>>
    %1401 = vector.broadcast %1400 : f32 to vector<2x10xf32>
    %1402 = arith.mulf %1401, %1071 : vector<2x10xf32>
    %1403 = arith.addf %1399, %1402 : vector<2x10xf32>
    %c71_377 = arith.constant 71 : index
    %1404 = memref.load %arg7[%c71_377] : memref<96xf32, #tpu.memory_space<smem>>
    %1405 = vector.broadcast %1404 : f32 to vector<2x10xf32>
    %1406 = arith.mulf %1405, %1073 : vector<2x10xf32>
    %1407 = arith.addf %1403, %1406 : vector<2x10xf32>
    %c5_378 = arith.constant 5 : index
    %1408 = memref.load %arg8[%c5_378] : memref<8xf32, #tpu.memory_space<smem>>
    %1409 = vector.broadcast %1408 : f32 to vector<2x10xf32>
    %1410 = arith.addf %1407, %1409 : vector<2x10xf32>
    %cst_379 = arith.constant 0.000000e+00 : f32
    %1411 = vector.broadcast %cst_379 : f32 to vector<2x10xf32>
    %1412 = arith.cmpf ogt, %1410, %1411 : vector<2x10xf32>
    %cst_380 = arith.constant 0.00999999977 : f32
    %1413 = vector.broadcast %cst_380 : f32 to vector<2x10xf32>
    %1414 = arith.mulf %1413, %1410 : vector<2x10xf32>
    %1415 = arith.select %1412, %1410, %1414 : vector<2x10xi1>, vector<2x10xf32>
    %cst_381 = arith.constant 0.000000e+00 : f32
    %1416 = vector.broadcast %cst_381 : f32 to vector<2x10xf32>
    %c72_382 = arith.constant 72 : index
    %1417 = memref.load %arg7[%c72_382] : memref<96xf32, #tpu.memory_space<smem>>
    %1418 = vector.broadcast %1417 : f32 to vector<2x10xf32>
    %1419 = arith.mulf %1418, %1051 : vector<2x10xf32>
    %1420 = arith.addf %1416, %1419 : vector<2x10xf32>
    %c73_383 = arith.constant 73 : index
    %1421 = memref.load %arg7[%c73_383] : memref<96xf32, #tpu.memory_space<smem>>
    %1422 = vector.broadcast %1421 : f32 to vector<2x10xf32>
    %1423 = arith.mulf %1422, %1053 : vector<2x10xf32>
    %1424 = arith.addf %1420, %1423 : vector<2x10xf32>
    %c74_384 = arith.constant 74 : index
    %1425 = memref.load %arg7[%c74_384] : memref<96xf32, #tpu.memory_space<smem>>
    %1426 = vector.broadcast %1425 : f32 to vector<2x10xf32>
    %1427 = arith.mulf %1426, %1055 : vector<2x10xf32>
    %1428 = arith.addf %1424, %1427 : vector<2x10xf32>
    %c75_385 = arith.constant 75 : index
    %1429 = memref.load %arg7[%c75_385] : memref<96xf32, #tpu.memory_space<smem>>
    %1430 = vector.broadcast %1429 : f32 to vector<2x10xf32>
    %1431 = arith.mulf %1430, %1057 : vector<2x10xf32>
    %1432 = arith.addf %1428, %1431 : vector<2x10xf32>
    %c76_386 = arith.constant 76 : index
    %1433 = memref.load %arg7[%c76_386] : memref<96xf32, #tpu.memory_space<smem>>
    %1434 = vector.broadcast %1433 : f32 to vector<2x10xf32>
    %1435 = arith.mulf %1434, %1059 : vector<2x10xf32>
    %1436 = arith.addf %1432, %1435 : vector<2x10xf32>
    %c77_387 = arith.constant 77 : index
    %1437 = memref.load %arg7[%c77_387] : memref<96xf32, #tpu.memory_space<smem>>
    %1438 = vector.broadcast %1437 : f32 to vector<2x10xf32>
    %1439 = arith.mulf %1438, %1061 : vector<2x10xf32>
    %1440 = arith.addf %1436, %1439 : vector<2x10xf32>
    %c78_388 = arith.constant 78 : index
    %1441 = memref.load %arg7[%c78_388] : memref<96xf32, #tpu.memory_space<smem>>
    %1442 = vector.broadcast %1441 : f32 to vector<2x10xf32>
    %1443 = arith.mulf %1442, %1063 : vector<2x10xf32>
    %1444 = arith.addf %1440, %1443 : vector<2x10xf32>
    %c79_389 = arith.constant 79 : index
    %1445 = memref.load %arg7[%c79_389] : memref<96xf32, #tpu.memory_space<smem>>
    %1446 = vector.broadcast %1445 : f32 to vector<2x10xf32>
    %1447 = arith.mulf %1446, %1065 : vector<2x10xf32>
    %1448 = arith.addf %1444, %1447 : vector<2x10xf32>
    %c80_390 = arith.constant 80 : index
    %1449 = memref.load %arg7[%c80_390] : memref<96xf32, #tpu.memory_space<smem>>
    %1450 = vector.broadcast %1449 : f32 to vector<2x10xf32>
    %1451 = arith.mulf %1450, %1067 : vector<2x10xf32>
    %1452 = arith.addf %1448, %1451 : vector<2x10xf32>
    %c81_391 = arith.constant 81 : index
    %1453 = memref.load %arg7[%c81_391] : memref<96xf32, #tpu.memory_space<smem>>
    %1454 = vector.broadcast %1453 : f32 to vector<2x10xf32>
    %1455 = arith.mulf %1454, %1069 : vector<2x10xf32>
    %1456 = arith.addf %1452, %1455 : vector<2x10xf32>
    %c82_392 = arith.constant 82 : index
    %1457 = memref.load %arg7[%c82_392] : memref<96xf32, #tpu.memory_space<smem>>
    %1458 = vector.broadcast %1457 : f32 to vector<2x10xf32>
    %1459 = arith.mulf %1458, %1071 : vector<2x10xf32>
    %1460 = arith.addf %1456, %1459 : vector<2x10xf32>
    %c83_393 = arith.constant 83 : index
    %1461 = memref.load %arg7[%c83_393] : memref<96xf32, #tpu.memory_space<smem>>
    %1462 = vector.broadcast %1461 : f32 to vector<2x10xf32>
    %1463 = arith.mulf %1462, %1073 : vector<2x10xf32>
    %1464 = arith.addf %1460, %1463 : vector<2x10xf32>
    %c6_394 = arith.constant 6 : index
    %1465 = memref.load %arg8[%c6_394] : memref<8xf32, #tpu.memory_space<smem>>
    %1466 = vector.broadcast %1465 : f32 to vector<2x10xf32>
    %1467 = arith.addf %1464, %1466 : vector<2x10xf32>
    %cst_395 = arith.constant 0.000000e+00 : f32
    %1468 = vector.broadcast %cst_395 : f32 to vector<2x10xf32>
    %1469 = arith.cmpf ogt, %1467, %1468 : vector<2x10xf32>
    %cst_396 = arith.constant 0.00999999977 : f32
    %1470 = vector.broadcast %cst_396 : f32 to vector<2x10xf32>
    %1471 = arith.mulf %1470, %1467 : vector<2x10xf32>
    %1472 = arith.select %1469, %1467, %1471 : vector<2x10xi1>, vector<2x10xf32>
    %cst_397 = arith.constant 0.000000e+00 : f32
    %1473 = vector.broadcast %cst_397 : f32 to vector<2x10xf32>
    %c84_398 = arith.constant 84 : index
    %1474 = memref.load %arg7[%c84_398] : memref<96xf32, #tpu.memory_space<smem>>
    %1475 = vector.broadcast %1474 : f32 to vector<2x10xf32>
    %1476 = arith.mulf %1475, %1051 : vector<2x10xf32>
    %1477 = arith.addf %1473, %1476 : vector<2x10xf32>
    %c85_399 = arith.constant 85 : index
    %1478 = memref.load %arg7[%c85_399] : memref<96xf32, #tpu.memory_space<smem>>
    %1479 = vector.broadcast %1478 : f32 to vector<2x10xf32>
    %1480 = arith.mulf %1479, %1053 : vector<2x10xf32>
    %1481 = arith.addf %1477, %1480 : vector<2x10xf32>
    %c86_400 = arith.constant 86 : index
    %1482 = memref.load %arg7[%c86_400] : memref<96xf32, #tpu.memory_space<smem>>
    %1483 = vector.broadcast %1482 : f32 to vector<2x10xf32>
    %1484 = arith.mulf %1483, %1055 : vector<2x10xf32>
    %1485 = arith.addf %1481, %1484 : vector<2x10xf32>
    %c87_401 = arith.constant 87 : index
    %1486 = memref.load %arg7[%c87_401] : memref<96xf32, #tpu.memory_space<smem>>
    %1487 = vector.broadcast %1486 : f32 to vector<2x10xf32>
    %1488 = arith.mulf %1487, %1057 : vector<2x10xf32>
    %1489 = arith.addf %1485, %1488 : vector<2x10xf32>
    %c88_402 = arith.constant 88 : index
    %1490 = memref.load %arg7[%c88_402] : memref<96xf32, #tpu.memory_space<smem>>
    %1491 = vector.broadcast %1490 : f32 to vector<2x10xf32>
    %1492 = arith.mulf %1491, %1059 : vector<2x10xf32>
    %1493 = arith.addf %1489, %1492 : vector<2x10xf32>
    %c89_403 = arith.constant 89 : index
    %1494 = memref.load %arg7[%c89_403] : memref<96xf32, #tpu.memory_space<smem>>
    %1495 = vector.broadcast %1494 : f32 to vector<2x10xf32>
    %1496 = arith.mulf %1495, %1061 : vector<2x10xf32>
    %1497 = arith.addf %1493, %1496 : vector<2x10xf32>
    %c90_404 = arith.constant 90 : index
    %1498 = memref.load %arg7[%c90_404] : memref<96xf32, #tpu.memory_space<smem>>
    %1499 = vector.broadcast %1498 : f32 to vector<2x10xf32>
    %1500 = arith.mulf %1499, %1063 : vector<2x10xf32>
    %1501 = arith.addf %1497, %1500 : vector<2x10xf32>
    %c91_405 = arith.constant 91 : index
    %1502 = memref.load %arg7[%c91_405] : memref<96xf32, #tpu.memory_space<smem>>
    %1503 = vector.broadcast %1502 : f32 to vector<2x10xf32>
    %1504 = arith.mulf %1503, %1065 : vector<2x10xf32>
    %1505 = arith.addf %1501, %1504 : vector<2x10xf32>
    %c92_406 = arith.constant 92 : index
    %1506 = memref.load %arg7[%c92_406] : memref<96xf32, #tpu.memory_space<smem>>
    %1507 = vector.broadcast %1506 : f32 to vector<2x10xf32>
    %1508 = arith.mulf %1507, %1067 : vector<2x10xf32>
    %1509 = arith.addf %1505, %1508 : vector<2x10xf32>
    %c93_407 = arith.constant 93 : index
    %1510 = memref.load %arg7[%c93_407] : memref<96xf32, #tpu.memory_space<smem>>
    %1511 = vector.broadcast %1510 : f32 to vector<2x10xf32>
    %1512 = arith.mulf %1511, %1069 : vector<2x10xf32>
    %1513 = arith.addf %1509, %1512 : vector<2x10xf32>
    %c94_408 = arith.constant 94 : index
    %1514 = memref.load %arg7[%c94_408] : memref<96xf32, #tpu.memory_space<smem>>
    %1515 = vector.broadcast %1514 : f32 to vector<2x10xf32>
    %1516 = arith.mulf %1515, %1071 : vector<2x10xf32>
    %1517 = arith.addf %1513, %1516 : vector<2x10xf32>
    %c95_409 = arith.constant 95 : index
    %1518 = memref.load %arg7[%c95_409] : memref<96xf32, #tpu.memory_space<smem>>
    %1519 = vector.broadcast %1518 : f32 to vector<2x10xf32>
    %1520 = arith.mulf %1519, %1073 : vector<2x10xf32>
    %1521 = arith.addf %1517, %1520 : vector<2x10xf32>
    %c7_410 = arith.constant 7 : index
    %1522 = memref.load %arg8[%c7_410] : memref<8xf32, #tpu.memory_space<smem>>
    %1523 = vector.broadcast %1522 : f32 to vector<2x10xf32>
    %1524 = arith.addf %1521, %1523 : vector<2x10xf32>
    %cst_411 = arith.constant 0.000000e+00 : f32
    %1525 = vector.broadcast %cst_411 : f32 to vector<2x10xf32>
    %1526 = arith.cmpf ogt, %1524, %1525 : vector<2x10xf32>
    %cst_412 = arith.constant 0.00999999977 : f32
    %1527 = vector.broadcast %cst_412 : f32 to vector<2x10xf32>
    %1528 = arith.mulf %1527, %1524 : vector<2x10xf32>
    %1529 = arith.select %1526, %1524, %1528 : vector<2x10xi1>, vector<2x10xf32>
    %1530 = vector.extract_strided_slice %1130 {offsets = [0, 0], sizes = [2, 8], strides = [1, 1]} : vector<2x10xf32> to vector<2x8xf32>
    %1531 = vector.extract_strided_slice %1130 {offsets = [0, 1], sizes = [2, 8], strides = [1, 1]} : vector<2x10xf32> to vector<2x8xf32>
    %1532 = vector.extract_strided_slice %1130 {offsets = [0, 2], sizes = [2, 8], strides = [1, 1]} : vector<2x10xf32> to vector<2x8xf32>
    %1533 = vector.extract_strided_slice %1187 {offsets = [0, 0], sizes = [2, 8], strides = [1, 1]} : vector<2x10xf32> to vector<2x8xf32>
    %1534 = vector.extract_strided_slice %1187 {offsets = [0, 1], sizes = [2, 8], strides = [1, 1]} : vector<2x10xf32> to vector<2x8xf32>
    %1535 = vector.extract_strided_slice %1187 {offsets = [0, 2], sizes = [2, 8], strides = [1, 1]} : vector<2x10xf32> to vector<2x8xf32>
    %1536 = vector.extract_strided_slice %1244 {offsets = [0, 0], sizes = [2, 8], strides = [1, 1]} : vector<2x10xf32> to vector<2x8xf32>
    %1537 = vector.extract_strided_slice %1244 {offsets = [0, 1], sizes = [2, 8], strides = [1, 1]} : vector<2x10xf32> to vector<2x8xf32>
    %1538 = vector.extract_strided_slice %1244 {offsets = [0, 2], sizes = [2, 8], strides = [1, 1]} : vector<2x10xf32> to vector<2x8xf32>
    %1539 = vector.extract_strided_slice %1301 {offsets = [0, 0], sizes = [2, 8], strides = [1, 1]} : vector<2x10xf32> to vector<2x8xf32>
    %1540 = vector.extract_strided_slice %1301 {offsets = [0, 1], sizes = [2, 8], strides = [1, 1]} : vector<2x10xf32> to vector<2x8xf32>
    %1541 = vector.extract_strided_slice %1301 {offsets = [0, 2], sizes = [2, 8], strides = [1, 1]} : vector<2x10xf32> to vector<2x8xf32>
    %1542 = vector.extract_strided_slice %1358 {offsets = [0, 0], sizes = [2, 8], strides = [1, 1]} : vector<2x10xf32> to vector<2x8xf32>
    %1543 = vector.extract_strided_slice %1358 {offsets = [0, 1], sizes = [2, 8], strides = [1, 1]} : vector<2x10xf32> to vector<2x8xf32>
    %1544 = vector.extract_strided_slice %1358 {offsets = [0, 2], sizes = [2, 8], strides = [1, 1]} : vector<2x10xf32> to vector<2x8xf32>
    %1545 = vector.extract_strided_slice %1415 {offsets = [0, 0], sizes = [2, 8], strides = [1, 1]} : vector<2x10xf32> to vector<2x8xf32>
    %1546 = vector.extract_strided_slice %1415 {offsets = [0, 1], sizes = [2, 8], strides = [1, 1]} : vector<2x10xf32> to vector<2x8xf32>
    %1547 = vector.extract_strided_slice %1415 {offsets = [0, 2], sizes = [2, 8], strides = [1, 1]} : vector<2x10xf32> to vector<2x8xf32>
    %1548 = vector.extract_strided_slice %1472 {offsets = [0, 0], sizes = [2, 8], strides = [1, 1]} : vector<2x10xf32> to vector<2x8xf32>
    %1549 = vector.extract_strided_slice %1472 {offsets = [0, 1], sizes = [2, 8], strides = [1, 1]} : vector<2x10xf32> to vector<2x8xf32>
    %1550 = vector.extract_strided_slice %1472 {offsets = [0, 2], sizes = [2, 8], strides = [1, 1]} : vector<2x10xf32> to vector<2x8xf32>
    %1551 = vector.extract_strided_slice %1529 {offsets = [0, 0], sizes = [2, 8], strides = [1, 1]} : vector<2x10xf32> to vector<2x8xf32>
    %1552 = vector.extract_strided_slice %1529 {offsets = [0, 1], sizes = [2, 8], strides = [1, 1]} : vector<2x10xf32> to vector<2x8xf32>
    %1553 = vector.extract_strided_slice %1529 {offsets = [0, 2], sizes = [2, 8], strides = [1, 1]} : vector<2x10xf32> to vector<2x8xf32>
    %cst_413 = arith.constant 0.000000e+00 : f32
    %1554 = vector.broadcast %cst_413 : f32 to vector<2x8xf32>
    %c0_414 = arith.constant 0 : index
    %1555 = memref.load %arg9[%c0_414] : memref<96xf32, #tpu.memory_space<smem>>
    %1556 = vector.broadcast %1555 : f32 to vector<2x8xf32>
    %1557 = arith.mulf %1556, %1530 : vector<2x8xf32>
    %1558 = arith.addf %1554, %1557 : vector<2x8xf32>
    %c1_415 = arith.constant 1 : index
    %1559 = memref.load %arg9[%c1_415] : memref<96xf32, #tpu.memory_space<smem>>
    %1560 = vector.broadcast %1559 : f32 to vector<2x8xf32>
    %1561 = arith.mulf %1560, %1531 : vector<2x8xf32>
    %1562 = arith.addf %1558, %1561 : vector<2x8xf32>
    %c2_416 = arith.constant 2 : index
    %1563 = memref.load %arg9[%c2_416] : memref<96xf32, #tpu.memory_space<smem>>
    %1564 = vector.broadcast %1563 : f32 to vector<2x8xf32>
    %1565 = arith.mulf %1564, %1532 : vector<2x8xf32>
    %1566 = arith.addf %1562, %1565 : vector<2x8xf32>
    %c3_417 = arith.constant 3 : index
    %1567 = memref.load %arg9[%c3_417] : memref<96xf32, #tpu.memory_space<smem>>
    %1568 = vector.broadcast %1567 : f32 to vector<2x8xf32>
    %1569 = arith.mulf %1568, %1533 : vector<2x8xf32>
    %1570 = arith.addf %1566, %1569 : vector<2x8xf32>
    %c4_418 = arith.constant 4 : index
    %1571 = memref.load %arg9[%c4_418] : memref<96xf32, #tpu.memory_space<smem>>
    %1572 = vector.broadcast %1571 : f32 to vector<2x8xf32>
    %1573 = arith.mulf %1572, %1534 : vector<2x8xf32>
    %1574 = arith.addf %1570, %1573 : vector<2x8xf32>
    %c5_419 = arith.constant 5 : index
    %1575 = memref.load %arg9[%c5_419] : memref<96xf32, #tpu.memory_space<smem>>
    %1576 = vector.broadcast %1575 : f32 to vector<2x8xf32>
    %1577 = arith.mulf %1576, %1535 : vector<2x8xf32>
    %1578 = arith.addf %1574, %1577 : vector<2x8xf32>
    %c6_420 = arith.constant 6 : index
    %1579 = memref.load %arg9[%c6_420] : memref<96xf32, #tpu.memory_space<smem>>
    %1580 = vector.broadcast %1579 : f32 to vector<2x8xf32>
    %1581 = arith.mulf %1580, %1536 : vector<2x8xf32>
    %1582 = arith.addf %1578, %1581 : vector<2x8xf32>
    %c7_421 = arith.constant 7 : index
    %1583 = memref.load %arg9[%c7_421] : memref<96xf32, #tpu.memory_space<smem>>
    %1584 = vector.broadcast %1583 : f32 to vector<2x8xf32>
    %1585 = arith.mulf %1584, %1537 : vector<2x8xf32>
    %1586 = arith.addf %1582, %1585 : vector<2x8xf32>
    %c8_422 = arith.constant 8 : index
    %1587 = memref.load %arg9[%c8_422] : memref<96xf32, #tpu.memory_space<smem>>
    %1588 = vector.broadcast %1587 : f32 to vector<2x8xf32>
    %1589 = arith.mulf %1588, %1538 : vector<2x8xf32>
    %1590 = arith.addf %1586, %1589 : vector<2x8xf32>
    %c9_423 = arith.constant 9 : index
    %1591 = memref.load %arg9[%c9_423] : memref<96xf32, #tpu.memory_space<smem>>
    %1592 = vector.broadcast %1591 : f32 to vector<2x8xf32>
    %1593 = arith.mulf %1592, %1539 : vector<2x8xf32>
    %1594 = arith.addf %1590, %1593 : vector<2x8xf32>
    %c10_424 = arith.constant 10 : index
    %1595 = memref.load %arg9[%c10_424] : memref<96xf32, #tpu.memory_space<smem>>
    %1596 = vector.broadcast %1595 : f32 to vector<2x8xf32>
    %1597 = arith.mulf %1596, %1540 : vector<2x8xf32>
    %1598 = arith.addf %1594, %1597 : vector<2x8xf32>
    %c11_425 = arith.constant 11 : index
    %1599 = memref.load %arg9[%c11_425] : memref<96xf32, #tpu.memory_space<smem>>
    %1600 = vector.broadcast %1599 : f32 to vector<2x8xf32>
    %1601 = arith.mulf %1600, %1541 : vector<2x8xf32>
    %1602 = arith.addf %1598, %1601 : vector<2x8xf32>
    %c12_426 = arith.constant 12 : index
    %1603 = memref.load %arg9[%c12_426] : memref<96xf32, #tpu.memory_space<smem>>
    %1604 = vector.broadcast %1603 : f32 to vector<2x8xf32>
    %1605 = arith.mulf %1604, %1542 : vector<2x8xf32>
    %1606 = arith.addf %1602, %1605 : vector<2x8xf32>
    %c13_427 = arith.constant 13 : index
    %1607 = memref.load %arg9[%c13_427] : memref<96xf32, #tpu.memory_space<smem>>
    %1608 = vector.broadcast %1607 : f32 to vector<2x8xf32>
    %1609 = arith.mulf %1608, %1543 : vector<2x8xf32>
    %1610 = arith.addf %1606, %1609 : vector<2x8xf32>
    %c14_428 = arith.constant 14 : index
    %1611 = memref.load %arg9[%c14_428] : memref<96xf32, #tpu.memory_space<smem>>
    %1612 = vector.broadcast %1611 : f32 to vector<2x8xf32>
    %1613 = arith.mulf %1612, %1544 : vector<2x8xf32>
    %1614 = arith.addf %1610, %1613 : vector<2x8xf32>
    %c15_429 = arith.constant 15 : index
    %1615 = memref.load %arg9[%c15_429] : memref<96xf32, #tpu.memory_space<smem>>
    %1616 = vector.broadcast %1615 : f32 to vector<2x8xf32>
    %1617 = arith.mulf %1616, %1545 : vector<2x8xf32>
    %1618 = arith.addf %1614, %1617 : vector<2x8xf32>
    %c16_430 = arith.constant 16 : index
    %1619 = memref.load %arg9[%c16_430] : memref<96xf32, #tpu.memory_space<smem>>
    %1620 = vector.broadcast %1619 : f32 to vector<2x8xf32>
    %1621 = arith.mulf %1620, %1546 : vector<2x8xf32>
    %1622 = arith.addf %1618, %1621 : vector<2x8xf32>
    %c17_431 = arith.constant 17 : index
    %1623 = memref.load %arg9[%c17_431] : memref<96xf32, #tpu.memory_space<smem>>
    %1624 = vector.broadcast %1623 : f32 to vector<2x8xf32>
    %1625 = arith.mulf %1624, %1547 : vector<2x8xf32>
    %1626 = arith.addf %1622, %1625 : vector<2x8xf32>
    %c18_432 = arith.constant 18 : index
    %1627 = memref.load %arg9[%c18_432] : memref<96xf32, #tpu.memory_space<smem>>
    %1628 = vector.broadcast %1627 : f32 to vector<2x8xf32>
    %1629 = arith.mulf %1628, %1548 : vector<2x8xf32>
    %1630 = arith.addf %1626, %1629 : vector<2x8xf32>
    %c19_433 = arith.constant 19 : index
    %1631 = memref.load %arg9[%c19_433] : memref<96xf32, #tpu.memory_space<smem>>
    %1632 = vector.broadcast %1631 : f32 to vector<2x8xf32>
    %1633 = arith.mulf %1632, %1549 : vector<2x8xf32>
    %1634 = arith.addf %1630, %1633 : vector<2x8xf32>
    %c20_434 = arith.constant 20 : index
    %1635 = memref.load %arg9[%c20_434] : memref<96xf32, #tpu.memory_space<smem>>
    %1636 = vector.broadcast %1635 : f32 to vector<2x8xf32>
    %1637 = arith.mulf %1636, %1550 : vector<2x8xf32>
    %1638 = arith.addf %1634, %1637 : vector<2x8xf32>
    %c21_435 = arith.constant 21 : index
    %1639 = memref.load %arg9[%c21_435] : memref<96xf32, #tpu.memory_space<smem>>
    %1640 = vector.broadcast %1639 : f32 to vector<2x8xf32>
    %1641 = arith.mulf %1640, %1551 : vector<2x8xf32>
    %1642 = arith.addf %1638, %1641 : vector<2x8xf32>
    %c22_436 = arith.constant 22 : index
    %1643 = memref.load %arg9[%c22_436] : memref<96xf32, #tpu.memory_space<smem>>
    %1644 = vector.broadcast %1643 : f32 to vector<2x8xf32>
    %1645 = arith.mulf %1644, %1552 : vector<2x8xf32>
    %1646 = arith.addf %1642, %1645 : vector<2x8xf32>
    %c23_437 = arith.constant 23 : index
    %1647 = memref.load %arg9[%c23_437] : memref<96xf32, #tpu.memory_space<smem>>
    %1648 = vector.broadcast %1647 : f32 to vector<2x8xf32>
    %1649 = arith.mulf %1648, %1553 : vector<2x8xf32>
    %1650 = arith.addf %1646, %1649 : vector<2x8xf32>
    %c0_438 = arith.constant 0 : index
    %1651 = memref.load %arg10[%c0_438] : memref<4xf32, #tpu.memory_space<smem>>
    %1652 = vector.broadcast %1651 : f32 to vector<2x8xf32>
    %1653 = arith.addf %1650, %1652 : vector<2x8xf32>
    %1654 = math.tanh %1653 : vector<2x8xf32>
    %cst_439 = arith.constant 0.000000e+00 : f32
    %1655 = vector.broadcast %cst_439 : f32 to vector<2x8xf32>
    %c24_440 = arith.constant 24 : index
    %1656 = memref.load %arg9[%c24_440] : memref<96xf32, #tpu.memory_space<smem>>
    %1657 = vector.broadcast %1656 : f32 to vector<2x8xf32>
    %1658 = arith.mulf %1657, %1530 : vector<2x8xf32>
    %1659 = arith.addf %1655, %1658 : vector<2x8xf32>
    %c25_441 = arith.constant 25 : index
    %1660 = memref.load %arg9[%c25_441] : memref<96xf32, #tpu.memory_space<smem>>
    %1661 = vector.broadcast %1660 : f32 to vector<2x8xf32>
    %1662 = arith.mulf %1661, %1531 : vector<2x8xf32>
    %1663 = arith.addf %1659, %1662 : vector<2x8xf32>
    %c26_442 = arith.constant 26 : index
    %1664 = memref.load %arg9[%c26_442] : memref<96xf32, #tpu.memory_space<smem>>
    %1665 = vector.broadcast %1664 : f32 to vector<2x8xf32>
    %1666 = arith.mulf %1665, %1532 : vector<2x8xf32>
    %1667 = arith.addf %1663, %1666 : vector<2x8xf32>
    %c27_443 = arith.constant 27 : index
    %1668 = memref.load %arg9[%c27_443] : memref<96xf32, #tpu.memory_space<smem>>
    %1669 = vector.broadcast %1668 : f32 to vector<2x8xf32>
    %1670 = arith.mulf %1669, %1533 : vector<2x8xf32>
    %1671 = arith.addf %1667, %1670 : vector<2x8xf32>
    %c28_444 = arith.constant 28 : index
    %1672 = memref.load %arg9[%c28_444] : memref<96xf32, #tpu.memory_space<smem>>
    %1673 = vector.broadcast %1672 : f32 to vector<2x8xf32>
    %1674 = arith.mulf %1673, %1534 : vector<2x8xf32>
    %1675 = arith.addf %1671, %1674 : vector<2x8xf32>
    %c29_445 = arith.constant 29 : index
    %1676 = memref.load %arg9[%c29_445] : memref<96xf32, #tpu.memory_space<smem>>
    %1677 = vector.broadcast %1676 : f32 to vector<2x8xf32>
    %1678 = arith.mulf %1677, %1535 : vector<2x8xf32>
    %1679 = arith.addf %1675, %1678 : vector<2x8xf32>
    %c30_446 = arith.constant 30 : index
    %1680 = memref.load %arg9[%c30_446] : memref<96xf32, #tpu.memory_space<smem>>
    %1681 = vector.broadcast %1680 : f32 to vector<2x8xf32>
    %1682 = arith.mulf %1681, %1536 : vector<2x8xf32>
    %1683 = arith.addf %1679, %1682 : vector<2x8xf32>
    %c31_447 = arith.constant 31 : index
    %1684 = memref.load %arg9[%c31_447] : memref<96xf32, #tpu.memory_space<smem>>
    %1685 = vector.broadcast %1684 : f32 to vector<2x8xf32>
    %1686 = arith.mulf %1685, %1537 : vector<2x8xf32>
    %1687 = arith.addf %1683, %1686 : vector<2x8xf32>
    %c32_448 = arith.constant 32 : index
    %1688 = memref.load %arg9[%c32_448] : memref<96xf32, #tpu.memory_space<smem>>
    %1689 = vector.broadcast %1688 : f32 to vector<2x8xf32>
    %1690 = arith.mulf %1689, %1538 : vector<2x8xf32>
    %1691 = arith.addf %1687, %1690 : vector<2x8xf32>
    %c33_449 = arith.constant 33 : index
    %1692 = memref.load %arg9[%c33_449] : memref<96xf32, #tpu.memory_space<smem>>
    %1693 = vector.broadcast %1692 : f32 to vector<2x8xf32>
    %1694 = arith.mulf %1693, %1539 : vector<2x8xf32>
    %1695 = arith.addf %1691, %1694 : vector<2x8xf32>
    %c34_450 = arith.constant 34 : index
    %1696 = memref.load %arg9[%c34_450] : memref<96xf32, #tpu.memory_space<smem>>
    %1697 = vector.broadcast %1696 : f32 to vector<2x8xf32>
    %1698 = arith.mulf %1697, %1540 : vector<2x8xf32>
    %1699 = arith.addf %1695, %1698 : vector<2x8xf32>
    %c35_451 = arith.constant 35 : index
    %1700 = memref.load %arg9[%c35_451] : memref<96xf32, #tpu.memory_space<smem>>
    %1701 = vector.broadcast %1700 : f32 to vector<2x8xf32>
    %1702 = arith.mulf %1701, %1541 : vector<2x8xf32>
    %1703 = arith.addf %1699, %1702 : vector<2x8xf32>
    %c36_452 = arith.constant 36 : index
    %1704 = memref.load %arg9[%c36_452] : memref<96xf32, #tpu.memory_space<smem>>
    %1705 = vector.broadcast %1704 : f32 to vector<2x8xf32>
    %1706 = arith.mulf %1705, %1542 : vector<2x8xf32>
    %1707 = arith.addf %1703, %1706 : vector<2x8xf32>
    %c37_453 = arith.constant 37 : index
    %1708 = memref.load %arg9[%c37_453] : memref<96xf32, #tpu.memory_space<smem>>
    %1709 = vector.broadcast %1708 : f32 to vector<2x8xf32>
    %1710 = arith.mulf %1709, %1543 : vector<2x8xf32>
    %1711 = arith.addf %1707, %1710 : vector<2x8xf32>
    %c38_454 = arith.constant 38 : index
    %1712 = memref.load %arg9[%c38_454] : memref<96xf32, #tpu.memory_space<smem>>
    %1713 = vector.broadcast %1712 : f32 to vector<2x8xf32>
    %1714 = arith.mulf %1713, %1544 : vector<2x8xf32>
    %1715 = arith.addf %1711, %1714 : vector<2x8xf32>
    %c39_455 = arith.constant 39 : index
    %1716 = memref.load %arg9[%c39_455] : memref<96xf32, #tpu.memory_space<smem>>
    %1717 = vector.broadcast %1716 : f32 to vector<2x8xf32>
    %1718 = arith.mulf %1717, %1545 : vector<2x8xf32>
    %1719 = arith.addf %1715, %1718 : vector<2x8xf32>
    %c40_456 = arith.constant 40 : index
    %1720 = memref.load %arg9[%c40_456] : memref<96xf32, #tpu.memory_space<smem>>
    %1721 = vector.broadcast %1720 : f32 to vector<2x8xf32>
    %1722 = arith.mulf %1721, %1546 : vector<2x8xf32>
    %1723 = arith.addf %1719, %1722 : vector<2x8xf32>
    %c41_457 = arith.constant 41 : index
    %1724 = memref.load %arg9[%c41_457] : memref<96xf32, #tpu.memory_space<smem>>
    %1725 = vector.broadcast %1724 : f32 to vector<2x8xf32>
    %1726 = arith.mulf %1725, %1547 : vector<2x8xf32>
    %1727 = arith.addf %1723, %1726 : vector<2x8xf32>
    %c42_458 = arith.constant 42 : index
    %1728 = memref.load %arg9[%c42_458] : memref<96xf32, #tpu.memory_space<smem>>
    %1729 = vector.broadcast %1728 : f32 to vector<2x8xf32>
    %1730 = arith.mulf %1729, %1548 : vector<2x8xf32>
    %1731 = arith.addf %1727, %1730 : vector<2x8xf32>
    %c43_459 = arith.constant 43 : index
    %1732 = memref.load %arg9[%c43_459] : memref<96xf32, #tpu.memory_space<smem>>
    %1733 = vector.broadcast %1732 : f32 to vector<2x8xf32>
    %1734 = arith.mulf %1733, %1549 : vector<2x8xf32>
    %1735 = arith.addf %1731, %1734 : vector<2x8xf32>
    %c44_460 = arith.constant 44 : index
    %1736 = memref.load %arg9[%c44_460] : memref<96xf32, #tpu.memory_space<smem>>
    %1737 = vector.broadcast %1736 : f32 to vector<2x8xf32>
    %1738 = arith.mulf %1737, %1550 : vector<2x8xf32>
    %1739 = arith.addf %1735, %1738 : vector<2x8xf32>
    %c45_461 = arith.constant 45 : index
    %1740 = memref.load %arg9[%c45_461] : memref<96xf32, #tpu.memory_space<smem>>
    %1741 = vector.broadcast %1740 : f32 to vector<2x8xf32>
    %1742 = arith.mulf %1741, %1551 : vector<2x8xf32>
    %1743 = arith.addf %1739, %1742 : vector<2x8xf32>
    %c46_462 = arith.constant 46 : index
    %1744 = memref.load %arg9[%c46_462] : memref<96xf32, #tpu.memory_space<smem>>
    %1745 = vector.broadcast %1744 : f32 to vector<2x8xf32>
    %1746 = arith.mulf %1745, %1552 : vector<2x8xf32>
    %1747 = arith.addf %1743, %1746 : vector<2x8xf32>
    %c47_463 = arith.constant 47 : index
    %1748 = memref.load %arg9[%c47_463] : memref<96xf32, #tpu.memory_space<smem>>
    %1749 = vector.broadcast %1748 : f32 to vector<2x8xf32>
    %1750 = arith.mulf %1749, %1553 : vector<2x8xf32>
    %1751 = arith.addf %1747, %1750 : vector<2x8xf32>
    %c1_464 = arith.constant 1 : index
    %1752 = memref.load %arg10[%c1_464] : memref<4xf32, #tpu.memory_space<smem>>
    %1753 = vector.broadcast %1752 : f32 to vector<2x8xf32>
    %1754 = arith.addf %1751, %1753 : vector<2x8xf32>
    %1755 = math.tanh %1754 : vector<2x8xf32>
    %cst_465 = arith.constant 0.000000e+00 : f32
    %1756 = vector.broadcast %cst_465 : f32 to vector<2x8xf32>
    %c48_466 = arith.constant 48 : index
    %1757 = memref.load %arg9[%c48_466] : memref<96xf32, #tpu.memory_space<smem>>
    %1758 = vector.broadcast %1757 : f32 to vector<2x8xf32>
    %1759 = arith.mulf %1758, %1530 : vector<2x8xf32>
    %1760 = arith.addf %1756, %1759 : vector<2x8xf32>
    %c49_467 = arith.constant 49 : index
    %1761 = memref.load %arg9[%c49_467] : memref<96xf32, #tpu.memory_space<smem>>
    %1762 = vector.broadcast %1761 : f32 to vector<2x8xf32>
    %1763 = arith.mulf %1762, %1531 : vector<2x8xf32>
    %1764 = arith.addf %1760, %1763 : vector<2x8xf32>
    %c50_468 = arith.constant 50 : index
    %1765 = memref.load %arg9[%c50_468] : memref<96xf32, #tpu.memory_space<smem>>
    %1766 = vector.broadcast %1765 : f32 to vector<2x8xf32>
    %1767 = arith.mulf %1766, %1532 : vector<2x8xf32>
    %1768 = arith.addf %1764, %1767 : vector<2x8xf32>
    %c51_469 = arith.constant 51 : index
    %1769 = memref.load %arg9[%c51_469] : memref<96xf32, #tpu.memory_space<smem>>
    %1770 = vector.broadcast %1769 : f32 to vector<2x8xf32>
    %1771 = arith.mulf %1770, %1533 : vector<2x8xf32>
    %1772 = arith.addf %1768, %1771 : vector<2x8xf32>
    %c52_470 = arith.constant 52 : index
    %1773 = memref.load %arg9[%c52_470] : memref<96xf32, #tpu.memory_space<smem>>
    %1774 = vector.broadcast %1773 : f32 to vector<2x8xf32>
    %1775 = arith.mulf %1774, %1534 : vector<2x8xf32>
    %1776 = arith.addf %1772, %1775 : vector<2x8xf32>
    %c53_471 = arith.constant 53 : index
    %1777 = memref.load %arg9[%c53_471] : memref<96xf32, #tpu.memory_space<smem>>
    %1778 = vector.broadcast %1777 : f32 to vector<2x8xf32>
    %1779 = arith.mulf %1778, %1535 : vector<2x8xf32>
    %1780 = arith.addf %1776, %1779 : vector<2x8xf32>
    %c54_472 = arith.constant 54 : index
    %1781 = memref.load %arg9[%c54_472] : memref<96xf32, #tpu.memory_space<smem>>
    %1782 = vector.broadcast %1781 : f32 to vector<2x8xf32>
    %1783 = arith.mulf %1782, %1536 : vector<2x8xf32>
    %1784 = arith.addf %1780, %1783 : vector<2x8xf32>
    %c55_473 = arith.constant 55 : index
    %1785 = memref.load %arg9[%c55_473] : memref<96xf32, #tpu.memory_space<smem>>
    %1786 = vector.broadcast %1785 : f32 to vector<2x8xf32>
    %1787 = arith.mulf %1786, %1537 : vector<2x8xf32>
    %1788 = arith.addf %1784, %1787 : vector<2x8xf32>
    %c56_474 = arith.constant 56 : index
    %1789 = memref.load %arg9[%c56_474] : memref<96xf32, #tpu.memory_space<smem>>
    %1790 = vector.broadcast %1789 : f32 to vector<2x8xf32>
    %1791 = arith.mulf %1790, %1538 : vector<2x8xf32>
    %1792 = arith.addf %1788, %1791 : vector<2x8xf32>
    %c57_475 = arith.constant 57 : index
    %1793 = memref.load %arg9[%c57_475] : memref<96xf32, #tpu.memory_space<smem>>
    %1794 = vector.broadcast %1793 : f32 to vector<2x8xf32>
    %1795 = arith.mulf %1794, %1539 : vector<2x8xf32>
    %1796 = arith.addf %1792, %1795 : vector<2x8xf32>
    %c58_476 = arith.constant 58 : index
    %1797 = memref.load %arg9[%c58_476] : memref<96xf32, #tpu.memory_space<smem>>
    %1798 = vector.broadcast %1797 : f32 to vector<2x8xf32>
    %1799 = arith.mulf %1798, %1540 : vector<2x8xf32>
    %1800 = arith.addf %1796, %1799 : vector<2x8xf32>
    %c59_477 = arith.constant 59 : index
    %1801 = memref.load %arg9[%c59_477] : memref<96xf32, #tpu.memory_space<smem>>
    %1802 = vector.broadcast %1801 : f32 to vector<2x8xf32>
    %1803 = arith.mulf %1802, %1541 : vector<2x8xf32>
    %1804 = arith.addf %1800, %1803 : vector<2x8xf32>
    %c60_478 = arith.constant 60 : index
    %1805 = memref.load %arg9[%c60_478] : memref<96xf32, #tpu.memory_space<smem>>
    %1806 = vector.broadcast %1805 : f32 to vector<2x8xf32>
    %1807 = arith.mulf %1806, %1542 : vector<2x8xf32>
    %1808 = arith.addf %1804, %1807 : vector<2x8xf32>
    %c61_479 = arith.constant 61 : index
    %1809 = memref.load %arg9[%c61_479] : memref<96xf32, #tpu.memory_space<smem>>
    %1810 = vector.broadcast %1809 : f32 to vector<2x8xf32>
    %1811 = arith.mulf %1810, %1543 : vector<2x8xf32>
    %1812 = arith.addf %1808, %1811 : vector<2x8xf32>
    %c62_480 = arith.constant 62 : index
    %1813 = memref.load %arg9[%c62_480] : memref<96xf32, #tpu.memory_space<smem>>
    %1814 = vector.broadcast %1813 : f32 to vector<2x8xf32>
    %1815 = arith.mulf %1814, %1544 : vector<2x8xf32>
    %1816 = arith.addf %1812, %1815 : vector<2x8xf32>
    %c63_481 = arith.constant 63 : index
    %1817 = memref.load %arg9[%c63_481] : memref<96xf32, #tpu.memory_space<smem>>
    %1818 = vector.broadcast %1817 : f32 to vector<2x8xf32>
    %1819 = arith.mulf %1818, %1545 : vector<2x8xf32>
    %1820 = arith.addf %1816, %1819 : vector<2x8xf32>
    %c64_482 = arith.constant 64 : index
    %1821 = memref.load %arg9[%c64_482] : memref<96xf32, #tpu.memory_space<smem>>
    %1822 = vector.broadcast %1821 : f32 to vector<2x8xf32>
    %1823 = arith.mulf %1822, %1546 : vector<2x8xf32>
    %1824 = arith.addf %1820, %1823 : vector<2x8xf32>
    %c65_483 = arith.constant 65 : index
    %1825 = memref.load %arg9[%c65_483] : memref<96xf32, #tpu.memory_space<smem>>
    %1826 = vector.broadcast %1825 : f32 to vector<2x8xf32>
    %1827 = arith.mulf %1826, %1547 : vector<2x8xf32>
    %1828 = arith.addf %1824, %1827 : vector<2x8xf32>
    %c66_484 = arith.constant 66 : index
    %1829 = memref.load %arg9[%c66_484] : memref<96xf32, #tpu.memory_space<smem>>
    %1830 = vector.broadcast %1829 : f32 to vector<2x8xf32>
    %1831 = arith.mulf %1830, %1548 : vector<2x8xf32>
    %1832 = arith.addf %1828, %1831 : vector<2x8xf32>
    %c67_485 = arith.constant 67 : index
    %1833 = memref.load %arg9[%c67_485] : memref<96xf32, #tpu.memory_space<smem>>
    %1834 = vector.broadcast %1833 : f32 to vector<2x8xf32>
    %1835 = arith.mulf %1834, %1549 : vector<2x8xf32>
    %1836 = arith.addf %1832, %1835 : vector<2x8xf32>
    %c68_486 = arith.constant 68 : index
    %1837 = memref.load %arg9[%c68_486] : memref<96xf32, #tpu.memory_space<smem>>
    %1838 = vector.broadcast %1837 : f32 to vector<2x8xf32>
    %1839 = arith.mulf %1838, %1550 : vector<2x8xf32>
    %1840 = arith.addf %1836, %1839 : vector<2x8xf32>
    %c69_487 = arith.constant 69 : index
    %1841 = memref.load %arg9[%c69_487] : memref<96xf32, #tpu.memory_space<smem>>
    %1842 = vector.broadcast %1841 : f32 to vector<2x8xf32>
    %1843 = arith.mulf %1842, %1551 : vector<2x8xf32>
    %1844 = arith.addf %1840, %1843 : vector<2x8xf32>
    %c70_488 = arith.constant 70 : index
    %1845 = memref.load %arg9[%c70_488] : memref<96xf32, #tpu.memory_space<smem>>
    %1846 = vector.broadcast %1845 : f32 to vector<2x8xf32>
    %1847 = arith.mulf %1846, %1552 : vector<2x8xf32>
    %1848 = arith.addf %1844, %1847 : vector<2x8xf32>
    %c71_489 = arith.constant 71 : index
    %1849 = memref.load %arg9[%c71_489] : memref<96xf32, #tpu.memory_space<smem>>
    %1850 = vector.broadcast %1849 : f32 to vector<2x8xf32>
    %1851 = arith.mulf %1850, %1553 : vector<2x8xf32>
    %1852 = arith.addf %1848, %1851 : vector<2x8xf32>
    %c2_490 = arith.constant 2 : index
    %1853 = memref.load %arg10[%c2_490] : memref<4xf32, #tpu.memory_space<smem>>
    %1854 = vector.broadcast %1853 : f32 to vector<2x8xf32>
    %1855 = arith.addf %1852, %1854 : vector<2x8xf32>
    %1856 = math.tanh %1855 : vector<2x8xf32>
    %cst_491 = arith.constant 0.000000e+00 : f32
    %1857 = vector.broadcast %cst_491 : f32 to vector<2x8xf32>
    %c72_492 = arith.constant 72 : index
    %1858 = memref.load %arg9[%c72_492] : memref<96xf32, #tpu.memory_space<smem>>
    %1859 = vector.broadcast %1858 : f32 to vector<2x8xf32>
    %1860 = arith.mulf %1859, %1530 : vector<2x8xf32>
    %1861 = arith.addf %1857, %1860 : vector<2x8xf32>
    %c73_493 = arith.constant 73 : index
    %1862 = memref.load %arg9[%c73_493] : memref<96xf32, #tpu.memory_space<smem>>
    %1863 = vector.broadcast %1862 : f32 to vector<2x8xf32>
    %1864 = arith.mulf %1863, %1531 : vector<2x8xf32>
    %1865 = arith.addf %1861, %1864 : vector<2x8xf32>
    %c74_494 = arith.constant 74 : index
    %1866 = memref.load %arg9[%c74_494] : memref<96xf32, #tpu.memory_space<smem>>
    %1867 = vector.broadcast %1866 : f32 to vector<2x8xf32>
    %1868 = arith.mulf %1867, %1532 : vector<2x8xf32>
    %1869 = arith.addf %1865, %1868 : vector<2x8xf32>
    %c75_495 = arith.constant 75 : index
    %1870 = memref.load %arg9[%c75_495] : memref<96xf32, #tpu.memory_space<smem>>
    %1871 = vector.broadcast %1870 : f32 to vector<2x8xf32>
    %1872 = arith.mulf %1871, %1533 : vector<2x8xf32>
    %1873 = arith.addf %1869, %1872 : vector<2x8xf32>
    %c76_496 = arith.constant 76 : index
    %1874 = memref.load %arg9[%c76_496] : memref<96xf32, #tpu.memory_space<smem>>
    %1875 = vector.broadcast %1874 : f32 to vector<2x8xf32>
    %1876 = arith.mulf %1875, %1534 : vector<2x8xf32>
    %1877 = arith.addf %1873, %1876 : vector<2x8xf32>
    %c77_497 = arith.constant 77 : index
    %1878 = memref.load %arg9[%c77_497] : memref<96xf32, #tpu.memory_space<smem>>
    %1879 = vector.broadcast %1878 : f32 to vector<2x8xf32>
    %1880 = arith.mulf %1879, %1535 : vector<2x8xf32>
    %1881 = arith.addf %1877, %1880 : vector<2x8xf32>
    %c78_498 = arith.constant 78 : index
    %1882 = memref.load %arg9[%c78_498] : memref<96xf32, #tpu.memory_space<smem>>
    %1883 = vector.broadcast %1882 : f32 to vector<2x8xf32>
    %1884 = arith.mulf %1883, %1536 : vector<2x8xf32>
    %1885 = arith.addf %1881, %1884 : vector<2x8xf32>
    %c79_499 = arith.constant 79 : index
    %1886 = memref.load %arg9[%c79_499] : memref<96xf32, #tpu.memory_space<smem>>
    %1887 = vector.broadcast %1886 : f32 to vector<2x8xf32>
    %1888 = arith.mulf %1887, %1537 : vector<2x8xf32>
    %1889 = arith.addf %1885, %1888 : vector<2x8xf32>
    %c80_500 = arith.constant 80 : index
    %1890 = memref.load %arg9[%c80_500] : memref<96xf32, #tpu.memory_space<smem>>
    %1891 = vector.broadcast %1890 : f32 to vector<2x8xf32>
    %1892 = arith.mulf %1891, %1538 : vector<2x8xf32>
    %1893 = arith.addf %1889, %1892 : vector<2x8xf32>
    %c81_501 = arith.constant 81 : index
    %1894 = memref.load %arg9[%c81_501] : memref<96xf32, #tpu.memory_space<smem>>
    %1895 = vector.broadcast %1894 : f32 to vector<2x8xf32>
    %1896 = arith.mulf %1895, %1539 : vector<2x8xf32>
    %1897 = arith.addf %1893, %1896 : vector<2x8xf32>
    %c82_502 = arith.constant 82 : index
    %1898 = memref.load %arg9[%c82_502] : memref<96xf32, #tpu.memory_space<smem>>
    %1899 = vector.broadcast %1898 : f32 to vector<2x8xf32>
    %1900 = arith.mulf %1899, %1540 : vector<2x8xf32>
    %1901 = arith.addf %1897, %1900 : vector<2x8xf32>
    %c83_503 = arith.constant 83 : index
    %1902 = memref.load %arg9[%c83_503] : memref<96xf32, #tpu.memory_space<smem>>
    %1903 = vector.broadcast %1902 : f32 to vector<2x8xf32>
    %1904 = arith.mulf %1903, %1541 : vector<2x8xf32>
    %1905 = arith.addf %1901, %1904 : vector<2x8xf32>
    %c84_504 = arith.constant 84 : index
    %1906 = memref.load %arg9[%c84_504] : memref<96xf32, #tpu.memory_space<smem>>
    %1907 = vector.broadcast %1906 : f32 to vector<2x8xf32>
    %1908 = arith.mulf %1907, %1542 : vector<2x8xf32>
    %1909 = arith.addf %1905, %1908 : vector<2x8xf32>
    %c85_505 = arith.constant 85 : index
    %1910 = memref.load %arg9[%c85_505] : memref<96xf32, #tpu.memory_space<smem>>
    %1911 = vector.broadcast %1910 : f32 to vector<2x8xf32>
    %1912 = arith.mulf %1911, %1543 : vector<2x8xf32>
    %1913 = arith.addf %1909, %1912 : vector<2x8xf32>
    %c86_506 = arith.constant 86 : index
    %1914 = memref.load %arg9[%c86_506] : memref<96xf32, #tpu.memory_space<smem>>
    %1915 = vector.broadcast %1914 : f32 to vector<2x8xf32>
    %1916 = arith.mulf %1915, %1544 : vector<2x8xf32>
    %1917 = arith.addf %1913, %1916 : vector<2x8xf32>
    %c87_507 = arith.constant 87 : index
    %1918 = memref.load %arg9[%c87_507] : memref<96xf32, #tpu.memory_space<smem>>
    %1919 = vector.broadcast %1918 : f32 to vector<2x8xf32>
    %1920 = arith.mulf %1919, %1545 : vector<2x8xf32>
    %1921 = arith.addf %1917, %1920 : vector<2x8xf32>
    %c88_508 = arith.constant 88 : index
    %1922 = memref.load %arg9[%c88_508] : memref<96xf32, #tpu.memory_space<smem>>
    %1923 = vector.broadcast %1922 : f32 to vector<2x8xf32>
    %1924 = arith.mulf %1923, %1546 : vector<2x8xf32>
    %1925 = arith.addf %1921, %1924 : vector<2x8xf32>
    %c89_509 = arith.constant 89 : index
    %1926 = memref.load %arg9[%c89_509] : memref<96xf32, #tpu.memory_space<smem>>
    %1927 = vector.broadcast %1926 : f32 to vector<2x8xf32>
    %1928 = arith.mulf %1927, %1547 : vector<2x8xf32>
    %1929 = arith.addf %1925, %1928 : vector<2x8xf32>
    %c90_510 = arith.constant 90 : index
    %1930 = memref.load %arg9[%c90_510] : memref<96xf32, #tpu.memory_space<smem>>
    %1931 = vector.broadcast %1930 : f32 to vector<2x8xf32>
    %1932 = arith.mulf %1931, %1548 : vector<2x8xf32>
    %1933 = arith.addf %1929, %1932 : vector<2x8xf32>
    %c91_511 = arith.constant 91 : index
    %1934 = memref.load %arg9[%c91_511] : memref<96xf32, #tpu.memory_space<smem>>
    %1935 = vector.broadcast %1934 : f32 to vector<2x8xf32>
    %1936 = arith.mulf %1935, %1549 : vector<2x8xf32>
    %1937 = arith.addf %1933, %1936 : vector<2x8xf32>
    %c92_512 = arith.constant 92 : index
    %1938 = memref.load %arg9[%c92_512] : memref<96xf32, #tpu.memory_space<smem>>
    %1939 = vector.broadcast %1938 : f32 to vector<2x8xf32>
    %1940 = arith.mulf %1939, %1550 : vector<2x8xf32>
    %1941 = arith.addf %1937, %1940 : vector<2x8xf32>
    %c93_513 = arith.constant 93 : index
    %1942 = memref.load %arg9[%c93_513] : memref<96xf32, #tpu.memory_space<smem>>
    %1943 = vector.broadcast %1942 : f32 to vector<2x8xf32>
    %1944 = arith.mulf %1943, %1551 : vector<2x8xf32>
    %1945 = arith.addf %1941, %1944 : vector<2x8xf32>
    %c94_514 = arith.constant 94 : index
    %1946 = memref.load %arg9[%c94_514] : memref<96xf32, #tpu.memory_space<smem>>
    %1947 = vector.broadcast %1946 : f32 to vector<2x8xf32>
    %1948 = arith.mulf %1947, %1552 : vector<2x8xf32>
    %1949 = arith.addf %1945, %1948 : vector<2x8xf32>
    %c95_515 = arith.constant 95 : index
    %1950 = memref.load %arg9[%c95_515] : memref<96xf32, #tpu.memory_space<smem>>
    %1951 = vector.broadcast %1950 : f32 to vector<2x8xf32>
    %1952 = arith.mulf %1951, %1553 : vector<2x8xf32>
    %1953 = arith.addf %1949, %1952 : vector<2x8xf32>
    %c3_516 = arith.constant 3 : index
    %1954 = memref.load %arg10[%c3_516] : memref<4xf32, #tpu.memory_space<smem>>
    %1955 = vector.broadcast %1954 : f32 to vector<2x8xf32>
    %1956 = arith.addf %1953, %1955 : vector<2x8xf32>
    %1957 = math.tanh %1956 : vector<2x8xf32>
    %1958 = arith.addf %3, %1654 : vector<2x8xf32>
    %1959 = arith.addf %5, %1755 : vector<2x8xf32>
    %1960 = arith.addf %7, %1856 : vector<2x8xf32>
    %1961 = arith.addf %9, %1957 : vector<2x8xf32>
    %c0_517 = arith.constant 0 : index
    %c0_518 = arith.constant 0 : index
    %c0_519 = arith.constant 0 : index
    %1962 = vector.load %arg12[%c0_517, %c0_518, %c0_519] : memref<2x4x8xf32, #tpu.memory_space<vmem>>, vector<2x1x8xf32>
    %1963 = vector.shape_cast %1962 : vector<2x1x8xf32> to vector<2x8xf32>
    %1964 = vector.shape_cast %986 : vector<2x8xf32> to vector<2x1x8xf32>
    tpu.vector_store %arg12[%c0_517, %c0_518, %c0_519], %1964 {strides = array<i32>} : memref<2x4x8xf32, #tpu.memory_space<vmem>>, vector<2x1x8xf32>,
    %c0_520 = arith.constant 0 : index
    %c0_521 = arith.constant 0 : index
    %c0_522 = arith.constant 0 : index
    %1965 = vector.load %arg11[%c0_520, %c0_521, %c0_522] : memref<2x4x8xf32, #tpu.memory_space<vmem>>, vector<2x1x8xf32>
    %1966 = vector.shape_cast %1965 : vector<2x1x8xf32> to vector<2x8xf32>
    %1967 = vector.shape_cast %1958 : vector<2x8xf32> to vector<2x1x8xf32>
    tpu.vector_store %arg11[%c0_520, %c0_521, %c0_522], %1967 {strides = array<i32>} : memref<2x4x8xf32, #tpu.memory_space<vmem>>, vector<2x1x8xf32>,
    %c0_523 = arith.constant 0 : index
    %c1_524 = arith.constant 1 : index
    %c0_525 = arith.constant 0 : index
    %1968 = vector.load %arg12[%c0_523, %c1_524, %c0_525] : memref<2x4x8xf32, #tpu.memory_space<vmem>>, vector<2x1x8xf32>
    %1969 = vector.shape_cast %1968 : vector<2x1x8xf32> to vector<2x8xf32>
    %1970 = vector.shape_cast %987 : vector<2x8xf32> to vector<2x1x8xf32>
    tpu.vector_store %arg12[%c0_523, %c1_524, %c0_525], %1970 {strides = array<i32>} : memref<2x4x8xf32, #tpu.memory_space<vmem>>, vector<2x1x8xf32>,
    %c0_526 = arith.constant 0 : index
    %c1_527 = arith.constant 1 : index
    %c0_528 = arith.constant 0 : index
    %1971 = vector.load %arg11[%c0_526, %c1_527, %c0_528] : memref<2x4x8xf32, #tpu.memory_space<vmem>>, vector<2x1x8xf32>
    %1972 = vector.shape_cast %1971 : vector<2x1x8xf32> to vector<2x8xf32>
    %1973 = vector.shape_cast %1959 : vector<2x8xf32> to vector<2x1x8xf32>
    tpu.vector_store %arg11[%c0_526, %c1_527, %c0_528], %1973 {strides = array<i32>} : memref<2x4x8xf32, #tpu.memory_space<vmem>>, vector<2x1x8xf32>,
    %c0_529 = arith.constant 0 : index
    %c2_530 = arith.constant 2 : index
    %c0_531 = arith.constant 0 : index
    %1974 = vector.load %arg12[%c0_529, %c2_530, %c0_531] : memref<2x4x8xf32, #tpu.memory_space<vmem>>, vector<2x1x8xf32>
    %1975 = vector.shape_cast %1974 : vector<2x1x8xf32> to vector<2x8xf32>
    %1976 = vector.shape_cast %988 : vector<2x8xf32> to vector<2x1x8xf32>
    tpu.vector_store %arg12[%c0_529, %c2_530, %c0_531], %1976 {strides = array<i32>} : memref<2x4x8xf32, #tpu.memory_space<vmem>>, vector<2x1x8xf32>,
    %c0_532 = arith.constant 0 : index
    %c2_533 = arith.constant 2 : index
    %c0_534 = arith.constant 0 : index
    %1977 = vector.load %arg11[%c0_532, %c2_533, %c0_534] : memref<2x4x8xf32, #tpu.memory_space<vmem>>, vector<2x1x8xf32>
    %1978 = vector.shape_cast %1977 : vector<2x1x8xf32> to vector<2x8xf32>
    %1979 = vector.shape_cast %1960 : vector<2x8xf32> to vector<2x1x8xf32>
    tpu.vector_store %arg11[%c0_532, %c2_533, %c0_534], %1979 {strides = array<i32>} : memref<2x4x8xf32, #tpu.memory_space<vmem>>, vector<2x1x8xf32>,
    %c0_535 = arith.constant 0 : index
    %c3_536 = arith.constant 3 : index
    %c0_537 = arith.constant 0 : index
    %1980 = vector.load %arg12[%c0_535, %c3_536, %c0_537] : memref<2x4x8xf32, #tpu.memory_space<vmem>>, vector<2x1x8xf32>
    %1981 = vector.shape_cast %1980 : vector<2x1x8xf32> to vector<2x8xf32>
    %1982 = vector.shape_cast %989 : vector<2x8xf32> to vector<2x1x8xf32>
    tpu.vector_store %arg12[%c0_535, %c3_536, %c0_537], %1982 {strides = array<i32>} : memref<2x4x8xf32, #tpu.memory_space<vmem>>, vector<2x1x8xf32>,
    %c0_538 = arith.constant 0 : index
    %c3_539 = arith.constant 3 : index
    %c0_540 = arith.constant 0 : index
    %1983 = vector.load %arg11[%c0_538, %c3_539, %c0_540] : memref<2x4x8xf32, #tpu.memory_space<vmem>>, vector<2x1x8xf32>
    %1984 = vector.shape_cast %1983 : vector<2x1x8xf32> to vector<2x8xf32>
    %1985 = vector.shape_cast %1961 : vector<2x8xf32> to vector<2x1x8xf32>
    tpu.vector_store %arg11[%c0_538, %c3_539, %c0_540], %1985 {strides = array<i32>} : memref<2x4x8xf32, #tpu.memory_space<vmem>>, vector<2x1x8xf32>,
    return
  }
  func.func @transform_0(%arg0: i32) -> (i32, i32, i32) {
    %c0_i32 = arith.constant 0 : i32
    %c0_i32_0 = arith.constant 0 : i32
    %c0_i32_1 = arith.constant 0 : i32
    return %arg0, %c0_i32, %c0_i32_0 : i32, i32, i32
  }
  func.func @transform_1(%arg0: i32) -> (i32, i32, i32) {
    %c0_i32 = arith.constant 0 : i32
    %c0_i32_0 = arith.constant 0 : i32
    %c0_i32_1 = arith.constant 0 : i32
    return %arg0, %c0_i32, %c0_i32_0 : i32, i32, i32
  }
  func.func @transform_2(%arg0: i32) -> i32 {
    %c0_i32 = arith.constant 0 : i32
    %c0_i32_0 = arith.constant 0 : i32
    return %c0_i32 : i32
  }
  func.func @transform_3(%arg0: i32) -> i32 {
    %c0_i32 = arith.constant 0 : i32
    %c0_i32_0 = arith.constant 0 : i32
    return %c0_i32 : i32
  }
  func.func @transform_4(%arg0: i32) -> i32 {
    %c0_i32 = arith.constant 0 : i32
    %c0_i32_0 = arith.constant 0 : i32
    return %c0_i32 : i32
  }
  func.func @transform_5(%arg0: i32) -> i32 {
    %c0_i32 = arith.constant 0 : i32
    %c0_i32_0 = arith.constant 0 : i32
    return %c0_i32 : i32
  }
  func.func @transform_6(%arg0: i32) -> i32 {
    %c0_i32 = arith.constant 0 : i32
    %c0_i32_0 = arith.constant 0 : i32
    return %c0_i32 : i32
  }
  func.func @transform_7(%arg0: i32) -> i32 {
    %c0_i32 = arith.constant 0 : i32
    %c0_i32_0 = arith.constant 0 : i32
    return %c0_i32 : i32
  }
  func.func @transform_8(%arg0: i32) -> i32 {
    %c0_i32 = arith.constant 0 : i32
    %c0_i32_0 = arith.constant 0 : i32
    return %c0_i32 : i32
  }
  func.func @transform_9(%arg0: i32) -> i32 {
    %c0_i32 = arith.constant 0 : i32
    %c0_i32_0 = arith.constant 0 : i32
    return %c0_i32 : i32
  }
  func.func @transform_10(%arg0: i32) -> (i32, i32, i32) {
    %c0_i32 = arith.constant 0 : i32
    %c0_i32_0 = arith.constant 0 : i32
    %c0_i32_1 = arith.constant 0 : i32
    return %arg0, %c0_i32, %c0_i32_0 : i32, i32, i32
  }
  func.func @transform_11(%arg0: i32) -> (i32, i32, i32) {
    %c0_i32 = arith.constant 0 : i32
    %c0_i32_0 = arith.constant 0 : i32
    %c0_i32_1 = arith.constant 0 : i32
    return %arg0, %c0_i32, %c0_i32_0 : i32, i32, i32
  }
}

</mosaic_0001>

<bundles_post_ra>
// kernel: tpu_custom_call.1
= control target key start
LH: loop header
LB: loop body
LE: loop exit
PB: predicated region body
PF: predicated region fallthrough
CT: control target
= control target key end

     0   :  { %17 = vsyncpa [#allocation4], 0  ;;  %s8896_s0 = inlined_call_operand.hbm [shape: f32[2,4,8], index: 0, kind: input, shape index: {}]   ;;  %s8897_s1 = inlined_call_operand.hbm [shape: f32[2,4,8], index: 1, kind: input, shape index: {}]   ;;  %s8898_s2 = inlined_call_operand.vmem [shape: f32[96], index: 2, kind: input, shape index: {}]   ;;  %s8899_s3 = inlined_call_operand.vmem [shape: f32[8], index: 3, kind: input, shape index: {}]   ;;  %s8900_s4 = inlined_call_operand.vmem [shape: f32[96], index: 4, kind: input, shape index: {}]   ;;  %s8901_s5 = inlined_call_operand.vmem [shape: f32[4], index: 5, kind: input, shape index: {}]   ;;  %s8902_s6 = inlined_call_operand.vmem [shape: f32[96], index: 6, kind: input, shape index: {}]   ;;  %s8903_s7 = inlined_call_operand.vmem [shape: f32[8], index: 7, kind: input, shape index: {}]   ;;  %s8904_s8 = inlined_call_operand.vmem [shape: f32[96], index: 8, kind: input, shape index: {}]   ;;  %s8905_s9 = inlined_call_operand.vmem [shape: f32[4], index: 9, kind: input, shape index: {}]   ;;  %s8906_s10 = inlined_call_operand.hbm [shape: f32[2,4,8], index: 10, kind: output, shape index: {0}]   ;;  %s8907_s11 = inlined_call_operand.hbm [shape: f32[2,4,8], index: 11, kind: output, shape index: {1}]  }
   0x1   :  { %18 = vsyncpa [#allocation8], 0 }
   0x2   :  { %19 = vsyncpa [#allocation6], 0 }
   0x3   :  { %20 = vsyncpa [#allocation11], 0 }
   0x4   :  { %21 = vsyncpa [#allocation14], 0 }
   0x5   :  { %22 = vsyncpa [#allocation17], 0 }
   0x6   :  { %23 = vsyncpa [#allocation20], 0 }
   0x7   :  { %24 = vsyncpa [#allocation5], 0  ;;  %s66_s19 = sshll.u32 %s8899_s3, 4  ;;  %s67_s19 = int_to_ptr.vmem [resolvable:$true] %s66_s19 }
   0x8   :  { %25 = vsyncpa [#allocation23], 0  ;;  %s86_s22 = sshll.u32 %s8901_s5, 4  ;;  %s5514_s23 = scalar_lea.vmem %s67_s19, 16  ;;  %s87_s22 = int_to_ptr.vmem [resolvable:$true] %s86_s22 }
   0x9   :  { %p5515_p0 = scmp.ne.s32.totalorder %s67_s19, %s5514_s23  ;;  %p5519_p1 = scmp.lt.s32.totalorder %s67_s19, %s67_s19 }
   0xa   :  { %p5520_p2 = scmp.lt.s32.totalorder %s5514_s23, %s5514_s23 }
   0xc   :  { %p5521_p3 = por %p5520_p2, %p5519_p1 }
   0xe   :  { %p5522_p4 = pnand %p5521_p3, %p5515_p0 }
  0x10   :  { %5525 = shalt.err (!%p5522_p4)
}
  0x11   :  { %s5716_s24 = smov [#allocation10]   ;;  %s5526_s25 = scalar_lea.vmem %s87_s22, 16 }
  0x12   :  { %69 = dma.vmem_to_smem %s67_s19, 16, %s5716_s24, [#allocation11]  }
  0x13   :  { %p5527_p5 = scmp.ne.s32.totalorder %s87_s22, %s5526_s25  ;;  %p5531_p6 = scmp.lt.s32.totalorder %s87_s22, %s87_s22 }
  0x14   :  { %p5532_p7 = scmp.lt.s32.totalorder %s5526_s25, %s5526_s25 }
  0x16   :  { %p5533_p8 = por %p5532_p7, %p5531_p6 }
  0x18   :  { %p5534_p9 = pnand %p5533_p8, %p5527_p5 }
  0x1a   :  { %5537 = shalt.err (!%p5534_p9)
}
  0x1b   :  { %s5717_s3 = smov [#allocation13]   ;;  %s106_s27 = sshll.u32 %s8903_s7, 4  ;;  %s107_s27 = int_to_ptr.vmem [resolvable:$true] %s106_s27 }
  0x1c   :  { %89 = dma.vmem_to_smem %s87_s22, 16, %s5717_s3, [#allocation14]  }
  0x1d   :  { %s5538_s28 = scalar_lea.vmem %s107_s27, 16  ;;  %p5543_p11 = scmp.lt.s32.totalorder %s107_s27, %s107_s27 }
  0x1e   :  { %p5539_p10 = scmp.ne.s32.totalorder %s107_s27, %s5538_s28  ;;  %p5544_p12 = scmp.lt.s32.totalorder %s5538_s28, %s5538_s28 }
  0x20   :  { %p5545_p13 = por %p5544_p12, %p5543_p11 }
  0x22   :  { %p5546_p0 = pnand %p5545_p13, %p5539_p10 }
  0x24   :  { %5549 = shalt.err (!%p5546_p0)
}
  0x25   :  { %s5718_s29 = smov [#allocation16]   ;;  %s5719_s30 = smov [#allocation3]  }
  0x26   :  { %109 = dma.vmem_to_smem %s107_s27, 16, %s5718_s29, [#allocation17]  }
  0x27   :  { %s31_s12 = sshll.u32 %s5719_s30, 4  ;;  %s5550_s15 = scalar_lea.hbm %s8896_s0, 128  ;;  %s32_s12 = int_to_ptr.vmem [resolvable:$true] %s31_s12 }
  0x28   :  { %p5551_p1 = scmp.ne.s32.totalorder %s8896_s0, %s5550_s15  ;;  %p5554_p2 = scmp.lt.u32.totalorder %s5550_s15, %s8896_s0 }
  0x2a   :  { %p5556_p3 = pnand %p5554_p2, %p5551_p1 }
  0x2c   :  { %5559 = shalt.err (!%p5556_p3)
}
  0x2d   :  { %s5560_s19 = scalar_lea.vmem %s32_s12, 128  ;;  %p5565_p5 = scmp.lt.s32.totalorder %s32_s12, %s32_s12 }
  0x2e   :  { %p5561_p4 = scmp.ne.s32.totalorder %s32_s12, %s5560_s19  ;;  %p5566_p6 = scmp.lt.s32.totalorder %s5560_s19, %s5560_s19 }
  0x30   :  { %p5567_p7 = por %p5566_p6, %p5565_p5 }
  0x32   :  { %p5568_p8 = pnand %p5567_p7, %p5561_p4 }
  0x34   :  { %5571 = shalt.err (!%p5568_p8)
}
  0x35   :  { %s5720_s20 = smov 64   ;;  %s5721_s21 = smov 4  }
  0x36   :  { %37 = dma.hbm_to_vmem [thread:$0]  %s8896_s0, 128, %s32_s12, [#allocation4], %s5720_s20, %s5720_s20, %s5721_s21  }
  0x37   :  { %s56_s3 = sshll.u32 %s8898_s2, 4  ;;  %s5722_s5 = smov [#allocation7]   ;;  %s57_s3 = int_to_ptr.vmem [resolvable:$true] %s56_s3 }
  0x38   :  { %s43_s26 = sshll.u32 %s5722_s5, 4  ;;  %s5572_s29 = scalar_lea.hbm %s8897_s1, 128  ;;  %s44_s26 = int_to_ptr.vmem [resolvable:$true] %s43_s26 }
  0x39   :  { %p5573_p9 = scmp.ne.s32.totalorder %s8897_s1, %s5572_s29  ;;  %p5576_p10 = scmp.lt.u32.totalorder %s5572_s29, %s8897_s1 }
  0x3b   :  { %p5578_p11 = pnand %p5576_p10, %p5573_p9 }
  0x3d   :  { %5581 = shalt.err (!%p5578_p11)
}
  0x3e   :  { %s5582_s0 = scalar_lea.vmem %s44_s26, 128  ;;  %p5587_p13 = scmp.lt.s32.totalorder %s44_s26, %s44_s26 }
  0x3f   :  { %p5583_p12 = scmp.ne.s32.totalorder %s44_s26, %s5582_s0  ;;  %p5588_p0 = scmp.lt.s32.totalorder %s5582_s0, %s5582_s0 }
  0x41   :  { %p5589_p1 = por %p5588_p0, %p5587_p13 }
  0x43   :  { %p5590_p2 = pnand %p5589_p1, %p5583_p12 }
  0x45   :  { %5593 = shalt.err (!%p5590_p2)
}
  0x46   :  { %49 = dma.hbm_to_vmem [thread:$0]  %s8897_s1, 128, %s44_s26, [#allocation8], %s5720_s20, %s5720_s20, %s5721_s21  }
  0x47   :  { %s5594_s16 = scalar_lea.vmem %s57_s3, 16  ;;  %p5599_p4 = scmp.lt.s32.totalorder %s57_s3, %s57_s3 }
  0x48   :  { %p5595_p3 = scmp.ne.s32.totalorder %s57_s3, %s5594_s16  ;;  %p5600_p5 = scmp.lt.s32.totalorder %s5594_s16, %s5594_s16 }
  0x4a   :  { %p5601_p6 = por %p5600_p5, %p5599_p4 }
  0x4c   :  { %p5602_p7 = pnand %p5601_p6, %p5595_p3 }
  0x4e   :  { %5605 = shalt.err (!%p5602_p7)
}
  0x4f   :  { %s5723_s17 = smov [#allocation9]   ;;  %s76_s19 = sshll.u32 %s8900_s4, 4  ;;  %s77_s19 = int_to_ptr.vmem [resolvable:$true] %s76_s19 }
  0x50   :  { %59 = dma.vmem_to_smem %s57_s3, 16, %s5723_s17, [#allocation6]  }
  0x51   :  { %s96_s24 = sshll.u32 %s8902_s6, 4  ;;  %s5606_s25 = scalar_lea.vmem %s77_s19, 16  ;;  %s97_s24 = int_to_ptr.vmem [resolvable:$true] %s96_s24 }
  0x52   :  { %p5607_p8 = scmp.ne.s32.totalorder %s77_s19, %s5606_s25  ;;  %p5611_p9 = scmp.lt.s32.totalorder %s77_s19, %s77_s19 }
  0x53   :  { %p5612_p10 = scmp.lt.s32.totalorder %s5606_s25, %s5606_s25 }
  0x55   :  { %p5613_p11 = por %p5612_p10, %p5611_p9 }
  0x57   :  { %p5614_p12 = pnand %p5613_p11, %p5607_p8 }
  0x59   :  { %5617 = shalt.err (!%p5614_p12)
}
  0x5a   :  { %s5724_s1 = smov [#allocation12]   ;;  %s5618_s3 = scalar_lea.vmem %s97_s24, 16 }
  0x5b   :  { %79 = dma.vmem_to_smem %s77_s19, 16, %s5724_s1, [#allocation11]  }
  0x5c   :  { %p5619_p13 = scmp.ne.s32.totalorder %s97_s24, %s5618_s3  ;;  %p5623_p0 = scmp.lt.s32.totalorder %s97_s24, %s97_s24 }
  0x5d   :  { %p5624_p1 = scmp.lt.s32.totalorder %s5618_s3, %s5618_s3 }
  0x5f   :  { %p5625_p2 = por %p5624_p1, %p5623_p0 }
  0x61   :  { %p5626_p3 = pnand %p5625_p2, %p5619_p13 }
  0x63   :  { %5629 = shalt.err (!%p5626_p3)
}
  0x64   :  { %s5725_s4 = smov [#allocation15]   ;;  %s116_s26 = sshll.u32 %s8904_s8, 4  ;;  %s117_s26 = int_to_ptr.vmem [resolvable:$true] %s116_s26 }
  0x65   :  { %99 = dma.vmem_to_smem %s97_s24, 16, %s5725_s4, [#allocation14]  }
  0x66   :  { %s126_s29 = sshll.u32 %s8905_s9, 4  ;;  %s5630_s30 = scalar_lea.vmem %s117_s26, 16  ;;  %s127_s29 = int_to_ptr.vmem [resolvable:$true] %s126_s29 }
  0x67   :  { %p5631_p4 = scmp.ne.s32.totalorder %s117_s26, %s5630_s30  ;;  %p5635_p5 = scmp.lt.s32.totalorder %s117_s26, %s117_s26 }
  0x68   :  { %p5636_p6 = scmp.lt.s32.totalorder %s5630_s30, %s5630_s30 }
  0x6a   :  { %p5637_p7 = por %p5636_p6, %p5635_p5 }
  0x6c   :  { %p5638_p8 = pnand %p5637_p7, %p5631_p4 }
  0x6e   :  { %5641 = shalt.err (!%p5638_p8)
}
  0x6f   :  { %s5726_s13 = smov [#allocation18]   ;;  %s5642_s14 = scalar_lea.vmem %s127_s29, 16 }
  0x70   :  { %119 = dma.vmem_to_smem %s117_s26, 16, %s5726_s13, [#allocation17]  }
  0x71   :  { %p5643_p9 = scmp.ne.s32.totalorder %s127_s29, %s5642_s14  ;;  %p5647_p10 = scmp.lt.s32.totalorder %s127_s29, %s127_s29 }
  0x72   :  { %p5648_p11 = scmp.lt.s32.totalorder %s5642_s14, %s5642_s14 }
  0x74   :  { %p5649_p12 = por %p5648_p11, %p5647_p10 }
  0x76   :  { %p5650_p13 = pnand %p5649_p12, %p5643_p9 }
  0x78   :  { %5653 = shalt.err (!%p5650_p13)
}
  0x79   :  { %s5727_s8 = smov [#allocation19]  }
  0x7a   :  { %129 = dma.vmem_to_smem %s127_s29, 16, %s5727_s8, [#allocation20]  }
  0x7b   :  { %5698 = dma.done.wait [#allocation4], 128  }
  0x7c   :  { %5699 = vsyncadd [#allocation4], 4294967168 }
  0x7d   :  { %5700 = dma.done.wait [#allocation8], 128  }
  0x7e   :  { %5701 = vsyncadd [#allocation8], 4294967168 }
  0x7f   :  { %5702 = dma.done.wait [#allocation6], 16  }
  0x80   :  { %5703 = vsyncadd [#allocation6], 4294967280 }
  0x81   :  { %5704 = dma.done.wait [#allocation11], 32  }
  0x82   :  { %5705 = vsyncadd [#allocation11], 4294967264 }
  0x83   :  { %5706 = dma.done.wait [#allocation14], 32  }
  0x84   :  { %5707 = vsyncadd [#allocation14], 4294967264 }
  0x85   :  { %5708 = dma.done.wait [#allocation17], 32  }
  0x86   :  { %5709 = vsyncadd [#allocation17], 4294967264 }
  0x87   :  { %5710 = dma.done.wait [#allocation20], 16  }
  0x88   :  { %5711 = vsyncadd [#allocation20], 4294967280 }
  0x89   :  { %160 = sfence }
  0x8a   :  { %v161_v0 = vld [vmem:[#allocation3] sm:$0xf]  ;;  %v8908_v1 = vmov 0   ;;  %s5729_s9 = smov 2   ;;  %v162_v2 = vld [vmem:[#allocation3 + $0x4] sm:$0xf] }
  0x8b   :  { %5451 = vset.pattern.permute.xlu1 %v8908_v1  ;;  %167 = vrot.lane.b32.xlu0 %v161_v0, %s5729_s9  ;;  %v8910_v3 = vmov 7   ;;  %vm173_vm0 = vcmask 73744   ;;  %vm198_vm1 = vcmask 74769   ;;  %vm207_vm2 = vcmask 75794   ;;  %s5032_s15 = sld [smem:[#allocation9 + $0x1]]  ;;  %s5033_s0 = sld [smem:[#allocation9 + $0x2]] }
  0x8c   :  { %177 = vperm.xlu1 %5451, %v161_v0   ;;  %5452 = vset.pattern.permute.xlu0 %v8910_v3  ;;  %vm216_vm3 = vcmask 76819   ;;  %vm184_vm4 = vcmask 8192   ;;  %vm201_vm5 = vcmask 9217   ;;  %vm210_vm6 = vcmask 10242   ;;  %s5035_s2 = sld [smem:[#allocation9 + $0x4]]  ;;  %s5036_s12 = sld [smem:[#allocation9 + $0x5]] }
  0x8d   :  { %vm219_vm7 = vcmask 11267   ;;  %vm195_vm8 = vcmask 90192   ;;  %vm204_vm9 = vcmask 91217   ;;  %vm213_vm10 = vcmask 92242   ;;  %s5731_s16 = smov 127   ;;  %s5038_s17 = sld [smem:[#allocation9 + $0x7]] }
  0x8e   :  { %vm222_vm11 = vcmask 93267   ;;  %s5732_s7 = smov 126   ;;  %s5039_s18 = sld [smem:[#allocation9 + $0x8]] }
  0x8f   :  { %169 = vrot.lane.b32.xlu0 %v162_v2, %s5729_s9  ;;  %s5041_s19 = sld [smem:[#allocation9 + $0xa]]  ;;  %s5042_s22 = sld [smem:[#allocation9 + $0xb]] }
  0x90   :  { %181 = vperm.xlu1 %5451, %v162_v2   ;;  %s5044_s23 = sld [smem:[#allocation9 + $0xd]]  ;;  %s5045_s24 = sld [smem:[#allocation9 + $0xe]] }
  0x91   :  { %v240_v10 = vstv %s5032_s15  ;;  %v254_v14 = vstv %s5033_s0  ;;  %s5047_s25 = sld [smem:[#allocation9 + $0x10]]  ;;  %s5048_s1 = sld [smem:[#allocation9 + $0x11]] }
  0x92   :  { %v274_v20 = vstv %s5035_s2  ;;  %v288_v23 = vstv %s5036_s12  ;;  %s5050_s3 = sld [smem:[#allocation9 + $0x13]]  ;;  %s5051_s4 = sld [smem:[#allocation9 + $0x14]] }
  0x93   :  { %188 = vperm.xlu0 %5452, %v161_v0   ;;  %v308_v27 = vstv %s5038_s17  ;;  %s5053_s6 = sld [smem:[#allocation9 + $0x16]]  ;;  %s5054_s5 = sld [smem:[#allocation9 + $0x17]] }
  0x94   :  { %5453 = vset.pattern.permute.xlu1 %v8910_v3  ;;  %v322_v30 = vstv %s5039_s18  ;;  %s5057_s26 = sld [smem:[#allocation9 + $0x19]]  ;;  %s5058_s27 = sld [smem:[#allocation9 + $0x1a]] }
  0x95   :  { %192 = vperm.xlu1 %5453, %v162_v2   ;;  %v342_v34 = vstv %s5041_s19  ;;  %v356_v38 = vstv %s5042_s22  ;;  %s5060_s28 = sld [smem:[#allocation9 + $0x1c]]  ;;  %s5061_s29 = sld [smem:[#allocation9 + $0x1d]] }
  0x96   :  { %v386_v41 = vstv %s5044_s23  ;;  %v400_v44 = vstv %s5045_s24  ;;  %s5063_s30 = sld [smem:[#allocation9 + $0x1f]]  ;;  %s5064_s13 = sld [smem:[#allocation9 + $0x20]] }
  0x97   :  { %5455 = vset.pattern.permute.xlu0 %v8908_v1  ;;  %v420_v47 = vstv %s5047_s25  ;;  %v434_v50 = vstv %s5048_s1  ;;  %s5066_s14 = sld [smem:[#allocation9 + $0x22]]  ;;  %s5067_s8 = sld [smem:[#allocation9 + $0x23]] }
  0x98   :  { %v454_v53 = vstv %s5050_s3  ;;  %v468_v56 = vstv %s5051_s4  ;;  %s5070_s15 = sld [smem:[#allocation9 + $0x25]]  ;;  %s5071_s0 = sld [smem:[#allocation9 + $0x26]] }
  0x99   :  { %5454 = vset.pattern.permute.xlu1 %v8908_v1  ;;  %v488_v59 = vstv %s5053_s6  ;;  %v502_v62 = vstv %s5054_s5  ;;  %s5073_s2 = sld [smem:[#allocation9 + $0x28]]  ;;  %s5074_s12 = sld [smem:[#allocation9 + $0x29]] }
  0x9a   :  { %v532_v2 = vstv %s5057_s26  ;;  %s5076_s17 = sld [smem:[#allocation9 + $0x2b]]  ;;  %s5077_s18 = sld [smem:[#allocation9 + $0x2c]] }
  0x9b   :  { %s5079_s19 = sld [smem:[#allocation9 + $0x2e]]  ;;  %s5080_s22 = sld [smem:[#allocation9 + $0x2f]] }
  0x9c   :  { %s5083_s23 = sld [smem:[#allocation9 + $0x31]]  ;;  %s5084_s24 = sld [smem:[#allocation9 + $0x32]] }
  0x9d   :  { %s5086_s25 = sld [smem:[#allocation9 + $0x34]]  ;;  %s5087_s1 = sld [smem:[#allocation9 + $0x35]] }
  0x9e   :  { %s5089_s3 = sld [smem:[#allocation9 + $0x37]]  ;;  %s5090_s4 = sld [smem:[#allocation9 + $0x38]] }
  0x9f   :  { %s5092_s6 = sld [smem:[#allocation9 + $0x3a]]  ;;  %s5093_s5 = sld [smem:[#allocation9 + $0x3b]] }
  0xa0   :  { %s5096_s26 = sld [smem:[#allocation9 + $0x3d]] }
  0xfd   :  { %v168_v4 = vpop.permute.xlu0 %167 }
  0xfe   :  { %174 = vst.msk [vmem:[#allocation2] sm:$0x1] %vm173_vm0, %v168_v4 }
  0xff   :  { %199 = vst.msk [vmem:[#allocation2] sm:$0x2] %vm198_vm1, %v168_v4 }
 0x100   :  { %208 = vst.msk [vmem:[#allocation2] sm:$0x4] %vm207_vm2, %v168_v4 }
 0x101   :  { %217 = vst.msk [vmem:[#allocation2] sm:$0x8] %vm216_vm3, %v168_v4  ;;  %v170_v5 = vpop.permute.xlu0 %169 }
 0x102   :  { %175 = vst.msk [vmem:[#allocation2 + $0x4] sm:$0x1] %vm173_vm0, %v170_v5 }
 0x103   :  { %200 = vst.msk [vmem:[#allocation2 + $0x4] sm:$0x2] %vm198_vm1, %v170_v5 }
 0x104   :  { %209 = vst.msk [vmem:[#allocation2 + $0x4] sm:$0x4] %vm207_vm2, %v170_v5 }
 0x105   :  { %218 = vst.msk [vmem:[#allocation2 + $0x4] sm:$0x8] %vm216_vm3, %v170_v5 }
 0x10b   :  { %v178_v6 = vpop.permute.xlu1 %177 }
 0x10c   :  { %185 = vst.msk [vmem:[#allocation2] sm:$0x1] %vm184_vm4, %v178_v6 }
 0x10d   :  { %202 = vst.msk [vmem:[#allocation2] sm:$0x2] %vm201_vm5, %v178_v6 }
 0x10e   :  { %211 = vst.msk [vmem:[#allocation2] sm:$0x4] %vm210_vm6, %v178_v6 }
 0x10f   :  { %220 = vst.msk [vmem:[#allocation2] sm:$0x8] %vm219_vm7, %v178_v6  ;;  %v182_v7 = vpop.permute.xlu1 %181  ;;  %v546_v6 = vstv %s5058_s27  ;;  %s5097_s27 = sld [smem:[#allocation9 + $0x3e]] }
 0x110   :  { %186 = vst.msk [vmem:[#allocation2 + $0x4] sm:$0x1] %vm184_vm4, %v182_v7 }
 0x111   :  { %203 = vst.msk [vmem:[#allocation2 + $0x4] sm:$0x2] %vm201_vm5, %v182_v7 }
 0x112   :  { %212 = vst.msk [vmem:[#allocation2 + $0x4] sm:$0x4] %vm210_vm6, %v182_v7  ;;  %v189_v8 = vpop.permute.xlu0 %188 }
 0x113   :  { %221 = vst.msk [vmem:[#allocation2 + $0x4] sm:$0x8] %vm219_vm7, %v182_v7 }
 0x114   :  { %196 = vst.msk [vmem:[#allocation2] sm:$0x1] %vm195_vm8, %v189_v8  ;;  %v193_v9 = vpop.permute.xlu1 %192 }
 0x115   :  { %205 = vst.msk [vmem:[#allocation2] sm:$0x2] %vm204_vm9, %v189_v8  ;;  %206 = vst.msk [vmem:[#allocation2 + $0x4] sm:$0x2] %vm204_vm9, %v193_v9 }
 0x116   :  { %214 = vst.msk [vmem:[#allocation2] sm:$0x4] %vm213_vm10, %v189_v8  ;;  %215 = vst.msk [vmem:[#allocation2 + $0x4] sm:$0x4] %vm213_vm10, %v193_v9 }
 0x117   :  { %223 = vst.msk [vmem:[#allocation2] sm:$0x8] %vm222_vm11, %v189_v8  ;;  %224 = vst.msk [vmem:[#allocation2 + $0x4] sm:$0x8] %vm222_vm11, %v193_v9 }
 0x118   :  { %197 = vst.msk [vmem:[#allocation2 + $0x4] sm:$0x1] %vm195_vm8, %v193_v9  ;;  %v566_v9 = vstv %s5060_s28  ;;  %s5099_s28 = sld [smem:[#allocation9 + $0x40]] }
 0x11b   :  { %v5880_v11 = vld [vmem:[#allocation2] sm:$0x1] }
 0x11c   :  { %v241_v12 = vmul.f32 %v240_v10, %v5880_v11  ;;  %v255_v16 = vmul.f32 %v254_v14, %v5880_v11  ;;  %v5890_v18 = vld [vmem:[#allocation2 + $0x1] sm:$0x1]  ;;  %v5892_v19 = vld [vmem:[#allocation2 + $0x5] sm:$0x1]  ;;  %v387_v43 = vmul.f32 %v386_v41, %v5880_v11  ;;  %v401_v46 = vmul.f32 %v400_v44, %v5880_v11 }
 0x11d   :  { %v275_v21 = vmul.f32 %v274_v20, %v5890_v18  ;;  %v276_v22 = vmul.f32 %v274_v20, %v5892_v19  ;;  %v289_v24 = vmul.f32 %v288_v23, %v5890_v18  ;;  %v290_v25 = vmul.f32 %v288_v23, %v5892_v19  ;;  %v5902_v26 = vld [vmem:[#allocation2 + $0x2] sm:$0x1]  ;;  %v5905_v28 = vld [vmem:[#allocation2 + $0x6] sm:$0x1] }
 0x11e   :  { %245 = vrot.lane.b32.xlu1 %v241_v12, %s5731_s16  ;;  %v309_v29 = vmul.f32 %v308_v27, %v5902_v26  ;;  %v310_v31 = vmul.f32 %v308_v27, %v5905_v28  ;;  %v323_v32 = vmul.f32 %v322_v30, %v5902_v26  ;;  %v5913_v33 = vld [vmem:[#allocation2 + $0x3] sm:$0x1]  ;;  %v324_v35 = vmul.f32 %v322_v30, %v5905_v28  ;;  %v5917_v36 = vld [vmem:[#allocation2 + $0x7] sm:$0x1] }
 0x11f   :  { %v5883_v13 = vld [vmem:[#allocation2 + $0x4] sm:$0x1]  ;;  %v343_v37 = vmul.f32 %v342_v34, %v5913_v33  ;;  %v344_v39 = vmul.f32 %v342_v34, %v5917_v36  ;;  %v357_v40 = vmul.f32 %v356_v38, %v5913_v33  ;;  %v358_v42 = vmul.f32 %v356_v38, %v5917_v36 }
 0x120   :  { %v242_v15 = vmul.f32 %v240_v10, %v5883_v13  ;;  %v256_v17 = vmul.f32 %v254_v14, %v5883_v13  ;;  %v388_v45 = vmul.f32 %v386_v41, %v5883_v13  ;;  %v402_v48 = vmul.f32 %v400_v44, %v5883_v13 }
 0x121   :  { %v421_v49 = vmul.f32 %v420_v47, %v5890_v18  ;;  %v422_v51 = vmul.f32 %v420_v47, %v5892_v19  ;;  %v435_v52 = vmul.f32 %v434_v50, %v5890_v18  ;;  %v436_v54 = vmul.f32 %v434_v50, %v5892_v19 }
 0x122   :  { %247 = vrot.lane.b32.xlu0 %v242_v15, %s5731_s16  ;;  %259 = vrot.lane.b32.xlu1 %v255_v16, %s5732_s7  ;;  %v455_v55 = vmul.f32 %v454_v53, %v5902_v26  ;;  %v456_v57 = vmul.f32 %v454_v53, %v5905_v28  ;;  %v469_v58 = vmul.f32 %v468_v56, %v5902_v26  ;;  %v580_v14 = vstv %s5061_s29  ;;  %s5100_s29 = sld [smem:[#allocation9 + $0x41]] }
 0x123   :  { %v470_v60 = vmul.f32 %v468_v56, %v5905_v28  ;;  %v489_v61 = vmul.f32 %v488_v59, %v5913_v33  ;;  %v490_v63 = vmul.f32 %v488_v59, %v5917_v36  ;;  %v503_v0 = vmul.f32 %v502_v62, %v5913_v33 }
 0x124   :  { %v504_v4 = vmul.f32 %v502_v62, %v5917_v36  ;;  %v533_v5 = vmul.f32 %v532_v2, %v5880_v11  ;;  %v534_v7 = vmul.f32 %v532_v2, %v5883_v13  ;;  %v547_v8 = vmul.f32 %v546_v6, %v5880_v11 }
 0x125   :  { %v548_v10 = vmul.f32 %v546_v6, %v5883_v13  ;;  %v567_v12 = vmul.f32 %v566_v9, %v5890_v18  ;;  %v568_v15 = vmul.f32 %v566_v9, %v5892_v19  ;;  %v581_v16 = vmul.f32 %v580_v14, %v5890_v18 }
 0x126   :  { %261 = vrot.lane.b32.xlu0 %v256_v17, %s5732_s7  ;;  %279 = vrot.lane.b32.xlu1 %v275_v21, %s5731_s16  ;;  %v600_v17 = vstv %s5063_s30  ;;  %v582_v20 = vmul.f32 %v580_v14, %v5892_v19  ;;  %v648_v30 = vstv %s5067_s8  ;;  %s5102_s30 = sld [smem:[#allocation9 + $0x43]]  ;;  %s5106_s8 = sld [smem:[#allocation9 + $0x47]] }
 0x127   :  { %v601_v21 = vmul.f32 %v600_v17, %v5902_v26  ;;  %v602_v23 = vmul.f32 %v600_v17, %v5905_v28  ;;  %v678_v34 = vstv %s5070_s15  ;;  %v692_v38 = vstv %s5071_s0  ;;  %s5109_s15 = sld [smem:[#allocation9 + $0x49]]  ;;  %s5110_s0 = sld [smem:[#allocation9 + $0x4a]] }
 0x128   :  { %v712_v41 = vstv %s5073_s2  ;;  %v726_v44 = vstv %s5074_s12  ;;  %v746_v47 = vstv %s5076_s17  ;;  %v760_v50 = vstv %s5077_s18  ;;  %s6159_s2 = sld [smem:[#allocation9 + $0x4c]]  ;;  %s6169_s12 = sld [smem:[#allocation9 + $0x4d]] }
 0x129   :  { %v761_v53 = vmul.f32 %v760_v50, %v5902_v26  ;;  %v762_v56 = vmul.f32 %v760_v50, %v5905_v28  ;;  %v794_v59 = vstv %s5080_s22  ;;  %v858_v14 = vstv %s5086_s25  ;;  %s6175_s17 = sld [smem:[#allocation9]]  ;;  %s6182_s18 = sld [smem:[#allocation9 + $0x4f]] }
 0x12a   :  { %281 = vrot.lane.b32.xlu0 %v276_v22, %s5731_s16  ;;  %293 = vrot.lane.b32.xlu1 %v289_v24, %s5732_s7  ;;  %v614_v22 = vstv %s5064_s13  ;;  %v970_v50 = vstv %s5096_s26  ;;  %s5103_s13 = sld [smem:[#allocation9 + $0x44]]  ;;  %s6194_s22 = sld [smem:[#allocation9 + $0x6]] }
 0x12b   :  { %v615_v24 = vmul.f32 %v614_v22, %v5902_v26  ;;  %v616_v27 = vmul.f32 %v614_v22, %v5905_v28  ;;  %s6201_s25 = sld [smem:[#allocation9 + $0xc]]  ;;  %s6223_s26 = sld [smem:[#allocation9 + $0x52]] }
 0x12e   :  { %295 = vrot.lane.b32.xlu0 %v290_v25, %s5732_s7  ;;  %313 = vrot.lane.b32.xlu1 %v309_v29, %s5731_s16  ;;  %v634_v25 = vstv %s5066_s14  ;;  %s5105_s14 = sld [smem:[#allocation9 + $0x46]] }
 0x12f   :  { %v635_v29 = vmul.f32 %v634_v25, %v5913_v33 }
 0x132   :  { %315 = vrot.lane.b32.xlu0 %v310_v31, %s5731_s16  ;;  %327 = vrot.lane.b32.xlu1 %v323_v32, %s5732_s7  ;;  %v636_v31 = vmul.f32 %v634_v25, %v5917_v36  ;;  %v649_v32 = vmul.f32 %v648_v30, %v5913_v33 }
 0x136   :  { %329 = vrot.lane.b32.xlu0 %v324_v35, %s5732_s7  ;;  %347 = vrot.lane.b32.xlu1 %v343_v37, %s5731_s16  ;;  %v650_v35 = vmul.f32 %v648_v30, %v5917_v36  ;;  %v679_v37 = vmul.f32 %v678_v34, %v5880_v11 }
 0x13a   :  { %349 = vrot.lane.b32.xlu0 %v344_v39, %s5731_s16  ;;  %361 = vrot.lane.b32.xlu1 %v357_v40, %s5732_s7  ;;  %v680_v39 = vmul.f32 %v678_v34, %v5883_v13  ;;  %v693_v40 = vmul.f32 %v692_v38, %v5880_v11  ;;  %v906_v34 = vstv %s5090_s4  ;;  %s6212_s4 = sld [smem:[#allocation9 + $0x15]] }
 0x13e   :  { %363 = vrot.lane.b32.xlu0 %v358_v42, %s5732_s7  ;;  %391 = vrot.lane.b32.xlu1 %v387_v43, %s5731_s16  ;;  %v694_v42 = vmul.f32 %v692_v38, %v5883_v13  ;;  %v713_v43 = vmul.f32 %v712_v41, %v5890_v18 }
 0x142   :  { %393 = vrot.lane.b32.xlu0 %v388_v45, %s5731_s16  ;;  %405 = vrot.lane.b32.xlu1 %v401_v46, %s5732_s7  ;;  %v714_v45 = vmul.f32 %v712_v41, %v5892_v19  ;;  %v727_v46 = vmul.f32 %v726_v44, %v5890_v18 }
 0x146   :  { %407 = vrot.lane.b32.xlu0 %v402_v48, %s5732_s7  ;;  %425 = vrot.lane.b32.xlu1 %v421_v49, %s5731_s16  ;;  %v728_v48 = vmul.f32 %v726_v44, %v5892_v19  ;;  %v747_v49 = vmul.f32 %v746_v47, %v5902_v26 }
 0x14a   :  { %427 = vrot.lane.b32.xlu0 %v422_v51, %s5731_s16  ;;  %439 = vrot.lane.b32.xlu1 %v435_v52, %s5732_s7  ;;  %v748_v51 = vmul.f32 %v746_v47, %v5905_v28 }
 0x14e   :  { %441 = vrot.lane.b32.xlu0 %v436_v54, %s5732_s7  ;;  %459 = vrot.lane.b32.xlu1 %v455_v55, %s5731_s16  ;;  %v780_v54 = vstv %s5079_s19  ;;  %s6188_s19 = sld [smem:[#allocation9 + $0x3]] }
 0x152   :  { %461 = vrot.lane.b32.xlu0 %v456_v57, %s5731_s16  ;;  %473 = vrot.lane.b32.xlu1 %v469_v58, %s5732_s7  ;;  %v781_v58 = vmul.f32 %v780_v54, %v5913_v33 }
 0x156   :  { %475 = vrot.lane.b32.xlu0 %v470_v60, %s5732_s7  ;;  %493 = vrot.lane.b32.xlu1 %v489_v61, %s5731_s16  ;;  %v782_v61 = vmul.f32 %v780_v54, %v5917_v36 }
 0x15a   :  { %495 = vrot.lane.b32.xlu0 %v490_v63, %s5731_s16  ;;  %507 = vrot.lane.b32.xlu1 %v503_v0, %s5732_s7  ;;  %v795_v63 = vmul.f32 %v794_v59, %v5913_v33  ;;  %v824_v0 = vstv %s5083_s23  ;;  %s6197_s23 = sld [smem:[#allocation9 + $0x50]] }
 0x15b   :  { %v825_v6 = vmul.f32 %v824_v0, %v5880_v11  ;;  %v826_v9 = vmul.f32 %v824_v0, %v5883_v13 }
 0x15e   :  { %509 = vrot.lane.b32.xlu0 %v504_v4, %s5732_s7  ;;  %537 = vrot.lane.b32.xlu1 %v533_v5, %s5731_s16  ;;  %v796_v4 = vmul.f32 %v794_v59, %v5917_v36 }
 0x160   :  { %v1198_v3 = vstv %s6197_s23  ;;  %s6293_s23 = sld [smem:[#allocation9 + $0x5e]] }
 0x162   :  { %539 = vrot.lane.b32.xlu0 %v534_v7, %s5731_s16  ;;  %551 = vrot.lane.b32.xlu1 %v547_v8, %s5732_s7  ;;  %v838_v7 = vstv %s5084_s24  ;;  %s6199_s24 = sld [smem:[#allocation9 + $0x9]] }
 0x166   :  { %553 = vrot.lane.b32.xlu0 %v548_v10, %s5732_s7  ;;  %571 = vrot.lane.b32.xlu1 %v567_v12, %s5731_s16  ;;  %v839_v12 = vmul.f32 %v838_v7, %v5880_v11 }
 0x16a   :  { %573 = vrot.lane.b32.xlu0 %v568_v15, %s5731_s16  ;;  %585 = vrot.lane.b32.xlu1 %v581_v16, %s5732_s7  ;;  %v840_v16 = vmul.f32 %v838_v7, %v5883_v13 }
 0x16e   :  { %587 = vrot.lane.b32.xlu0 %v582_v20, %s5732_s7  ;;  %605 = vrot.lane.b32.xlu1 %v601_v21, %s5731_s16  ;;  %v859_v20 = vmul.f32 %v858_v14, %v5890_v18  ;;  %v872_v21 = vstv %s5087_s1  ;;  %s6208_s1 = sld [smem:[#allocation9 + $0xf]] }
 0x16f   :  { %v873_v25 = vmul.f32 %v872_v21, %v5890_v18  ;;  %v874_v30 = vmul.f32 %v872_v21, %v5892_v19 }
 0x172   :  { %607 = vrot.lane.b32.xlu0 %v602_v23, %s5731_s16  ;;  %619 = vrot.lane.b32.xlu1 %v615_v24, %s5732_s7  ;;  %v860_v23 = vmul.f32 %v858_v14, %v5892_v19  ;;  %v1018_v14 = vstv %s5100_s29  ;;  %s6234_s29 = sld [smem:[#allocation9 + $0x24]] }
 0x176   :  { %621 = vrot.lane.b32.xlu0 %v616_v27, %s5732_s7  ;;  %639 = vrot.lane.b32.xlu1 %v635_v29, %s5731_s16  ;;  %v892_v27 = vstv %s5089_s3  ;;  %s6210_s3 = sld [smem:[#allocation9 + $0x12]] }
 0x17a   :  { %641 = vrot.lane.b32.xlu0 %v636_v31, %s5731_s16  ;;  %653 = vrot.lane.b32.xlu1 %v649_v32, %s5732_s7  ;;  %v893_v32 = vmul.f32 %v892_v27, %v5902_v26 }
 0x17e   :  { %655 = vrot.lane.b32.xlu0 %v650_v35, %s5732_s7  ;;  %683 = vrot.lane.b32.xlu1 %v679_v37, %s5731_s16  ;;  %v894_v37 = vmul.f32 %v892_v27, %v5905_v28 }
 0x182   :  { %685 = vrot.lane.b32.xlu0 %v680_v39, %s5731_s16  ;;  %697 = vrot.lane.b32.xlu1 %v693_v40, %s5732_s7  ;;  %v907_v39 = vmul.f32 %v906_v34, %v5902_v26  ;;  %v926_v40 = vstv %s5092_s6  ;;  %s6214_s6 = sld [smem:[#allocation9 + $0x18]] }
 0x183   :  { %v927_v44 = vmul.f32 %v926_v40, %v5913_v33  ;;  %v928_v47 = vmul.f32 %v926_v40, %v5917_v36 }
 0x186   :  { %699 = vrot.lane.b32.xlu0 %v694_v42, %s5732_s7  ;;  %717 = vrot.lane.b32.xlu1 %v713_v43, %s5731_s16  ;;  %v908_v42 = vmul.f32 %v906_v34, %v5905_v28 }
 0x18a   :  { %719 = vrot.lane.b32.xlu0 %v714_v45, %s5731_s16  ;;  %731 = vrot.lane.b32.xlu1 %v727_v46, %s5732_s7  ;;  %v940_v45 = vstv %s5093_s5  ;;  %s6220_s5 = sld [smem:[#allocation9 + $0x1b]] }
 0x18e   :  { %733 = vrot.lane.b32.xlu0 %v728_v48, %s5732_s7  ;;  %751 = vrot.lane.b32.xlu1 %v747_v49, %s5731_s16  ;;  %v941_v49 = vmul.f32 %v940_v45, %v5913_v33 }
 0x190   :  { %v6012_v52 = vpop.permute.xlu1 %245 }
 0x192   :  { %753 = vrot.lane.b32.xlu0 %v748_v51, %s5731_s16  ;;  %765 = vrot.lane.b32.xlu1 %v761_v53, %s5732_s7  ;;  %v942_v53 = vmul.f32 %v940_v45, %v5917_v36  ;;  %v1072_v45 = vstv %s5105_s14  ;;  %s6245_s14 = sld [smem:[#allocation9 + $0x55]] }
 0x194   :  { %v6016_v55 = vpop.permute.xlu0 %247  ;;  %v6020_v57 = vpop.permute.xlu1 %259 }
 0x196   :  { %767 = vrot.lane.b32.xlu0 %v762_v56, %s5732_s7  ;;  %785 = vrot.lane.b32.xlu1 %v781_v58, %s5731_s16  ;;  %v971_v56 = vmul.f32 %v970_v50, %v5880_v11  ;;  %v984_v58 = vstv %s5097_s27  ;;  %s6226_s27 = sld [smem:[#allocation9 + $0x1e]] }
 0x197   :  { %v985_v0 = vmul.f32 %v984_v58, %v5880_v11  ;;  %v986_v7 = vmul.f32 %v984_v58, %v5883_v13 }
 0x198   :  { %v6024_v60 = vpop.permute.xlu0 %261  ;;  %v6028_v62 = vpop.permute.xlu1 %279 }
 0x19a   :  { %787 = vrot.lane.b32.xlu0 %v782_v61, %s5731_s16  ;;  %799 = vrot.lane.b32.xlu1 %v795_v63, %s5732_s7  ;;  %v972_v61 = vmul.f32 %v970_v50, %v5883_v13 }
 0x19c   :  { %v6032_v2 = vpop.permute.xlu0 %281  ;;  %v6036_v5 = vpop.permute.xlu1 %293 }
 0x19e   :  { %801 = vrot.lane.b32.xlu0 %v796_v4, %s5732_s7  ;;  %829 = vrot.lane.b32.xlu1 %v825_v6, %s5731_s16  ;;  %v1004_v4 = vstv %s5099_s28  ;;  %s6228_s28 = sld [smem:[#allocation9 + $0x21]] }
 0x1a0   :  { %v6040_v8 = vpop.permute.xlu0 %295  ;;  %v6044_v10 = vpop.permute.xlu1 %313 }
 0x1a2   :  { %831 = vrot.lane.b32.xlu0 %v826_v9, %s5731_s16  ;;  %843 = vrot.lane.b32.xlu1 %v839_v12, %s5732_s7  ;;  %v1005_v12 = vmul.f32 %v1004_v4, %v5890_v18 }
 0x1a4   :  { %v6048_v15 = vpop.permute.xlu0 %315  ;;  %v6052_v17 = vpop.permute.xlu1 %327 }
 0x1a6   :  { %845 = vrot.lane.b32.xlu0 %v840_v16, %s5732_s7  ;;  %863 = vrot.lane.b32.xlu1 %v859_v20, %s5731_s16  ;;  %v1006_v20 = vmul.f32 %v1004_v4, %v5892_v19 }
 0x1a8   :  { %v6056_v22 = vpop.permute.xlu0 %329  ;;  %v6060_v24 = vpop.permute.xlu1 %347 }
 0x1aa   :  { %865 = vrot.lane.b32.xlu0 %v860_v23, %s5731_s16  ;;  %877 = vrot.lane.b32.xlu1 %v873_v25, %s5732_s7  ;;  %v1019_v23 = vmul.f32 %v1018_v14, %v5890_v18  ;;  %v1038_v25 = vstv %s5102_s30  ;;  %s6236_s30 = sld [smem:[#allocation9 + $0x27]] }
 0x1ab   :  { %v1039_v34 = vmul.f32 %v1038_v25, %v5902_v26  ;;  %v1040_v40 = vmul.f32 %v1038_v25, %v5905_v28  ;;  %v1130_v25 = vstv %s5110_s0  ;;  %s6260_s0 = sld [smem:[#allocation9 + $0x58]] }
 0x1ac   :  { %v6064_v29 = vpop.permute.xlu0 %349  ;;  %v6068_v31 = vpop.permute.xlu1 %361 }
 0x1ae   :  { %879 = vrot.lane.b32.xlu0 %v874_v30, %s5732_s7  ;;  %897 = vrot.lane.b32.xlu1 %v893_v32, %s5731_s16  ;;  %v1020_v30 = vmul.f32 %v1018_v14, %v5892_v19 }
 0x1b0   :  { %v6072_v35 = vpop.permute.xlu0 %363  ;;  %v6076_v38 = vpop.permute.xlu1 %391 }
 0x1b2   :  { %899 = vrot.lane.b32.xlu0 %v894_v37, %s5731_s16  ;;  %911 = vrot.lane.b32.xlu1 %v907_v39, %s5732_s7  ;;  %v1052_v37 = vstv %s5103_s13  ;;  %s6243_s13 = sld [smem:[#allocation9 + $0x53]] }
 0x1b4   :  { %v6080_v41 = vpop.permute.xlu0 %393  ;;  %v6084_v43 = vpop.permute.xlu1 %405 }
 0x1b6   :  { %913 = vrot.lane.b32.xlu0 %v908_v42, %s5732_s7  ;;  %931 = vrot.lane.b32.xlu1 %v927_v44, %s5731_s16  ;;  %v1053_v44 = vmul.f32 %v1052_v37, %v5902_v26 }
 0x1b8   :  { %v6088_v46 = vpop.permute.xlu0 %407  ;;  %v6092_v48 = vpop.permute.xlu1 %425 }
 0x1ba   :  { %933 = vrot.lane.b32.xlu0 %v928_v47, %s5731_s16  ;;  %945 = vrot.lane.b32.xlu1 %v941_v49, %s5732_s7  ;;  %v1054_v49 = vmul.f32 %v1052_v37, %v5905_v28 }
 0x1bc   :  { %v6096_v51 = vpop.permute.xlu0 %427  ;;  %v6100_v54 = vpop.permute.xlu1 %439 }
 0x1be   :  { %947 = vrot.lane.b32.xlu0 %v942_v53, %s5732_s7  ;;  %975 = vrot.lane.b32.xlu1 %v971_v56, %s5731_s16  ;;  %v1073_v53 = vmul.f32 %v1072_v45, %v5913_v33  ;;  %v1086_v56 = vstv %s5106_s8  ;;  %s6250_s8 = sld [smem:[#allocation9 + $0x2a]] }
 0x1bf   :  { %v1087_v4 = vmul.f32 %v1086_v56, %v5913_v33  ;;  %v1088_v14 = vmul.f32 %v1086_v56, %v5917_v36 }
 0x1c0   :  { %v6104_v59 = vpop.permute.xlu0 %441  ;;  %v6108_v63 = vpop.permute.xlu1 %459 }
 0x1c2   :  { %977 = vrot.lane.b32.xlu0 %v972_v61, %s5731_s16  ;;  %989 = vrot.lane.b32.xlu1 %v985_v0, %s5732_s7  ;;  %v1074_v61 = vmul.f32 %v1072_v45, %v5917_v36 }
 0x1c4   :  { %v6112_v6 = vpop.permute.xlu0 %461  ;;  %v6116_v9 = vpop.permute.xlu1 %473 }
 0x1c6   :  { %991 = vrot.lane.b32.xlu0 %v986_v7, %s5732_s7  ;;  %1009 = vrot.lane.b32.xlu1 %v1005_v12, %s5731_s16  ;;  %v1116_v7 = vstv %s5109_s15  ;;  %s6252_s15 = sld [smem:[#allocation9 + $0x56]] }
 0x1c8   :  { %v6120_v16 = vpop.permute.xlu0 %475  ;;  %v6124_v21 = vpop.permute.xlu1 %493 }
 0x1ca   :  { %1011 = vrot.lane.b32.xlu0 %v1006_v20, %s5731_s16  ;;  %1023 = vrot.lane.b32.xlu1 %v1019_v23, %s5732_s7  ;;  %v1117_v23 = vmul.f32 %v1116_v7, %v5880_v11 }
 0x1cc   :  { %v6128_v27 = vpop.permute.xlu0 %495  ;;  %v6132_v32 = vpop.permute.xlu1 %507 }
 0x1cd   :  { %8912 = vst [vmem:[#allocation33_spill] sm:$0xff] %v6132_v32 }
 0x1ce   :  { %1025 = vrot.lane.b32.xlu0 %v1020_v30, %s5732_s7  ;;  %1043 = vrot.lane.b32.xlu1 %v1039_v34, %s5731_s16  ;;  %v1118_v34 = vmul.f32 %v1116_v7, %v5883_v13 }
 0x1d0   :  { %v6136_v39 = vpop.permute.xlu0 %509  ;;  %v6140_v42 = vpop.permute.xlu1 %537 }
 0x1d1   :  { %8913 = vst [vmem:[#allocation34_spill] sm:$0xff] %v6136_v39  ;;  %v414_v39 = vstv %s6208_s1  ;;  %s6301_s1 = sld [smem:[#allocation9 + $0x5f]] }
 0x1d2   :  { %1045 = vrot.lane.b32.xlu0 %v1040_v40, %s5731_s16  ;;  %1057 = vrot.lane.b32.xlu1 %v1053_v44, %s5732_s7  ;;  %v1131_v40 = vmul.f32 %v1130_v25, %v5880_v11  ;;  %v1150_v44 = vstv %s6159_s2  ;;  %s6262_s2 = sld [smem:[#allocation9 + $0x2d]] }
 0x1d3   :  { %v1151_v56 = vmul.f32 %v1150_v44, %v5890_v18  ;;  %v1152_v7 = vmul.f32 %v1150_v44, %v5892_v19 }
 0x1d4   :  { %v6144_v47 = vpop.permute.xlu0 %539  ;;  %v6148_v50 = vpop.permute.xlu1 %551 }
 0x1d6   :  { %1059 = vrot.lane.b32.xlu0 %v1054_v49, %s5732_s7  ;;  %1077 = vrot.lane.b32.xlu1 %v1073_v53, %s5731_s16  ;;  %v1132_v49 = vmul.f32 %v1130_v25, %v5883_v13 }
 0x1d8   :  { %v6152_v58 = vpop.permute.xlu0 %553  ;;  %v6156_v0 = vpop.permute.xlu1 %571 }
 0x1da   :  { %1079 = vrot.lane.b32.xlu0 %v1074_v61, %s5731_s16  ;;  %1091 = vrot.lane.b32.xlu1 %v1087_v4, %s5732_s7  ;;  %v1164_v61 = vstv %s6169_s12  ;;  %s6268_s12 = sld [smem:[#allocation9 + $0x59]] }
 0x1db   :  { %v1165_v25 = vmul.f32 %v1164_v61, %v5890_v18 }
 0x1dc   :  { %v6162_v12 = vpop.permute.xlu0 %573  ;;  %v6166_v20 = vpop.permute.xlu1 %585 }
 0x1de   :  { %1093 = vrot.lane.b32.xlu0 %v1088_v14, %s5732_s7  ;;  %1121 = vrot.lane.b32.xlu1 %v1117_v23, %s5731_s16  ;;  %v234_v14 = vstv %s6175_s17  ;;  %s6270_s17 = sld [smem:[#allocation9 + $0x5b]] }
 0x1e0   :  { %v6172_v30 = vpop.permute.xlu0 %587  ;;  %v6177_v37 = vpop.permute.xlu1 %605 }
 0x1e2   :  { %1123 = vrot.lane.b32.xlu0 %v1118_v34, %s5731_s16  ;;  %1135 = vrot.lane.b32.xlu1 %v1131_v40, %s5732_s7  ;;  %v1184_v34 = vstv %s6182_s18  ;;  %v235_v40 = vmul.f32 %v234_v14, %v5880_v11  ;;  %s6283_s18 = sld [smem:[#allocation9 + $0x30]] }
 0x1e3   :  { %v1185_v1 = vmul.f32 %v1184_v34, %v5902_v26 }
 0x1e4   :  { %v6185_v45 = vpop.permute.xlu0 %607  ;;  %v6190_v53 = vpop.permute.xlu1 %619 }
 0x1e6   :  { %1137 = vrot.lane.b32.xlu0 %v1132_v49, %s5732_s7  ;;  %1155 = vrot.lane.b32.xlu1 %v1151_v56, %s5731_s16  ;;  %v1166_v49 = vmul.f32 %v1164_v61, %v5892_v19  ;;  %v251_v56 = vadd.f32 %v6012_v52, %v235_v40  ;;  %v236_v61 = vmul.f32 %v234_v14, %v5883_v13 }
 0x1e7   :  { %v1199_v40 = vmul.f32 %v1198_v3, %v5902_v26 }
 0x1e8   :  { %v6204_v4 = vpop.permute.xlu0 %621  ;;  %v6216_v23 = vpop.permute.xlu1 %639  ;;  %v265_v52 = vadd.f32 %v6020_v57, %v251_v56  ;;  %v252_v14 = vadd.f32 %v6016_v55, %v236_v61 }
 0x1e9   :  { %8914 = vst [vmem:[#allocation35_spill] sm:$0xff] %v6204_v4  ;;  %8915 = vst [vmem:[#allocation36_spill] sm:$0xff] %v6216_v23  ;;  %v380_v23 = vstv %s6201_s25  ;;  %s6299_s25 = sld [smem:[#allocation9 + $0x33]] }
 0x1ea   :  { %1157 = vrot.lane.b32.xlu0 %v1152_v7, %s5731_s16  ;;  %1169 = vrot.lane.b32.xlu1 %v1165_v25, %s5732_s7  ;;  %v268_v25 = vstv %s6188_s19  ;;  %v266_v55 = vadd.f32 %v6024_v60, %v252_v14  ;;  %s6285_s19 = sld [smem:[#allocation9 + $0x5c]]  ;;  %v1200_v60 = vmul.f32 %v1198_v3, %v5905_v28 }
 0x1eb   :  { %v270_v14 = vmul.f32 %v268_v25, %v5892_v19 }
 0x1ec   :  { %v6231_v44 = vpop.permute.xlu0 %641  ;;  %v6239_v7 = vpop.permute.xlu1 %653 }
 0x1ed   :  { %8916 = vst [vmem:[#allocation37_spill] sm:$0xff] %v6231_v44  ;;  %8917 = vst [vmem:[#allocation38_spill] sm:$0xff] %v6239_v7  ;;  %v1186_v44 = vmul.f32 %v1184_v34, %v5905_v28  ;;  %v381_v34 = vmul.f32 %v380_v23, %v5880_v11  ;;  %v1262_v7 = vstv %s6245_s14  ;;  %s6667_s14 = sld [smem:[#allocation10 + $0x4]] }
 0x1ee   :  { %1171 = vrot.lane.b32.xlu0 %v1166_v49, %s5732_s7  ;;  %1189 = vrot.lane.b32.xlu1 %v1185_v1, %s5731_s16  ;;  %v269_v1 = vmul.f32 %v268_v25, %v5890_v18  ;;  %v1232_v25 = vstv %s6243_s13  ;;  %s6322_s13 = sld [smem:[#allocation10]] }
 0x1f0   :  { %v6257_v49 = vpop.permute.xlu0 %655  ;;  %v6275_v56 = vpop.permute.xlu1 %683  ;;  %v271_v57 = vadd.f32 %v269_v1, %v265_v52  ;;  %v382_v1 = vmul.f32 %v380_v23, %v5883_v13  ;;  %v272_v52 = vadd.f32 %v270_v14, %v266_v55  ;;  %v8921_v14 = vstv %s6194_s22 }
 0x1f1   :  { %8918 = vst [vmem:[#allocation39_spill] sm:$0xff] %v6257_v49  ;;  %v1218_v49 = vstv %s6223_s26  ;;  %s6313_s26 = sld [smem:[#allocation9 + $0x36]] }
 0x1f2   :  { %1191 = vrot.lane.b32.xlu0 %v1186_v44, %s5731_s16  ;;  %1203 = vrot.lane.b32.xlu1 %v1199_v40, %s5732_s7  ;;  %v397_v40 = vadd.f32 %v6076_v38, %v381_v34  ;;  %v1219_v3 = vmul.f32 %v1218_v49, %v5913_v33  ;;  %v285_v38 = vadd.f32 %v6028_v62, %v271_v57 }
 0x1f3   :  { %v398_v23 = vadd.f32 %v6080_v41, %v382_v1  ;;  %v1220_v55 = vmul.f32 %v1218_v49, %v5917_v36  ;;  %v415_v57 = vmul.f32 %v414_v39, %v5890_v18  ;;  %v1233_v49 = vmul.f32 %v1232_v25, %v5913_v33 }
 0x1f4   :  { %v6290_v44 = vpop.permute.xlu0 %685  ;;  %v6305_v4 = vpop.permute.xlu1 %697  ;;  %v411_v34 = vadd.f32 %v6084_v43, %v397_v40  ;;  %v299_v41 = vadd.f32 %v6036_v5, %v285_v38  ;;  %v286_v1 = vadd.f32 %v6032_v2, %v272_v52  ;;  %v1234_v2 = vmul.f32 %v1232_v25, %v5917_v36 }
 0x1f5   :  { %v412_v43 = vadd.f32 %v6088_v46, %v398_v23  ;;  %v416_v46 = vmul.f32 %v414_v39, %v5892_v19  ;;  %v8920_v23 = vstv %s6214_s6  ;;  %v304_v25 = vmul.f32 %v8921_v14, %v5905_v28 }
 0x1f6   :  { %1205 = vrot.lane.b32.xlu0 %v1200_v60, %s5732_s7  ;;  %1223 = vrot.lane.b32.xlu1 %v1219_v3, %s5731_s16  ;;  %v8919_v3 = vstv %s6194_s22  ;;  %v417_v38 = vadd.f32 %v415_v57, %v411_v34  ;;  %v527_v32 = vmul.f32 %v8920_v23, %v5880_v11  ;;  %v300_v52 = vadd.f32 %v6040_v8, %v286_v1  ;;  %s6509_s22 = sld [smem:[#allocation10 + $0x1]] }
 0x1f7   :  { %v303_v61 = vmul.f32 %v8919_v3, %v5902_v26  ;;  %v1364_v3 = vstv %s6293_s23  ;;  %v418_v39 = vadd.f32 %v416_v46, %v412_v43  ;;  %v8922_v8 = vstv %s6199_s24  ;;  %s6559_s24 = sld [smem:[#allocation12 + $0x1]]  ;;  %s5107_s23 = sld [smem:[#allocation10 + $0x5]] }
 0x1f8   :  { %v6319_v60 = vpop.permute.xlu0 %699  ;;  %v6331_v40 = vpop.permute.xlu1 %717  ;;  %v543_v62 = vadd.f32 %v6140_v42, %v527_v32  ;;  %v337_v1 = vmul.f32 %v8922_v8, %v5913_v33  ;;  %v8923_v57 = vstv %s6214_s6  ;;  %v8924_v43 = vmov %v8922_v8  ;;  %s6603_s6 = sld [smem:[#allocation9 + $0x39]] }
 0x1f9   :  { %v305_v5 = vadd.f32 %v303_v61, %v299_v41  ;;  %v528_v61 = vmul.f32 %v8923_v57, %v5883_v13  ;;  %v338_v32 = vmul.f32 %v8924_v43, %v5917_v36  ;;  %v431_v42 = vadd.f32 %v6092_v48, %v417_v38 }
 0x1fa   :  { %1225 = vrot.lane.b32.xlu0 %v1220_v55, %s5731_s16  ;;  %1237 = vrot.lane.b32.xlu1 %v1233_v49, %s5732_s7  ;;  %v1263_v49 = vmul.f32 %v1262_v7, %v5880_v11  ;;  %v557_v46 = vadd.f32 %v6148_v50, %v543_v62  ;;  %v306_v8 = vadd.f32 %v304_v25, %v300_v52  ;;  %v370_v57 = vstv %s6322_s13  ;;  %s6751_s13 = sld [smem:[#allocation12 + $0x11]] }
 0x1fb   :  { %v544_v41 = vadd.f32 %v6144_v47, %v528_v61  ;;  %v8925_v34 = vstv %s6220_s5  ;;  %v319_v48 = vadd.f32 %v6044_v10, %v305_v5  ;;  %v432_v38 = vadd.f32 %v6096_v51, %v418_v39 }
 0x1fc   :  { %v6346_v55 = vpop.permute.xlu0 %719  ;;  %v6354_v23 = vpop.permute.xlu1 %731  ;;  %v561_v43 = vmul.f32 %v8925_v34, %v5890_v18  ;;  %v445_v50 = vadd.f32 %v6100_v54, %v431_v42  ;;  %v8927_v52 = vstv %s6210_s3  ;;  %v8929_v51 = vstv %s6212_s4  ;;  %s6578_s3 = sld [smem:[#allocation12 + $0x2]] }
 0x1fd   :  { %v449_v34 = vmul.f32 %v8927_v52, %v5902_v26  ;;  %v6400_v54 = vmul.f32 %v8929_v51, %v5913_v33  ;;  %v558_v5 = vadd.f32 %v6152_v58, %v544_v41  ;;  %v333_v39 = vadd.f32 %v6052_v17, %v319_v48  ;;  %v6420_v41 = vld [vmem:[#allocation2] sm:$0x1]  ;;  %s6587_s4 = sld [smem:[#allocation10 + $0x2]] }
 0x1fe   :  { %1239 = vrot.lane.b32.xlu0 %v1234_v2, %s5732_s7  ;;  %1267 = vrot.lane.b32.xlu1 %v1263_v49, %s5731_s16  ;;  %v1264_v2 = vmul.f32 %v1262_v7, %v5883_v13  ;;  %v8926_v7 = vstv %s6252_s15  ;;  %v8928_v49 = vmov %v8927_v52  ;;  %v446_v25 = vadd.f32 %v6104_v59, %v432_v38  ;;  %s6674_s15 = sld [smem:[#allocation9 + $0x3f]] }
 0x1ff   :  { %v1277_v47 = vmul.f32 %v8926_v7, %v5880_v11  ;;  %v450_v10 = vmul.f32 %v8928_v49, %v5905_v28  ;;  %v563_v11 = vadd.f32 %v561_v43, %v557_v46  ;;  %v8930_v42 = vmov %v8926_v7 }
 0x200   :  { %v6374_v14 = vpop.permute.xlu0 %733  ;;  %v6385_v62 = vpop.permute.xlu1 %751  ;;  %v320_v7 = vadd.f32 %v6048_v15, %v306_v8  ;;  %v8931_v52 = vmov %v8929_v51  ;;  %v8932_v17 = vstv %s6220_s5  ;;  %v8933_v59 = vstv %s6234_s29  ;;  %s6610_s5 = sld [smem:[#allocation12 + $0x4]]  ;;  %s6648_s29 = sld [smem:[#allocation12 + $0x7]] }
 0x201   :  { %v6415_v49 = vmul.f32 %v8931_v52, %v5917_v36  ;;  %v562_v58 = vmul.f32 %v8932_v17, %v5892_v19  ;;  %v673_v46 = vmul.f32 %v6420_v41, %v8933_v59  ;;  %v451_v43 = vadd.f32 %v449_v34, %v445_v50 }
 0x202   :  { %1269 = vrot.lane.b32.xlu0 %v1264_v2, %s5731_s16  ;;  %1281 = vrot.lane.b32.xlu1 %v1277_v47, %s5732_s7  ;;  %v1278_v2 = vmul.f32 %v8930_v42, %v5883_v13  ;;  %v8934_v48 = vstv %s6226_s27  ;;  %v8936_v19 = vstv %s6260_s0  ;;  %v334_v51 = vadd.f32 %v6056_v22, %v320_v7  ;;  %s6627_s27 = sld [smem:[#allocation12 + $0x5]]  ;;  %s6680_s0 = sld [smem:[#allocation12 + $0xa]] }
 0x203   :  { %v595_v38 = vmul.f32 %v8934_v48, %v5902_v26  ;;  %v8935_v13 = vmov %v8934_v48  ;;  %v1297_v47 = vmul.f32 %v8936_v19, %v5890_v18  ;;  %v564_v50 = vadd.f32 %v562_v58, %v558_v5  ;;  %v6441_v26 = vld [vmem:[#allocation2 + $0x4] sm:$0x1]  ;;  %v6450_v18 = vld [vmem:[#allocation2 + $0x5] sm:$0x1]  ;;  %v6469_v58 = vld [vmem:[#allocation2 + $0x1] sm:$0x1] }
 0x204   :  { %v6406_v61 = vpop.permute.xlu0 %753  ;;  %v6431_v15 = vmul.f32 %v8935_v13, %v5905_v28  ;;  %v6433_v8 = vpop.permute.xlu1 %765  ;;  %v689_v34 = vadd.f32 %v6275_v56, %v673_v46  ;;  %v8937_v42 = vmov %v8933_v59  ;;  %v339_v52 = vadd.f32 %v337_v1, %v333_v39 }
 0x205   :  { %v674_v28 = vmul.f32 %v6441_v26, %v8937_v42  ;;  %v452_v17 = vadd.f32 %v450_v10, %v446_v25  ;;  %v577_v59 = vadd.f32 %v6156_v0, %v563_v11  ;;  %v8938_v22 = vmov %v8936_v19 }
 0x206   :  { %1283 = vrot.lane.b32.xlu0 %v1278_v2, %s5732_s7  ;;  %1301 = vrot.lane.b32.xlu1 %v1297_v47, %s5731_s16  ;;  %v1298_v56 = vmul.f32 %v6450_v18, %v8938_v22  ;;  %v8939_v5 = vstv %s6228_s28  ;;  %v703_v39 = vadd.f32 %v6305_v4, %v689_v34  ;;  %v465_v25 = vadd.f32 %v6108_v63, %v451_v43  ;;  %s6631_s28 = sld [smem:[#allocation10 + $0x3]] }
 0x207   :  { %v6458_v7 = vmul.f32 %v8939_v5, %v5913_v33  ;;  %v8940_v1 = vmov %v8939_v5  ;;  %v690_v0 = vadd.f32 %v6290_v44, %v674_v28  ;;  %v591_v11 = vadd.f32 %v6166_v20, %v577_v59 }
 0x208   :  { %v6448_v2 = vpop.permute.xlu0 %767  ;;  %v6463_v10 = vmul.f32 %v8940_v1, %v5917_v36  ;;  %v8941_v46 = vstv %s6236_s30  ;;  %v6474_v33 = vpop.permute.xlu1 %785  ;;  %v8942_v36 = vstv %s6268_s12  ;;  %v340_v4 = vadd.f32 %v338_v32, %v334_v51  ;;  %v6495_v51 = vld [vmem:[#allocation2 + $0x2] sm:$0x1]  ;;  %s6661_s30 = sld [smem:[#allocation12 + $0x8]]  ;;  %s6702_s12 = sld [smem:[#allocation12 + $0xd]] }
 0x209   :  { %v707_v48 = vmul.f32 %v6469_v58, %v8941_v46  ;;  %v1311_v44 = vmul.f32 %v6469_v58, %v8942_v36  ;;  %v578_v63 = vadd.f32 %v6162_v12, %v564_v50  ;;  %v704_v43 = vadd.f32 %v6319_v60, %v690_v0  ;;  %v6518_v0 = vld [vmem:[#allocation2 + $0x3] sm:$0x1] }
 0x20a   :  { %1303 = vrot.lane.b32.xlu0 %v1298_v56, %s5731_s16  ;;  %v8943_v20 = vmov %v8941_v46  ;;  %v353_v19 = vadd.f32 %v6060_v24, %v339_v52  ;;  %v466_v47 = vadd.f32 %v6112_v6, %v452_v17  ;;  %v479_v34 = vadd.f32 %v6116_v9, %v465_v25  ;;  %v6500_v6 = vld [vmem:[#allocation2 + $0x6] sm:$0x1]  ;;  %v6525_v25 = vld [vmem:[#allocation2 + $0x7] sm:$0x1] }
 0x20b   :  { %v708_v13 = vmul.f32 %v6450_v18, %v8943_v20  ;;  %1315 = vrot.lane.b32.xlu1 %v1311_v44, %s5732_s7  ;;  %v8944_v28 = vmov %v8942_v36  ;;  %v592_v12 = vadd.f32 %v6172_v30, %v578_v63  ;;  %v709_v60 = vadd.f32 %v707_v48, %v703_v39 }
 0x20c   :  { %v6489_v42 = vpop.permute.xlu0 %787  ;;  %v1312_v32 = vmul.f32 %v6450_v18, %v8944_v28  ;;  %v8945_v50 = vstv %s6250_s8  ;;  %v367_v17 = vadd.f32 %v6068_v31, %v353_v19  ;;  %v480_v59 = vadd.f32 %v6120_v16, %v466_v47  ;;  %v6511_v22 = vpop.permute.xlu1 %799  ;;  %s6669_s8 = sld [smem:[#allocation9 + $0x3c]] }
 0x20d   :  { %v741_v24 = vmul.f32 %v6495_v51, %v8945_v50  ;;  %v8946_v9 = vmov %v8945_v50  ;;  %v597_v30 = vadd.f32 %v595_v38, %v591_v11  ;;  %v8947_v56 = vstv %s6270_s17  ;;  %s6706_s17 = sld [smem:[#allocation9 + $0x42]] }
 0x20e   :  { %v6505_v52 = vmul.f32 %v6500_v6, %v8946_v9  ;;  %1317 = vrot.lane.b32.xlu0 %v1312_v32, %s5732_s7  ;;  %v1331_v5 = vmul.f32 %v6495_v51, %v8947_v56  ;;  %v354_v1 = vadd.f32 %v6064_v29, %v340_v4  ;;  %v710_v31 = vadd.f32 %v708_v13, %v704_v43 }
 0x20f   :  { %v8948_v16 = vstv %s6262_s2  ;;  %v485_v46 = vadd.f32 %v6400_v54, %v479_v34  ;;  %v8950_v48 = vstv %s6283_s18  ;;  %v8951_v44 = vmov %v8947_v56  ;;  %s6689_s2 = sld [smem:[#allocation12 + $0xb]]  ;;  %s6715_s18 = sld [smem:[#allocation12 + $0xe]] }
 0x210   :  { %v6523_v39 = vmul.f32 %v6518_v0, %v8948_v16  ;;  %v8949_v38 = vmov %v8948_v16  ;;  %1335 = vrot.lane.b32.xlu1 %v1331_v5, %s5731_s16  ;;  %v6534_v29 = vpop.permute.xlu0 %801  ;;  %v819_v36 = vmul.f32 %v6420_v41, %v8950_v48  ;;  %v1332_v4 = vmul.f32 %v6500_v6, %v8951_v44  ;;  %v830_v50 = vpop.permute.xlu1 %829 }
 0x211   :  { %v6530_v11 = vmul.f32 %v6525_v25, %v8949_v38  ;;  %v8952_v63 = vstv %s6285_s19  ;;  %v368_v20 = vadd.f32 %v6072_v35, %v354_v1  ;;  %v598_v13 = vadd.f32 %v6431_v15, %v592_v12  ;;  %v8957_v38 = vld [vmem:[#allocation33_spill] sm:$0xff]  ;;  %s6728_s19 = sld [smem:[#allocation9 + $0x45]] }
 0x212   :  { %v1345_v43 = vmul.f32 %v6495_v51, %v8952_v63  ;;  %v723_v54 = vadd.f32 %v6331_v40, %v709_v60  ;;  %v8953_v19 = vmov %v8950_v48  ;;  %v371_v34 = vadd.f32 %v370_v57, %v367_v17  ;;  %1337 = vrot.lane.b32.xlu0 %v1332_v4, %s5731_s16  ;;  %v8958_v48 = vld [vmem:[#allocation35_spill] sm:$0xff] }
 0x213   :  { %v820_v47 = vmul.f32 %v6441_v26, %v8953_v19  ;;  %v486_v28 = vadd.f32 %v6415_v49, %v480_v59  ;;  %v611_v32 = vadd.f32 %v6177_v37, %v597_v30  ;;  %v8954_v35 = vmov %v8952_v63 }
 0x214   :  { %v1346_v15 = vmul.f32 %v6500_v6, %v8954_v35  ;;  %v724_v40 = vadd.f32 %v6346_v55, %v710_v31  ;;  %v737_v12 = vadd.f32 %v6354_v23, %v723_v54  ;;  %v1365_v60 = vmul.f32 %v6518_v0, %v1364_v3  ;;  %1349 = vrot.lane.b32.xlu1 %v1345_v43, %s5732_s7  ;;  %v832_v59 = vpop.permute.xlu0 %831 }
 0x215   :  { %v8955_v49 = vstv %s6299_s25  ;;  %v499_v9 = vadd.f32 %v6124_v21, %v485_v46  ;;  %v625_v17 = vadd.f32 %v6190_v53, %v611_v32  ;;  %v1366_v30 = vmul.f32 %v6525_v25, %v1364_v3  ;;  %v844_v3 = vpop.permute.xlu1 %843  ;;  %s5108_s25 = sld [smem:[#allocation9 + $0x48]] }
 0x216   :  { %v853_v37 = vmul.f32 %v6469_v58, %v8955_v49  ;;  %v8956_v55 = vstv %s6301_s1  ;;  %v372_v56 = vadd.f32 %v370_v57, %v368_v20  ;;  %v612_v5 = vadd.f32 %v6185_v45, %v598_v13  ;;  %1351 = vrot.lane.b32.xlu0 %v1346_v15, %s5732_s7  ;;  %s6747_s1 = sld [smem:[#allocation9 + $0x4b]] }
 0x217   :  { %v1379_v23 = vmul.f32 %v6518_v0, %v8956_v55  ;;  %v738_v1 = vadd.f32 %v6374_v14, %v724_v40  ;;  %v835_v21 = vadd.f32 %v830_v50, %v819_v36  ;;  %v375_v31 = vmul.f32 0.01, %v371_v34  ;;  %v8959_v14 = vld [vmem:[#allocation34_spill] sm:$0xff] }
 0x218   :  { %v500_v53 = vadd.f32 %v6128_v27, %v486_v28  ;;  %v516_v16 = vstv %s6509_s22  ;;  %v513_v46 = vadd.f32 %v8957_v38, %v499_v9  ;;  %v626_v44 = vadd.f32 %v8958_v48, %v612_v5  ;;  %1369 = vrot.lane.b32.xlu1 %v1365_v60, %s5731_s16  ;;  %v846_v63 = vpop.permute.xlu0 %845  ;;  %v8962_v60 = vld [vmem:[#allocation36_spill] sm:$0xff]  ;;  %s6757_s22 = sld [smem:[#allocation9 + $0x4e]] }
 0x219   :  { %v743_v57 = vadd.f32 %v741_v24, %v737_v12  ;;  %v836_v4 = vadd.f32 %v832_v59, %v820_v47  ;;  %v849_v45 = vadd.f32 %v844_v3, %v835_v21  ;;  %vm373_vm12 = vcmp.gt.f32.partialorder %v371_v34, 0.0  ;;  %v864_v28 = vpop.permute.xlu1 %863 }
 0x21a   :  { %v514_v36 = vadd.f32 %v8959_v14, %v500_v53  ;;  %v631_v27 = vadd.f32 %v6458_v7, %v625_v17  ;;  %v8960_v43 = vmov %v8955_v49  ;;  %v376_v13 = vmul.f32 0.01, %v372_v56  ;;  %1371 = vrot.lane.b32.xlu0 %v1366_v30, %s5731_s16  ;;  %v8965_v53 = vld [vmem:[#allocation37_spill] sm:$0xff] }
 0x21b   :  { %v854_v20 = vmul.f32 %v6450_v18, %v8960_v43  ;;  %v744_v54 = vadd.f32 %v6505_v52, %v738_v1  ;;  %v850_v19 = vadd.f32 %v846_v63, %v836_v4  ;;  %v855_v24 = vadd.f32 %v853_v37, %v849_v45  ;;  %v8964_v1 = vld [vmem:[#allocation38_spill] sm:$0xff] }
 0x21c   :  { %vm374_vm13 = vcmp.gt.f32.partialorder %v372_v56, 0.0  ;;  %v517_v47 = vadd.f32 %v516_v16, %v513_v46  ;;  %v8961_v32 = vmov %v8956_v55  ;;  %v1408_v50 = vstv %s6559_s24  ;;  %1383 = vrot.lane.b32.xlu1 %v1379_v23, %s5732_s7  ;;  %v866_v37 = vpop.permute.xlu0 %865  ;;  %s5117_s24 = sld [smem:[#allocation9 + $0x51]] }
 0x21d   :  { %v1380_v7 = vmul.f32 %v6525_v25, %v8961_v32  ;;  %v6606_v35 = vsel %vm373_vm12, %v371_v34, %v375_v31  ;;  %v632_v52 = vadd.f32 %v6463_v10, %v626_v44  ;;  %v757_v15 = vadd.f32 %v6385_v62, %v743_v57  ;;  %v878_v31 = vpop.permute.xlu1 %877  ;;  %v8967_v57 = vld [vmem:[#allocation39_spill] sm:$0xff] }
 0x21e   :  { %v856_v40 = vadd.f32 %v854_v20, %v850_v19  ;;  %v518_v12 = vadd.f32 %v516_v16, %v514_v36  ;;  %v645_v49 = vadd.f32 %v8962_v60, %v631_v27  ;;  %v8963_v9 = vstv %s6313_s26  ;;  %s6749_s26 = sld [smem:[#allocation12 + $0x10]] }
 0x21f   :  { %v887_v17 = vmul.f32 %v6495_v51, %v8963_v9  ;;  %v1422_v59 = vstv %s6578_s3  ;;  %v6619_v34 = vsel %vm374_vm13, %v372_v56, %v376_v13  ;;  %v758_v10 = vadd.f32 %v6406_v61, %v744_v54  ;;  %1385 = vrot.lane.b32.xlu0 %v1380_v7, %s5732_s7  ;;  %s5120_s3 = sld [smem:[#allocation10 + $0x6]] }
 0x220   :  { %v771_v62 = vadd.f32 %v6433_v8, %v757_v15  ;;  %v869_v30 = vadd.f32 %v864_v28, %v855_v24  ;;  %v521_v55 = vmul.f32 0.01, %v517_v47  ;;  %v662_v5 = vstv %s6587_s4  ;;  %v880_v46 = vpop.permute.xlu0 %879  ;;  %s5121_s4 = sld [smem:[#allocation9 + $0x54]] }
 0x221   :  { %v659_v21 = vadd.f32 %v8964_v1, %v645_v49  ;;  %v1409_v23 = vmul.f32 %v1408_v50, %v6606_v35  ;;  %v646_v56 = vadd.f32 %v8965_v53, %v632_v52  ;;  %v772_v16 = vadd.f32 %v6448_v2, %v758_v10  ;;  %v898_v27 = vpop.permute.xlu1 %897 }
 0x222   :  { %v870_v61 = vadd.f32 %v866_v37, %v856_v40  ;;  %v883_v38 = vadd.f32 %v878_v31, %v869_v30  ;;  %vm519_vm14 = vcmp.gt.f32.partialorder %v517_v47, 0.0  ;;  %v522_v8 = vmul.f32 0.01, %v518_v12 }
 0x223   :  { %1413 = vrot.lane.b32.xlu1 %v1409_v23, %s5731_s16  ;;  %v1410_v3 = vmul.f32 %v1408_v50, %v6619_v34  ;;  %v8966_v48 = vmov %v8963_v9  ;;  %v660_v4 = vadd.f32 %v8967_v57, %v646_v56  ;;  %v777_v2 = vadd.f32 %v6523_v39, %v771_v62 }
 0x224   :  { %v888_v44 = vmul.f32 %v6500_v6, %v8966_v48  ;;  %v884_v45 = vadd.f32 %v880_v46, %v870_v61  ;;  %v889_v14 = vadd.f32 %v887_v17, %v883_v38  ;;  %vm520_vm15 = vcmp.gt.f32.partialorder %v518_v12, 0.0  ;;  %v900_v39 = vpop.permute.xlu0 %899 }
 0x225   :  { %v663_v36 = vadd.f32 %v662_v5, %v659_v21  ;;  %1415 = vrot.lane.b32.xlu0 %v1410_v3, %s5731_s16  ;;  %v1423_v63 = vmul.f32 %v1422_v59, %v6606_v35  ;;  %v920_v43 = vstv %s6603_s6  ;;  %v6644_v20 = vsel %vm519_vm14, %v517_v47, %v521_v55  ;;  %v912_v52 = vpop.permute.xlu1 %911  ;;  %s6779_s6 = sld [smem:[#allocation9 + $0x57]] }
 0x226   :  { %v778_v13 = vadd.f32 %v6530_v11, %v772_v16  ;;  %v890_v54 = vadd.f32 %v888_v44, %v884_v45  ;;  %v1442_v19 = vstv %s6610_s5  ;;  %v1424_v24 = vmul.f32 %v1422_v59, %v6619_v34  ;;  %s6781_s5 = sld [smem:[#allocation12 + $0x13]] }
 0x227   :  { %1427 = vrot.lane.b32.xlu1 %v1423_v63, %s5732_s7  ;;  %v6652_v28 = vsel %vm520_vm15, %v518_v12, %v522_v8  ;;  %v664_v32 = vadd.f32 %v662_v5, %v660_v4  ;;  %v791_v7 = vadd.f32 %v6474_v33, %v777_v2  ;;  %v903_v47 = vadd.f32 %v898_v27, %v889_v14 }
 0x228   :  { %v667_v50 = vmul.f32 0.01, %v663_v36  ;;  %v1443_v11 = vmul.f32 %v1442_v19, %v6644_v20  ;;  %v921_v15 = vmul.f32 %v6518_v0, %v920_v43  ;;  %v1456_v40 = vstv %s6627_s27  ;;  %v914_v9 = vpop.permute.xlu0 %913  ;;  %s6783_s27 = sld [smem:[#allocation12 + $0x14]] }
 0x229   :  { %1429 = vrot.lane.b32.xlu0 %v1424_v24, %s5732_s7  ;;  %v792_v60 = vadd.f32 %v6489_v42, %v778_v13  ;;  %v805_v49 = vadd.f32 %v6511_v22, %v791_v7  ;;  %v904_v12 = vadd.f32 %v900_v39, %v890_v54  ;;  %v917_v37 = vadd.f32 %v912_v52, %v903_v47  ;;  %v932_v30 = vpop.permute.xlu1 %931 }
 0x22a   :  { %vm665_vm12 = vcmp.gt.f32.partialorder %v663_v36, 0.0  ;;  %v808_v33 = vstv %s6631_s28  ;;  %v1444_v17 = vmul.f32 %v1442_v19, %v6652_v28  ;;  %v922_v59 = vmul.f32 %v6525_v25, %v920_v43  ;;  %s6789_s28 = sld [smem:[#allocation9 + $0x5a]] }
 0x22b   :  { %1447 = vrot.lane.b32.xlu1 %v1443_v11, %s5731_s16  ;;  %v668_v42 = vmul.f32 0.01, %v664_v32  ;;  %v806_v22 = vadd.f32 %v6534_v29, %v792_v60  ;;  %v918_v10 = vadd.f32 %v914_v9, %v904_v12  ;;  %v923_v62 = vadd.f32 %v921_v15, %v917_v37 }
 0x22c   :  { %vm666_vm13 = vcmp.gt.f32.partialorder %v664_v32, 0.0  ;;  %v1457_v55 = vmul.f32 %v1456_v40, %v6644_v20  ;;  %v6677_v5 = vsel %vm665_vm12, %v663_v36, %v667_v50  ;;  %v809_v1 = vadd.f32 %v808_v33, %v805_v49  ;;  %v934_v29 = vpop.permute.xlu0 %933 }
 0x22d   :  { %1449 = vrot.lane.b32.xlu0 %v1444_v17, %s5731_s16  ;;  %v924_v21 = vadd.f32 %v922_v59, %v918_v10  ;;  %v1476_v31 = vstv %s6648_s29  ;;  %v1458_v23 = vmul.f32 %v1456_v40, %v6652_v28  ;;  %v6684_v53 = vsel %vm666_vm13, %v664_v32, %v668_v42  ;;  %v946_v61 = vpop.permute.xlu1 %945  ;;  %s5130_s29 = sld [smem:[#allocation9 + $0x5d]] }
 0x22e   :  { %v810_v56 = vadd.f32 %v808_v33, %v806_v22  ;;  %v937_v16 = vadd.f32 %v932_v30, %v923_v62  ;;  %v1477_v38 = vmul.f32 %v1476_v31, %v6677_v5  ;;  %v813_v8 = vmul.f32 0.01, %v809_v1 }
 0x22f   :  { %1461 = vrot.lane.b32.xlu1 %v1457_v55, %s5732_s7  ;;  %v938_v46 = vadd.f32 %v934_v29, %v924_v21  ;;  %v1490_v48 = vstv %s6661_s30  ;;  %vm811_vm14 = vcmp.gt.f32.partialorder %v809_v1, 0.0  ;;  %v954_v44 = vstv %s6667_s14  ;;  %s5133_s30 = sld [smem:[#allocation10 + $0x7]]  ;;  %s1401_s14 = sld [smem:[#allocation12]] }
 0x230   :  { %v951_v3 = vadd.f32 %v946_v61, %v937_v16  ;;  %v948_v57 = vpop.permute.xlu0 %947  ;;  %v964_v4 = vstv %s6669_s8  ;;  %v1478_v2 = vmul.f32 %v1476_v31, %v6684_v53  ;;  %v814_v45 = vmul.f32 0.01, %v810_v56  ;;  %s6811_s8 = sld [smem:[#allocation12 + $0x3]] }
 0x231   :  { %1463 = vrot.lane.b32.xlu0 %v1458_v23, %s5732_s7  ;;  %v952_v14 = vadd.f32 %v948_v57, %v938_v46  ;;  %vm812_vm15 = vcmp.gt.f32.partialorder %v810_v56, 0.0  ;;  %v976_v36 = vpop.permute.xlu1 %975  ;;  %v1491_v27 = vmul.f32 %v1490_v48, %v6677_v5  ;;  %v998_v63 = vstv %s6674_s15  ;;  %s6813_s15 = sld [smem:[#allocation12 + $0x16]] }
 0x232   :  { %v6698_v43 = vsel %vm811_vm14, %v809_v1, %v813_v8  ;;  %v955_v13 = vadd.f32 %v954_v44, %v951_v3  ;;  %v965_v54 = vmul.f32 %v6420_v41, %v964_v4  ;;  %v1510_v19 = vstv %s6680_s0  ;;  %s6815_s0 = sld [smem:[#allocation12 + $0x17]] }
 0x233   :  { %1481 = vrot.lane.b32.xlu1 %v1477_v38, %s5731_s16  ;;  %v1492_v24 = vmul.f32 %v1490_v48, %v6684_v53  ;;  %v6708_v32 = vsel %vm812_vm15, %v810_v56, %v814_v45  ;;  %v956_v7 = vadd.f32 %v954_v44, %v952_v14  ;;  %v966_v50 = vmul.f32 %v6441_v26, %v964_v4 }
 0x234   :  { %v978_v39 = vpop.permute.xlu0 %977  ;;  %v981_v47 = vadd.f32 %v976_v36, %v965_v54  ;;  %v1511_v11 = vmul.f32 %v1510_v19, %v6698_v43  ;;  %v999_v15 = vmul.f32 %v6469_v58, %v998_v63  ;;  %v959_v40 = vmul.f32 0.01, %v955_v13 }
 0x235   :  { %1483 = vrot.lane.b32.xlu0 %v1478_v2, %s5731_s16  ;;  %v990_v52 = vpop.permute.xlu1 %989  ;;  %v982_v60 = vadd.f32 %v978_v39, %v966_v50  ;;  %v1524_v12 = vstv %s6689_s2  ;;  %vm957_vm12 = vcmp.gt.f32.partialorder %v955_v13, 0.0  ;;  %v1512_v33 = vmul.f32 %v1510_v19, %v6708_v32  ;;  %s6820_s2 = sld [smem:[#allocation12 + $0x19]] }
 0x236   :  { %v995_v49 = vadd.f32 %v990_v52, %v981_v47  ;;  %v960_v9 = vmul.f32 0.01, %v956_v7  ;;  %v1000_v42 = vmul.f32 %v6450_v18, %v998_v63  ;;  %vm958_vm13 = vcmp.gt.f32.partialorder %v956_v7, 0.0 }
 0x237   :  { %1495 = vrot.lane.b32.xlu1 %v1491_v27, %s5732_s7  ;;  %v1525_v10 = vmul.f32 %v1524_v12, %v6698_v43  ;;  %v6722_v62 = vsel %vm957_vm12, %v955_v13, %v959_v40  ;;  %v1544_v55 = vstv %s6702_s12  ;;  %v1526_v21 = vmul.f32 %v1524_v12, %v6708_v32  ;;  %s6823_s12 = sld [smem:[#allocation12 + $0x6]] }
 0x238   :  { %v992_v37 = vpop.permute.xlu0 %991  ;;  %v1001_v59 = vadd.f32 %v999_v15, %v995_v49  ;;  %v1032_v31 = vstv %s6706_s17  ;;  %v6730_v29 = vsel %vm958_vm13, %v956_v7, %v960_v9  ;;  %v1545_v16 = vmul.f32 %v1544_v55, %v6722_v62  ;;  %s6832_s17 = sld [smem:[#allocation12 + $0x1a]] }
 0x239   :  { %1497 = vrot.lane.b32.xlu0 %v1492_v24, %s5732_s7  ;;  %v996_v17 = vadd.f32 %v992_v37, %v982_v60  ;;  %v1010_v22 = vpop.permute.xlu1 %1009  ;;  %v1033_v8 = vmul.f32 %v6495_v51, %v1032_v31  ;;  %v1558_v46 = vstv %s6715_s18  ;;  %v1546_v48 = vmul.f32 %v1544_v55, %v6730_v29  ;;  %s6840_s18 = sld [smem:[#allocation12 + $0x1c]] }
 0x23a   :  { %v1015_v23 = vadd.f32 %v1010_v22, %v1001_v59  ;;  %v1034_v4 = vmul.f32 %v6500_v6, %v1032_v31  ;;  %v1559_v45 = vmul.f32 %v1558_v46, %v6722_v62  ;;  %v1560_v27 = vmul.f32 %v1558_v46, %v6730_v29 }
 0x23b   :  { %1515 = vrot.lane.b32.xlu1 %v1511_v11, %s5731_s16  ;;  %v1002_v30 = vadd.f32 %v1000_v42, %v996_v17  ;;  %v1066_v63 = vstv %s6728_s19  ;;  %v1100_v49 = vstv %s5107_s23  ;;  %v1110_v9 = vstv %s5108_s25  ;;  %s6845_s19 = sld [smem:[#allocation12 + $0x9]]  ;;  %s6851_s23 = sld [smem:[#allocation12 + $0x1d]] }
 0x23c   :  { %v1012_v1 = vpop.permute.xlu0 %1011  ;;  %v1067_v24 = vmul.f32 %v6518_v0, %v1066_v63  ;;  %v1068_v52 = vmul.f32 %v6525_v25, %v1066_v63  ;;  %v1111_v22 = vmul.f32 %v6420_v41, %v1110_v9  ;;  %v1112_v31 = vmul.f32 %v6441_v26, %v1110_v9  ;;  %s6859_s25 = sld [smem:[#allocation12 + $0x1f]] }
 0x23d   :  { %1517 = vrot.lane.b32.xlu0 %v1512_v33, %s5731_s16  ;;  %v1024_v56 = vpop.permute.xlu1 %1023  ;;  %v1016_v61 = vadd.f32 %v1012_v1, %v1002_v30  ;;  %v1144_v30 = vstv %s6747_s1  ;;  %s6864_s1 = sld [smem:[#allocation12 + $0xc]] }
 0x23e   :  { %v1029_v38 = vadd.f32 %v1024_v56, %v1015_v23  ;;  %v1145_v46 = vmul.f32 %v6469_v58, %v1144_v30 }
 0x23f   :  { %1529 = vrot.lane.b32.xlu1 %v1525_v10, %s5732_s7 }
 0x240   :  { %v1026_v3 = vpop.permute.xlu0 %1025  ;;  %v1035_v57 = vadd.f32 %v1033_v8, %v1029_v38 }
 0x241   :  { %1531 = vrot.lane.b32.xlu0 %v1526_v21, %s5732_s7  ;;  %v1030_v44 = vadd.f32 %v1026_v3, %v1016_v61  ;;  %v1044_v2 = vpop.permute.xlu1 %1043  ;;  %v1578_v21 = vstv %s6749_s26  ;;  %s6870_s26 = sld [smem:[#allocation12 + $0x20]] }
 0x242   :  { %v1049_v13 = vadd.f32 %v1044_v2, %v1035_v57  ;;  %v1592_v57 = vstv %s6751_s13  ;;  %s6878_s13 = sld [smem:[#allocation12 + $0x22]] }
 0x243   :  { %1549 = vrot.lane.b32.xlu1 %v1545_v16, %s5731_s16  ;;  %v1036_v14 = vadd.f32 %v1034_v4, %v1030_v44 }
 0x244   :  { %v1046_v36 = vpop.permute.xlu0 %1045 }
 0x245   :  { %1551 = vrot.lane.b32.xlu0 %v1546_v48, %s5731_s16  ;;  %v1058_v54 = vpop.permute.xlu1 %1057  ;;  %v1050_v19 = vadd.f32 %v1046_v36, %v1036_v14  ;;  %v1146_v36 = vmul.f32 %v6450_v18, %v1144_v30 }
 0x246   :  { %v1063_v39 = vadd.f32 %v1058_v54, %v1049_v13 }
 0x247   :  { %1563 = vrot.lane.b32.xlu1 %v1559_v45, %s5732_s7 }
 0x248   :  { %v1060_v7 = vpop.permute.xlu0 %1059  ;;  %v1069_v50 = vadd.f32 %v1067_v24, %v1063_v39  ;;  %v1178_v39 = vstv %s6757_s22  ;;  %s6883_s22 = sld [smem:[#allocation12 + $0xf]] }
 0x249   :  { %1565 = vrot.lane.b32.xlu0 %v1560_v27, %s5732_s7  ;;  %v1064_v47 = vadd.f32 %v1060_v7, %v1050_v19  ;;  %v1078_v11 = vpop.permute.xlu1 %1077 }
 0x24a   :  { %v1083_v60 = vadd.f32 %v1078_v11, %v1069_v50 }
 0x24b   :  { %v1070_v15 = vadd.f32 %v1068_v52, %v1064_v47  ;;  %v1179_v52 = vmul.f32 %v6495_v51, %v1178_v39 }
 0x24c   :  { %v1080_v40 = vpop.permute.xlu0 %1079 }
 0x24d   :  { %v1092_v12 = vpop.permute.xlu1 %1091  ;;  %v1084_v37 = vadd.f32 %v1080_v40, %v1070_v15 }
 0x24e   :  { %v1097_v33 = vadd.f32 %v1092_v12, %v1083_v60  ;;  %v1180_v60 = vmul.f32 %v6500_v6, %v1178_v39 }
 0x250   :  { %v1094_v17 = vpop.permute.xlu0 %1093  ;;  %v1101_v59 = vadd.f32 %v1100_v49, %v1097_v33  ;;  %v1212_v33 = vstv %s5117_s24  ;;  %s6889_s24 = sld [smem:[#allocation12 + $0x23]] }
 0x251   :  { %v1098_v42 = vadd.f32 %v1094_v17, %v1084_v37  ;;  %v1122_v10 = vpop.permute.xlu1 %1121 }
 0x252   :  { %vm1103_vm14 = vcmp.gt.f32.partialorder %v1101_v59, 0.0  ;;  %v1105_v55 = vmul.f32 0.01, %v1101_v59  ;;  %v1127_v61 = vadd.f32 %v1122_v10, %v1111_v22  ;;  %v1213_v22 = vmul.f32 %v6518_v0, %v1212_v33 }
 0x253   :  { %v1102_v1 = vadd.f32 %v1100_v49, %v1098_v42 }
 0x254   :  { %v1124_v23 = vpop.permute.xlu0 %1123  ;;  %v6759_v56 = vsel %vm1103_vm14, %v1101_v59, %v1105_v55 }
 0x255   :  { %vm1104_vm15 = vcmp.gt.f32.partialorder %v1102_v1, 0.0  ;;  %v1106_v16 = vmul.f32 0.01, %v1102_v1  ;;  %v1136_v38 = vpop.permute.xlu1 %1135  ;;  %v1579_v8 = vmul.f32 %v1578_v21, %v6759_v56  ;;  %v1128_v48 = vadd.f32 %v1124_v23, %v1112_v31 }
 0x256   :  { %v1141_v44 = vadd.f32 %v1136_v38, %v1127_v61  ;;  %v1593_v63 = vmul.f32 %v1592_v57, %v6759_v56  ;;  %v1246_v61 = vstv %s5120_s3  ;;  %s6897_s3 = sld [smem:[#allocation12 + $0x25]] }
 0x257   :  { %v6763_v3 = vsel %vm1104_vm15, %v1102_v1, %v1106_v16  ;;  %1583 = vrot.lane.b32.xlu1 %v1579_v8, %s5731_s16  ;;  %v1214_v1 = vmul.f32 %v6525_v25, %v1212_v33 }
 0x258   :  { %v1138_v4 = vpop.permute.xlu0 %1137  ;;  %v1580_v2 = vmul.f32 %v1578_v21, %v6763_v3  ;;  %v1147_v14 = vadd.f32 %v1145_v46, %v1141_v44  ;;  %v1594_v19 = vmul.f32 %v1592_v57, %v6763_v3 }
 0x259   :  { %v1142_v45 = vadd.f32 %v1138_v4, %v1128_v48  ;;  %v1156_v27 = vpop.permute.xlu1 %1155  ;;  %v1256_v48 = vstv %s5121_s4  ;;  %s5171_s4 = sld [smem:[#allocation12 + $0x26]] }
 0x25a   :  { %1585 = vrot.lane.b32.xlu0 %v1580_v2, %s5731_s16  ;;  %v1161_v24 = vadd.f32 %v1156_v27, %v1147_v14  ;;  %v1257_v2 = vmul.f32 %v6420_v41, %v1256_v48  ;;  %v1290_v14 = vstv %s6779_s6  ;;  %s5173_s6 = sld [smem:[#allocation12 + $0x28]] }
 0x25b   :  { %v1148_v13 = vadd.f32 %v1146_v36, %v1142_v45  ;;  %1597 = vrot.lane.b32.xlu1 %v1593_v63, %s5732_s7  ;;  %v1612_v63 = vstv %s6781_s5  ;;  %s5174_s5 = sld [smem:[#allocation12 + $0x29]] }
 0x25c   :  { %v1158_v54 = vpop.permute.xlu0 %1157 }
 0x25d   :  { %v1170_v7 = vpop.permute.xlu1 %1169  ;;  %v1162_v47 = vadd.f32 %v1158_v54, %v1148_v13  ;;  %v1258_v13 = vmul.f32 %v6441_v26, %v1256_v48 }
 0x25e   :  { %1599 = vrot.lane.b32.xlu0 %v1594_v19, %s5732_s7  ;;  %v1175_v50 = vadd.f32 %v1170_v7, %v1161_v24 }
 0x260   :  { %v1172_v11 = vpop.permute.xlu0 %1171  ;;  %v1181_v40 = vadd.f32 %v1179_v52, %v1175_v50 }
 0x261   :  { %v1176_v15 = vadd.f32 %v1172_v11, %v1162_v47  ;;  %v1190_v49 = vpop.permute.xlu1 %1189  ;;  %v1291_v47 = vmul.f32 %v6469_v58, %v1290_v14 }
 0x262   :  { %v1195_v9 = vadd.f32 %v1190_v49, %v1181_v40 }
 0x263   :  { %v1182_v12 = vadd.f32 %v1180_v60, %v1176_v15  ;;  %v1626_v15 = vstv %s6783_s27  ;;  %s5176_s27 = sld [smem:[#allocation12 + $0x2b]] }
 0x264   :  { %v1192_v37 = vpop.permute.xlu0 %1191 }
 0x265   :  { %v1204_v17 = vpop.permute.xlu1 %1203  ;;  %v1196_v59 = vadd.f32 %v1192_v37, %v1182_v12  ;;  %v1292_v12 = vmul.f32 %v6450_v18, %v1290_v14 }
 0x266   :  { %v1209_v42 = vadd.f32 %v1204_v17, %v1195_v9 }
 0x268   :  { %v1206_v10 = vpop.permute.xlu0 %1205  ;;  %v1215_v55 = vadd.f32 %v1213_v22, %v1209_v42 }
 0x269   :  { %v1210_v30 = vadd.f32 %v1206_v10, %v1196_v59  ;;  %v1224_v21 = vpop.permute.xlu1 %1223  ;;  %v1324_v59 = vstv %s6789_s28  ;;  %s5151_s28 = sld [smem:[#allocation12 + $0x12]] }
 0x26a   :  { %v1229_v16 = vadd.f32 %v1224_v21, %v1215_v55  ;;  %v1325_v18 = vmul.f32 %v6495_v51, %v1324_v59 }
 0x26b   :  { %v1216_v31 = vadd.f32 %v1214_v1, %v1210_v30 }
 0x26c   :  { %v1226_v23 = vpop.permute.xlu0 %1225 }
 0x26d   :  { %v1238_v38 = vpop.permute.xlu1 %1237  ;;  %v1230_v8 = vadd.f32 %v1226_v23, %v1216_v31  ;;  %v1326_v31 = vmul.f32 %v6500_v6, %v1324_v59 }
 0x26e   :  { %v1243_v46 = vadd.f32 %v1238_v38, %v1229_v16  ;;  %v1358_v38 = vstv %s5130_s29  ;;  %s6924_s29 = sld [smem:[#allocation12 + $0x2c]] }
 0x270   :  { %v1240_v44 = vpop.permute.xlu0 %1239  ;;  %v1247_v57 = vadd.f32 %v1246_v61, %v1243_v46 }
 0x271   :  { %v1244_v4 = vadd.f32 %v1240_v44, %v1230_v8  ;;  %v1268_v45 = vpop.permute.xlu1 %1267 }
 0x272   :  { %vm1249_vm12 = vcmp.gt.f32.partialorder %v1247_v57, 0.0  ;;  %v1251_v36 = vmul.f32 0.01, %v1247_v57  ;;  %v1273_v24 = vadd.f32 %v1268_v45, %v1257_v2  ;;  %v1360_v45 = vmul.f32 %v6525_v25, %v1358_v38 }
 0x273   :  { %v1248_v27 = vadd.f32 %v1246_v61, %v1244_v4 }
 0x274   :  { %v1270_v54 = vpop.permute.xlu0 %1269  ;;  %v6791_v19 = vsel %vm1249_vm12, %v1247_v57, %v1251_v36  ;;  %v1359_v57 = vmul.f32 %v6518_v0, %v1358_v38  ;;  %vm4973_vm12 = vcmask 57344  }
 0x275   :  { %vm1250_vm13 = vcmp.gt.f32.partialorder %v1248_v27, 0.0  ;;  %v1252_v39 = vmul.f32 0.01, %v1248_v27  ;;  %v1282_v7 = vpop.permute.xlu1 %1281  ;;  %v1613_v41 = vmul.f32 %v1612_v63, %v6791_v19  ;;  %v1274_v52 = vadd.f32 %v1270_v54, %v1258_v13 }
 0x276   :  { %v1287_v11 = vadd.f32 %v1282_v7, %v1273_v24  ;;  %v1627_v58 = vmul.f32 %v1626_v15, %v6791_v19 }
 0x277   :  { %v6795_v50 = vsel %vm1250_vm13, %v1248_v27, %v1252_v39  ;;  %1617 = vrot.lane.b32.xlu1 %v1613_v41, %s5731_s16  ;;  %v1402_v39 = vstv %s1401_s14  ;;  %s5180_s14 = sld [smem:[#allocation12 + $0x2f]]  ;;  %vm4978_vm13 = vcmask 58369  }
 0x278   :  { %v1284_v26 = vpop.permute.xlu0 %1283  ;;  %v1614_v40 = vmul.f32 %v1612_v63, %v6795_v50  ;;  %v1293_v49 = vadd.f32 %v1291_v47, %v1287_v11  ;;  %v1628_v17 = vmul.f32 %v1626_v15, %v6795_v50  ;;  %v1392_v63 = vstv %s5133_s30  ;;  %s6930_s30 = sld [smem:[#allocation12 + $0x2e]] }
 0x279   :  { %v1288_v60 = vadd.f32 %v1284_v26, %v1274_v52  ;;  %v1302_v37 = vpop.permute.xlu1 %1301  ;;  %v1403_v47 = vmul.f32 %v1402_v39, %v6606_v35  ;;  %v1436_v52 = vstv %s6811_s8  ;;  %v1646_v26 = vstv %s6813_s15  ;;  %s5183_s8 = sld [smem:[#allocation12 + $0x31]]  ;;  %s5184_s15 = sld [smem:[#allocation12 + $0x32]] }
 0x27a   :  { %1619 = vrot.lane.b32.xlu0 %v1614_v40, %s5731_s16  ;;  %v1307_v42 = vadd.f32 %v1302_v37, %v1293_v49  ;;  %v1404_v40 = vmul.f32 %v1402_v39, %v6619_v34 }
 0x27b   :  { %v1294_v33 = vadd.f32 %v1292_v12, %v1288_v60  ;;  %1631 = vrot.lane.b32.xlu1 %v1627_v58, %s5732_s7 }
 0x27c   :  { %v1304_v9 = vpop.permute.xlu0 %1303 }
 0x27d   :  { %v1316_v22 = vpop.permute.xlu1 %1315  ;;  %v1308_v10 = vadd.f32 %v1304_v9, %v1294_v33  ;;  %v1437_v9 = vmul.f32 %v1436_v52, %v6644_v20 }
 0x27e   :  { %1633 = vrot.lane.b32.xlu0 %v1628_v17, %s5732_s7  ;;  %v1321_v30 = vadd.f32 %v1316_v22, %v1307_v42  ;;  %v1660_v22 = vstv %s6815_s0  ;;  %s5186_s0 = sld [smem:[#allocation12 + $0x34]] }
 0x280   :  { %v1318_v55 = vpop.permute.xlu0 %1317  ;;  %v1327_v21 = vadd.f32 %v1325_v18, %v1321_v30 }
 0x281   :  { %v1322_v1 = vadd.f32 %v1318_v55, %v1308_v10 }
 0x282   :  { %v1336_v23 = vpop.permute.xlu1 %1335 }
 0x283   :  { %v1328_v16 = vadd.f32 %v1326_v31, %v1322_v1  ;;  %v1341_v8 = vadd.f32 %v1336_v23, %v1327_v21  ;;  %v1438_v1 = vmul.f32 %v1436_v52, %v6652_v28 }
 0x284   :  { %v1338_v61 = vpop.permute.xlu0 %1337 }
 0x285   :  { %v1342_v48 = vadd.f32 %v1338_v61, %v1328_v16  ;;  %v1686_v16 = vstv %s6820_s2  ;;  %s5187_s2 = sld [smem:[#allocation12 + $0x35]] }
 0x286   :  { %v1350_v46 = vpop.permute.xlu1 %1349 }
 0x287   :  { %v1355_v44 = vadd.f32 %v1350_v46, %v1341_v8  ;;  %v1470_v8 = vstv %s6823_s12  ;;  %s5189_s12 = sld [smem:[#allocation12 + $0x37]] }
 0x288   :  { %v1352_v4 = vpop.permute.xlu0 %1351 }
 0x289   :  { %v1356_v2 = vadd.f32 %v1352_v4, %v1342_v48  ;;  %v1361_v51 = vadd.f32 %v1359_v57, %v1355_v44  ;;  %v1687_v44 = vmul.f32 %v1686_v16, %v6606_v35 }
 0x28a   :  { %v1370_v14 = vpop.permute.xlu1 %1369 }
 0x28b   :  { %v1362_v6 = vadd.f32 %v1360_v45, %v1356_v2  ;;  %v1375_v27 = vadd.f32 %v1370_v14, %v1361_v51  ;;  %v1471_v2 = vmul.f32 %v1470_v8, %v6677_v5  ;;  %v1700_v51 = vstv %s6832_s17  ;;  %s5154_s17 = sld [smem:[#allocation12 + $0x15]] }
 0x28c   :  { %v1372_v36 = vpop.permute.xlu0 %1371  ;;  %v1688_v14 = vmul.f32 %v1686_v16, %v6619_v34  ;;  %v1768_v16 = vstv %s6870_s26  ;;  %s5198_s26 = sld [smem:[#allocation12 + $0x40]] }
 0x28d   :  { %v1376_v54 = vadd.f32 %v1372_v36, %v1362_v6 }
 0x28e   :  { %v1384_v13 = vpop.permute.xlu1 %1383 }
 0x28f   :  { %v1389_v0 = vadd.f32 %v1384_v13, %v1375_v27  ;;  %v1472_v27 = vmul.f32 %v1470_v8, %v6684_v53  ;;  %v1701_v13 = vmul.f32 %v1700_v51, %v6606_v35 }
 0x291   :  { %v1386_v24 = vpop.permute.xlu0 %1385  ;;  %v1393_v7 = vadd.f32 %v1392_v63, %v1389_v0  ;;  %v1720_v0 = vstv %s6840_s18  ;;  %s6964_s18 = sld [smem:[#allocation12 + $0x38]] }
 0x292   :  { %v1390_v25 = vadd.f32 %v1386_v24, %v1376_v54  ;;  %v1702_v24 = vmul.f32 %v1700_v51, %v6619_v34 }
 0x293   :  { %vm1395_vm14 = vcmp.gt.f32.partialorder %v1393_v7, 0.0  ;;  %v1397_v11 = vmul.f32 0.01, %v1393_v7 }
 0x294   :  { %v1394_v15 = vadd.f32 %v1392_v63, %v1390_v25 }
 0x295   :  { %v1414_v41 = vpop.permute.xlu1 %1413  ;;  %v6825_v49 = vsel %vm1395_vm14, %v1393_v7, %v1397_v11  ;;  %v1504_v7 = vstv %s6845_s19  ;;  %s6970_s19 = sld [smem:[#allocation12 + $0x3a]]  ;;  %vm4983_vm14 = vcmask 59394  }
 0x296   :  { %vm1396_vm15 = vcmp.gt.f32.partialorder %v1394_v15, 0.0  ;;  %v1398_v12 = vmul.f32 0.01, %v1394_v15  ;;  %v1419_v37 = vadd.f32 %v1414_v41, %v1403_v47  ;;  %v1647_v33 = vmul.f32 %v1646_v26, %v6825_v49 }
 0x297   :  { %v1416_v60 = vpop.permute.xlu0 %1415  ;;  %v1661_v31 = vmul.f32 %v1660_v22, %v6825_v49  ;;  %v1721_v47 = vmul.f32 %v1720_v0, %v6644_v20 }
 0x298   :  { %v6829_v17 = vsel %vm1396_vm15, %v1394_v15, %v1398_v12  ;;  %v1420_v59 = vadd.f32 %v1416_v60, %v1404_v40  ;;  %1651 = vrot.lane.b32.xlu1 %v1647_v33, %s5731_s16  ;;  %v1505_v15 = vmul.f32 %v1504_v7, %v6698_v43  ;;  %v1722_v60 = vmul.f32 %v1720_v0, %v6652_v28 }
 0x299   :  { %v1428_v58 = vpop.permute.xlu1 %1427  ;;  %v1648_v30 = vmul.f32 %v1646_v26, %v6829_v17  ;;  %v1662_v38 = vmul.f32 %v1660_v22, %v6829_v17  ;;  %v1734_v26 = vstv %s6851_s23  ;;  %s5193_s23 = sld [smem:[#allocation12 + $0x3b]]  ;;  %vm4988_vm15 = vcmask 60419  }
 0x29a   :  { %v1433_v42 = vadd.f32 %v1428_v58, %v1419_v37  ;;  %v1506_v58 = vmul.f32 %v1504_v7, %v6708_v32 }
 0x29b   :  { %v1430_v10 = vpop.permute.xlu0 %1429  ;;  %1653 = vrot.lane.b32.xlu0 %v1648_v30, %s5731_s16  ;;  %v1538_v30 = vstv %s6864_s1  ;;  %s5196_s1 = sld [smem:[#allocation12 + $0x3e]] }
 0x29c   :  { %v1434_v18 = vadd.f32 %v1430_v10, %v1420_v59  ;;  %v1439_v55 = vadd.f32 %v1437_v9, %v1433_v42  ;;  %1665 = vrot.lane.b32.xlu1 %v1661_v31, %s5732_s7  ;;  %v1735_v9 = vmul.f32 %v1734_v26, %v6644_v20  ;;  %v1754_v42 = vstv %s6859_s25  ;;  %s5195_s25 = sld [smem:[#allocation12 + $0x3d]] }
 0x29d   :  { %v1448_v21 = vpop.permute.xlu1 %1447  ;;  %v1736_v10 = vmul.f32 %v1734_v26, %v6652_v28 }
 0x29e   :  { %v1440_v23 = vadd.f32 %v1438_v1, %v1434_v18  ;;  %v1453_v46 = vadd.f32 %v1448_v21, %v1439_v55  ;;  %v1755_v1 = vmul.f32 %v1754_v42, %v6677_v5 }
 0x29f   :  { %v1450_v61 = vpop.permute.xlu0 %1449  ;;  %1667 = vrot.lane.b32.xlu0 %v1662_v38, %s5732_s7  ;;  %v1756_v38 = vmul.f32 %v1754_v42, %v6684_v53 }
 0x2a0   :  { %v1454_v57 = vadd.f32 %v1450_v61, %v1440_v23  ;;  %1691 = vrot.lane.b32.xlu1 %v1687_v44, %s5731_s16  ;;  %v1539_v23 = vmul.f32 %v1538_v30, %v6722_v62 }
 0x2a1   :  { %v1462_v48 = vpop.permute.xlu1 %1461 }
 0x2a2   :  { %v1467_v4 = vadd.f32 %v1462_v48, %v1453_v46  ;;  %v1540_v48 = vmul.f32 %v1538_v30, %v6730_v29 }
 0x2a3   :  { %v1464_v45 = vpop.permute.xlu0 %1463  ;;  %1693 = vrot.lane.b32.xlu0 %v1688_v14, %s5731_s16  ;;  %v1572_v14 = vstv %s6883_s22  ;;  %s7000_s22 = sld [smem:[#allocation12 + $0x43]] }
 0x2a4   :  { %v1468_v6 = vadd.f32 %v1464_v45, %v1454_v57  ;;  %v1473_v36 = vadd.f32 %v1471_v2, %v1467_v4  ;;  %1705 = vrot.lane.b32.xlu1 %v1701_v13, %s5732_s7  ;;  %v1769_v57 = vmul.f32 %v1768_v16, %v6677_v5  ;;  %v1788_v2 = vstv %s6878_s13  ;;  %s5199_s13 = sld [smem:[#allocation12 + $0x41]] }
 0x2a5   :  { %v1482_v63 = vpop.permute.xlu1 %1481  ;;  %v1770_v45 = vmul.f32 %v1768_v16, %v6684_v53  ;;  %v1573_v0 = vmul.f32 %v1572_v14, %v6759_v56 }
 0x2a6   :  { %v1474_v54 = vadd.f32 %v1472_v27, %v1468_v6  ;;  %v1487_v25 = vadd.f32 %v1482_v63, %v1473_v36  ;;  %v1789_v27 = vmul.f32 %v1788_v2, %v6698_v43 }
 0x2a7   :  { %v1484_v39 = vpop.permute.xlu0 %1483  ;;  %1707 = vrot.lane.b32.xlu0 %v1702_v24, %s5732_s7  ;;  %v1790_v24 = vmul.f32 %v1788_v2, %v6708_v32  ;;  %v1924_v2 = vstv %s6930_s30  ;;  %s7048_s30 = sld [smem:[#allocation12 + $0x4a]] }
 0x2a8   :  { %v1488_v52 = vadd.f32 %v1484_v39, %v1474_v54  ;;  %1725 = vrot.lane.b32.xlu1 %v1721_v47, %s5731_s16  ;;  %v1802_v54 = vstv %s6889_s24  ;;  %s7006_s24 = sld [smem:[#allocation13]] }
 0x2a9   :  { %v1496_v41 = vpop.permute.xlu1 %1495  ;;  %v1803_v47 = vmul.f32 %v1802_v54, %v6698_v43 }
 0x2aa   :  { %v1501_v11 = vadd.f32 %v1496_v41, %v1487_v25  ;;  %v1574_v41 = vmul.f32 %v1572_v14, %v6763_v3  ;;  %v1925_v14 = vmul.f32 %v1924_v2, %v6825_v49 }
 0x2ab   :  { %v1498_v40 = vpop.permute.xlu0 %1497  ;;  %1727 = vrot.lane.b32.xlu0 %v1722_v60, %s5731_s16 }
 0x2ac   :  { %v1502_v12 = vadd.f32 %v1498_v40, %v1488_v52  ;;  %v1507_v37 = vadd.f32 %v1505_v15, %v1501_v11  ;;  %1739 = vrot.lane.b32.xlu1 %v1735_v9, %s5732_s7  ;;  %v1822_v52 = vstv %s6897_s3  ;;  %v1804_v15 = vmul.f32 %v1802_v54, %v6708_v32  ;;  %s7008_s3 = sld [smem:[#allocation12 + $0x44]] }
 0x2ad   :  { %v1516_v33 = vpop.permute.xlu1 %1515  ;;  %v1823_v26 = vmul.f32 %v1822_v52, %v6722_v62  ;;  %v1836_v40 = vstv %s5171_s4  ;;  %v1824_v60 = vmul.f32 %v1822_v52, %v6730_v29  ;;  %v1870_v9 = vstv %s5174_s5  ;;  %s7012_s4 = sld [smem:[#allocation12 + $0x18]]  ;;  %s7021_s5 = sld [smem:[#allocation12 + $0x1b]] }
 0x2ae   :  { %v1508_v59 = vadd.f32 %v1506_v58, %v1502_v12  ;;  %v1521_v18 = vadd.f32 %v1516_v33, %v1507_v37  ;;  %v1837_v12 = vmul.f32 %v1836_v40, %v6722_v62  ;;  %v1856_v37 = vstv %s5173_s6  ;;  %s7017_s6 = sld [smem:[#allocation12 + $0x46]] }
 0x2af   :  { %v1518_v22 = vpop.permute.xlu0 %1517  ;;  %1741 = vrot.lane.b32.xlu0 %v1736_v10, %s5732_s7  ;;  %v1838_v58 = vmul.f32 %v1836_v40, %v6730_v29  ;;  %v1857_v33 = vmul.f32 %v1856_v37, %v6759_v56  ;;  %v1890_v10 = vstv %s5176_s27  ;;  %s7027_s27 = sld [smem:[#allocation12 + $0x47]] }
 0x2b0   :  { %v1522_v21 = vadd.f32 %v1518_v22, %v1508_v59  ;;  %1759 = vrot.lane.b32.xlu1 %v1755_v1, %s5731_s16  ;;  %v1858_v59 = vmul.f32 %v1856_v37, %v6763_v3  ;;  %v1871_v22 = vmul.f32 %v1870_v9, %v6759_v56 }
 0x2b1   :  { %v1530_v55 = vpop.permute.xlu1 %1529 }
 0x2b2   :  { %v1535_v31 = vadd.f32 %v1530_v55, %v1521_v18  ;;  %v1872_v18 = vmul.f32 %v1870_v9, %v6763_v3  ;;  %v1606_v55 = vstv %s5151_s28  ;;  %s7036_s28 = sld [smem:[#allocation12 + $0x49]] }
 0x2b3   :  { %v1532_v61 = vpop.permute.xlu0 %1531  ;;  %1761 = vrot.lane.b32.xlu0 %v1756_v38, %s5731_s16  ;;  %v1607_v38 = vmul.f32 %v1606_v55, %v6791_v19 }
 0x2b4   :  { %v1536_v8 = vadd.f32 %v1532_v61, %v1522_v21  ;;  %v1541_v46 = vadd.f32 %v1539_v23, %v1535_v31  ;;  %1773 = vrot.lane.b32.xlu1 %v1769_v57, %s5732_s7  ;;  %v1891_v31 = vmul.f32 %v1890_v10, %v6791_v19  ;;  %v1904_v61 = vstv %s6924_s29  ;;  %s7041_s29 = sld [smem:[#allocation12 + $0x1e]] }
 0x2b5   :  { %v1550_v44 = vpop.permute.xlu1 %1549  ;;  %v1608_v57 = vmul.f32 %v1606_v55, %v6795_v50 }
 0x2b6   :  { %v1542_v4 = vadd.f32 %v1540_v48, %v1536_v8  ;;  %v1555_v6 = vadd.f32 %v1550_v44, %v1541_v46  ;;  %v1892_v46 = vmul.f32 %v1890_v10, %v6795_v50 }
 0x2b7   :  { %v1552_v51 = vpop.permute.xlu0 %1551  ;;  %1775 = vrot.lane.b32.xlu0 %v1770_v45, %s5732_s7  ;;  %v1906_v45 = vmul.f32 %v1904_v61, %v6795_v50 }
 0x2b8   :  { %v1556_v63 = vadd.f32 %v1552_v51, %v1542_v4  ;;  %1793 = vrot.lane.b32.xlu1 %v1789_v27, %s5731_s16  ;;  %v1905_v4 = vmul.f32 %v1904_v61, %v6791_v19 }
 0x2b9   :  { %v1564_v36 = vpop.permute.xlu1 %1563 }
 0x2ba   :  { %v1569_v13 = vadd.f32 %v1564_v36, %v1555_v6  ;;  %v1938_v6 = vstv %s5180_s14  ;;  %v1926_v36 = vmul.f32 %v1924_v2, %v6829_v17  ;;  %s7056_s14 = sld [smem:[#allocation12 + $0x4c]] }
 0x2bb   :  { %v1566_v39 = vpop.permute.xlu0 %1565  ;;  %1795 = vrot.lane.b32.xlu0 %v1790_v24, %s5731_s16  ;;  %v1939_v27 = vmul.f32 %v1938_v6, %v6825_v49 }
 0x2bc   :  { %v1570_v7 = vadd.f32 %v1566_v39, %v1556_v63  ;;  %v1575_v25 = vadd.f32 %v1573_v0, %v1569_v13  ;;  %1807 = vrot.lane.b32.xlu1 %v1803_v47, %s5732_s7  ;;  %v1964_v63 = vstv %s5183_s8  ;;  %v1940_v13 = vmul.f32 %v1938_v6, %v6829_v17  ;;  %s7063_s8 = sld [smem:[#allocation12 + $0x21]] }
 0x2bd   :  { %v1965_v54 = vmul.f32 %v1964_v63, %v6606_v35  ;;  %v1978_v0 = vstv %s5184_s15  ;;  %v1966_v39 = vmul.f32 %v1964_v63, %v6619_v34  ;;  %v2012_v47 = vstv %s5187_s2  ;;  %s7074_s15 = sld [smem:[#allocation12 + $0x4d]]  ;;  %s7094_s2 = sld [smem:[#allocation12 + $0x24]] }
 0x2be   :  { %v1576_v11 = vadd.f32 %v1574_v41, %v1570_v7  ;;  %v1979_v24 = vmul.f32 %v1978_v0, %v6606_v35  ;;  %v1998_v7 = vstv %s5186_s0  ;;  %s7089_s0 = sld [smem:[#allocation12 + $0x4f]] }
 0x2bf   :  { %1809 = vrot.lane.b32.xlu0 %v1804_v15, %s5732_s7  ;;  %v1999_v41 = vmul.f32 %v1998_v7, %v6644_v20  ;;  %v2000_v52 = vmul.f32 %v1998_v7, %v6652_v28  ;;  %v2013_v15 = vmul.f32 %v2012_v47, %v6644_v20  ;;  %v1674_v7 = vstv %s7006_s24  ;;  %s7165_s24 = sld [smem:[#allocation12 + $0x5b]] }
 0x2c0   :  { %1827 = vrot.lane.b32.xlu1 %v1823_v26, %s5731_s16  ;;  %v2032_v26 = vstv %s5189_s12  ;;  %s7100_s12 = sld [smem:[#allocation12 + $0x50]] }
 0x2c3   :  { %1829 = vrot.lane.b32.xlu0 %v1824_v60, %s5731_s16  ;;  %v2014_v60 = vmul.f32 %v2012_v47, %v6652_v28 }
 0x2c4   :  { %1841 = vrot.lane.b32.xlu1 %v1837_v12, %s5732_s7  ;;  %v1640_v12 = vstv %s5154_s17  ;;  %s7108_s17 = sld [smem:[#allocation12 + $0x52]] }
 0x2c7   :  { %1843 = vrot.lane.b32.xlu0 %v1838_v58, %s5732_s7 }
 0x2c8   :  { %1861 = vrot.lane.b32.xlu1 %v1857_v33, %s5731_s16  ;;  %v2033_v33 = vmul.f32 %v2032_v26, %v6677_v5 }
 0x2c9   :  { %v1584_v42 = vpop.permute.xlu1 %1583 }
 0x2ca   :  { %v1589_v1 = vadd.f32 %v1584_v42, %v1575_v25  ;;  %v1980_v25 = vmul.f32 %v1978_v0, %v6619_v34  ;;  %v2046_v42 = vstv %s6964_s18  ;;  %s7113_s18 = sld [smem:[#allocation12 + $0x27]] }
 0x2cb   :  { %1863 = vrot.lane.b32.xlu0 %v1858_v59, %s5731_s16 }
 0x2cc   :  { %1875 = vrot.lane.b32.xlu1 %v1871_v22, %s5732_s7  ;;  %v1586_v30 = vpop.permute.xlu0 %1585  ;;  %v1641_v22 = vmul.f32 %v1640_v12, %v6825_v49 }
 0x2cd   :  { %v1598_v21 = vpop.permute.xlu1 %1597  ;;  %v1590_v23 = vadd.f32 %v1586_v30, %v1576_v11  ;;  %v2034_v30 = vmul.f32 %v2032_v26, %v6684_v53  ;;  %v1680_v26 = vstv %s7012_s4  ;;  %s7176_s4 = sld [smem:[#allocation12 + $0x5c]] }
 0x2ce   :  { %v1603_v16 = vadd.f32 %v1598_v21, %v1589_v1  ;;  %v1642_v1 = vmul.f32 %v1640_v12, %v6829_v17  ;;  %v2047_v21 = vmul.f32 %v2046_v42, %v6677_v5 }
 0x2cf   :  { %1877 = vrot.lane.b32.xlu0 %v1872_v18, %s5732_s7 }
 0x2d0   :  { %1895 = vrot.lane.b32.xlu1 %v1891_v31, %s5731_s16  ;;  %v1600_v8 = vpop.permute.xlu0 %1599  ;;  %v1609_v44 = vadd.f32 %v1607_v38, %v1603_v16  ;;  %v2066_v31 = vstv %s6970_s19  ;;  %v2048_v16 = vmul.f32 %v2046_v42, %v6684_v53  ;;  %v2080_v38 = vstv %s5193_s23  ;;  %s7119_s19 = sld [smem:[#allocation12 + $0x53]]  ;;  %s7127_s23 = sld [smem:[#allocation12 + $0x55]] }
 0x2d1   :  { %v1604_v48 = vadd.f32 %v1600_v8, %v1590_v23  ;;  %v2067_v61 = vmul.f32 %v2066_v31, %v6698_v43  ;;  %v2068_v8 = vmul.f32 %v2066_v31, %v6708_v32 }
 0x2d3   :  { %1897 = vrot.lane.b32.xlu0 %v1892_v46, %s5731_s16  ;;  %v1610_v51 = vadd.f32 %v1608_v57, %v1604_v48  ;;  %v2081_v46 = vmul.f32 %v2080_v38, %v6698_v43  ;;  %v2100_v48 = vstv %s5195_s25  ;;  %s7132_s25 = sld [smem:[#allocation12 + $0x2a]] }
 0x2d4   :  { %1909 = vrot.lane.b32.xlu1 %v1905_v4, %s5732_s7  ;;  %v2101_v57 = vmul.f32 %v2100_v48, %v6722_v62  ;;  %v2114_v4 = vstv %s5196_s1  ;;  %v2102_v2 = vmul.f32 %v2100_v48, %v6730_v29  ;;  %s7138_s1 = sld [smem:[#allocation12 + $0x56]] }
 0x2d7   :  { %1911 = vrot.lane.b32.xlu0 %v1906_v45, %s5732_s7  ;;  %v2134_v45 = vstv %s5198_s26  ;;  %s7146_s26 = sld [smem:[#allocation12 + $0x58]] }
 0x2d8   :  { %1929 = vrot.lane.b32.xlu1 %v1925_v14, %s5731_s16  ;;  %v2116_v14 = vmul.f32 %v2114_v4, %v6730_v29  ;;  %v2135_v6 = vmul.f32 %v2134_v45, %v6759_v56 }
 0x2db   :  { %1931 = vrot.lane.b32.xlu0 %v1926_v36, %s5731_s16  ;;  %v2148_v36 = vstv %s5199_s13  ;;  %s7151_s13 = sld [smem:[#allocation12 + $0x2d]] }
 0x2dc   :  { %1943 = vrot.lane.b32.xlu1 %v1939_v27, %s5732_s7  ;;  %v2136_v27 = vmul.f32 %v2134_v45, %v6763_v3 }
 0x2df   :  { %1945 = vrot.lane.b32.xlu0 %v1940_v13, %s5732_s7  ;;  %v2149_v13 = vmul.f32 %v2148_v36, %v6759_v56 }
 0x2e0   :  { %1969 = vrot.lane.b32.xlu1 %v1965_v54, %s5731_s16  ;;  %v2168_v54 = vstv %s7000_s22  ;;  %s7157_s22 = sld [smem:[#allocation12 + $0x59]] }
 0x2e3   :  { %1971 = vrot.lane.b32.xlu0 %v1966_v39, %s5731_s16  ;;  %v2150_v39 = vmul.f32 %v2148_v36, %v6763_v3 }
 0x2e4   :  { %1983 = vrot.lane.b32.xlu1 %v1979_v24, %s5732_s7 }
 0x2e7   :  { %1985 = vrot.lane.b32.xlu0 %v1980_v25, %s5732_s7 }
 0x2e8   :  { %2003 = vrot.lane.b32.xlu1 %v1999_v41, %s5731_s16  ;;  %v2169_v41 = vmul.f32 %v2168_v54, %v6791_v19 }
 0x2e9   :  { %v1618_v11 = vpop.permute.xlu1 %1617 }
 0x2ea   :  { %v1623_v37 = vadd.f32 %v1618_v11, %v1609_v44  ;;  %v2082_v44 = vmul.f32 %v2080_v38, %v6708_v32  ;;  %v2182_v11 = vstv %s7008_s3  ;;  %s7172_s3 = sld [smem:[#allocation13 + $0x1]] }
 0x2eb   :  { %2005 = vrot.lane.b32.xlu0 %v2000_v52, %s5731_s16 }
 0x2ec   :  { %2017 = vrot.lane.b32.xlu1 %v2013_v15, %s5732_s7  ;;  %v1620_v40 = vpop.permute.xlu0 %1619 }
 0x2ed   :  { %v1632_v58 = vpop.permute.xlu1 %1631  ;;  %v1624_v9 = vadd.f32 %v1620_v40, %v1610_v51  ;;  %v2115_v51 = vmul.f32 %v2114_v4, %v6722_v62  ;;  %v2170_v40 = vmul.f32 %v2168_v54, %v6795_v50 }
 0x2ee   :  { %v1637_v59 = vadd.f32 %v1632_v58, %v1623_v37  ;;  %v2183_v58 = vmul.f32 %v2182_v11, %v6791_v19 }
 0x2ef   :  { %2019 = vrot.lane.b32.xlu0 %v2014_v60, %s5732_s7 }
 0x2f0   :  { %2037 = vrot.lane.b32.xlu1 %v2033_v33, %s5731_s16  ;;  %v1634_v10 = vpop.permute.xlu0 %1633  ;;  %v1643_v55 = vadd.f32 %v1641_v22, %v1637_v59  ;;  %v2202_v59 = vstv %s7017_s6  ;;  %v2184_v22 = vmul.f32 %v2182_v11, %v6795_v50  ;;  %s7180_s6 = sld [smem:[#allocation12 + $0x30]] }
 0x2f1   :  { %v1638_v18 = vadd.f32 %v1634_v10, %v1624_v9  ;;  %v1681_v9 = vmul.f32 %v1680_v26, %v6606_v35  ;;  %v1714_v10 = vstv %s7021_s5  ;;  %v2204_v38 = vmul.f32 %v2202_v59, %v6829_v17  ;;  %s7186_s5 = sld [smem:[#allocation12 + $0x5e]] }
 0x2f2   :  { %v1716_v48 = vmul.f32 %v1714_v10, %v6652_v28 }
 0x2f3   :  { %2039 = vrot.lane.b32.xlu0 %v2034_v30, %s5731_s16  ;;  %v1644_v23 = vadd.f32 %v1642_v1, %v1638_v18  ;;  %v1682_v18 = vmul.f32 %v1680_v26, %v6619_v34  ;;  %v2203_v1 = vmul.f32 %v2202_v59, %v6825_v49  ;;  %v1782_v59 = vstv %s7063_s8  ;;  %s5197_s8 = sld [smem:[#allocation12 + $0x3f]] }
 0x2f4   :  { %2051 = vrot.lane.b32.xlu1 %v2047_v21, %s5732_s7 }
 0x2f7   :  { %2053 = vrot.lane.b32.xlu0 %v2048_v16, %s5732_s7  ;;  %v2216_v16 = vstv %s7027_s27  ;;  %s7190_s27 = sld [smem:[#allocation12 + $0x33]] }
 0x2f8   :  { %2071 = vrot.lane.b32.xlu1 %v2067_v61, %s5731_s16 }
 0x2fb   :  { %2073 = vrot.lane.b32.xlu0 %v2068_v8, %s5731_s16 }
 0x2fc   :  { %2085 = vrot.lane.b32.xlu1 %v2081_v46, %s5732_s7 }
 0x2ff   :  { %2087 = vrot.lane.b32.xlu0 %v2082_v44, %s5732_s7 }
 0x300   :  { %2105 = vrot.lane.b32.xlu1 %v2101_v57, %s5731_s16  ;;  %v2217_v57 = vmul.f32 %v2216_v16, %v6825_v49 }
 0x303   :  { %2107 = vrot.lane.b32.xlu0 %v2102_v2, %s5731_s16  ;;  %v2242_v2 = vstv %s7036_s28  ;;  %s7196_s28 = sld [smem:[#allocation12 + $0x5f]] }
 0x304   :  { %2119 = vrot.lane.b32.xlu1 %v2115_v51, %s5732_s7  ;;  %v7058_v51 = vld [vmem:[#allocation7] sm:$0xf]  ;;  %v2243_v54 = vmul.f32 %v2242_v2, %v6606_v35 }
 0x307   :  { %2121 = vrot.lane.b32.xlu0 %v2116_v14, %s5732_s7  ;;  %v2218_v14 = vmul.f32 %v2216_v16, %v6829_v17 }
 0x308   :  { %2139 = vrot.lane.b32.xlu1 %v2135_v6, %s5731_s16  ;;  %v1748_v6 = vstv %s7041_s29  ;;  %s7208_s29 = sld [smem:[#allocation12 + $0x36]] }
 0x30a   :  { %v1652_v63 = vpop.permute.xlu1 %1651 }
 0x30b   :  { %2141 = vrot.lane.b32.xlu0 %v2136_v27, %s5731_s16  ;;  %v1657_v24 = vadd.f32 %v1652_v63, %v1643_v55  ;;  %v7065_v63 = vld [vmem:[#allocation7 + $0x4] sm:$0xf] }
 0x30c   :  { %2153 = vrot.lane.b32.xlu1 %v2149_v13, %s5732_s7 }
 0x30d   :  { %v1654_v0 = vpop.permute.xlu0 %1653 }
 0x30e   :  { %v1666_v25 = vpop.permute.xlu1 %1665  ;;  %v1658_v47 = vadd.f32 %v1654_v0, %v1644_v23  ;;  %v1715_v23 = vmul.f32 %v1714_v10, %v6644_v20 }
 0x30f   :  { %2155 = vrot.lane.b32.xlu0 %v2150_v39, %s5732_s7  ;;  %v1671_v52 = vadd.f32 %v1666_v25, %v1657_v24  ;;  %v1749_v25 = vmul.f32 %v1748_v6, %v6677_v5 }
 0x310   :  { %2173 = vrot.lane.b32.xlu1 %v2169_v41, %s5731_s16  ;;  %v2256_v41 = vstv %s7048_s30  ;;  %s7223_s30 = sld [smem:[#allocation12 + $0x39]] }
 0x311   :  { %v1668_v15 = vpop.permute.xlu0 %1667  ;;  %v1675_v60 = vadd.f32 %v1674_v7, %v1671_v52  ;;  %v2244_v52 = vmul.f32 %v2242_v2, %v6619_v34 }
 0x312   :  { %v1672_v12 = vadd.f32 %v1668_v15, %v1658_v47  ;;  %v1692_v37 = vpop.permute.xlu1 %1691 }
 0x313   :  { %2175 = vrot.lane.b32.xlu0 %v2170_v40, %s5731_s16  ;;  %5464 = vtanh.f32 %v1675_v60  ;;  %v1697_v30 = vadd.f32 %v1692_v37, %v1681_v9  ;;  %v1750_v40 = vmul.f32 %v1748_v6, %v6684_v53  ;;  %v2258_v9 = vmul.f32 %v2256_v41, %v6619_v34 }
 0x314   :  { %v1676_v33 = vadd.f32 %v1674_v7, %v1672_v12  ;;  %2187 = vrot.lane.b32.xlu1 %v2183_v58, %s5732_s7  ;;  %v2257_v12 = vmul.f32 %v2256_v41, %v6606_v35  ;;  %v2276_v58 = vstv %s7056_s14  ;;  %s7240_s14 = sld [smem:[#allocation12 + $0x3c]] }
 0x315   :  { %v1694_v42 = vpop.permute.xlu0 %1693  ;;  %v2277_v10 = vmul.f32 %v2276_v58, %v6644_v20 }
 0x316   :  { %5466 = vtanh.f32 %v1676_v33  ;;  %v1706_v55 = vpop.permute.xlu1 %1705  ;;  %v1698_v21 = vadd.f32 %v1694_v42, %v1682_v18 }
 0x317   :  { %2189 = vrot.lane.b32.xlu0 %v2184_v22, %s5732_s7  ;;  %v1711_v31 = vadd.f32 %v1706_v55, %v1697_v30  ;;  %v1783_v55 = vmul.f32 %v1782_v59, %v6698_v43 }
 0x318   :  { %2207 = vrot.lane.b32.xlu1 %v2203_v1, %s5731_s16  ;;  %v2290_v1 = vstv %s7074_s15  ;;  %s5200_s15 = sld [smem:[#allocation12 + $0x42]] }
 0x319   :  { %v1708_v61 = vpop.permute.xlu0 %1707  ;;  %v1717_v46 = vadd.f32 %v1715_v23, %v1711_v31  ;;  %v2278_v31 = vmul.f32 %v2276_v58, %v6652_v28 }
 0x31a   :  { %v1712_v8 = vadd.f32 %v1708_v61, %v1698_v21  ;;  %v1726_v44 = vpop.permute.xlu1 %1725  ;;  %v1784_v61 = vmul.f32 %v1782_v59, %v6708_v32 }
 0x31b   :  { %2209 = vrot.lane.b32.xlu0 %v2204_v38, %s5731_s16  ;;  %v1731_v27 = vadd.f32 %v1726_v44, %v1717_v46 }
 0x31c   :  { %v1718_v4 = vadd.f32 %v1716_v48, %v1712_v8  ;;  %2221 = vrot.lane.b32.xlu1 %v2217_v57, %s5732_s7  ;;  %v2291_v8 = vmul.f32 %v2290_v1, %v6644_v20  ;;  %v2310_v48 = vstv %s7089_s0  ;;  %v2292_v57 = vmul.f32 %v2290_v1, %v6652_v28  ;;  %s5203_s0 = sld [smem:[#allocation12 + $0x45]] }
 0x31d   :  { %v1728_v45 = vpop.permute.xlu0 %1727  ;;  %v5465_v36 = vpop.eup %5464 }
 0x31e   :  { %v1740_v13 = vpop.permute.xlu1 %1739  ;;  %v7070_v0 = vsub.f32 %v7058_v51, %v5465_v36  ;;  %v1732_v24 = vadd.f32 %v1728_v45, %v1718_v4  ;;  %v1816_v4 = vstv %s7094_s2  ;;  %s5206_s2 = sld [smem:[#allocation13 + $0x2]] }
 0x31f   :  { %2223 = vrot.lane.b32.xlu0 %v2218_v14, %s5732_s7  ;;  %v1745_v7 = vadd.f32 %v1740_v13, %v1731_v27  ;;  %v2311_v14 = vmul.f32 %v2310_v48, %v6677_v5  ;;  %v1817_v27 = vmul.f32 %v1816_v4, %v6722_v62  ;;  %v2324_v13 = vstv %s7100_s12  ;;  %s5207_s12 = sld [smem:[#allocation12 + $0x48]] }
 0x320   :  { %v5467_v39 = vpop.eup %5466  ;;  %2247 = vrot.lane.b32.xlu1 %v2243_v54, %s5731_s16  ;;  %4974 = vst.msk [vmem:[#allocation22] sm:$0x1] %vm4973_vm12, %v7070_v0 }
 0x321   :  { %v1742_v47 = vpop.permute.xlu0 %1741  ;;  %v7081_v11 = vsub.f32 %v7065_v63, %v5467_v39  ;;  %v1751_v26 = vadd.f32 %v1749_v25, %v1745_v7  ;;  %v2312_v39 = vmul.f32 %v2310_v48, %v6684_v53  ;;  %v1818_v25 = vmul.f32 %v1816_v4, %v6730_v29 }
 0x322   :  { %v1746_v15 = vadd.f32 %v1742_v47, %v1732_v24  ;;  %v1760_v60 = vpop.permute.xlu1 %1759  ;;  %v2325_v47 = vmul.f32 %v2324_v13, %v6677_v5 }
 0x323   :  { %2249 = vrot.lane.b32.xlu0 %v2244_v52, %s5731_s16  ;;  %4975 = vst.msk [vmem:[#allocation22 + $0x4] sm:$0x1] %vm4973_vm12, %v7081_v11  ;;  %v1765_v42 = vadd.f32 %v1760_v60, %v1751_v26  ;;  %v1850_v60 = vstv %s7113_s18  ;;  %s7266_s18 = sld [smem:[#allocation12 + $0x4e]] }
 0x324   :  { %v1752_v37 = vadd.f32 %v1750_v40, %v1746_v15  ;;  %2261 = vrot.lane.b32.xlu1 %v2257_v12, %s5732_s7  ;;  %v2344_v15 = vstv %s7108_s17  ;;  %v2326_v40 = vmul.f32 %v2324_v13, %v6684_v53  ;;  %v1851_v59 = vmul.f32 %v1850_v60, %v6759_v56  ;;  %s5210_s17 = sld [smem:[#allocation12 + $0x4b]] }
 0x325   :  { %v1762_v33 = vpop.permute.xlu0 %1761  ;;  %v2345_v58 = vmul.f32 %v2344_v15, %v6698_v43 }
 0x326   :  { %v1774_v22 = vpop.permute.xlu1 %1773  ;;  %v1766_v30 = vadd.f32 %v1762_v33, %v1752_v37 }
 0x327   :  { %2263 = vrot.lane.b32.xlu0 %v2258_v9, %s5732_s7  ;;  %v1779_v18 = vadd.f32 %v1774_v22, %v1765_v42  ;;  %v2358_v42 = vstv %s7119_s19  ;;  %s7272_s19 = sld [smem:[#allocation12 + $0x51]] }
 0x328   :  { %2281 = vrot.lane.b32.xlu1 %v2277_v10, %s5731_s16  ;;  %v2346_v10 = vmul.f32 %v2344_v15, %v6708_v32 }
 0x329   :  { %v1776_v21 = vpop.permute.xlu0 %1775  ;;  %v1785_v16 = vadd.f32 %v1783_v55, %v1779_v18  ;;  %v1852_v55 = vmul.f32 %v1850_v60, %v6763_v3 }
 0x32a   :  { %v1780_v23 = vadd.f32 %v1776_v21, %v1766_v30  ;;  %v1794_v38 = vpop.permute.xlu1 %1793  ;;  %v2359_v21 = vmul.f32 %v2358_v42, %v6698_v43 }
 0x32b   :  { %2283 = vrot.lane.b32.xlu0 %v2278_v31, %s5731_s16  ;;  %v1799_v2 = vadd.f32 %v1794_v38, %v1785_v16  ;;  %v1884_v38 = vstv %s7132_s25  ;;  %s5222_s25 = sld [smem:[#allocation12 + $0x57]] }
 0x32c   :  { %v1786_v46 = vadd.f32 %v1784_v61, %v1780_v23  ;;  %2295 = vrot.lane.b32.xlu1 %v2291_v8, %s5732_s7  ;;  %v2378_v23 = vstv %s7127_s23  ;;  %v2360_v61 = vmul.f32 %v2358_v42, %v6708_v32  ;;  %v1885_v4 = vmul.f32 %v1884_v38, %v6791_v19  ;;  %s5219_s23 = sld [smem:[#allocation12 + $0x54]] }
 0x32d   :  { %v1796_v44 = vpop.permute.xlu0 %1795  ;;  %v2379_v48 = vmul.f32 %v2378_v23, %v6722_v62 }
 0x32e   :  { %v1808_v45 = vpop.permute.xlu1 %1807  ;;  %v1800_v6 = vadd.f32 %v1796_v44, %v1786_v46 }
 0x32f   :  { %2297 = vrot.lane.b32.xlu0 %v2292_v57, %s5732_s7  ;;  %v1813_v36 = vadd.f32 %v1808_v45, %v1799_v2  ;;  %v2392_v2 = vstv %s7138_s1  ;;  %s5225_s1 = sld [smem:[#allocation12 + $0x5a]] }
 0x330   :  { %2315 = vrot.lane.b32.xlu1 %v2311_v14, %s5731_s16  ;;  %v2380_v14 = vmul.f32 %v2378_v23, %v6730_v29 }
 0x331   :  { %v1810_v54 = vpop.permute.xlu0 %1809  ;;  %v1819_v7 = vadd.f32 %v1817_v27, %v1813_v36  ;;  %v1886_v27 = vmul.f32 %v1884_v38, %v6795_v50  ;;  %v2460_v38 = vstv %s7176_s4  ;;  %s7346_s4 = sld [smem:[#allocation15 + $0x7]] }
 0x332   :  { %v1814_v24 = vadd.f32 %v1810_v54, %v1800_v6  ;;  %v1828_v41 = vpop.permute.xlu1 %1827  ;;  %v2393_v54 = vmul.f32 %v2392_v2, %v6722_v62 }
 0x333   :  { %2317 = vrot.lane.b32.xlu0 %v2312_v39, %s5731_s16  ;;  %v1833_v12 = vadd.f32 %v1828_v41, %v1819_v7  ;;  %v1918_v41 = vstv %s7151_s13  ;;  %s5231_s13 = sld [smem:[#allocation13 + $0x3]] }
 0x334   :  { %v1820_v52 = vadd.f32 %v1818_v25, %v1814_v24  ;;  %2329 = vrot.lane.b32.xlu1 %v2325_v47, %s5732_s7  ;;  %v2412_v24 = vstv %s7146_s26  ;;  %v2394_v25 = vmul.f32 %v2392_v2, %v6730_v29  ;;  %v1919_v60 = vmul.f32 %v1918_v41, %v6825_v49  ;;  %s5228_s26 = sld [smem:[#allocation12 + $0x5d]] }
 0x335   :  { %v1830_v26 = vpop.permute.xlu0 %1829  ;;  %v2413_v15 = vmul.f32 %v2412_v24, %v6759_v56  ;;  %v2461_v2 = vmul.f32 %v2460_v38, %v6791_v19 }
 0x336   :  { %v1842_v37 = vpop.permute.xlu1 %1841  ;;  %v1834_v33 = vadd.f32 %v1830_v26, %v1820_v52 }
 0x337   :  { %2331 = vrot.lane.b32.xlu0 %v2326_v40, %s5732_s7  ;;  %v1847_v9 = vadd.f32 %v1842_v37, %v1833_v12  ;;  %v2426_v12 = vstv %s7157_s22  ;;  %s5232_s22 = sld [smem:[#allocation15 + $0x1]] }
 0x338   :  { %2349 = vrot.lane.b32.xlu1 %v2345_v58, %s5731_s16  ;;  %v2414_v58 = vmul.f32 %v2412_v24, %v6763_v3 }
 0x339   :  { %v1844_v22 = vpop.permute.xlu0 %1843  ;;  %v1853_v18 = vadd.f32 %v1851_v59, %v1847_v9  ;;  %v1920_v59 = vmul.f32 %v1918_v41, %v6829_v17 }
 0x33a   :  { %v1848_v30 = vadd.f32 %v1844_v22, %v1834_v33  ;;  %v1862_v1 = vpop.permute.xlu1 %1861  ;;  %v2427_v22 = vmul.f32 %v2426_v12, %v6759_v56 }
 0x33b   :  { %2351 = vrot.lane.b32.xlu0 %v2346_v10, %s5731_s16  ;;  %v1867_v8 = vadd.f32 %v1862_v1, %v1853_v18 }
 0x33c   :  { %v1854_v31 = vadd.f32 %v1852_v55, %v1848_v30  ;;  %2363 = vrot.lane.b32.xlu1 %v2359_v21, %s5732_s7  ;;  %v2446_v30 = vstv %s7165_s24  ;;  %v2428_v55 = vmul.f32 %v2426_v12, %v6763_v3  ;;  %v1952_v21 = vstv %s7172_s3  ;;  %s5233_s24 = sld [smem:[#allocation15 + $0x2]]  ;;  %s7329_s3 = sld [smem:[#allocation15 + $0x5]] }
 0x33d   :  { %v1864_v16 = vpop.permute.xlu0 %1863  ;;  %v2447_v23 = vmul.f32 %v2446_v30, %v6791_v19 }
 0x33e   :  { %v1876_v46 = vpop.permute.xlu1 %1875  ;;  %v1868_v44 = vadd.f32 %v1864_v16, %v1854_v31 }
 0x33f   :  { %2365 = vrot.lane.b32.xlu0 %v2360_v61, %s5732_s7  ;;  %v1881_v57 = vadd.f32 %v1876_v46, %v1867_v8  ;;  %v1958_v46 = vstv %s7180_s6  ;;  %s7349_s6 = sld [smem:[#allocation15 + $0x8]] }
 0x340   :  { %2383 = vrot.lane.b32.xlu1 %v2379_v48, %s5731_s16  ;;  %v2448_v48 = vmul.f32 %v2446_v30, %v6795_v50 }
 0x341   :  { %v1878_v45 = vpop.permute.xlu0 %1877  ;;  %v1887_v36 = vadd.f32 %v1885_v4, %v1881_v57 }
 0x342   :  { %v1882_v6 = vadd.f32 %v1878_v45, %v1868_v44  ;;  %v1896_v13 = vpop.permute.xlu1 %1895 }
 0x343   :  { %2385 = vrot.lane.b32.xlu0 %v2380_v14, %s5731_s16  ;;  %v1901_v47 = vadd.f32 %v1896_v13, %v1887_v36  ;;  %v1959_v14 = vmul.f32 %v1958_v46, %v6606_v35  ;;  %v1992_v13 = vstv %s7190_s27  ;;  %s7365_s27 = sld [smem:[#allocation15 + $0xa]] }
 0x344   :  { %v1888_v39 = vadd.f32 %v1886_v27, %v1882_v6  ;;  %2397 = vrot.lane.b32.xlu1 %v2393_v54, %s5732_s7  ;;  %v2480_v6 = vstv %s7186_s5  ;;  %v2462_v27 = vmul.f32 %v2460_v38, %v6795_v50  ;;  %v1994_v12 = vmul.f32 %v1992_v13, %v6652_v28  ;;  %s2667_s5 = sld [smem:[#allocation15]] }
 0x345   :  { %v1898_v7 = vpop.permute.xlu0 %1897 }
 0x346   :  { %v1910_v52 = vpop.permute.xlu1 %1909  ;;  %v1902_v26 = vadd.f32 %v1898_v7, %v1888_v39  ;;  %v1960_v39 = vmul.f32 %v1958_v46, %v6619_v34  ;;  %v2481_v7 = vmul.f32 %v2480_v6, %v6825_v49 }
 0x347   :  { %2399 = vrot.lane.b32.xlu0 %v2394_v25, %s5732_s7  ;;  %v1915_v40 = vadd.f32 %v1910_v52, %v1901_v47  ;;  %v1993_v47 = vmul.f32 %v1992_v13, %v6644_v20  ;;  %v2494_v52 = vstv %s7196_s28  ;;  %v8968_v13 = vmov 7   ;;  %s7368_s28 = sld [smem:[#allocation15 + $0x3]] }
 0x348   :  { %2417 = vrot.lane.b32.xlu1 %v2413_v15, %s5731_s16 }
 0x349   :  { %v1912_v37 = vpop.permute.xlu0 %1911  ;;  %v1921_v9 = vadd.f32 %v1919_v60, %v1915_v40 }
 0x34a   :  { %v1916_v33 = vadd.f32 %v1912_v37, %v1902_v26  ;;  %v1930_v42 = vpop.permute.xlu1 %1929  ;;  %v2482_v26 = vmul.f32 %v2480_v6, %v6829_v17 }
 0x34b   :  { %2419 = vrot.lane.b32.xlu0 %v2414_v58, %s5731_s16  ;;  %v1935_v1 = vadd.f32 %v1930_v42, %v1921_v9  ;;  %v2495_v58 = vmul.f32 %v2494_v52, %v6825_v49  ;;  %v2026_v42 = vstv %s7208_s29  ;;  %s7371_s29 = sld [smem:[#allocation15 + $0xb]] }
 0x34c   :  { %v1922_v10 = vadd.f32 %v1920_v59, %v1916_v33  ;;  %2431 = vrot.lane.b32.xlu1 %v2427_v22, %s5732_s7  ;;  %v2496_v59 = vmul.f32 %v2494_v52, %v6829_v17  ;;  %v2028_v46 = vmul.f32 %v2026_v42, %v6684_v53  ;;  %v2094_v52 = vstv %s7240_s14  ;;  %s7388_s14 = sld [smem:[#allocation15 + $0x6]] }
 0x34d   :  { %v1932_v18 = vpop.permute.xlu0 %1931 }
 0x34e   :  { %v1944_v31 = vpop.permute.xlu1 %1943  ;;  %v1936_v16 = vadd.f32 %v1932_v18, %v1922_v10 }
 0x34f   :  { %2433 = vrot.lane.b32.xlu0 %v2428_v55, %s5732_s7  ;;  %v1949_v61 = vadd.f32 %v1944_v31, %v1935_v1  ;;  %v2027_v31 = vmul.f32 %v2026_v42, %v6677_v5 }
 0x350   :  { %2451 = vrot.lane.b32.xlu1 %v2447_v23, %s5731_s16 }
 0x351   :  { %v1946_v8 = vpop.permute.xlu0 %1945  ;;  %v1953_v44 = vadd.f32 %v1952_v21, %v1949_v61 }
 0x352   :  { %v1950_v57 = vadd.f32 %v1946_v8, %v1936_v16  ;;  %v1970_v4 = vpop.permute.xlu1 %1969 }
 0x353   :  { %2453 = vrot.lane.b32.xlu0 %v2448_v48, %s5731_s16  ;;  %5468 = vtanh.f32 %v1953_v44  ;;  %v1975_v54 = vadd.f32 %v1970_v4, %v1959_v14 }
 0x354   :  { %v1954_v45 = vadd.f32 %v1952_v21, %v1950_v57  ;;  %2465 = vrot.lane.b32.xlu1 %v2461_v2, %s5732_s7  ;;  %v2060_v2 = vstv %s7223_s30  ;;  %s7383_s30 = sld [smem:[#allocation15 + $0xd]] }
 0x355   :  { %v1972_v36 = vpop.permute.xlu0 %1971 }
 0x356   :  { %5470 = vtanh.f32 %v1954_v45  ;;  %v1984_v24 = vpop.permute.xlu1 %1983  ;;  %v1976_v25 = vadd.f32 %v1972_v36, %v1960_v39 }
 0x357   :  { %2467 = vrot.lane.b32.xlu0 %v2462_v27, %s5732_s7  ;;  %v1989_v41 = vadd.f32 %v1984_v24, %v1975_v54  ;;  %v2061_v27 = vmul.f32 %v2060_v2, %v6698_v43 }
 0x358   :  { %2485 = vrot.lane.b32.xlu1 %v2481_v7, %s5731_s16  ;;  %v2062_v7 = vmul.f32 %v2060_v2, %v6708_v32 }
 0x359   :  { %v1986_v15 = vpop.permute.xlu0 %1985  ;;  %v1995_v60 = vadd.f32 %v1993_v47, %v1989_v41 }
 0x35a   :  { %v1990_v40 = vadd.f32 %v1986_v15, %v1976_v25  ;;  %v2004_v37 = vpop.permute.xlu1 %2003 }
 0x35b   :  { %2487 = vrot.lane.b32.xlu0 %v2482_v26, %s5731_s16  ;;  %v2009_v10 = vadd.f32 %v2004_v37, %v1995_v60 }
 0x35c   :  { %v1996_v33 = vadd.f32 %v1994_v12, %v1990_v40  ;;  %2499 = vrot.lane.b32.xlu1 %v2495_v58, %s5732_s7 }
 0x35d   :  { %v2006_v9 = vpop.permute.xlu0 %2005  ;;  %v5469_v22 = vpop.eup %5468 }
 0x35e   :  { %v2517_v30 = vrot.slane %v5469_v22, 7  ;;  %v2018_v18 = vpop.permute.xlu1 %2017  ;;  %v2010_v1 = vadd.f32 %v2006_v9, %v1996_v33  ;;  %v2096_v33 = vmul.f32 %v2094_v52, %v6730_v29 }
 0x35f   :  { %2501 = vrot.lane.b32.xlu0 %v2496_v59, %s5732_s7  ;;  %v2023_v21 = vadd.f32 %v2018_v18, %v2009_v10  ;;  %v8969_v59 = vmov 0  }
 0x360   :  { %v5471_v55 = vpop.eup %5470  ;;  %2541 = vrot.lane.b32.xlu1 %v7070_v0, %s5729_s9  ;;  %v7230_v61 = vsub.f32 %v7058_v51, %v2517_v30 }
 0x361   :  { %v2518_v23 = vrot.slane %v5471_v55, 7  ;;  %v2020_v16 = vpop.permute.xlu0 %2019  ;;  %v2029_v8 = vadd.f32 %v2027_v31, %v2023_v21 }
 0x362   :  { %v2024_v38 = vadd.f32 %v2020_v16, %v2010_v1  ;;  %v2038_v48 = vpop.permute.xlu1 %2037  ;;  %4979 = vst.msk [vmem:[#allocation22] sm:$0x2] %vm4978_vm13, %v7230_v61 }
 0x363   :  { %2543 = vrot.lane.b32.xlu0 %v7081_v11, %s5729_s9  ;;  %v2522_v44 = vsub.f32 %v7065_v63, %v2518_v23  ;;  %v2043_v45 = vadd.f32 %v2038_v48, %v2029_v8  ;;  %v2162_v48 = vstv %s5200_s15  ;;  %s7402_s15 = sld [smem:[#allocation15 + $0x10]] }
 0x364   :  { %v2030_v57 = vadd.f32 %v2028_v46, %v2024_v38  ;;  %2550 = vperm.xlu1 %5454, %v7070_v0  }
 0x365   :  { %v2040_v4 = vpop.permute.xlu0 %2039  ;;  %4980 = vst.msk [vmem:[#allocation22 + $0x4] sm:$0x2] %vm4978_vm13, %v2522_v44 }
 0x366   :  { %v2052_v14 = vpop.permute.xlu1 %2051  ;;  %v2044_v6 = vadd.f32 %v2040_v4, %v2030_v57 }
 0x367   :  { %2554 = vperm.xlu0 %5455, %v7081_v11   ;;  %v2057_v36 = vadd.f32 %v2052_v14, %v2043_v45  ;;  %v2163_v14 = vmul.f32 %v2162_v48, %v6791_v19 }
 0x368   :  { %5456 = vset.pattern.permute.xlu1 %v8968_v13 }
 0x369   :  { %v2054_v54 = vpop.permute.xlu0 %2053  ;;  %2560 = vperm.xlu1 %5456, %v7070_v0   ;;  %v2063_v24 = vadd.f32 %v2061_v27, %v2057_v36  ;;  %v2095_v0 = vmul.f32 %v2094_v52, %v6722_v62 }
 0x36a   :  { %v2058_v39 = vadd.f32 %v2054_v54, %v2044_v6  ;;  %v2072_v25 = vpop.permute.xlu1 %2071  ;;  %v2164_v54 = vmul.f32 %v2162_v48, %v6795_v50 }
 0x36b   :  { %2571 = vrot.lane.b32.xlu0 %v7230_v61, %s5729_s9  ;;  %v2077_v15 = vadd.f32 %v2072_v25, %v2063_v24 }
 0x36c   :  { %v2064_v41 = vadd.f32 %v2062_v7, %v2058_v39  ;;  %v2196_v7 = vstv %s5203_s0  ;;  %s7411_s0 = sld [smem:[#allocation15 + $0x11]] }
 0x36d   :  { %v2074_v47 = vpop.permute.xlu0 %2073  ;;  %2564 = vperm.xlu1 %5456, %v7081_v11   ;;  %v2128_v11 = vstv %s5197_s8  ;;  %s7397_s8 = sld [smem:[#allocation15 + $0xe]] }
 0x36e   :  { %v2086_v26 = vpop.permute.xlu1 %2085  ;;  %v2078_v40 = vadd.f32 %v2074_v47, %v2064_v41  ;;  %v2129_v1 = vmul.f32 %v2128_v11, %v6759_v56  ;;  %v2130_v16 = vmul.f32 %v2128_v11, %v6763_v3 }
 0x36f   :  { %2580 = vperm.xlu0 %5455, %v7230_v61   ;;  %v2091_v60 = vadd.f32 %v2086_v26, %v2077_v15  ;;  %v2197_v15 = vmul.f32 %v2196_v7, %v6825_v49 }
 0x371   :  { %v2088_v12 = vpop.permute.xlu0 %2087  ;;  %2573 = vrot.lane.b32.xlu1 %v2522_v44, %s5729_s9  ;;  %v2097_v58 = vadd.f32 %v2095_v0, %v2091_v60  ;;  %v2198_v0 = vmul.f32 %v2196_v7, %v6829_v17 }
 0x372   :  { %v2092_v37 = vadd.f32 %v2088_v12, %v2078_v40  ;;  %v2106_v9 = vpop.permute.xlu1 %2105  ;;  %5457 = vset.pattern.permute.xlu1 %v8969_v59 }
 0x373   :  { %v2111_v10 = vadd.f32 %v2106_v9, %v2097_v58  ;;  %v2230_v9 = vstv %s5206_s2  ;;  %s7431_s2 = sld [smem:[#allocation15 + $0x13]] }
 0x374   :  { %v2098_v42 = vadd.f32 %v2096_v33, %v2092_v37 }
 0x375   :  { %v2108_v22 = vpop.permute.xlu0 %2107  ;;  %2584 = vperm.xlu1 %5457, %v2522_v44  }
 0x376   :  { %v2120_v30 = vpop.permute.xlu1 %2119  ;;  %v2112_v18 = vadd.f32 %v2108_v22, %v2098_v42 }
 0x377   :  { %v2125_v55 = vadd.f32 %v2120_v30, %v2111_v10  ;;  %v2236_v30 = vstv %s5207_s12  ;;  %s7438_s12 = sld [smem:[#allocation15 + $0x14]] }
 0x379   :  { %v2122_v21 = vpop.permute.xlu0 %2121  ;;  %5458 = vset.pattern.permute.xlu1 %v8968_v13  ;;  %v2131_v23 = vadd.f32 %v2129_v1, %v2125_v55 }
 0x37a   :  { %v2126_v31 = vadd.f32 %v2122_v21, %v2112_v18  ;;  %v2140_v38 = vpop.permute.xlu1 %2139  ;;  %2594 = vperm.xlu1 %5458, %v2522_v44  }
 0x37b   :  { %v2145_v57 = vadd.f32 %v2140_v38, %v2131_v23 }
 0x37c   :  { %v2132_v8 = vadd.f32 %v2130_v16, %v2126_v31  ;;  %v2237_v31 = vmul.f32 %v2236_v30, %v6606_v35  ;;  %v2270_v16 = vstv %s5210_s17  ;;  %s7442_s17 = sld [smem:[#allocation15 + $0x16]] }
 0x37d   :  { %v2142_v46 = vpop.permute.xlu0 %2141 }
 0x37e   :  { %v2154_v4 = vpop.permute.xlu1 %2153  ;;  %5459 = vset.pattern.permute.xlu1 %v8969_v59  ;;  %v2146_v2 = vadd.f32 %v2142_v46, %v2132_v8  ;;  %v2238_v8 = vmul.f32 %v2236_v30, %v6619_v34 }
 0x37f   :  { %v2159_v45 = vadd.f32 %v2154_v4, %v2145_v57  ;;  %v2271_v4 = vmul.f32 %v2270_v16, %v6644_v20 }
 0x381   :  { %v2156_v6 = vpop.permute.xlu0 %2155  ;;  %v2165_v27 = vadd.f32 %v2163_v14, %v2159_v45 }
 0x382   :  { %v2160_v36 = vadd.f32 %v2156_v6, %v2146_v2  ;;  %v2174_v39 = vpop.permute.xlu1 %2173  ;;  %v2272_v6 = vmul.f32 %v2270_v16, %v6652_v28 }
 0x383   :  { %v2179_v25 = vadd.f32 %v2174_v39, %v2165_v27 }
 0x384   :  { %v2166_v24 = vadd.f32 %v2164_v54, %v2160_v36  ;;  %v2304_v54 = vstv %s7266_s18  ;;  %s7449_s18 = sld [smem:[#allocation15 + $0x17]] }
 0x385   :  { %v2176_v44 = vpop.permute.xlu0 %2175  ;;  %v2305_v20 = vmul.f32 %v2304_v54, %v6677_v5 }
 0x386   :  { %v2188_v41 = vpop.permute.xlu1 %2187  ;;  %v2180_v47 = vadd.f32 %v2176_v44, %v2166_v24 }
 0x387   :  { %v2193_v52 = vadd.f32 %v2188_v41, %v2179_v25 }
 0x389   :  { %v2190_v26 = vpop.permute.xlu0 %2189  ;;  %v2199_v60 = vadd.f32 %v2197_v15, %v2193_v52 }
 0x38a   :  { %v2194_v40 = vadd.f32 %v2190_v26, %v2180_v47  ;;  %v2208_v12 = vpop.permute.xlu1 %2207 }
 0x38b   :  { %v2213_v33 = vadd.f32 %v2208_v12, %v2199_v60 }
 0x38c   :  { %v2200_v37 = vadd.f32 %v2198_v0, %v2194_v40  ;;  %v2306_v40 = vmul.f32 %v2304_v54, %v6684_v53 }
 0x38d   :  { %v2210_v58 = vpop.permute.xlu0 %2209 }
 0x38e   :  { %v2222_v42 = vpop.permute.xlu1 %2221  ;;  %v2214_v22 = vadd.f32 %v2210_v58, %v2200_v37  ;;  %v2338_v37 = vstv %s7272_s19  ;;  %s7459_s19 = sld [smem:[#allocation15 + $0x19]] }
 0x38f   :  { %v2227_v11 = vadd.f32 %v2222_v42, %v2213_v33  ;;  %v2339_v42 = vmul.f32 %v2338_v37, %v6698_v43  ;;  %v2340_v30 = vmul.f32 %v2338_v37, %v6708_v32 }
 0x391   :  { %v2224_v10 = vpop.permute.xlu0 %2223  ;;  %v2231_v18 = vadd.f32 %v2230_v9, %v2227_v11 }
 0x392   :  { %v2228_v55 = vadd.f32 %v2224_v10, %v2214_v22  ;;  %v2248_v1 = vpop.permute.xlu1 %2247 }
 0x393   :  { %5472 = vtanh.f32 %v2231_v18  ;;  %v2253_v38 = vadd.f32 %v2248_v1, %v2237_v31 }
 0x394   :  { %v2232_v21 = vadd.f32 %v2230_v9, %v2228_v55 }
 0x395   :  { %v2250_v23 = vpop.permute.xlu0 %2249 }
 0x396   :  { %5474 = vtanh.f32 %v2232_v21  ;;  %v2262_v46 = vpop.permute.xlu1 %2261  ;;  %v2254_v48 = vadd.f32 %v2250_v23, %v2238_v8  ;;  %v2372_v21 = vstv %s5219_s23  ;;  %s7466_s23 = sld [smem:[#allocation15 + $0x1a]] }
 0x397   :  { %v2267_v57 = vadd.f32 %v2262_v46, %v2253_v38  ;;  %v2373_v43 = vmul.f32 %v2372_v21, %v6722_v62  ;;  %v2374_v32 = vmul.f32 %v2372_v21, %v6730_v29 }
 0x399   :  { %v2264_v2 = vpop.permute.xlu0 %2263  ;;  %v2273_v14 = vadd.f32 %v2271_v4, %v2267_v57 }
 0x39a   :  { %v2268_v45 = vadd.f32 %v2264_v2, %v2254_v48  ;;  %v2282_v35 = vpop.permute.xlu1 %2281 }
 0x39b   :  { %v2287_v24 = vadd.f32 %v2282_v35, %v2273_v14 }
 0x39c   :  { %v2274_v36 = vadd.f32 %v2272_v6, %v2268_v45  ;;  %v2406_v45 = vstv %s5222_s25  ;;  %s7470_s25 = sld [smem:[#allocation15 + $0x1c]] }
 0x39d   :  { %v2284_v27 = vpop.permute.xlu0 %2283  ;;  %v5473_v39 = vpop.eup %5472 }
 0x39e   :  { %v2525_v44 = vrot.slane %v5473_v39, 6  ;;  %v2296_v34 = vpop.permute.xlu1 %2295  ;;  %v2288_v25 = vadd.f32 %v2284_v27, %v2274_v36  ;;  %v2407_v27 = vmul.f32 %v2406_v45, %v6759_v56 }
 0x39f   :  { %v2301_v41 = vadd.f32 %v2296_v34, %v2287_v24  ;;  %v2408_v24 = vmul.f32 %v2406_v45, %v6763_v3  ;;  %v2474_v3 = vstv %s5228_s26  ;;  %v2674_v45 = vstv %s5232_s22  ;;  %s7487_s26 = sld [smem:[#allocation15 + $0x1f]]  ;;  %s7496_s22 = sld [smem:[#allocation15 + $0x20]] }
 0x3a0   :  { %v5475_v7 = vpop.eup %5474  ;;  %v2529_v28 = vsub.f32 %v7058_v51, %v2525_v44 }
 0x3a1   :  { %v2526_v47 = vrot.slane %v5475_v7, 6  ;;  %v2298_v52 = vpop.permute.xlu0 %2297  ;;  %v2307_v26 = vadd.f32 %v2305_v20, %v2301_v41  ;;  %v2440_v7 = vstv %s5225_s1  ;;  %s7477_s1 = sld [smem:[#allocation15 + $0x1d]] }
 0x3a2   :  { %v2302_v15 = vadd.f32 %v2298_v52, %v2288_v25  ;;  %v2316_v60 = vpop.permute.xlu1 %2315  ;;  %2601 = vrot.lane.b32.xlu1 %v2529_v28, %s5729_s9  ;;  %4984 = vst.msk [vmem:[#allocation22] sm:$0x4] %vm4983_vm14, %v2529_v28  ;;  %v2442_v56 = vmul.f32 %v2440_v7, %v6795_v50 }
 0x3a3   :  { %v2530_v0 = vsub.f32 %v7065_v63, %v2526_v47  ;;  %v2321_v58 = vadd.f32 %v2316_v60, %v2307_v26  ;;  %v2441_v47 = vmul.f32 %v2440_v7, %v6791_v19  ;;  %v2476_v19 = vmul.f32 %v2474_v3, %v6829_v17 }
 0x3a4   :  { %v2308_v12 = vadd.f32 %v2306_v40, %v2302_v15 }
 0x3a5   :  { %2603 = vrot.lane.b32.xlu0 %v2530_v0, %s5729_s9  ;;  %v2318_v5 = vpop.permute.xlu0 %2317  ;;  %4985 = vst.msk [vmem:[#allocation22 + $0x4] sm:$0x4] %vm4983_vm14, %v2530_v0 }
 0x3a6   :  { %v2330_v33 = vpop.permute.xlu1 %2329  ;;  %2610 = vperm.xlu1 %5459, %v2529_v28   ;;  %v2322_v9 = vadd.f32 %v2318_v5, %v2308_v12 }
 0x3a7   :  { %v2335_v53 = vadd.f32 %v2330_v33, %v2321_v58  ;;  %v2475_v58 = vmul.f32 %v2474_v3, %v6825_v49 }
 0x3a9   :  { %2614 = vperm.xlu0 %5455, %v2530_v0   ;;  %v2332_v22 = vpop.permute.xlu0 %2331  ;;  %v2341_v10 = vadd.f32 %v2339_v42, %v2335_v53 }
 0x3aa   :  { %v2336_v11 = vadd.f32 %v2332_v22, %v2322_v9  ;;  %v2350_v18 = vpop.permute.xlu1 %2349  ;;  %5460 = vset.pattern.permute.xlu1 %v8968_v13 }
 0x3ab   :  { %2620 = vperm.xlu1 %5460, %v2529_v28   ;;  %v2355_v31 = vadd.f32 %v2350_v18, %v2341_v10  ;;  %v2508_v10 = vstv %s5231_s13  ;;  %s7491_s13 = sld [smem:[#allocation15 + $0x9]] }
 0x3ac   :  { %v2342_v55 = vadd.f32 %v2340_v30, %v2336_v11 }
 0x3ad   :  { %v2352_v1 = vpop.permute.xlu0 %2351 }
 0x3ae   :  { %v2364_v23 = vpop.permute.xlu1 %2363  ;;  %v2356_v16 = vadd.f32 %v2352_v1, %v2342_v55 }
 0x3af   :  { %v2369_v38 = vadd.f32 %v2364_v23, %v2355_v31  ;;  %2624 = vperm.xlu1 %5460, %v2530_v0  }
 0x3b1   :  { %v2366_v8 = vpop.permute.xlu0 %2365  ;;  %v2375_v48 = vadd.f32 %v2373_v43, %v2369_v38 }
 0x3b2   :  { %v2370_v46 = vadd.f32 %v2366_v8, %v2356_v16  ;;  %v2384_v57 = vpop.permute.xlu1 %2383 }
 0x3b3   :  { %5462 = vset.pattern.permute.xlu1 %v8969_v59  ;;  %v2389_v14 = vadd.f32 %v2384_v57, %v2375_v48 }
 0x3b4   :  { %v2376_v4 = vadd.f32 %v2374_v32, %v2370_v46 }
 0x3b5   :  { %v2386_v2 = vpop.permute.xlu0 %2385 }
 0x3b6   :  { %v2398_v6 = vpop.permute.xlu1 %2397  ;;  %v2390_v35 = vadd.f32 %v2386_v2, %v2376_v4 }
 0x3b7   :  { %v2403_v36 = vadd.f32 %v2398_v6, %v2389_v14 }
 0x3b9   :  { %v2400_v54 = vpop.permute.xlu0 %2399  ;;  %v2409_v39 = vadd.f32 %v2407_v27, %v2403_v36  ;;  %v2688_v36 = vstv %s5233_s24  ;;  %s7500_s24 = sld [smem:[#allocation15 + $0x22]] }
 0x3ba   :  { %v2404_v62 = vadd.f32 %v2400_v54, %v2390_v35  ;;  %v2418_v44 = vpop.permute.xlu1 %2417 }
 0x3bb   :  { %v2423_v59 = vadd.f32 %v2418_v44, %v2409_v39 }
 0x3bc   :  { %v2410_v29 = vadd.f32 %v2408_v24, %v2404_v62 }
 0x3bd   :  { %v2420_v34 = vpop.permute.xlu0 %2419 }
 0x3be   :  { %v2432_v25 = vpop.permute.xlu1 %2431  ;;  %v2424_v41 = vadd.f32 %v2420_v34, %v2410_v29  ;;  %v2722_v34 = vstv %s7329_s3  ;;  %s7524_s3 = sld [smem:[#allocation15 + $0x25]] }
 0x3bf   :  { %v2437_v20 = vadd.f32 %v2432_v25, %v2423_v59 }
 0x3c1   :  { %v2434_v52 = vpop.permute.xlu0 %2433  ;;  %v2443_v15 = vadd.f32 %v2441_v47, %v2437_v20 }
 0x3c2   :  { %v2438_v28 = vadd.f32 %v2434_v52, %v2424_v41  ;;  %v2452_v26 = vpop.permute.xlu1 %2451 }
 0x3c3   :  { %v2457_v0 = vadd.f32 %v2452_v26, %v2443_v15  ;;  %v2742_v15 = vstv %s7346_s4  ;;  %v2756_v26 = vstv %s7349_s6  ;;  %s7531_s4 = sld [smem:[#allocation15 + $0x26]]  ;;  %s7535_s6 = sld [smem:[#allocation15 + $0x28]] }
 0x3c4   :  { %v2444_v40 = vadd.f32 %v2442_v56, %v2438_v28 }
 0x3c5   :  { %v2454_v60 = vpop.permute.xlu0 %2453 }
 0x3c6   :  { %v2466_v12 = vpop.permute.xlu1 %2465  ;;  %v2458_v5 = vadd.f32 %v2454_v60, %v2444_v40 }
 0x3c7   :  { %v2471_v37 = vadd.f32 %v2466_v12, %v2457_v0 }
 0x3c9   :  { %v2468_v33 = vpop.permute.xlu0 %2467  ;;  %v2477_v53 = vadd.f32 %v2475_v58, %v2471_v37 }
 0x3ca   :  { %v2472_v9 = vadd.f32 %v2468_v33, %v2458_v5  ;;  %v2486_v42 = vpop.permute.xlu1 %2485  ;;  %v2668_v33 = vstv %s2667_s5  ;;  %s7542_s5 = sld [smem:[#allocation15 + $0x29]] }
 0x3cb   :  { %v2491_v50 = vadd.f32 %v2486_v42, %v2477_v53  ;;  %v2776_v42 = vstv %s7365_s27  ;;  %s7552_s27 = sld [smem:[#allocation15 + $0x2b]] }
 0x3cc   :  { %v2478_v22 = vadd.f32 %v2476_v19, %v2472_v9 }
 0x3cd   :  { %v2488_v11 = vpop.permute.xlu0 %2487 }
 0x3ce   :  { %v2500_v30 = vpop.permute.xlu1 %2499  ;;  %v2492_v18 = vadd.f32 %v2488_v11, %v2478_v22 }
 0x3cf   :  { %v2505_v55 = vadd.f32 %v2500_v30, %v2491_v50 }
 0x3d1   :  { %v2502_v1 = vpop.permute.xlu0 %2501  ;;  %v2509_v21 = vadd.f32 %v2508_v10, %v2505_v55 }
 0x3d2   :  { %v2506_v31 = vadd.f32 %v2502_v1, %v2492_v18  ;;  %v2542_v23 = vpop.permute.xlu1 %2541  ;;  %v2702_v18 = vstv %s7368_s28  ;;  %s7559_s28 = sld [smem:[#allocation15 + $0x2c]] }
 0x3d3   :  { %5476 = vtanh.f32 %v2509_v21  ;;  %2547 = vst.msk [vmem:[#allocation2] sm:$0x1] %vm173_vm0, %v2542_v23  ;;  %v2790_v23 = vstv %s7371_s29  ;;  %s7563_s29 = sld [smem:[#allocation15 + $0x2e]] }
 0x3d4   :  { %v2510_v16 = vadd.f32 %v2508_v10, %v2506_v31 }
 0x3d5   :  { %v2544_v49 = vpop.permute.xlu0 %2543 }
 0x3d6   :  { %5478 = vtanh.f32 %v2510_v16  ;;  %2548 = vst.msk [vmem:[#allocation2 + $0x4] sm:$0x1] %vm173_vm0, %v2544_v49 }
 0x3dd   :  { %v5477_v17 = vpop.eup %5476 }
 0x3de   :  { %v2533_v38 = vrot.slane %v5477_v17, 5 }
 0x3e0   :  { %v5479_v43 = vpop.eup %5478  ;;  %v2537_v46 = vsub.f32 %v7058_v51, %v2533_v38 }
 0x3e1   :  { %v2534_v8 = vrot.slane %v5479_v43, 5 }
 0x3e2   :  { %2631 = vrot.lane.b32.xlu0 %v2537_v46, %s5729_s9  ;;  %4989 = vst.msk [vmem:[#allocation22] sm:$0x8] %vm4988_vm15, %v2537_v46 }
 0x3e3   :  { %v2538_v48 = vsub.f32 %v7065_v63, %v2534_v8  ;;  %v2551_v32 = vpop.permute.xlu1 %2550 }
 0x3e4   :  { %2557 = vst.msk [vmem:[#allocation2] sm:$0x1] %vm184_vm4, %v2551_v32 }
 0x3e5   :  { %2633 = vrot.lane.b32.xlu1 %v2538_v48, %s5729_s9  ;;  %4990 = vst.msk [vmem:[#allocation22 + $0x4] sm:$0x8] %vm4988_vm15, %v2538_v48  ;;  %s7324_s9 = sld [smem:[#allocation15 + $0x4]] }
 0x3e6   :  { %v2555_v57 = vpop.permute.xlu0 %2554  ;;  %2640 = vperm.xlu0 %5455, %v2537_v46  }
 0x3e7   :  { %2558 = vst.msk [vmem:[#allocation2 + $0x4] sm:$0x1] %vm184_vm4, %v2555_v57 }
 0x3e8   :  { %v2561_v4 = vpop.permute.xlu1 %2560 }
 0x3e9   :  { %2644 = vperm.xlu1 %5462, %v2538_v48   ;;  %2567 = vst.msk [vmem:[#allocation2] sm:$0x1] %vm195_vm8, %v2561_v4 }
 0x3ea   :  { %v2572_v51 = vpop.permute.xlu0 %2571  ;;  %5461 = vset.pattern.permute.xlu0 %v8968_v13 }
 0x3eb   :  { %2577 = vst.msk [vmem:[#allocation2] sm:$0x2] %vm198_vm1, %v2572_v51  ;;  %2590 = vperm.xlu0 %5461, %v7230_v61   ;;  %v2708_v24 = vstv %s7324_s9  ;;  %v2820_v51 = vstv %s7383_s30  ;;  %s7509_s9 = sld [smem:[#allocation15 + $0x23]]  ;;  %s7570_s30 = sld [smem:[#allocation15 + $0x2f]] }
 0x3ec   :  { %v2565_v63 = vpop.permute.xlu1 %2564 }
 0x3ed   :  { %5463 = vset.pattern.permute.xlu1 %v8968_v13  ;;  %2568 = vst.msk [vmem:[#allocation2 + $0x4] sm:$0x1] %vm195_vm8, %v2565_v63 }
 0x3ee   :  { %2654 = vperm.xlu1 %5463, %v2538_v48   ;;  %v2581_v2 = vpop.permute.xlu0 %2580 }
 0x3ef   :  { %2587 = vst.msk [vmem:[#allocation2] sm:$0x2] %vm201_vm5, %v2581_v2  ;;  %2650 = vperm.xlu0 %5461, %v2537_v46  }
 0x3f0   :  { %v7312_v14 = vld [vmem:[#allocation2] sm:$0x1]  ;;  %v2574_v6 = vpop.permute.xlu1 %2573 }
 0x3f1   :  { %2578 = vst.msk [vmem:[#allocation2 + $0x4] sm:$0x2] %vm198_vm1, %v2574_v6  ;;  %v2675_v35 = vmul.f32 %v2674_v45, %v7312_v14  ;;  %v2689_v27 = vmul.f32 %v2688_v36, %v7312_v14  ;;  %v2669_v22 = vmul.f32 %v2668_v33, %v7312_v14  ;;  %v2736_v6 = vstv %s7388_s14  ;;  %s7654_s14 = sld [smem:[#allocation15 + $0x3d]] }
 0x3f3   :  { %2679 = vrot.lane.b32.xlu1 %v2675_v35, %s5731_s16 }
 0x3f4   :  { %v7317_v61 = vld [vmem:[#allocation2 + $0x4] sm:$0x1]  ;;  %v2585_v13 = vpop.permute.xlu1 %2584 }
 0x3f5   :  { %2588 = vst.msk [vmem:[#allocation2 + $0x4] sm:$0x2] %vm201_vm5, %v2585_v13  ;;  %v2676_v54 = vmul.f32 %v2674_v45, %v7317_v61  ;;  %v2690_v39 = vmul.f32 %v2688_v36, %v7317_v61  ;;  %v2670_v11 = vmul.f32 %v2668_v33, %v7317_v61  ;;  %v2822_v2 = vmul.f32 %v2820_v51, %v7317_v61 }
 0x3f7   :  { %2693 = vrot.lane.b32.xlu1 %v2689_v27, %s5732_s7  ;;  %2681 = vrot.lane.b32.xlu0 %v2676_v54, %s5731_s16  ;;  %v2834_v54 = vstv %s7397_s8  ;;  %s7580_s8 = sld [smem:[#allocation15 + $0x31]] }
 0x3f9   :  { %v2595_v62 = vpop.permute.xlu1 %2594 }
 0x3fa   :  { %2598 = vst.msk [vmem:[#allocation2 + $0x4] sm:$0x2] %vm204_vm9, %v2595_v62  ;;  %v2836_v62 = vmul.f32 %v2834_v54, %v7317_v61 }
 0x3fb   :  { %2695 = vrot.lane.b32.xlu0 %v2690_v39, %s5732_s7 }
 0x401   :  { %v7332_v44 = vld [vmem:[#allocation2 + $0x5] sm:$0x1] }
 0x402   :  { %v2710_v29 = vmul.f32 %v2708_v24, %v7332_v44  ;;  %v2724_v7 = vmul.f32 %v2722_v34, %v7332_v44  ;;  %v2704_v38 = vmul.f32 %v2702_v18, %v7332_v44 }
 0x404   :  { %2715 = vrot.lane.b32.xlu0 %v2710_v29, %s5731_s16 }
 0x408   :  { %2729 = vrot.lane.b32.xlu0 %v2724_v7, %s5732_s7  ;;  %v2868_v7 = vstv %s7411_s0  ;;  %s7591_s0 = sld [smem:[#allocation15 + $0x34]] }
 0x414   :  { %v2602_v59 = vpop.permute.xlu1 %2601 }
 0x415   :  { %2607 = vst.msk [vmem:[#allocation2] sm:$0x4] %vm207_vm2, %v2602_v59 }
 0x417   :  { %v2604_v25 = vpop.permute.xlu0 %2603 }
 0x418   :  { %2608 = vst.msk [vmem:[#allocation2 + $0x4] sm:$0x4] %vm207_vm2, %v2604_v25  ;;  %v2870_v25 = vmul.f32 %v2868_v7, %v7332_v44 }
 0x425   :  { %v2611_v41 = vpop.permute.xlu1 %2610 }
 0x426   :  { %2617 = vst.msk [vmem:[#allocation2] sm:$0x4] %vm210_vm6, %v2611_v41  ;;  %v2821_v41 = vmul.f32 %v2820_v51, %v7312_v14 }
 0x428   :  { %v2615_v20 = vpop.permute.xlu0 %2614 }
 0x429   :  { %2618 = vst.msk [vmem:[#allocation2 + $0x4] sm:$0x4] %vm210_vm6, %v2615_v20  ;;  %v2888_v20 = vstv %s7431_s2  ;;  %s7598_s2 = sld [smem:[#allocation15 + $0x35]] }
 0x42a   :  { %v2621_v47 = vpop.permute.xlu1 %2620 }
 0x42b   :  { %2627 = vst.msk [vmem:[#allocation2] sm:$0x4] %vm213_vm10, %v2621_v47 }
 0x42e   :  { %v2625_v52 = vpop.permute.xlu1 %2624 }
 0x42f   :  { %2628 = vst.msk [vmem:[#allocation2 + $0x4] sm:$0x4] %vm213_vm10, %v2625_v52  ;;  %v2835_v52 = vmul.f32 %v2834_v54, %v7312_v14 }
 0x432   :  { %v7395_v43 = vld [vmem:[#allocation2 + $0x2] sm:$0x1] }
 0x433   :  { %v2743_v57 = vmul.f32 %v2742_v15, %v7395_v43  ;;  %v2757_v36 = vmul.f32 %v2756_v26, %v7395_v43 }
 0x436   :  { %v7351_v28 = vld [vmem:[#allocation2 + $0x6] sm:$0x1] }
 0x437   :  { %v2744_v56 = vmul.f32 %v2742_v15, %v7351_v28  ;;  %v2758_v40 = vmul.f32 %v2756_v26, %v7351_v28  ;;  %v2738_v13 = vmul.f32 %v2736_v6, %v7351_v28  ;;  %v2890_v47 = vmul.f32 %v2888_v20, %v7351_v28 }
 0x438   :  { %v2902_v15 = vstv %s7438_s12  ;;  %v2922_v26 = vstv %s7442_s17  ;;  %s7608_s12 = sld [smem:[#allocation15 + $0x37]]  ;;  %s7615_s17 = sld [smem:[#allocation15 + $0x38]] }
 0x439   :  { %2749 = vrot.lane.b32.xlu0 %v2744_v56, %s5731_s16  ;;  %v2904_v56 = vmul.f32 %v2902_v15, %v7351_v28  ;;  %v2903_v33 = vmul.f32 %v2902_v15, %v7395_v43 }
 0x43d   :  { %2763 = vrot.lane.b32.xlu0 %v2758_v40, %s5732_s7 }
 0x454   :  { %v2632_v60 = vpop.permute.xlu0 %2631 }
 0x455   :  { %2637 = vst.msk [vmem:[#allocation2] sm:$0x8] %vm216_vm3, %v2632_v60 }
 0x457   :  { %v2634_v3 = vpop.permute.xlu1 %2633 }
 0x458   :  { %2638 = vst.msk [vmem:[#allocation2 + $0x4] sm:$0x8] %vm216_vm3, %v2634_v3  ;;  %v2936_v3 = vstv %s7449_s18  ;;  %s7621_s18 = sld [smem:[#allocation15 + $0xc]] }
 0x465   :  { %v2641_v0 = vpop.permute.xlu0 %2640 }
 0x466   :  { %2647 = vst.msk [vmem:[#allocation2] sm:$0x8] %vm219_vm7, %v2641_v0 }
 0x468   :  { %v2645_v12 = vpop.permute.xlu1 %2644 }
 0x469   :  { %2648 = vst.msk [vmem:[#allocation2 + $0x4] sm:$0x8] %vm219_vm7, %v2645_v12 }
 0x46a   :  { %v2591_v5 = vpop.permute.xlu0 %2590 }
 0x46b   :  { %2597 = vst.msk [vmem:[#allocation2] sm:$0x2] %vm204_vm9, %v2591_v5  ;;  %v2889_v5 = vmul.f32 %v2888_v20, %v7395_v43 }
 0x46d   :  { %v2655_v37 = vpop.permute.xlu1 %2654 }
 0x46e   :  { %2658 = vst.msk [vmem:[#allocation2 + $0x4] sm:$0x8] %vm222_vm11, %v2655_v37  ;;  %v2651_v58 = vpop.permute.xlu0 %2650  ;;  %v2966_v37 = vstv %s7459_s19  ;;  %s7624_s19 = sld [smem:[#allocation15 + $0x3a]] }
 0x46f   :  { %2657 = vst.msk [vmem:[#allocation2] sm:$0x8] %vm222_vm11, %v2651_v58  ;;  %v2968_v58 = vmul.f32 %v2966_v37, %v7317_v61 }
 0x471   :  { %v2680_v9 = vpop.permute.xlu1 %2679 }
 0x472   :  { %v7374_v53 = vld [vmem:[#allocation2 + $0x1] sm:$0x1]  ;;  %v2682_v19 = vpop.permute.xlu0 %2681  ;;  %v2685_v55 = vadd.f32 %v2680_v9, %v2669_v22  ;;  %v2980_v9 = vstv %s7466_s23  ;;  %s7628_s23 = sld [smem:[#allocation15 + $0xf]] }
 0x473   :  { %v2709_v50 = vmul.f32 %v2708_v24, %v7374_v53  ;;  %v2686_v1 = vadd.f32 %v2682_v19, %v2670_v11  ;;  %v2723_v17 = vmul.f32 %v2722_v34, %v7374_v53  ;;  %v2703_v48 = vmul.f32 %v2702_v18, %v7374_v53 }
 0x474   :  { %v2854_v24 = vstv %s7402_s15  ;;  %v2869_v0 = vmul.f32 %v2868_v7, %v7374_v53  ;;  %v2982_v19 = vmul.f32 %v2980_v9, %v7317_v61  ;;  %s7587_s15 = sld [smem:[#allocation15 + $0x32]] }
 0x475   :  { %v7380_v10 = vld [vmem:[#allocation2 + $0x7] sm:$0x1]  ;;  %v2694_v30 = vpop.permute.xlu1 %2693  ;;  %2713 = vrot.lane.b32.xlu1 %v2709_v50, %s5731_s16  ;;  %v2856_v34 = vmul.f32 %v2854_v24, %v7332_v44  ;;  %v2855_v40 = vmul.f32 %v2854_v24, %v7374_v53  ;;  %v3014_v50 = vstv %s7477_s1  ;;  %s7658_s1 = sld [smem:[#allocation15 + $0x12]] }
 0x476   :  { %v2778_v21 = vmul.f32 %v2776_v42, %v7380_v10  ;;  %v2696_v31 = vpop.permute.xlu0 %2695  ;;  %v2699_v16 = vadd.f32 %v2694_v30, %v2685_v55  ;;  %v2792_v46 = vmul.f32 %v2790_v23, %v7380_v10  ;;  %v7421_v27 = vld [vmem:[#allocation2 + $0x3] sm:$0x1]  ;;  %v2924_v60 = vmul.f32 %v2922_v26, %v7380_v10 }
 0x477   :  { %v2700_v49 = vadd.f32 %v2696_v31, %v2686_v1  ;;  %v2777_v29 = vmul.f32 %v2776_v42, %v7421_v27  ;;  %v2791_v59 = vmul.f32 %v2790_v23, %v7421_v27  ;;  %v2938_v12 = vmul.f32 %v2936_v3, %v7380_v10 }
 0x478   :  { %2783 = vrot.lane.b32.xlu0 %v2778_v21, %s5731_s16  ;;  %v7406_v4 = vadd.f32 %v2703_v48, %v2699_v16  ;;  %v3000_v42 = vstv %s7470_s25  ;;  %v2923_v22 = vmul.f32 %v2922_v26, %v7421_v27  ;;  %v2937_v30 = vmul.f32 %v2936_v3, %v7421_v27  ;;  %s7638_s25 = sld [smem:[#allocation15 + $0x3b]] }
 0x479   :  { %2727 = vrot.lane.b32.xlu1 %v2723_v17, %s5732_s7  ;;  %v2706_v8 = vadd.f32 %v2704_v38, %v2700_v49  ;;  %v3002_v11 = vmul.f32 %v3000_v42, %v7332_v44  ;;  %v3016_v18 = vmul.f32 %v3014_v50, %v7332_v44  ;;  %v2967_v1 = vmul.f32 %v2966_v37, %v7312_v14 }
 0x47a   :  { %v2716_v32 = vpop.permute.xlu0 %2715  ;;  %v3034_v21 = vstv %s7487_s26  ;;  %v2770_v23 = vstv %s7491_s13  ;;  %v2981_v17 = vmul.f32 %v2980_v9, %v7312_v14  ;;  %v3001_v51 = vmul.f32 %v3000_v42, %v7374_v53  ;;  %s7668_s26 = sld [smem:[#allocation15 + $0x3e]]  ;;  %s7672_s13 = sld [smem:[#allocation15 + $0x40]] }
 0x47b   :  { %v2720_v63 = vadd.f32 %v2716_v32, %v2706_v8  ;;  %v3036_v31 = vmul.f32 %v3034_v21, %v7351_v28  ;;  %v3048_v8 = vstv %s7496_s22  ;;  %v3068_v32 = vstv %s7500_s24  ;;  %s7678_s22 = sld [smem:[#allocation15 + $0x15]]  ;;  %s7685_s24 = sld [smem:[#allocation15 + $0x41]] }
 0x47c   :  { %2797 = vrot.lane.b32.xlu0 %v2792_v46, %s5732_s7  ;;  %v2772_v46 = vmul.f32 %v2770_v23, %v7380_v10  ;;  %v3050_v48 = vmul.f32 %v3048_v8, %v7351_v28 }
 0x47d   :  { %2747 = vrot.lane.b32.xlu1 %v2743_v57, %s5731_s16 }
 0x47e   :  { %v2730_v45 = vpop.permute.xlu0 %2729 }
 0x47f   :  { %v2734_v35 = vadd.f32 %v2730_v45, %v2720_v63  ;;  %v3070_v63 = vmul.f32 %v3068_v32, %v7380_v10  ;;  %v3015_v45 = vmul.f32 %v3014_v50, %v7374_v53 }
 0x480   :  { %2827 = vrot.lane.b32.xlu0 %v2822_v2, %s5731_s16  ;;  %v3082_v2 = vstv %s7509_s9  ;;  %s7698_s9 = sld [smem:[#allocation15 + $0x43]] }
 0x481   :  { %2761 = vrot.lane.b32.xlu1 %v2757_v36, %s5732_s7  ;;  %v7426_v39 = vadd.f32 %v2738_v13, %v2734_v35  ;;  %v3084_v35 = vmul.f32 %v3082_v2, %v7380_v10  ;;  %v3035_v36 = vmul.f32 %v3034_v21, %v7395_v43  ;;  %v3112_v13 = vstv %s7524_s3  ;;  %s7708_s3 = sld [smem:[#allocation15 + $0x44]] }
 0x482   :  { %v3114_v54 = vmul.f32 %v3112_v13, %v7317_v61  ;;  %v3113_v20 = vmul.f32 %v3112_v13, %v7312_v14  ;;  %v3360_v13 = vstv %s7624_s19  ;;  %s7808_s19 = sld [smem:[#allocation15 + $0x27]] }
 0x484   :  { %2841 = vrot.lane.b32.xlu0 %v2836_v62, %s5732_s7  ;;  %v3049_v62 = vmul.f32 %v3048_v8, %v7395_v43  ;;  %v2737_v8 = vmul.f32 %v2736_v6, %v7395_v43  ;;  %v2814_v6 = vstv %s7621_s18  ;;  %s7804_s18 = sld [smem:[#allocation15 + $0x52]] }
 0x485   :  { %2781 = vrot.lane.b32.xlu1 %v2777_v29, %s5731_s16  ;;  %v3146_v29 = vstv %s7535_s6  ;;  %s7716_s6 = sld [smem:[#allocation15 + $0x46]] }
 0x486   :  { %v3148_v7 = vmul.f32 %v3146_v29, %v7332_v44 }
 0x488   :  { %2861 = vrot.lane.b32.xlu0 %v2856_v34, %s5731_s16  ;;  %v3069_v34 = vmul.f32 %v3068_v32, %v7421_v27 }
 0x489   :  { %2795 = vrot.lane.b32.xlu1 %v2791_v59, %s5732_s7  ;;  %v3160_v59 = vstv %s7542_s5  ;;  %s7720_s5 = sld [smem:[#allocation15 + $0x1b]] }
 0x48c   :  { %2875 = vrot.lane.b32.xlu0 %v2870_v25, %s5732_s7  ;;  %v3083_v25 = vmul.f32 %v3082_v2, %v7421_v27 }
 0x48d   :  { %2825 = vrot.lane.b32.xlu1 %v2821_v41, %s5731_s16  ;;  %v3162_v41 = vmul.f32 %v3160_v59, %v7332_v44 }
 0x490   :  { %2895 = vrot.lane.b32.xlu0 %v2890_v47, %s5731_s16  ;;  %v3180_v47 = vstv %s7552_s27  ;;  %s7728_s27 = sld [smem:[#allocation15 + $0x47]] }
 0x491   :  { %2839 = vrot.lane.b32.xlu1 %v2835_v52, %s5732_s7  ;;  %v3182_v52 = vmul.f32 %v3180_v47, %v7351_v28  ;;  %v3181_v37 = vmul.f32 %v3180_v47, %v7395_v43  ;;  %v3374_v47 = vstv %s7638_s25  ;;  %s7830_s25 = sld [smem:[#allocation15 + $0x55]] }
 0x494   :  { %2909 = vrot.lane.b32.xlu0 %v2904_v56, %s5732_s7  ;;  %v3194_v56 = vstv %s7559_s28  ;;  %s7742_s28 = sld [smem:[#allocation15 + $0x49]] }
 0x495   :  { %2859 = vrot.lane.b32.xlu1 %v2855_v40, %s5731_s16  ;;  %v3196_v26 = vmul.f32 %v3194_v56, %v7351_v28  ;;  %v3214_v40 = vstv %s7563_s29  ;;  %v3195_v9 = vmul.f32 %v3194_v56, %v7395_v43  ;;  %s7746_s29 = sld [smem:[#allocation15 + $0x1e]] }
 0x496   :  { %v3216_v3 = vmul.f32 %v3214_v40, %v7380_v10 }
 0x498   :  { %2929 = vrot.lane.b32.xlu0 %v2924_v60, %s5731_s16  ;;  %v3147_v60 = vmul.f32 %v3146_v29, %v7374_v53 }
 0x499   :  { %2873 = vrot.lane.b32.xlu1 %v2869_v0, %s5732_s7  ;;  %v3228_v0 = vstv %s7570_s30  ;;  %s7756_s30 = sld [smem:[#allocation15 + $0x4a]] }
 0x49c   :  { %2943 = vrot.lane.b32.xlu0 %v2938_v12, %s5732_s7  ;;  %v3161_v12 = vmul.f32 %v3160_v59, %v7374_v53  ;;  %v3362_v59 = vmul.f32 %v3360_v13, %v7380_v10 }
 0x49d   :  { %2893 = vrot.lane.b32.xlu1 %v2889_v5, %s5731_s16  ;;  %v3230_v5 = vmul.f32 %v3228_v0, %v7380_v10 }
 0x4a0   :  { %2973 = vrot.lane.b32.xlu0 %v2968_v58, %s5731_s16  ;;  %v3258_v58 = vstv %s7580_s8  ;;  %s7760_s8 = sld [smem:[#allocation15 + $0x4c]] }
 0x4a1   :  { %2907 = vrot.lane.b32.xlu1 %v2903_v33, %s5732_s7  ;;  %v3260_v33 = vmul.f32 %v3258_v58, %v7317_v61 }
 0x4a4   :  { %2987 = vrot.lane.b32.xlu0 %v2982_v19, %s5732_s7  ;;  %v3272_v19 = vstv %s7587_s15  ;;  %s7766_s15 = sld [smem:[#allocation15 + $0x21]] }
 0x4a5   :  { %2927 = vrot.lane.b32.xlu1 %v2923_v22, %s5731_s16  ;;  %v3274_v42 = vmul.f32 %v3272_v19, %v7317_v61  ;;  %v3292_v22 = vstv %s7591_s0  ;;  %s7773_s0 = sld [smem:[#allocation15 + $0x4d]] }
 0x4a6   :  { %v3294_v50 = vmul.f32 %v3292_v22, %v7332_v44 }
 0x4a8   :  { %3007 = vrot.lane.b32.xlu0 %v3002_v11, %s5731_s16  ;;  %v3215_v11 = vmul.f32 %v3214_v40, %v7421_v27 }
 0x4a9   :  { %2941 = vrot.lane.b32.xlu1 %v2937_v30, %s5732_s7  ;;  %v3306_v30 = vstv %s7598_s2  ;;  %s7786_s2 = sld [smem:[#allocation15 + $0x4f]] }
 0x4aa   :  { %v3308_v21 = vmul.f32 %v3306_v30, %v7332_v44 }
 0x4ab   :  { %v2750_v55 = vpop.permute.xlu0 %2749 }
 0x4ac   :  { %3021 = vrot.lane.b32.xlu0 %v3016_v18, %s5732_s7  ;;  %v2754_v16 = vadd.f32 %v2750_v55, %v7426_v39  ;;  %v3126_v39 = vstv %s7531_s4  ;;  %v3229_v55 = vmul.f32 %v3228_v0, %v7421_v27  ;;  %v3404_v0 = vstv %s7654_s14  ;;  %s7714_s4 = sld [smem:[#allocation15 + $0x18]]  ;;  %s7834_s14 = sld [smem:[#allocation15 + $0x2a]] }
 0x4ad   :  { %2971 = vrot.lane.b32.xlu1 %v2967_v1, %s5731_s16  ;;  %v3128_v24 = vmul.f32 %v3126_v39, %v7317_v61  ;;  %v3127_v15 = vmul.f32 %v3126_v39, %v7312_v14  ;;  %v2848_v39 = vstv %s7628_s23  ;;  %s7816_s23 = sld [smem:[#allocation15 + $0x53]] }
 0x4af   :  { %v2764_v49 = vpop.permute.xlu0 %2763 }
 0x4b0   :  { %3041 = vrot.lane.b32.xlu0 %v3036_v31, %s5731_s16  ;;  %v2768_v38 = vadd.f32 %v2764_v49, %v2754_v16  ;;  %v3259_v49 = vmul.f32 %v3258_v58, %v7312_v14 }
 0x4b1   :  { %2985 = vrot.lane.b32.xlu1 %v2981_v17, %s5732_s7 }
 0x4b2   :  { %v7520_v57 = vadd.f32 %v2772_v46, %v2768_v38  ;;  %v3326_v38 = vstv %s7608_s12  ;;  %s7796_s12 = sld [smem:[#allocation15 + $0x50]] }
 0x4b3   :  { %v3328_v46 = vmul.f32 %v3326_v38, %v7351_v28 }
 0x4b4   :  { %3055 = vrot.lane.b32.xlu0 %v3050_v48, %s5732_s7 }
 0x4b5   :  { %3005 = vrot.lane.b32.xlu1 %v3001_v51, %s5731_s16  ;;  %v3273_v51 = vmul.f32 %v3272_v19, %v7312_v14 }
 0x4b8   :  { %3075 = vrot.lane.b32.xlu0 %v3070_v63, %s5731_s16  ;;  %v3340_v63 = vstv %s7615_s17  ;;  %s7802_s17 = sld [smem:[#allocation15 + $0x24]] }
 0x4b9   :  { %3019 = vrot.lane.b32.xlu1 %v3015_v45, %s5732_s7  ;;  %v3342_v45 = vmul.f32 %v3340_v63, %v7351_v28  ;;  %v3341_v19 = vmul.f32 %v3340_v63, %v7395_v43  ;;  %v3452_v63 = vstv %s7685_s24  ;;  %s7878_s24 = sld [smem:[#allocation15 + $0x5b]] }
 0x4bc   :  { %3089 = vrot.lane.b32.xlu0 %v3084_v35, %s5732_s7 }
 0x4bd   :  { %3039 = vrot.lane.b32.xlu1 %v3035_v36, %s5731_s16  ;;  %v2816_v36 = vmul.f32 %v2814_v6, %v7317_v61 }
 0x4c0   :  { %3119 = vrot.lane.b32.xlu0 %v3114_v54, %s5731_s16 }
 0x4c1   :  { %3053 = vrot.lane.b32.xlu1 %v3049_v62, %s5732_s7  ;;  %v3293_v62 = vmul.f32 %v3292_v22, %v7374_v53 }
 0x4c4   :  { %3133 = vrot.lane.b32.xlu0 %v3128_v24, %s5732_s7 }
 0x4c5   :  { %3073 = vrot.lane.b32.xlu1 %v3069_v34, %s5731_s16  ;;  %v2771_v34 = vmul.f32 %v2770_v23, %v7421_v27  ;;  %v3307_v23 = vmul.f32 %v3306_v30, %v7374_v53 }
 0x4c8   :  { %3153 = vrot.lane.b32.xlu0 %v3148_v7, %s5731_s16 }
 0x4c9   :  { %3087 = vrot.lane.b32.xlu1 %v3083_v25, %s5732_s7 }
 0x4cc   :  { %3167 = vrot.lane.b32.xlu0 %v3162_v41, %s5732_s7 }
 0x4cd   :  { %3117 = vrot.lane.b32.xlu1 %v3113_v20, %s5731_s16  ;;  %v2850_v20 = vmul.f32 %v2848_v39, %v7332_v44 }
 0x4d0   :  { %3187 = vrot.lane.b32.xlu0 %v3182_v52, %s5731_s16 }
 0x4d1   :  { %3131 = vrot.lane.b32.xlu1 %v3127_v15, %s5732_s7 }
 0x4d4   :  { %3201 = vrot.lane.b32.xlu0 %v3196_v26, %s5732_s7  ;;  %v3376_v26 = vmul.f32 %v3374_v47, %v7380_v10 }
 0x4d5   :  { %3151 = vrot.lane.b32.xlu1 %v3147_v60, %s5731_s16  ;;  %v3327_v60 = vmul.f32 %v3326_v38, %v7395_v43  ;;  %v2849_v38 = vmul.f32 %v2848_v39, %v7374_v53 }
 0x4d8   :  { %3221 = vrot.lane.b32.xlu0 %v3216_v3, %s5731_s16 }
 0x4d9   :  { %3165 = vrot.lane.b32.xlu1 %v3161_v12, %s5732_s7 }
 0x4dc   :  { %3235 = vrot.lane.b32.xlu0 %v3230_v5, %s5732_s7  ;;  %v3406_v5 = vmul.f32 %v3404_v0, %v7317_v61 }
 0x4dd   :  { %3185 = vrot.lane.b32.xlu1 %v3181_v37, %s5731_s16  ;;  %v2882_v37 = vstv %s7658_s1  ;;  %s7844_s1 = sld [smem:[#allocation15 + $0x56]] }
 0x4e0   :  { %3265 = vrot.lane.b32.xlu0 %v3260_v33, %s5731_s16  ;;  %v2884_v33 = vmul.f32 %v2882_v37, %v7351_v28 }
 0x4e1   :  { %3199 = vrot.lane.b32.xlu1 %v3195_v9, %s5732_s7 }
 0x4e4   :  { %3279 = vrot.lane.b32.xlu0 %v3274_v42, %s5732_s7  ;;  %v2815_v42 = vmul.f32 %v2814_v6, %v7312_v14 }
 0x4e5   :  { %3219 = vrot.lane.b32.xlu1 %v3215_v11, %s5731_s16  ;;  %v3418_v11 = vstv %s7668_s26  ;;  %s7848_s26 = sld [smem:[#allocation15 + $0x58]] }
 0x4e6   :  { %v3420_v30 = vmul.f32 %v3418_v11, %v7317_v61 }
 0x4e7   :  { %v2714_v18 = vpop.permute.xlu1 %2713 }
 0x4e8   :  { %3299 = vrot.lane.b32.xlu0 %v3294_v50, %s5731_s16  ;;  %v2719_v31 = vadd.f32 %v2714_v18, %v7406_v4 }
 0x4e9   :  { %3233 = vrot.lane.b32.xlu1 %v3229_v55, %s5732_s7  ;;  %v3438_v55 = vstv %s7672_s13  ;;  %s7854_s13 = sld [smem:[#allocation15 + $0x2d]] }
 0x4ea   :  { %v7618_v1 = vpop.permute.xlu0 %2783 }
 0x4eb   :  { %v2728_v16 = vpop.permute.xlu1 %2727 }
 0x4ec   :  { %3313 = vrot.lane.b32.xlu0 %v3308_v21, %s5732_s7  ;;  %v2733_v17 = vadd.f32 %v2728_v16, %v2719_v31  ;;  %v3361_v31 = vmul.f32 %v3360_v13, %v7421_v27  ;;  %v2916_v16 = vstv %s7678_s22  ;;  %s7863_s22 = sld [smem:[#allocation15 + $0x59]] }
 0x4ed   :  { %3263 = vrot.lane.b32.xlu1 %v3259_v49, %s5731_s16 }
 0x4ee   :  { %v7635_v4 = vpop.permute.xlu0 %2797  ;;  %v2739_v48 = vadd.f32 %v2737_v8, %v2733_v17 }
 0x4ef   :  { %v2748_v32 = vpop.permute.xlu1 %2747 }
 0x4f0   :  { %3333 = vrot.lane.b32.xlu0 %v3328_v46, %s5731_s16  ;;  %v2753_v35 = vadd.f32 %v2748_v32, %v2739_v48  ;;  %v3440_v46 = vmul.f32 %v3438_v55, %v7332_v44 }
 0x4f1   :  { %3277 = vrot.lane.b32.xlu1 %v3273_v51, %s5732_s7  ;;  %v2918_v51 = vmul.f32 %v2916_v16, %v7380_v10 }
 0x4f2   :  { %v2828_v2 = vpop.permute.xlu0 %2827 }
 0x4f3   :  { %v2762_v54 = vpop.permute.xlu1 %2761  ;;  %v2832_v24 = vadd.f32 %v2828_v2, %v2816_v36  ;;  %v3375_v2 = vmul.f32 %v3374_v47, %v7421_v27  ;;  %v3454_v36 = vmul.f32 %v3452_v63, %v7332_v44  ;;  %v3486_v47 = vstv %s7708_s3  ;;  %s7896_s3 = sld [smem:[#allocation15 + $0x5c]] }
 0x4f4   :  { %3347 = vrot.lane.b32.xlu0 %v3342_v45, %s5732_s7  ;;  %v2767_v29 = vadd.f32 %v2762_v54, %v2753_v35 }
 0x4f5   :  { %3297 = vrot.lane.b32.xlu1 %v3293_v62, %s5731_s16  ;;  %v3405_v62 = vmul.f32 %v3404_v0, %v7312_v14 }
 0x4f6   :  { %v2842_v7 = vpop.permute.xlu0 %2841  ;;  %v7660_v41 = vadd.f32 %v2771_v34, %v2767_v29  ;;  %v2883_v29 = vmul.f32 %v2882_v37, %v7395_v43 }
 0x4f7   :  { %v2846_v25 = vadd.f32 %v2842_v7, %v2832_v24  ;;  %v7665_v52 = vpop.permute.xlu1 %2781  ;;  %v3472_v24 = vstv %s7698_s9  ;;  %s7890_s9 = sld [smem:[#allocation16]] }
 0x4f8   :  { %3367 = vrot.lane.b32.xlu0 %v3362_v59, %s5731_s16  ;;  %v3474_v7 = vmul.f32 %v3472_v24, %v7351_v28 }
 0x4f9   :  { %v2852_v15 = vadd.f32 %v2850_v20, %v2846_v25  ;;  %3311 = vrot.lane.b32.xlu1 %v3307_v23, %s5732_s7  ;;  %v3419_v20 = vmul.f32 %v3418_v11, %v7312_v14  ;;  %v2960_v23 = vstv %s7714_s4  ;;  %s7904_s4 = sld [smem:[#allocation15 + $0x30]] }
 0x4fa   :  { %v2862_v56 = vpop.permute.xlu0 %2861 }
 0x4fb   :  { %v7675_v40 = vpop.permute.xlu1 %2795  ;;  %v2866_v3 = vadd.f32 %v2862_v56, %v2852_v15  ;;  %v3488_v56 = vmul.f32 %v3486_v47, %v7351_v28 }
 0x4fc   :  { %3381 = vrot.lane.b32.xlu0 %v3376_v26, %s5732_s7 }
 0x4fd   :  { %3331 = vrot.lane.b32.xlu1 %v3327_v60, %s5731_s16  ;;  %v2962_v60 = vmul.f32 %v2960_v23, %v7317_v61 }
 0x4fe   :  { %v2876_v12 = vpop.permute.xlu0 %2875 }
 0x4ff   :  { %v2880_v58 = vadd.f32 %v2876_v12, %v2866_v3  ;;  %v2826_v9 = vpop.permute.xlu1 %2825  ;;  %v3506_v3 = vstv %s7716_s6  ;;  %v3439_v12 = vmul.f32 %v3438_v55, %v7374_v53  ;;  %s7906_s6 = sld [smem:[#allocation15 + $0x33]] }
 0x500   :  { %3411 = vrot.lane.b32.xlu0 %v3406_v5, %s5731_s16  ;;  %v2831_v18 = vadd.f32 %v2826_v9, %v2815_v42  ;;  %v2994_v5 = vstv %s7720_s5  ;;  %s7908_s5 = sld [smem:[#allocation15 + $0x5e]] }
 0x501   :  { %v2886_v22 = vadd.f32 %v2884_v33, %v2880_v58  ;;  %3345 = vrot.lane.b32.xlu1 %v3341_v19, %s5732_s7  ;;  %v2917_v33 = vmul.f32 %v2916_v16, %v7421_v27  ;;  %v3508_v19 = vmul.f32 %v3506_v3, %v7380_v10  ;;  %v2996_v11 = vmul.f32 %v2994_v5, %v7332_v44 }
 0x502   :  { %v2896_v50 = vpop.permute.xlu0 %2895 }
 0x503   :  { %v2840_v21 = vpop.permute.xlu1 %2839  ;;  %v2900_v49 = vadd.f32 %v2896_v50, %v2886_v22  ;;  %v3520_v50 = vstv %s7728_s27  ;;  %s7924_s27 = sld [smem:[#allocation15 + $0x5f]] }
 0x504   :  { %3425 = vrot.lane.b32.xlu0 %v3420_v30, %s5732_s7  ;;  %v2845_v17 = vadd.f32 %v2840_v21, %v2831_v18  ;;  %v3453_v18 = vmul.f32 %v3452_v63, %v7374_v53 }
 0x505   :  { %3365 = vrot.lane.b32.xlu1 %v3361_v31, %s5731_s16  ;;  %v3522_v31 = vmul.f32 %v3520_v50, %v7380_v10 }
 0x506   :  { %v2910_v8 = vpop.permute.xlu0 %2909  ;;  %v2851_v32 = vadd.f32 %v2849_v38, %v2845_v17  ;;  %v3550_v38 = vstv %s7742_s28  ;;  %s7928_s28 = sld [smem:[#allocation16 + $0x1]] }
 0x507   :  { %v2914_v48 = vadd.f32 %v2910_v8, %v2900_v49  ;;  %v2860_v6 = vpop.permute.xlu1 %2859  ;;  %v3473_v49 = vmul.f32 %v3472_v24, %v7395_v43  ;;  %v3584_v24 = vstv %s7760_s8  ;;  %s7973_s8 = sld [smem:[#allocation18 + $0x2]] }
 0x508   :  { %3445 = vrot.lane.b32.xlu0 %v3440_v46, %s5731_s16  ;;  %v2865_v13 = vadd.f32 %v2860_v6, %v2851_v32  ;;  %v3552_v46 = vmul.f32 %v3550_v38, %v7317_v61  ;;  %v3487_v6 = vmul.f32 %v3486_v47, %v7395_v43  ;;  %v2995_v47 = vmul.f32 %v2994_v5, %v7374_v53 }
 0x509   :  { %v7706_v45 = vadd.f32 %v2918_v51, %v2914_v48  ;;  %3379 = vrot.lane.b32.xlu1 %v3375_v2, %s5732_s7  ;;  %v3028_v48 = vstv %s7746_s29  ;;  %v2961_v2 = vmul.f32 %v2960_v23, %v7312_v14  ;;  %s7945_s29 = sld [smem:[#allocation18 + $0x1]] }
 0x50a   :  { %v7711_v35 = vpop.permute.xlu0 %2929  ;;  %v3030_v51 = vmul.f32 %v3028_v48, %v7351_v28 }
 0x50b   :  { %v2874_v54 = vpop.permute.xlu1 %2873 }
 0x50c   :  { %3459 = vrot.lane.b32.xlu0 %v3454_v36, %s5732_s7  ;;  %v2879_v39 = vadd.f32 %v2874_v54, %v2865_v13  ;;  %v3564_v13 = vstv %s7756_s30  ;;  %s7958_s30 = sld [smem:[#allocation15 + $0x36]] }
 0x50d   :  { %3409 = vrot.lane.b32.xlu1 %v3405_v62, %s5731_s16  ;;  %v3566_v62 = vmul.f32 %v3564_v13, %v7317_v61 }
 0x50e   :  { %v7725_v34 = vpop.permute.xlu0 %2943  ;;  %v2885_v59 = vadd.f32 %v2883_v29, %v2879_v39 }
 0x50f   :  { %v2894_v25 = vpop.permute.xlu1 %2893 }
 0x510   :  { %3479 = vrot.lane.b32.xlu0 %v3474_v7, %s5731_s16  ;;  %v2899_v26 = vadd.f32 %v2894_v25, %v2885_v59  ;;  %v3507_v7 = vmul.f32 %v3506_v3, %v7421_v27  ;;  %v3062_v59 = vstv %s7766_s15  ;;  %v3521_v3 = vmul.f32 %v3520_v50, %v7421_v27  ;;  %s7976_s15 = sld [smem:[#allocation16 + $0x2]] }
 0x511   :  { %3423 = vrot.lane.b32.xlu1 %v3419_v20, %s5732_s7  ;;  %v3618_v50 = vstv %s7786_s2  ;;  %s7992_s2 = sld [smem:[#allocation15 + $0x39]] }
 0x512   :  { %v2974_v15 = vpop.permute.xlu0 %2973 }
 0x513   :  { %v2908_v0 = vpop.permute.xlu1 %2907  ;;  %v2978_v37 = vadd.f32 %v2974_v15, %v2962_v60  ;;  %v3586_v15 = vmul.f32 %v3584_v24, %v7332_v44  ;;  %v3064_v60 = vmul.f32 %v3062_v59, %v7380_v10 }
 0x514   :  { %3493 = vrot.lane.b32.xlu0 %v3488_v56, %s5732_s7  ;;  %v2913_v58 = vadd.f32 %v2908_v0, %v2899_v26  ;;  %v3598_v0 = vstv %s7773_s0  ;;  %s7990_s0 = sld [smem:[#allocation18 + $0x4]] }
 0x515   :  { %3443 = vrot.lane.b32.xlu1 %v3439_v12, %s5731_s16 }
 0x516   :  { %v2988_v9 = vpop.permute.xlu0 %2987  ;;  %v7748_v22 = vadd.f32 %v2917_v33, %v2913_v58  ;;  %v3600_v58 = vmul.f32 %v3598_v0, %v7332_v44 }
 0x517   :  { %v2992_v42 = vadd.f32 %v2988_v9, %v2978_v37  ;;  %v7753_v30 = vpop.permute.xlu1 %2927 }
 0x518   :  { %3513 = vrot.lane.b32.xlu0 %v3508_v19, %s5731_s16  ;;  %v3551_v19 = vmul.f32 %v3550_v38, %v7312_v14  ;;  %v3106_v38 = vstv %s7802_s17  ;;  %s8025_s17 = sld [smem:[#allocation16 + $0x3]] }
 0x519   :  { %v2998_v55 = vadd.f32 %v2996_v11, %v2992_v42  ;;  %3457 = vrot.lane.b32.xlu1 %v3453_v18, %s5732_s7  ;;  %v3029_v11 = vmul.f32 %v3028_v48, %v7395_v43 }
 0x51a   :  { %v3008_v21 = vpop.permute.xlu0 %3007 }
 0x51b   :  { %v7763_v16 = vpop.permute.xlu1 %2941  ;;  %v3012_v17 = vadd.f32 %v3008_v21, %v2998_v55  ;;  %v3620_v55 = vmul.f32 %v3618_v50, %v7351_v28 }
 0x51c   :  { %3527 = vrot.lane.b32.xlu0 %v3522_v31, %s5732_s7 }
 0x51d   :  { %3477 = vrot.lane.b32.xlu1 %v3473_v49, %s5731_s16  ;;  %v3565_v49 = vmul.f32 %v3564_v13, %v7312_v14  ;;  %v3063_v13 = vmul.f32 %v3062_v59, %v7421_v27  ;;  %v3599_v59 = vmul.f32 %v3598_v0, %v7374_v53 }
 0x51e   :  { %v3022_v8 = vpop.permute.xlu0 %3021 }
 0x51f   :  { %v3026_v32 = vadd.f32 %v3022_v8, %v3012_v17  ;;  %v2972_v63 = vpop.permute.xlu1 %2971  ;;  %v3632_v17 = vstv %s7796_s12  ;;  %s8018_s12 = sld [smem:[#allocation18 + $0x5]] }
 0x520   :  { %3557 = vrot.lane.b32.xlu0 %v3552_v46, %s5731_s16  ;;  %v2977_v39 = vadd.f32 %v2972_v63, %v2961_v2  ;;  %v3634_v46 = vmul.f32 %v3632_v17, %v7351_v28  ;;  %v3140_v2 = vstv %s7808_s19  ;;  %s8069_s19 = sld [smem:[#allocation18 + $0x8]] }
 0x521   :  { %v3032_v36 = vadd.f32 %v3030_v51, %v3026_v32  ;;  %3491 = vrot.lane.b32.xlu1 %v3487_v6, %s5732_s7  ;;  %v3108_v32 = vmul.f32 %v3106_v38, %v7317_v61  ;;  %v3652_v51 = vstv %s7804_s18  ;;  %v3585_v6 = vmul.f32 %v3584_v24, %v7374_v53  ;;  %s8040_s18 = sld [smem:[#allocation18 + $0x7]] }
 0x522   :  { %v3042_v54 = vpop.permute.xlu0 %3041  ;;  %v3666_v24 = vstv %s7816_s23  ;;  %s8076_s23 = sld [smem:[#allocation16 + $0x4]] }
 0x523   :  { %v2986_v29 = vpop.permute.xlu1 %2985  ;;  %v3046_v25 = vadd.f32 %v3042_v54, %v3032_v36 }
 0x524   :  { %3571 = vrot.lane.b32.xlu0 %v3566_v62, %s5732_s7  ;;  %v2991_v20 = vadd.f32 %v2986_v29, %v2977_v39  ;;  %v3654_v62 = vmul.f32 %v3652_v51, %v7380_v10  ;;  %v3142_v29 = vmul.f32 %v3140_v2, %v7332_v44 }
 0x525   :  { %3511 = vrot.lane.b32.xlu1 %v3507_v7, %s5731_s16 }
 0x526   :  { %v3056_v23 = vpop.permute.xlu0 %3055  ;;  %v2997_v26 = vadd.f32 %v2995_v47, %v2991_v20  ;;  %v3668_v47 = vmul.f32 %v3666_v24, %v7380_v10 }
 0x527   :  { %v3060_v56 = vadd.f32 %v3056_v23, %v3046_v25  ;;  %v3006_v12 = vpop.permute.xlu1 %3005  ;;  %v3619_v23 = vmul.f32 %v3618_v50, %v7395_v43  ;;  %v3710_v50 = vstv %s7844_s1  ;;  %s8092_s1 = sld [smem:[#allocation15 + $0x3f]] }
 0x528   :  { %3591 = vrot.lane.b32.xlu0 %v3586_v15, %s5731_s16  ;;  %v3011_v33 = vadd.f32 %v3006_v12, %v2997_v26  ;;  %v3174_v12 = vstv %s7834_s14  ;;  %s8090_s14 = sld [smem:[#allocation18 + $0xa]] }
 0x529   :  { %v7794_v37 = vadd.f32 %v3064_v60, %v3060_v56  ;;  %3525 = vrot.lane.b32.xlu1 %v3521_v3, %s5732_s7  ;;  %v3696_v56 = vstv %s7830_s25  ;;  %v7858_v60 = vld [vmem:[#allocation2 + $0x4] sm:$0x1]  ;;  %s8083_s25 = sld [smem:[#allocation15 + $0x3c]] }
 0x52a   :  { %v7799_v5 = vpop.permute.xlu0 %3075  ;;  %v3698_v0 = vmul.f32 %v7858_v60, %v3696_v56 }
 0x52b   :  { %v3020_v9 = vpop.permute.xlu1 %3019 }
 0x52c   :  { %3605 = vrot.lane.b32.xlu0 %v3600_v58, %s5732_s7  ;;  %v3025_v42 = vadd.f32 %v3020_v9, %v3011_v33  ;;  %v3176_v58 = vmul.f32 %v3174_v12, %v7351_v28  ;;  %v3633_v9 = vmul.f32 %v3632_v17, %v7395_v43  ;;  %v3712_v28 = vmul.f32 %v7858_v60, %v3710_v50 }
 0x52d   :  { %3555 = vrot.lane.b32.xlu1 %v3551_v19, %s5731_s16  ;;  %v7867_v19 = vld [vmem:[#allocation2] sm:$0x1]  ;;  %v3653_v17 = vmul.f32 %v3652_v51, %v7421_v27 }
 0x52e   :  { %v7813_v18 = vpop.permute.xlu0 %3089  ;;  %v3031_v21 = vadd.f32 %v3029_v11, %v3025_v42  ;;  %v3107_v42 = vmul.f32 %v7867_v19, %v3106_v38 }
 0x52f   :  { %v3040_v31 = vpop.permute.xlu1 %3039 }
 0x530   :  { %3625 = vrot.lane.b32.xlu0 %v3620_v55, %s5731_s16  ;;  %v3045_v48 = vadd.f32 %v3040_v31, %v3031_v21  ;;  %v3730_v31 = vstv %s7848_s26  ;;  %s8114_s26 = sld [smem:[#allocation18 + $0xb]] }
 0x531   :  { %3569 = vrot.lane.b32.xlu1 %v3565_v49, %s5732_s7 }
 0x532   :  { %v3120_v8 = vpop.permute.xlu0 %3119 }
 0x533   :  { %v3054_v63 = vpop.permute.xlu1 %3053  ;;  %v3124_v36 = vadd.f32 %v3120_v8, %v3108_v32  ;;  %v3208_v8 = vstv %s7854_s13  ;;  %s8141_s13 = sld [smem:[#allocation18 + $0xd]] }
 0x534   :  { %3639 = vrot.lane.b32.xlu0 %v3634_v46, %s5732_s7  ;;  %v3059_v14 = vadd.f32 %v3054_v63, %v3045_v48  ;;  %v3141_v48 = vmul.f32 %v3140_v2, %v7374_v53  ;;  %v7881_v63 = vld [vmem:[#allocation2 + $0x5] sm:$0x1]  ;;  %v3210_v51 = vmul.f32 %v3208_v8, %v7380_v10  ;;  %v3667_v2 = vmul.f32 %v3666_v24, %v7421_v27 }
 0x535   :  { %3589 = vrot.lane.b32.xlu1 %v3585_v6, %s5731_s16  ;;  %v3732_v6 = vmul.f32 %v7881_v63, %v3730_v31  ;;  %v3697_v24 = vmul.f32 %v7867_v19, %v3696_v56 }
 0x536   :  { %v3134_v54 = vpop.permute.xlu0 %3133  ;;  %v7836_v39 = vadd.f32 %v3063_v13, %v3059_v14  ;;  %v3744_v13 = vstv %s7863_s22  ;;  %s8158_s22 = sld [smem:[#allocation15 + $0x42]] }
 0x537   :  { %v3138_v61 = vadd.f32 %v3134_v54, %v3124_v36  ;;  %v7840_v7 = vpop.permute.xlu1 %3073  ;;  %v3746_v10 = vmul.f32 %v7881_v63, %v3744_v13 }
 0x538   :  { %3659 = vrot.lane.b32.xlu0 %v3654_v62, %s5731_s16 }
 0x539   :  { %v3144_v25 = vadd.f32 %v3142_v29, %v3138_v61  ;;  %3603 = vrot.lane.b32.xlu1 %v3599_v59, %s5732_s7  ;;  %v2788_v59 = vadd.f32 %v7618_v1, %v7520_v57  ;;  %v2804_v1 = vstv %s7890_s9  ;;  %s8180_s9 = sld [smem:[#allocation15 + $0x45]] }
 0x53a   :  { %v3154_v20 = vpop.permute.xlu0 %3153 }
 0x53b   :  { %v7850_v44 = vpop.permute.xlu1 %3087  ;;  %v3158_v15 = vadd.f32 %v3154_v20, %v3144_v25  ;;  %v3175_v20 = vmul.f32 %v3174_v12, %v7395_v43  ;;  %v2802_v57 = vadd.f32 %v7635_v4, %v2788_v59  ;;  %v3778_v12 = vstv %s7896_s3  ;;  %v8003_v59 = vld [vmem:[#allocation2 + $0x2] sm:$0x1]  ;;  %s8209_s3 = sld [smem:[#allocation16 + $0x5]] }
 0x53c   :  { %3673 = vrot.lane.b32.xlu0 %v3668_v47, %s5732_s7  ;;  %v3764_v47 = vstv %s7878_s24  ;;  %s8161_s24 = sld [smem:[#allocation18 + $0xe]] }
 0x53d   :  { %3623 = vrot.lane.b32.xlu1 %v3619_v23, %s5731_s16 }
 0x53e   :  { %v3168_v26 = vpop.permute.xlu0 %3167 }
 0x53f   :  { %v3172_v3 = vadd.f32 %v3168_v26, %v3158_v15  ;;  %v3118_v33 = vpop.permute.xlu1 %3117  ;;  %v7919_v15 = vld [vmem:[#allocation2 + $0x6] sm:$0x1] }
 0x540   :  { %3703 = vrot.lane.b32.xlu0 %v3698_v0, %s5731_s16  ;;  %v3123_v21 = vadd.f32 %v3118_v33, %v3107_v42  ;;  %v3766_v56 = vmul.f32 %v7919_v15, %v3764_v47  ;;  %v3711_v0 = vmul.f32 %v7867_v19, %v3710_v50  ;;  %v3780_v4 = vmul.f32 %v7919_v15, %v3778_v12 }
 0x541   :  { %v3178_v11 = vadd.f32 %v3176_v58, %v3172_v3  ;;  %3637 = vrot.lane.b32.xlu1 %v3633_v9, %s5732_s7  ;;  %v3252_v3 = vstv %s7904_s4  ;;  %v3286_v33 = vstv %s7906_s6  ;;  %v2806_v9 = vadd.f32 %v2804_v1, %v2802_v57  ;;  %s8215_s4 = sld [smem:[#allocation15 + $0x48]] }
 0x542   :  { %v3188_v55 = vpop.permute.xlu0 %3187  ;;  %v3320_v57 = vstv %s7958_s30  ;;  %s8218_s6 = sld [smem:[#allocation18 + $0x10]]  ;;  %s8256_s30 = sld [smem:[#allocation16 + $0x6]] }
 0x543   :  { %v3132_v49 = vpop.permute.xlu1 %3131  ;;  %v3192_v46 = vadd.f32 %v3188_v55, %v3178_v11  ;;  %v3254_v11 = vmul.f32 %v7858_v60, %v3252_v3  ;;  %v3798_v55 = vstv %s7908_s5  ;;  %vm2808_vm0 = vcmp.gt.f32.partialorder %v2806_v9, 0.0  ;;  %s8221_s5 = sld [smem:[#allocation15 + $0x4b]] }
 0x544   :  { %3717 = vrot.lane.b32.xlu0 %v3712_v28, %s5732_s7  ;;  %v3137_v38 = vadd.f32 %v3132_v49, %v3123_v21  ;;  %v7948_v28 = vld [vmem:[#allocation2 + $0x1] sm:$0x1]  ;;  %v2934_v49 = vadd.f32 %v7711_v35, %v7706_v45  ;;  %v3288_v45 = vmul.f32 %v7881_v63, %v3286_v33  ;;  %v3812_v35 = vstv %s7924_s27  ;;  %s8226_s27 = sld [smem:[#allocation18 + $0x11]] }
 0x545   :  { %3657 = vrot.lane.b32.xlu1 %v3653_v17, %s5731_s16  ;;  %v3731_v21 = vmul.f32 %v7948_v28, %v3730_v31 }
 0x546   :  { %v3202_v32 = vpop.permute.xlu0 %3201  ;;  %v3143_v14 = vadd.f32 %v3141_v48, %v3137_v38  ;;  %v3209_v38 = vmul.f32 %v3208_v8, %v7421_v27 }
 0x547   :  { %v3206_v36 = vadd.f32 %v3202_v32, %v3192_v46  ;;  %v3152_v53 = vpop.permute.xlu1 %3151  ;;  %v7961_v32 = vld [vmem:[#allocation2 + $0x7] sm:$0x1] }
 0x548   :  { %3737 = vrot.lane.b32.xlu0 %v3732_v6, %s5731_s16  ;;  %v3157_v61 = vadd.f32 %v3152_v53, %v3143_v14  ;;  %v3800_v31 = vmul.f32 %v7961_v32, %v3798_v55  ;;  %v2810_v6 = vmul.f32 0.01, %v2806_v9  ;;  %v2950_v14 = vstv %s7928_s28  ;;  %s8238_s28 = sld [smem:[#allocation15 + $0x4e]] }
 0x549   :  { %v7894_v54 = vadd.f32 %v3210_v51, %v3206_v36  ;;  %3671 = vrot.lane.b32.xlu1 %v3667_v2, %s5732_s7  ;;  %v2948_v36 = vadd.f32 %v7725_v34, %v2934_v49  ;;  %v3745_v53 = vmul.f32 %v7948_v28, %v3744_v13  ;;  %v2787_v2 = vadd.f32 %v7665_v52, %v7660_v41 }
 0x54a   :  { %v7899_v62 = vpop.permute.xlu0 %3221  ;;  %v3354_v49 = vstv %s7992_s2  ;;  %s8269_s2 = sld [smem:[#allocation18 + $0x14]] }
 0x54b   :  { %v3166_v29 = vpop.permute.xlu1 %3165  ;;  %v2952_v13 = vadd.f32 %v2950_v14, %v2948_v36  ;;  %v2801_v41 = vadd.f32 %v7675_v40, %v2787_v2 }
 0x54c   :  { %3751 = vrot.lane.b32.xlu0 %v3746_v10, %s5732_s7  ;;  %v3171_v25 = vadd.f32 %v3166_v29, %v3157_v61  ;;  %v3814_v61 = vmul.f32 %v7961_v32, %v3812_v35  ;;  %v7994_v29 = vsel %vm2808_vm0, %v2806_v9, %v2810_v6  ;;  %v3287_v6 = vmul.f32 %v7948_v28, %v3286_v33 }
 0x54d   :  { %3701 = vrot.lane.b32.xlu1 %v3697_v24, %s5731_s16  ;;  %v3842_v24 = vstv %s7945_s29  ;;  %vm2954_vm1 = vcmp.gt.f32.partialorder %v2952_v13, 0.0  ;;  %v3356_v33 = vmul.f32 %v7961_v32, %v3354_v49  ;;  %s8245_s29 = sld [smem:[#allocation15 + $0x51]] }
 0x54e   :  { %v7917_v23 = vpop.permute.xlu0 %3235  ;;  %v3177_v43 = vadd.f32 %v3175_v20, %v3171_v25  ;;  %v3765_v25 = vmul.f32 %v8003_v59, %v3764_v47  ;;  %v3080_v20 = vadd.f32 %v7799_v5, %v7794_v37  ;;  %v2956_v47 = vmul.f32 0.01, %v2952_v13 }
 0x54f   :  { %v3186_v26 = vpop.permute.xlu1 %3185 }
 0x550   :  { %3771 = vrot.lane.b32.xlu0 %v3766_v56, %s5731_s16  ;;  %v3191_v42 = vadd.f32 %v3186_v26, %v3177_v43  ;;  %v3844_v43 = vmul.f32 %v3842_v24, %v7994_v29  ;;  %v3322_v26 = vmul.f32 %v7919_v15, %v3320_v57  ;;  %v3094_v37 = vadd.f32 %v7813_v18, %v3080_v20 }
 0x551   :  { %3715 = vrot.lane.b32.xlu1 %v3711_v0, %s5732_s7  ;;  %v3856_v0 = vstv %s7973_s8  ;;  %s8260_s8 = sld [smem:[#allocation15 + $0x54]] }
 0x552   :  { %v3266_v58 = vpop.permute.xlu0 %3265 }
 0x553   :  { %v3200_v50 = vpop.permute.xlu1 %3199  ;;  %v3270_v17 = vadd.f32 %v3266_v58, %v3254_v11  ;;  %v2805_v58 = vadd.f32 %v2804_v1, %v2801_v41  ;;  %v3253_v11 = vmul.f32 %v7867_v19, %v3252_v3 }
 0x554   :  { %3785 = vrot.lane.b32.xlu0 %v3780_v4, %s5732_s7  ;;  %v3205_v46 = vadd.f32 %v3200_v50, %v3191_v42  ;;  %v3096_v4 = vstv %s7976_s15  ;;  %v3779_v42 = vmul.f32 %v8003_v59, %v3778_v12  ;;  %v3858_v50 = vmul.f32 %v3856_v0, %v7994_v29  ;;  %s8263_s15 = sld [smem:[#allocation18 + $0x13]] }
 0x555   :  { %3735 = vrot.lane.b32.xlu1 %v3731_v21, %s5731_s16  ;;  %v3876_v21 = vstv %s7990_s0  ;;  %v2933_v12 = vadd.f32 %v7753_v30, %v7748_v22  ;;  %v3098_v3 = vadd.f32 %v3096_v4, %v3094_v37  ;;  %v3226_v30 = vadd.f32 %v7899_v62, %v7894_v54  ;;  %s8265_s0 = sld [smem:[#allocation15 + $0x57]] }
 0x556   :  { %v3280_v48 = vpop.permute.xlu0 %3279  ;;  %v7971_v8 = vadd.f32 %v3209_v38, %v3205_v46  ;;  %v2809_v38 = vmul.f32 0.01, %v2805_v58  ;;  %vm2807_vm2 = vcmp.gt.f32.partialorder %v2805_v58, 0.0 }
 0x557   :  { %v3284_v27 = vadd.f32 %v3280_v48, %v3270_v17  ;;  %v7978_v51 = vpop.permute.xlu1 %3219  ;;  %v8042_v17 = vsel %vm2954_vm1, %v2952_v13, %v2956_v47  ;;  %v2947_v22 = vadd.f32 %v7763_v16, %v2933_v12  ;;  %v3102_v16 = vmul.f32 0.01, %v3098_v3 }
 0x558   :  { %3805 = vrot.lane.b32.xlu0 %v3800_v31, %s5731_s16  ;;  %v8049_v31 = vld [vmem:[#allocation2 + $0x3] sm:$0x1]  ;;  %v3240_v2 = vadd.f32 %v7917_v23, %v3226_v30  ;;  %vm3100_vm3 = vcmp.gt.f32.partialorder %v3098_v3, 0.0  ;;  %v8079_v41 = vsel %vm2807_vm2, %v2805_v58, %v2809_v38  ;;  %v3398_v38 = vstv %s8083_s25  ;;  %s8306_s25 = sld [smem:[#allocation18 + $0x3]] }
 0x559   :  { %v3290_v34 = vadd.f32 %v3288_v45, %v3284_v27  ;;  %3749 = vrot.lane.b32.xlu1 %v3745_v53, %s5732_s7  ;;  %v3799_v45 = vmul.f32 %v8049_v31, %v3798_v55  ;;  %v3878_v55 = vmul.f32 %v3876_v21, %v8042_v17  ;;  %v3813_v13 = vmul.f32 %v8049_v31, %v3812_v35 }
 0x55a   :  { %v3300_v10 = vpop.permute.xlu0 %3299  ;;  %v2951_v23 = vadd.f32 %v2950_v14, %v2947_v22  ;;  %v8095_v35 = vsel %vm3100_vm3, %v3098_v3, %v3102_v16  ;;  %v3079_v14 = vadd.f32 %v7840_v7, %v7836_v39  ;;  %v3843_v37 = vmul.f32 %v3842_v24, %v8079_v41 }
 0x55b   :  { %v8000_v52 = vpop.permute.xlu1 %3233  ;;  %v3304_v56 = vadd.f32 %v3300_v10, %v3290_v34  ;;  %v3890_v34 = vstv %s8018_s12  ;;  %v3242_v10 = vstv %s8025_s17  ;;  %v3857_v12 = vmul.f32 %v3856_v0, %v8079_v41  ;;  %s8279_s12 = sld [smem:[#allocation15 + $0x5a]]  ;;  %s8286_s17 = sld [smem:[#allocation15 + $0x5d]] }
 0x55c   :  { %3819 = vrot.lane.b32.xlu0 %v3814_v61, %s5732_s7  ;;  %v2955_v58 = vmul.f32 0.01, %v2951_v23  ;;  %vm2953_vm4 = vcmp.gt.f32.partialorder %v2951_v23, 0.0  ;;  %v3944_v22 = vstv %s8090_s14  ;;  %v3432_v30 = vstv %s8092_s1  ;;  %s8311_s14 = sld [smem:[#allocation18 + $0x17]]  ;;  %s8315_s1 = sld [smem:[#allocation18 + $0x19]] }
 0x55d   :  { %3769 = vrot.lane.b32.xlu1 %v3765_v25, %s5731_s16  ;;  %v3225_v0 = vadd.f32 %v7978_v51, %v7971_v8 }
 0x55e   :  { %v3314_v40 = vpop.permute.xlu0 %3313  ;;  %v8121_v3 = vsel %vm2953_vm4, %v2951_v23, %v2955_v58 }
 0x55f   :  { %v3318_v5 = vadd.f32 %v3314_v40, %v3304_v56  ;;  %v3264_v9 = vpop.permute.xlu1 %3263  ;;  %v3892_v56 = vmul.f32 %v3890_v34, %v8042_v17  ;;  %v3910_v40 = vstv %s8040_s18  ;;  %s8297_s18 = sld [smem:[#allocation16 + $0x7]] }
 0x560   :  { %3849 = vrot.lane.b32.xlu0 %v3844_v43, %s5731_s16  ;;  %v3269_v46 = vadd.f32 %v3264_v9, %v3253_v11  ;;  %v3244_v43 = vadd.f32 %v3242_v10, %v3240_v2  ;;  %v3093_v9 = vadd.f32 %v7850_v44, %v3079_v14  ;;  %v3912_v24 = vmul.f32 %v3910_v40, %v8095_v35 }
 0x561   :  { %v3324_v18 = vadd.f32 %v3322_v26, %v3318_v5  ;;  %3783 = vrot.lane.b32.xlu1 %v3779_v42, %s5732_s7  ;;  %v3321_v5 = vmul.f32 %v8003_v59, %v3320_v57  ;;  %v3924_v44 = vstv %s8069_s19  ;;  %v3239_v2 = vadd.f32 %v8000_v52, %v3225_v0  ;;  %s8300_s19 = sld [smem:[#allocation18]] }
 0x562   :  { %v3334_v1 = vpop.permute.xlu0 %3333  ;;  %v3248_v11 = vmul.f32 0.01, %v3244_v43  ;;  %vm3246_vm5 = vcmp.gt.f32.partialorder %v3244_v43, 0.0 }
 0x563   :  { %v3278_v48 = vpop.permute.xlu1 %3277  ;;  %v3338_v36 = vadd.f32 %v3334_v1, %v3324_v18  ;;  %v3388_v1 = vstv %s8076_s23  ;;  %s8304_s23 = sld [smem:[#allocation18 + $0x16]] }
 0x564   :  { %3863 = vrot.lane.b32.xlu0 %v3858_v50, %s5732_s7  ;;  %v3283_v27 = vadd.f32 %v3278_v48, %v3269_v46  ;;  %v3097_v46 = vadd.f32 %v3096_v4, %v3093_v9  ;;  %v3400_v48 = vmul.f32 %v7858_v60, %v3398_v38 }
 0x565   :  { %3803 = vrot.lane.b32.xlu1 %v3799_v45, %s5731_s16 }
 0x566   :  { %v3348_v53 = vpop.permute.xlu0 %3347  ;;  %v3289_v62 = vadd.f32 %v3287_v6, %v3283_v27  ;;  %v3926_v6 = vmul.f32 %v3924_v44, %v8095_v35  ;;  %v3101_v16 = vmul.f32 0.01, %v3097_v46  ;;  %vm3099_vm6 = vcmp.gt.f32.partialorder %v3097_v46, 0.0 }
 0x567   :  { %v3352_v54 = vadd.f32 %v3348_v53, %v3338_v36  ;;  %v3298_v61 = vpop.permute.xlu1 %3297  ;;  %v8135_v36 = vsel %vm3246_vm5, %v3244_v43, %v3248_v11 }
 0x568   :  { %3883 = vrot.lane.b32.xlu0 %v3878_v55, %s5731_s16  ;;  %v3303_v26 = vadd.f32 %v3298_v61, %v3289_v62  ;;  %v3877_v55 = vmul.f32 %v3876_v21, %v8121_v3  ;;  %v3946_v62 = vmul.f32 %v3944_v22, %v8135_v36  ;;  %v3434_v21 = vmul.f32 %v7881_v63, %v3432_v30 }
 0x569   :  { %v3358_v25 = vadd.f32 %v3356_v33, %v3352_v54  ;;  %3817 = vrot.lane.b32.xlu1 %v3813_v13, %s5732_s7  ;;  %v3355_v33 = vmul.f32 %v8049_v31, %v3354_v49  ;;  %v3958_v13 = vstv %s8114_s26  ;;  %s8318_s26 = sld [smem:[#allocation18 + $0x6]] }
 0x56a   :  { %v3368_v20 = vpop.permute.xlu0 %3367 }
 0x56b   :  { %v3312_v47 = vpop.permute.xlu1 %3311  ;;  %v3372_v42 = vadd.f32 %v3368_v20, %v3358_v25  ;;  %v3891_v25 = vmul.f32 %v3890_v34, %v8121_v3  ;;  %v8167_v20 = vsel %vm3099_vm6, %v3097_v46, %v3101_v16 }
 0x56c   :  { %3897 = vrot.lane.b32.xlu0 %v3892_v56, %s5732_s7  ;;  %v3317_v39 = vadd.f32 %v3312_v47, %v3303_v26  ;;  %v3243_v56 = vadd.f32 %v3242_v10, %v3239_v2  ;;  %v3960_v26 = vmul.f32 %v3958_v13, %v8135_v36  ;;  %v3911_v34 = vmul.f32 %v3910_v40, %v8167_v20 }
 0x56d   :  { %3847 = vrot.lane.b32.xlu1 %v3843_v37, %s5731_s16  ;;  %v3992_v40 = vstv %s8161_s24  ;;  %s8335_s24 = sld [smem:[#allocation18 + $0x9]] }
 0x56e   :  { %v3382_v7 = vpop.permute.xlu0 %3381  ;;  %v3323_v57 = vadd.f32 %v3321_v5, %v3317_v39  ;;  %v3978_v5 = vstv %s8141_s13  ;;  %v3247_v10 = vmul.f32 0.01, %v3243_v56  ;;  %vm3245_vm8 = vcmp.gt.f32.partialorder %v3243_v56, 0.0  ;;  %s8326_s13 = sld [smem:[#allocation18 + $0x1a]] }
 0x56f   :  { %v3386_v18 = vadd.f32 %v3382_v7, %v3372_v42  ;;  %v3332_v50 = vpop.permute.xlu1 %3331 }
 0x570   :  { %3917 = vrot.lane.b32.xlu0 %v3912_v24, %s5731_s16  ;;  %v3337_v27 = vadd.f32 %v3332_v50, %v3323_v57  ;;  %v3466_v24 = vstv %s8158_s22  ;;  %v3925_v50 = vmul.f32 %v3924_v44, %v8167_v20  ;;  %s8331_s22 = sld [smem:[#allocation18 + $0x1c]] }
 0x571   :  { %3861 = vrot.lane.b32.xlu1 %v3857_v12, %s5732_s7  ;;  %v3390_v4 = vadd.f32 %v3388_v1, %v3386_v18  ;;  %v3468_v18 = vmul.f32 %v7919_v15, %v3466_v24  ;;  %v8191_v12 = vsel %vm3245_vm8, %v3243_v56, %v3247_v10  ;;  %v3534_v56 = vstv %s8209_s3  ;;  %s8348_s3 = sld [smem:[#allocation18 + $0x1f]] }
 0x572   :  { %v3412_v45 = vpop.permute.xlu0 %3411  ;;  %v3945_v44 = vmul.f32 %v3944_v22, %v8191_v12  ;;  %v3959_v22 = vmul.f32 %v3958_v13, %v8191_v12  ;;  %v3467_v13 = vmul.f32 %v8003_v59, %v3466_v24 }
 0x573   :  { %v3346_v53 = vpop.permute.xlu1 %3345  ;;  %v3416_v8 = vadd.f32 %v3412_v45, %v3400_v48  ;;  %v3394_v49 = vmul.f32 0.01, %v3390_v4  ;;  %vm3392_vm7 = vcmp.gt.f32.partialorder %v3390_v4, 0.0  ;;  %v3399_v48 = vmul.f32 %v7867_v19, %v3398_v38 }
 0x574   :  { %3931 = vrot.lane.b32.xlu0 %v3926_v6, %s5732_s7  ;;  %v3351_v51 = vadd.f32 %v3346_v53, %v3337_v27  ;;  %v3500_v53 = vstv %s8180_s9  ;;  %v3433_v38 = vmul.f32 %v7948_v28, %v3432_v30  ;;  %s8340_s9 = sld [smem:[#allocation18 + $0x1d]] }
 0x575   :  { %3881 = vrot.lane.b32.xlu1 %v3877_v55, %s5731_s16  ;;  %v8173_v47 = vsel %vm3392_vm7, %v3390_v4, %v3394_v49 }
 0x576   :  { %v3426_v54 = vpop.permute.xlu0 %3425  ;;  %v3357_v52 = vadd.f32 %v3355_v33, %v3351_v51  ;;  %v3980_v7 = vmul.f32 %v3978_v5, %v8173_v47  ;;  %v3994_v0 = vmul.f32 %v3992_v40, %v8173_v47  ;;  %v3502_v51 = vmul.f32 %v7961_v32, %v3500_v53 }
 0x577   :  { %v3430_v61 = vadd.f32 %v3426_v54, %v3416_v8  ;;  %v3366_v23 = vpop.permute.xlu1 %3365 }
 0x578   :  { %3951 = vrot.lane.b32.xlu0 %v3946_v62, %s5731_s16  ;;  %v3371_v37 = vadd.f32 %v3366_v23, %v3357_v52 }
 0x579   :  { %v3436_v14 = vadd.f32 %v3434_v21, %v3430_v61  ;;  %3895 = vrot.lane.b32.xlu1 %v3891_v25, %s5732_s7 }
 0x57a   :  { %v3446_v43 = vpop.permute.xlu0 %3445 }
 0x57b   :  { %v3380_v58 = vpop.permute.xlu1 %3379  ;;  %v3450_v9 = vadd.f32 %v3446_v43, %v3436_v14 }
 0x57c   :  { %3965 = vrot.lane.b32.xlu0 %v3960_v26, %s5732_s7  ;;  %v3385_v42 = vadd.f32 %v3380_v58, %v3371_v37 }
 0x57d   :  { %3915 = vrot.lane.b32.xlu1 %v3911_v34, %s5731_s16  ;;  %v3544_v34 = vstv %s8215_s4  ;;  %s8353_s4 = sld [smem:[#allocation18 + $0xc]] }
 0x57e   :  { %v3460_v39 = vpop.permute.xlu0 %3459  ;;  %v3389_v46 = vadd.f32 %v3388_v1, %v3385_v42  ;;  %v3546_v10 = vmul.f32 %v7858_v60, %v3544_v34 }
 0x57f   :  { %v3464_v11 = vadd.f32 %v3460_v39, %v3450_v9  ;;  %v3410_v57 = vpop.permute.xlu1 %3409 }
 0x580   :  { %3985 = vrot.lane.b32.xlu0 %v3980_v7, %s5731_s16  ;;  %v3415_v4 = vadd.f32 %v3410_v57, %v3399_v48  ;;  %v3393_v55 = vmul.f32 0.01, %v3389_v46  ;;  %vm3391_vm9 = vcmp.gt.f32.partialorder %v3389_v46, 0.0  ;;  %v4012_v7 = vstv %s8218_s6  ;;  %s8360_s6 = sld [smem:[#allocation18 + $0x20]] }
 0x581   :  { %v3470_v45 = vadd.f32 %v3468_v18, %v3464_v11  ;;  %3929 = vrot.lane.b32.xlu1 %v3925_v50, %s5732_s7  ;;  %v3578_v11 = vstv %s8221_s5  ;;  %s8367_s5 = sld [smem:[#allocation18 + $0x22]] }
 0x582   :  { %v3480_v6 = vpop.permute.xlu0 %3479  ;;  %v8213_v62 = vsel %vm3391_vm9, %v3389_v46, %v3393_v55 }
 0x583   :  { %v3424_v27 = vpop.permute.xlu1 %3423  ;;  %v3484_v33 = vadd.f32 %v3480_v6, %v3470_v45  ;;  %v3979_v52 = vmul.f32 %v3978_v5, %v8213_v62  ;;  %v3993_v58 = vmul.f32 %v3992_v40, %v8213_v62  ;;  %v3501_v40 = vmul.f32 %v8049_v31, %v3500_v53 }
 0x584   :  { %3999 = vrot.lane.b32.xlu0 %v3994_v0, %s5732_s7  ;;  %v3429_v1 = vadd.f32 %v3424_v27, %v3415_v4  ;;  %v3580_v0 = vmul.f32 %v7881_v63, %v3578_v11  ;;  %v4026_v4 = vstv %s8226_s27  ;;  %s8372_s27 = sld [smem:[#allocation18 + $0xf]] }
 0x585   :  { %3949 = vrot.lane.b32.xlu1 %v3945_v44, %s5731_s16 }
 0x586   :  { %v3494_v16 = vpop.permute.xlu0 %3493  ;;  %v3435_v8 = vadd.f32 %v3433_v38, %v3429_v1 }
 0x587   :  { %v3498_v2 = vadd.f32 %v3494_v16, %v3484_v33  ;;  %v3444_v54 = vpop.permute.xlu1 %3443 }
 0x588   :  { %v3449_v49 = vadd.f32 %v3444_v54, %v3435_v8  ;;  %v3612_v8 = vstv %s8238_s28  ;;  %s8379_s28 = sld [smem:[#allocation18 + $0x23]] }
 0x589   :  { %v3504_v21 = vadd.f32 %v3502_v51, %v3498_v2  ;;  %3963 = vrot.lane.b32.xlu1 %v3959_v22, %s5732_s7  ;;  %v3614_v22 = vmul.f32 %v7919_v15, %v3612_v8 }
 0x58a   :  { %v3514_v30 = vpop.permute.xlu0 %3513 }
 0x58b   :  { %v3458_v61 = vpop.permute.xlu1 %3457  ;;  %v3518_v23 = vadd.f32 %v3514_v30, %v3504_v21 }
 0x58c   :  { %v3463_v25 = vadd.f32 %v3458_v61, %v3449_v49  ;;  %v3545_v49 = vmul.f32 %v7867_v19, %v3544_v34 }
 0x58d   :  { %3983 = vrot.lane.b32.xlu1 %v3979_v52, %s5731_s16 }
 0x58e   :  { %v3528_v14 = vpop.permute.xlu0 %3527  ;;  %v3469_v26 = vadd.f32 %v3467_v13, %v3463_v25 }
 0x58f   :  { %v3532_v43 = vadd.f32 %v3528_v14, %v3518_v23  ;;  %v3478_v37 = vpop.permute.xlu1 %3477 }
 0x590   :  { %v3483_v39 = vadd.f32 %v3478_v37, %v3469_v26 }
 0x591   :  { %v3536_v5 = vadd.f32 %v3534_v56, %v3532_v43  ;;  %3997 = vrot.lane.b32.xlu1 %v3993_v58, %s5732_s7  ;;  %v3646_v43 = vstv %s8245_s29  ;;  %s8386_s29 = sld [smem:[#allocation18 + $0x25]] }
 0x592   :  { %v3558_v9 = vpop.permute.xlu0 %3557 }
 0x593   :  { %vm3538_vm10 = vcmp.gt.f32.partialorder %v3536_v5, 0.0  ;;  %v3540_v42 = vmul.f32 0.01, %v3536_v5  ;;  %v3492_v24 = vpop.permute.xlu1 %3491  ;;  %v3562_v57 = vadd.f32 %v3558_v9, %v3546_v10  ;;  %v3648_v10 = vmul.f32 %v7961_v32, %v3646_v43 }
 0x594   :  { %v3497_v50 = vadd.f32 %v3492_v24, %v3483_v39 }
 0x595   :  { %v8234_v18 = vsel %vm3538_vm10, %v3536_v5, %v3540_v42 }
 0x596   :  { %v3572_v46 = vpop.permute.xlu0 %3571  ;;  %v4014_v48 = vmul.f32 %v4012_v7, %v8234_v18  ;;  %v3503_v6 = vadd.f32 %v3501_v40, %v3497_v50  ;;  %v4028_v33 = vmul.f32 %v4026_v4, %v8234_v18  ;;  %v3613_v40 = vmul.f32 %v8003_v59, %v3612_v8 }
 0x597   :  { %v3576_v45 = vadd.f32 %v3572_v46, %v3562_v57  ;;  %v3512_v27 = vpop.permute.xlu1 %3511  ;;  %v3680_v46 = vstv %s8256_s30  ;;  %s8395_s30 = sld [smem:[#allocation18 + $0x26]] }
 0x598   :  { %4019 = vrot.lane.b32.xlu0 %v4014_v48, %s5731_s16  ;;  %v3517_v1 = vadd.f32 %v3512_v27, %v3503_v6  ;;  %v3690_v27 = vstv %s8260_s8  ;;  %s8403_s8 = sld [smem:[#allocation18 + $0x28]] }
 0x599   :  { %v3582_v44 = vadd.f32 %v3580_v0, %v3576_v45 }
 0x59a   :  { %v3592_v55 = vpop.permute.xlu0 %3591 }
 0x59b   :  { %v3526_v53 = vpop.permute.xlu1 %3525  ;;  %v3596_v38 = vadd.f32 %v3592_v55, %v3582_v44  ;;  %v3692_v44 = vmul.f32 %v7858_v60, %v3690_v27 }
 0x59c   :  { %4033 = vrot.lane.b32.xlu0 %v4028_v33, %s5732_s7  ;;  %v3531_v16 = vadd.f32 %v3526_v53, %v3517_v1  ;;  %v4046_v53 = vstv %s8263_s15  ;;  %s8411_s15 = sld [smem:[#allocation18 + $0x29]] }
 0x59e   :  { %v3606_v2 = vpop.permute.xlu0 %3605  ;;  %v3535_v51 = vadd.f32 %v3534_v56, %v3531_v16  ;;  %v3579_v56 = vmul.f32 %v7948_v28, %v3578_v11  ;;  %v3724_v16 = vstv %s8265_s0  ;;  %s8418_s0 = sld [smem:[#allocation18 + $0x2b]] }
 0x59f   :  { %v3610_v54 = vadd.f32 %v3606_v2, %v3596_v38  ;;  %v3556_v21 = vpop.permute.xlu1 %3555 }
 0x5a0   :  { %vm3537_vm11 = vcmp.gt.f32.partialorder %v3535_v51, 0.0  ;;  %v3539_v30 = vmul.f32 0.01, %v3535_v51  ;;  %v3561_v25 = vadd.f32 %v3556_v21, %v3545_v49  ;;  %v3726_v49 = vmul.f32 %v7881_v63, %v3724_v16 }
 0x5a1   :  { %v3616_v61 = vadd.f32 %v3614_v22, %v3610_v54  ;;  %v3647_v54 = vmul.f32 %v8049_v31, %v3646_v43 }
 0x5a2   :  { %v3626_v52 = vpop.permute.xlu0 %3625  ;;  %v8250_v23 = vsel %vm3537_vm11, %v3535_v51, %v3539_v30 }
 0x5a3   :  { %v3570_v13 = vpop.permute.xlu1 %3569  ;;  %v4013_v14 = vmul.f32 %v4012_v7, %v8250_v23  ;;  %v3630_v26 = vadd.f32 %v3626_v52, %v3616_v61  ;;  %v4027_v42 = vmul.f32 %v4026_v4, %v8250_v23  ;;  %v4060_v61 = vstv %s8269_s2  ;;  %s8422_s2 = sld [smem:[#allocation18 + $0x12]] }
 0x5a4   :  { %v3575_v37 = vadd.f32 %v3570_v13, %v3561_v25 }
 0x5a5   :  { %4017 = vrot.lane.b32.xlu1 %v4013_v14, %s5731_s16 }
 0x5a6   :  { %v3640_v58 = vpop.permute.xlu0 %3639  ;;  %v3581_v34 = vadd.f32 %v3579_v56, %v3575_v37 }
 0x5a7   :  { %v3644_v5 = vadd.f32 %v3640_v58, %v3630_v26  ;;  %v3590_v9 = vpop.permute.xlu1 %3589 }
 0x5a8   :  { %v3595_v24 = vadd.f32 %v3590_v9, %v3581_v34 }
 0x5a9   :  { %v3650_v39 = vadd.f32 %v3648_v10, %v3644_v5  ;;  %4031 = vrot.lane.b32.xlu1 %v4027_v42, %s5732_s7  ;;  %v3758_v5 = vstv %s8279_s12  ;;  %s8428_s12 = sld [smem:[#allocation18 + $0x2c]] }
 0x5aa   :  { %v3660_v7 = vpop.permute.xlu0 %3659  ;;  %v3760_v10 = vmul.f32 %v7919_v15, %v3758_v5 }
 0x5ab   :  { %v3604_v11 = vpop.permute.xlu1 %3603  ;;  %v3664_v57 = vadd.f32 %v3660_v7, %v3650_v39  ;;  %v3691_v39 = vmul.f32 %v7867_v19, %v3690_v27 }
 0x5ac   :  { %v3609_v50 = vadd.f32 %v3604_v11, %v3595_v24 }
 0x5ae   :  { %v3674_v48 = vpop.permute.xlu0 %3673  ;;  %v3615_v6 = vadd.f32 %v3613_v40, %v3609_v50 }
 0x5af   :  { %v3678_v45 = vadd.f32 %v3674_v48, %v3664_v57  ;;  %v3624_v0 = vpop.permute.xlu1 %3623  ;;  %v3792_v48 = vstv %s8286_s17  ;;  %s8435_s17 = sld [smem:[#allocation18 + $0x2e]] }
 0x5b0   :  { %v3629_v1 = vadd.f32 %v3624_v0, %v3615_v6 }
 0x5b1   :  { %v3682_v4 = vadd.f32 %v3680_v46, %v3678_v45 }
 0x5b2   :  { %v3704_v55 = vpop.permute.xlu0 %3703 }
 0x5b3   :  { %vm3684_vm0 = vcmp.gt.f32.partialorder %v3682_v4, 0.0  ;;  %v3686_v33 = vmul.f32 0.01, %v3682_v4  ;;  %v3638_v38 = vpop.permute.xlu1 %3637  ;;  %v3708_v8 = vadd.f32 %v3704_v55, %v3692_v44 }
 0x5b4   :  { %v3643_v51 = vadd.f32 %v3638_v38, %v3629_v1 }
 0x5b5   :  { %v8275_v2 = vsel %vm3684_vm0, %v3682_v4, %v3686_v33  ;;  %v3794_v4 = vmul.f32 %v7961_v32, %v3792_v48  ;;  %v3759_v32 = vmul.f32 %v8003_v59, %v3758_v5 }
 0x5b6   :  { %v3718_v22 = vpop.permute.xlu0 %3717  ;;  %v4048_v21 = vmul.f32 %v4046_v53, %v8275_v2  ;;  %v3649_v30 = vadd.f32 %v3647_v54, %v3643_v51  ;;  %v4062_v14 = vmul.f32 %v4060_v61, %v8275_v2 }
 0x5b7   :  { %v3722_v60 = vadd.f32 %v3718_v22, %v3708_v8  ;;  %v3658_v52 = vpop.permute.xlu1 %3657  ;;  %v3836_v22 = vstv %s8300_s19  ;;  %s8451_s19 = sld [smem:[#allocation18 + $0x31]] }
 0x5b8   :  { %4053 = vrot.lane.b32.xlu0 %v4048_v21, %s5731_s16  ;;  %v3663_v26 = vadd.f32 %v3658_v52, %v3649_v30  ;;  %v3838_v30 = vmul.f32 %v3836_v22, %v7994_v29 }
 0x5b9   :  { %v3728_v25 = vadd.f32 %v3726_v49, %v3722_v60 }
 0x5ba   :  { %v3738_v13 = vpop.permute.xlu0 %3737 }
 0x5bb   :  { %v3672_v43 = vpop.permute.xlu1 %3671  ;;  %v3742_v37 = vadd.f32 %v3738_v13, %v3728_v25  ;;  %v4080_v25 = vstv %s8304_s23  ;;  %v3870_v13 = vstv %s8306_s25  ;;  %s8460_s23 = sld [smem:[#allocation18 + $0x49]]  ;;  %s8465_s25 = sld [smem:[#allocation18 + $0x32]] }
 0x5bc   :  { %4067 = vrot.lane.b32.xlu0 %v4062_v14, %s5732_s7  ;;  %v3677_v56 = vadd.f32 %v3672_v43, %v3663_v26 }
 0x5be   :  { %v3752_v58 = vpop.permute.xlu0 %3751  ;;  %v3681_v63 = vadd.f32 %v3680_v46, %v3677_v56  ;;  %v3725_v46 = vmul.f32 %v7948_v28, %v3724_v16  ;;  %v3826_v16 = vstv %s8297_s18  ;;  %s8443_s18 = sld [smem:[#allocation18 + $0x2f]] }
 0x5bf   :  { %v3756_v34 = vadd.f32 %v3752_v58, %v3742_v37  ;;  %v3702_v9 = vpop.permute.xlu1 %3701  ;;  %v3793_v37 = vmul.f32 %v8049_v31, %v3792_v48 }
 0x5c0   :  { %vm3683_vm1 = vcmp.gt.f32.partialorder %v3681_v63, 0.0  ;;  %v3685_v42 = vmul.f32 0.01, %v3681_v63  ;;  %v3707_v57 = vadd.f32 %v3702_v9, %v3691_v39 }
 0x5c1   :  { %v3762_v7 = vadd.f32 %v3760_v10, %v3756_v34  ;;  %v3872_v34 = vmul.f32 %v3870_v13, %v8042_v17  ;;  %v4094_v10 = vstv %s8311_s14  ;;  %s8472_s14 = sld [smem:[#allocation18 + $0x4a]] }
 0x5c2   :  { %v3772_v24 = vpop.permute.xlu0 %3771  ;;  %v8291_v11 = vsel %vm3683_vm1, %v3681_v63, %v3685_v42 }
 0x5c3   :  { %v3716_v50 = vpop.permute.xlu1 %3715  ;;  %v4047_v40 = vmul.f32 %v4046_v53, %v8291_v11  ;;  %v3776_v45 = vadd.f32 %v3772_v24, %v3762_v7  ;;  %v4061_v44 = vmul.f32 %v4060_v61, %v8291_v11  ;;  %v4120_v24 = vstv %s8315_s1  ;;  %s8480_s1 = sld [smem:[#allocation18 + $0x34]] }
 0x5c4   :  { %v3721_v6 = vadd.f32 %v3716_v50, %v3707_v57  ;;  %v3904_v50 = vstv %s8318_s26  ;;  %s8484_s26 = sld [smem:[#allocation18 + $0x15]] }
 0x5c5   :  { %4051 = vrot.lane.b32.xlu1 %v4047_v40, %s5731_s16 }
 0x5c6   :  { %v3786_v15 = vpop.permute.xlu0 %3785  ;;  %v3727_v19 = vadd.f32 %v3725_v46, %v3721_v6  ;;  %v4122_v6 = vmul.f32 %v4120_v24, %v7994_v29 }
 0x5c7   :  { %v3790_v0 = vadd.f32 %v3786_v15, %v3776_v45  ;;  %v3736_v27 = vpop.permute.xlu1 %3735 }
 0x5c8   :  { %v3741_v33 = vadd.f32 %v3736_v27, %v3727_v19  ;;  %v4134_v19 = vstv %s8326_s13  ;;  %s8489_s13 = sld [smem:[#allocation18 + $0x4c]] }
 0x5c9   :  { %v3796_v55 = vadd.f32 %v3794_v4, %v3790_v0  ;;  %4065 = vrot.lane.b32.xlu1 %v4061_v44, %s5732_s7  ;;  %v3906_v0 = vmul.f32 %v3904_v50, %v8095_v35  ;;  %v3837_v44 = vmul.f32 %v3836_v22, %v8079_v41  ;;  %v3871_v22 = vmul.f32 %v3870_v13, %v8121_v3 }
 0x5ca   :  { %v3806_v28 = vpop.permute.xlu0 %3805 }
 0x5cb   :  { %v3750_v1 = vpop.permute.xlu1 %3749  ;;  %v3810_v53 = vadd.f32 %v3806_v28, %v3796_v55 }
 0x5cc   :  { %v3755_v38 = vadd.f32 %v3750_v1, %v3741_v33  ;;  %v4136_v33 = vmul.f32 %v4134_v19, %v7994_v29 }
 0x5ce   :  { %v3820_v8 = vpop.permute.xlu0 %3819  ;;  %v3761_v54 = vadd.f32 %v3759_v32, %v3755_v38  ;;  %v4154_v38 = vstv %s8331_s22  ;;  %s8496_s22 = sld [smem:[#allocation18 + $0x35]] }
 0x5cf   :  { %v3824_v51 = vadd.f32 %v3820_v8, %v3810_v53  ;;  %v3770_v21 = vpop.permute.xlu1 %3769  ;;  %v3938_v8 = vstv %s8335_s24  ;;  %s8504_s24 = sld [smem:[#allocation18 + $0x4d]] }
 0x5d0   :  { %v3775_v52 = vadd.f32 %v3770_v21, %v3761_v54 }
 0x5d1   :  { %v3828_v60 = vadd.f32 %v3826_v16, %v3824_v51 }
 0x5d2   :  { %v3850_v49 = vpop.permute.xlu0 %3849 }
 0x5d3   :  { %vm3830_vm2 = vcmp.gt.f32.partialorder %v3828_v60, 0.0  ;;  %v3832_v61 = vmul.f32 0.01, %v3828_v60  ;;  %v3784_v59 = vpop.permute.xlu1 %3783  ;;  %v3854_v26 = vadd.f32 %v3850_v49, %v3838_v30 }
 0x5d4   :  { %v3789_v43 = vadd.f32 %v3784_v59, %v3775_v52  ;;  %v4168_v52 = vstv %s8340_s9  ;;  %s8512_s9 = sld [smem:[#allocation18 + $0x37]] }
 0x5d5   :  { %v8320_v14 = vsel %vm3830_vm2, %v3828_v60, %v3832_v61  ;;  %v4156_v60 = vmul.f32 %v4154_v38, %v8042_v17  ;;  %v3940_v61 = vmul.f32 %v3938_v8, %v8135_v36 }
 0x5d6   :  { %v3864_v56 = vpop.permute.xlu0 %3863  ;;  %v4082_v58 = vmul.f32 %v4080_v25, %v8320_v14  ;;  %v3795_v63 = vadd.f32 %v3793_v37, %v3789_v43  ;;  %v4096_v7 = vmul.f32 %v4094_v10, %v8320_v14  ;;  %v4170_v43 = vmul.f32 %v4168_v52, %v8042_v17 }
 0x5d7   :  { %v3868_v5 = vadd.f32 %v3864_v56, %v3854_v26  ;;  %v3804_v9 = vpop.permute.xlu1 %3803  ;;  %v4188_v56 = vstv %s8348_s3  ;;  %s8519_s3 = sld [smem:[#allocation18 + $0x4f]] }
 0x5d8   :  { %4087 = vrot.lane.b32.xlu0 %v4082_v58, %s5731_s16  ;;  %v3809_v31 = vadd.f32 %v3804_v9, %v3795_v63  ;;  %v3972_v63 = vstv %s8353_s4  ;;  %v3905_v9 = vmul.f32 %v3904_v50, %v8167_v20  ;;  %s8526_s4 = sld [smem:[#allocation18 + $0x38]] }
 0x5d9   :  { %v3874_v42 = vadd.f32 %v3872_v34, %v3868_v5  ;;  %v4121_v5 = vmul.f32 %v4120_v24, %v8079_v41 }
 0x5da   :  { %v3884_v39 = vpop.permute.xlu0 %3883 }
 0x5db   :  { %v3818_v57 = vpop.permute.xlu1 %3817  ;;  %v3888_v40 = vadd.f32 %v3884_v39, %v3874_v42  ;;  %v4190_v39 = vmul.f32 %v4188_v56, %v8095_v35 }
 0x5dc   :  { %4101 = vrot.lane.b32.xlu0 %v4096_v7, %s5732_s7  ;;  %v3823_v48 = vadd.f32 %v3818_v57, %v3809_v31  ;;  %v3974_v57 = vmul.f32 %v3972_v63, %v8173_v47 }
 0x5de   :  { %v3898_v45 = vpop.permute.xlu0 %3897  ;;  %v3827_v46 = vadd.f32 %v3826_v16, %v3823_v48  ;;  %v4135_v48 = vmul.f32 %v4134_v19, %v8079_v41  ;;  %v3939_v19 = vmul.f32 %v3938_v8, %v8191_v12 }
 0x5df   :  { %v3902_v15 = vadd.f32 %v3898_v45, %v3888_v40  ;;  %v3848_v4 = vpop.permute.xlu1 %3847  ;;  %v4202_v40 = vstv %s8360_s6  ;;  %s8534_s6 = sld [smem:[#allocation18 + $0x50]] }
 0x5e0   :  { %4127 = vrot.lane.b32.xlu0 %v4122_v6, %s5731_s16  ;;  %vm3829_vm3 = vcmp.gt.f32.partialorder %v3827_v46, 0.0  ;;  %v3831_v27 = vmul.f32 0.01, %v3827_v46  ;;  %v3853_v53 = vadd.f32 %v3848_v4, %v3837_v44  ;;  %v4204_v6 = vmul.f32 %v4202_v40, %v8095_v35 }
 0x5e1   :  { %v3908_v55 = vadd.f32 %v3906_v0, %v3902_v15  ;;  %v4222_v15 = vstv %s8367_s5  ;;  %v4155_v4 = vmul.f32 %v4154_v38, %v8121_v3  ;;  %v4169_v38 = vmul.f32 %v4168_v52, %v8121_v3  ;;  %s8543_s5 = sld [smem:[#allocation18 + $0x3a]] }
 0x5e2   :  { %v3918_v28 = vpop.permute.xlu0 %3917  ;;  %v8345_v1 = vsel %vm3829_vm3, %v3827_v46, %v3831_v27  ;;  %v4006_v27 = vstv %s8372_s27  ;;  %s8549_s27 = sld [smem:[#allocation19]] }
 0x5e3   :  { %v3862_v32 = vpop.permute.xlu1 %3861  ;;  %v4081_v16 = vmul.f32 %v4080_v25, %v8345_v1  ;;  %v3922_v51 = vadd.f32 %v3918_v28, %v3908_v55  ;;  %v4095_v59 = vmul.f32 %v4094_v10, %v8345_v1 }
 0x5e4   :  { %4141 = vrot.lane.b32.xlu0 %v4136_v33, %s5732_s7  ;;  %v3867_v54 = vadd.f32 %v3862_v32, %v3853_v53  ;;  %v4224_v33 = vmul.f32 %v4222_v15, %v8135_v36 }
 0x5e5   :  { %4085 = vrot.lane.b32.xlu1 %v4081_v16, %s5731_s16  ;;  %v4236_v16 = vstv %s8379_s28  ;;  %s8552_s28 = sld [smem:[#allocation18 + $0x52]] }
 0x5e6   :  { %v3932_v21 = vpop.permute.xlu0 %3931  ;;  %v3873_v49 = vadd.f32 %v3871_v22, %v3867_v54  ;;  %v4238_v22 = vmul.f32 %v4236_v16, %v8135_v36 }
 0x5e7   :  { %v3936_v30 = vadd.f32 %v3932_v21, %v3922_v51  ;;  %v3882_v25 = vpop.permute.xlu1 %3881  ;;  %v4008_v51 = vmul.f32 %v4006_v27, %v8234_v18 }
 0x5e8   :  { %4161 = vrot.lane.b32.xlu0 %v4156_v60, %s5731_s16  ;;  %v3887_v37 = vadd.f32 %v3882_v25, %v3873_v49  ;;  %v4256_v60 = vstv %s8386_s29  ;;  %v4189_v49 = vmul.f32 %v4188_v56, %v8167_v20  ;;  %v3973_v25 = vmul.f32 %v3972_v63, %v8213_v62  ;;  %s8556_s29 = sld [smem:[#allocation18 + $0x18]] }
 0x5e9   :  { %v3942_v13 = vadd.f32 %v3940_v61, %v3936_v30  ;;  %4099 = vrot.lane.b32.xlu1 %v4095_v59, %s5732_s7  ;;  %v4258_v52 = vmul.f32 %v4256_v60, %v8173_v47  ;;  %v4223_v63 = vmul.f32 %v4222_v15, %v8191_v12  ;;  %v4338_v15 = vstv %s8428_s12  ;;  %s8591_s12 = sld [smem:[#allocation18 + $0x55]] }
 0x5ea   :  { %v3952_v26 = vpop.permute.xlu0 %3951 }
 0x5eb   :  { %v3896_v58 = vpop.permute.xlu1 %3895  ;;  %v3956_v34 = vadd.f32 %v3952_v26, %v3942_v13  ;;  %v4270_v13 = vstv %s8395_s30  ;;  %s8561_s30 = sld [smem:[#allocation18 + $0x3b]] }
 0x5ec   :  { %4175 = vrot.lane.b32.xlu0 %v4170_v43, %s5732_s7  ;;  %v3901_v10 = vadd.f32 %v3896_v58, %v3887_v37  ;;  %v4203_v43 = vmul.f32 %v4202_v40, %v8167_v20  ;;  %v4272_v37 = vmul.f32 %v4270_v13, %v8173_v47  ;;  %v4290_v58 = vstv %s8403_s8  ;;  %s8565_s8 = sld [smem:[#allocation18 + $0x1b]] }
 0x5ed   :  { %4125 = vrot.lane.b32.xlu1 %v4121_v5, %s5731_s16  ;;  %v4324_v40 = vstv %s8418_s0  ;;  %s8580_s0 = sld [smem:[#allocation18 + $0x3d]] }
 0x5ee   :  { %v3966_v42 = vpop.permute.xlu0 %3965  ;;  %v3907_v31 = vadd.f32 %v3905_v9, %v3901_v10  ;;  %v4007_v10 = vmul.f32 %v4006_v27, %v8250_v23  ;;  %v4292_v9 = vmul.f32 %v4290_v58, %v8234_v18 }
 0x5ef   :  { %v3970_v7 = vadd.f32 %v3966_v42, %v3956_v34  ;;  %v3916_v24 = vpop.permute.xlu1 %3915  ;;  %v4304_v42 = vstv %s8411_s15  ;;  %s8571_s15 = sld [smem:[#allocation18 + $0x53]] }
 0x5f0   :  { %4195 = vrot.lane.b32.xlu0 %v4190_v39, %s5731_s16  ;;  %v3921_v46 = vadd.f32 %v3916_v24, %v3907_v31  ;;  %v4257_v24 = vmul.f32 %v4256_v60, %v8213_v62 }
 0x5f1   :  { %v3976_v50 = vadd.f32 %v3974_v57, %v3970_v7  ;;  %4139 = vrot.lane.b32.xlu1 %v4135_v48, %s5732_s7  ;;  %v4237_v7 = vmul.f32 %v4236_v16, %v8191_v12  ;;  %v4306_v57 = vmul.f32 %v4304_v42, %v8234_v18  ;;  %v4040_v48 = vstv %s8422_s2  ;;  %s8585_s2 = sld [smem:[#allocation18 + $0x1e]] }
 0x5f2   :  { %v3986_v45 = vpop.permute.xlu0 %3985 }
 0x5f3   :  { %v3930_v0 = vpop.permute.xlu1 %3929  ;;  %v3990_v44 = vadd.f32 %v3986_v45, %v3976_v50 }
 0x5f4   :  { %4209 = vrot.lane.b32.xlu0 %v4204_v6, %s5732_s7  ;;  %v3935_v55 = vadd.f32 %v3930_v0, %v3921_v46  ;;  %v4326_v6 = vmul.f32 %v4324_v40, %v8275_v2  ;;  %v4042_v0 = vmul.f32 %v4040_v48, %v8275_v2 }
 0x5f5   :  { %4159 = vrot.lane.b32.xlu1 %v4155_v4, %s5731_s16  ;;  %v4271_v4 = vmul.f32 %v4270_v13, %v8213_v62 }
 0x5f6   :  { %v4000_v28 = vpop.permute.xlu0 %3999  ;;  %v3941_v32 = vadd.f32 %v3939_v19, %v3935_v55  ;;  %v4358_v55 = vstv %s8435_s17  ;;  %v4291_v19 = vmul.f32 %v4290_v58, %v8250_v23  ;;  %v4432_v58 = vstv %s8480_s1  ;;  %s8599_s17 = sld [smem:[#allocation18 + $0x3e]]  ;;  %s8647_s1 = sld [smem:[#allocation18 + $0x41]] }
 0x5f7   :  { %v4004_v53 = vadd.f32 %v4000_v28, %v3990_v44  ;;  %v3950_v54 = vpop.permute.xlu1 %3949  ;;  %v4340_v44 = vmul.f32 %v4338_v15, %v8275_v2  ;;  %v4360_v28 = vmul.f32 %v4358_v55, %v8320_v14 }
 0x5f8   :  { %4229 = vrot.lane.b32.xlu0 %v4224_v33, %s5731_s16  ;;  %v3955_v21 = vadd.f32 %v3950_v54, %v3941_v32  ;;  %v4372_v33 = vstv %s8443_s18  ;;  %v4305_v32 = vmul.f32 %v4304_v42, %v8250_v23  ;;  %v4398_v54 = vstv %s8451_s19  ;;  %s8604_s18 = sld [smem:[#allocation18 + $0x21]]  ;;  %s8617_s19 = sld [smem:[#allocation18 + $0x56]] }
 0x5f9   :  { %v4010_v8 = vadd.f32 %v4008_v51, %v4004_v53  ;;  %4173 = vrot.lane.b32.xlu1 %v4169_v38, %s5732_s7  ;;  %v4374_v16 = vmul.f32 %v4372_v33, %v8320_v14  ;;  %v4400_v60 = vmul.f32 %v4398_v54, %v7994_v29 }
 0x5fb   :  { %v3964_v30 = vpop.permute.xlu1 %3963 }
 0x5fc   :  { %4243 = vrot.lane.b32.xlu0 %v4238_v22, %s5732_s7  ;;  %v3969_v61 = vadd.f32 %v3964_v30, %v3955_v21  ;;  %v4041_v21 = vmul.f32 %v4040_v48, %v8291_v11 }
 0x5fd   :  { %4193 = vrot.lane.b32.xlu1 %v4189_v49, %s5731_s16  ;;  %v4339_v49 = vmul.f32 %v4338_v15, %v8291_v11 }
 0x5fe   :  { %v3975_v59 = vadd.f32 %v3973_v25, %v3969_v61  ;;  %v4676_v61 = vstv %s8460_s23  ;;  %s8628_s23 = sld [smem:[#allocation18 + $0x40]] }
 0x5ff   :  { %v3984_v26 = vpop.permute.xlu1 %3983  ;;  %v4677_v25 = vmul.f32 %v4676_v61, %v8079_v41  ;;  %v4678_v48 = vmul.f32 %v4676_v61, %v7994_v29 }
 0x600   :  { %4263 = vrot.lane.b32.xlu0 %v4258_v52, %s5731_s16  ;;  %v3989_v56 = vadd.f32 %v3984_v26, %v3975_v59  ;;  %v4412_v52 = vstv %s8465_s25  ;;  %v4359_v59 = vmul.f32 %v4358_v55, %v8345_v1  ;;  %v4690_v26 = vstv %s8472_s14  ;;  %s8633_s25 = sld [smem:[#allocation18 + $0x24]]  ;;  %s8640_s14 = sld [smem:[#allocation18 + $0x58]] }
 0x601   :  { %4207 = vrot.lane.b32.xlu1 %v4203_v43, %s5732_s7  ;;  %v4414_v13 = vmul.f32 %v4412_v52, %v7994_v29  ;;  %v4373_v43 = vmul.f32 %v4372_v33, %v8345_v1  ;;  %v4744_v33 = vstv %s8519_s3  ;;  %s8695_s3 = sld [smem:[#allocation18 + $0x44]] }
 0x603   :  { %v3998_v5 = vpop.permute.xlu1 %3997 }
 0x604   :  { %4277 = vrot.lane.b32.xlu0 %v4272_v37, %s5732_s7  ;;  %v4003_v34 = vadd.f32 %v3998_v5, %v3989_v56  ;;  %v4692_v56 = vmul.f32 %v4690_v26, %v7994_v29  ;;  %v4399_v5 = vmul.f32 %v4398_v54, %v8079_v41 }
 0x605   :  { %4227 = vrot.lane.b32.xlu1 %v4223_v63, %s5731_s16  ;;  %v4074_v63 = vstv %s8484_s26  ;;  %s8657_s26 = sld [smem:[#allocation18 + $0x27]] }
 0x606   :  { %v4009_v39 = vadd.f32 %v4007_v10, %v4003_v34 }
 0x608   :  { %4297 = vrot.lane.b32.xlu0 %v4292_v9, %s5731_s16  ;;  %v4434_v9 = vmul.f32 %v4432_v58, %v8042_v17 }
 0x609   :  { %4241 = vrot.lane.b32.xlu1 %v4237_v7, %s5732_s7  ;;  %v4076_v7 = vmul.f32 %v4074_v63, %v8320_v14 }
 0x60a   :  { %v4020_v31 = vpop.permute.xlu0 %4019 }
 0x60b   :  { %v4024_v50 = vadd.f32 %v4020_v31, %v4010_v8  ;;  %v4325_v8 = vmul.f32 %v4324_v40, %v8291_v11  ;;  %v4413_v31 = vmul.f32 %v4412_v52, %v8079_v41 }
 0x60c   :  { %4311 = vrot.lane.b32.xlu0 %v4306_v57, %s5732_s7 }
 0x60d   :  { %4261 = vrot.lane.b32.xlu1 %v4257_v24, %s5731_s16  ;;  %v4446_v24 = vstv %s8496_s22  ;;  %s8676_s22 = sld [smem:[#allocation18 + $0x43]] }
 0x60e   :  { %v4034_v45 = vpop.permute.xlu0 %4033  ;;  %v4447_v54 = vmul.f32 %v4446_v24, %v8121_v3 }
 0x60f   :  { %v4038_v46 = vadd.f32 %v4034_v45, %v4024_v50  ;;  %v4448_v50 = vmul.f32 %v4446_v24, %v8042_v17  ;;  %v4724_v45 = vstv %s8504_s24  ;;  %s8681_s24 = sld [smem:[#allocation18 + $0x2a]] }
 0x610   :  { %4331 = vrot.lane.b32.xlu0 %v4326_v6, %s5731_s16  ;;  %v4726_v15 = vmul.f32 %v4724_v45, %v8042_v17 }
 0x611   :  { %v4044_v27 = vadd.f32 %v4042_v0, %v4038_v46  ;;  %4275 = vrot.lane.b32.xlu1 %v4271_v4, %s5732_s7  ;;  %v4691_v46 = vmul.f32 %v4690_v26, %v8079_v41  ;;  %v4466_v4 = vstv %s8512_s9  ;;  %v4778_v26 = vstv %s8552_s28  ;;  %s8688_s9 = sld [smem:[#allocation18 + $0x5b]]  ;;  %s8724_s28 = sld [smem:[#allocation18 + $0x30]] }
 0x614   :  { %4345 = vrot.lane.b32.xlu0 %v4340_v44, %s5732_s7  ;;  %v4433_v44 = vmul.f32 %v4432_v58, %v8121_v3 }
 0x615   :  { %4295 = vrot.lane.b32.xlu1 %v4291_v19, %s5731_s16  ;;  %v4075_v19 = vmul.f32 %v4074_v63, %v8345_v1 }
 0x617   :  { %v4018_v53 = vpop.permute.xlu1 %4017 }
 0x618   :  { %4365 = vrot.lane.b32.xlu0 %v4360_v28, %s5731_s16  ;;  %v4023_v51 = vadd.f32 %v4018_v53, %v4009_v39  ;;  %v4710_v39 = vstv %s8489_s13  ;;  %v4468_v28 = vmul.f32 %v4466_v4, %v8095_v35  ;;  %s8667_s13 = sld [smem:[#allocation18 + $0x59]] }
 0x619   :  { %4309 = vrot.lane.b32.xlu1 %v4305_v32, %s5732_s7  ;;  %v4712_v40 = vmul.f32 %v4710_v39, %v8042_v17  ;;  %v4711_v32 = vmul.f32 %v4710_v39, %v8121_v3 }
 0x61b   :  { %v4032_v38 = vpop.permute.xlu1 %4031 }
 0x61c   :  { %4379 = vrot.lane.b32.xlu0 %v4374_v16, %s5732_s7  ;;  %v4037_v22 = vadd.f32 %v4032_v38, %v4023_v51  ;;  %v4746_v16 = vmul.f32 %v4744_v33, %v8095_v35  ;;  %v4480_v51 = vstv %s8526_s4  ;;  %s8700_s4 = sld [smem:[#allocation18 + $0x2d]] }
 0x61d   :  { %4329 = vrot.lane.b32.xlu1 %v4325_v8, %s5731_s16  ;;  %v4482_v38 = vmul.f32 %v4480_v51, %v8095_v35  ;;  %v4758_v8 = vstv %s8534_s6  ;;  %s8707_s6 = sld [smem:[#allocation18 + $0x5c]] }
 0x61e   :  { %v4043_v30 = vadd.f32 %v4041_v21, %v4037_v22  ;;  %v4725_v22 = vmul.f32 %v4724_v45, %v8121_v3 }
 0x620   :  { %4405 = vrot.lane.b32.xlu0 %v4400_v60, %s5731_s16  ;;  %v4760_v60 = vmul.f32 %v4758_v8, %v8095_v35 }
 0x621   :  { %4343 = vrot.lane.b32.xlu1 %v4339_v49, %s5732_s7  ;;  %v4467_v49 = vmul.f32 %v4466_v4, %v8167_v20 }
 0x624   :  { %4681 = vrot.lane.b32.xlu0 %v4677_v25, %s5731_s16  ;;  %v4108_v25 = vstv %s8549_s27  ;;  %s8722_s27 = sld [smem:[#allocation19 + $0x1]] }
 0x625   :  { %4363 = vrot.lane.b32.xlu1 %v4359_v59, %s5731_s16 }
 0x628   :  { %4419 = vrot.lane.b32.xlu0 %v4414_v13, %s5732_s7 }
 0x629   :  { %4377 = vrot.lane.b32.xlu1 %v4373_v43, %s5732_s7  ;;  %v4745_v43 = vmul.f32 %v4744_v33, %v8167_v20 }
 0x62a   :  { %v4054_v37 = vpop.permute.xlu0 %4053 }
 0x62b   :  { %v4058_v34 = vadd.f32 %v4054_v37, %v4044_v27  ;;  %v4114_v37 = vstv %s8556_s29  ;;  %s8728_s29 = sld [smem:[#allocation18 + $0x5e]] }
 0x62c   :  { %4697 = vrot.lane.b32.xlu0 %v4692_v56, %s5732_s7  ;;  %v4116_v63 = vmul.f32 %v4114_v37, %v7994_v29 }
 0x62d   :  { %4403 = vrot.lane.b32.xlu1 %v4399_v5, %s5731_s16  ;;  %v4780_v5 = vmul.f32 %v4778_v26, %v8135_v36 }
 0x62e   :  { %v4068_v10 = vpop.permute.xlu0 %4067 }
 0x62f   :  { %v4072_v42 = vadd.f32 %v4068_v10, %v4058_v34  ;;  %v4514_v34 = vstv %s8561_s30  ;;  %v4481_v10 = vmul.f32 %v4480_v51, %v8167_v20  ;;  %s8735_s30 = sld [smem:[#allocation18 + $0x47]] }
 0x630   :  { %4439 = vrot.lane.b32.xlu0 %v4434_v9, %s5731_s16  ;;  %v4148_v9 = vstv %s8565_s8  ;;  %s8739_s8 = sld [smem:[#allocation18 + $0x48]] }
 0x631   :  { %v4078_v57 = vadd.f32 %v4076_v7, %v4072_v42  ;;  %4417 = vrot.lane.b32.xlu1 %v4413_v31, %s5732_s7  ;;  %v4516_v7 = vmul.f32 %v4514_v34, %v8135_v36 }
 0x634   :  { %4717 = vrot.lane.b32.xlu0 %v4712_v40, %s5731_s16  ;;  %v4792_v40 = vstv %s8571_s15  ;;  %s8747_s15 = sld [smem:[#allocation18 + $0x5f]] }
 0x635   :  { %4683 = vrot.lane.b32.xlu1 %v4678_v48, %s5731_s16  ;;  %v4759_v48 = vmul.f32 %v4758_v8, %v8167_v20 }
 0x637   :  { %v4052_v6 = vpop.permute.xlu1 %4051 }
 0x638   :  { %4453 = vrot.lane.b32.xlu0 %v4448_v50, %s5732_s7  ;;  %v4057_v0 = vadd.f32 %v4052_v6, %v4043_v30  ;;  %v4500_v30 = vstv %s8543_s5  ;;  %v4794_v6 = vmul.f32 %v4792_v40, %v8135_v36  ;;  %s8714_s5 = sld [smem:[#allocation18 + $0x46]] }
 0x639   :  { %4695 = vrot.lane.b32.xlu1 %v4691_v46, %s5732_s7  ;;  %v4502_v59 = vmul.f32 %v4500_v30, %v8135_v36  ;;  %v4501_v4 = vmul.f32 %v4500_v30, %v8191_v12 }
 0x63b   :  { %v4066_v27 = vpop.permute.xlu1 %4065 }
 0x63c   :  { %4731 = vrot.lane.b32.xlu0 %v4726_v15, %s5732_s7  ;;  %v4071_v55 = vadd.f32 %v4066_v27, %v4057_v0  ;;  %v4534_v15 = vstv %s8580_s0  ;;  %v4182_v27 = vstv %s8585_s2  ;;  %s8751_s0 = sld [smem:[#allocation18 + $0x33]] }
 0x63d   :  { %4437 = vrot.lane.b32.xlu1 %v4433_v44, %s5731_s16  ;;  %s8777_s2 = sld [smem:[#allocation18 + $0x4b]] }
 0x63e   :  { %v8536_v53 = vadd.f32 %v4075_v19, %v4071_v55 }
 0x640   :  { %4473 = vrot.lane.b32.xlu0 %v4468_v28, %s5731_s16  ;;  %v8606_v28 = vld [vmem:[#allocation3 + $0x4] sm:$0xf] }
 0x641   :  { %4715 = vrot.lane.b32.xlu1 %v4711_v32, %s5731_s16  ;;  %v4536_v32 = vmul.f32 %v4534_v15, %v8173_v47 }
 0x644   :  { %4751 = vrot.lane.b32.xlu0 %v4746_v16, %s5731_s16 }
 0x645   :  { %4451 = vrot.lane.b32.xlu1 %v4447_v54, %s5732_s7  ;;  %v4184_v54 = vmul.f32 %v4182_v27, %v8095_v35 }
 0x648   :  { %4487 = vrot.lane.b32.xlu0 %v4482_v38, %s5732_s7  ;;  %v4812_v38 = vstv %s8591_s12  ;;  %s8779_s12 = sld [smem:[#allocation18 + $0x36]] }
 0x649   :  { %4729 = vrot.lane.b32.xlu1 %v4725_v22, %s5732_s7  ;;  %v4779_v22 = vmul.f32 %v4778_v26, %v8191_v12 }
 0x64a   :  { %v4088_v21 = vpop.permute.xlu0 %4087 }
 0x64b   :  { %v4092_v61 = vadd.f32 %v4088_v21, %v4078_v57  ;;  %v4150_v57 = vmul.f32 %v4148_v9, %v8042_v17  ;;  %v4115_v21 = vmul.f32 %v4114_v37, %v8079_v41  ;;  %v4149_v37 = vmul.f32 %v4148_v9, %v8121_v3 }
 0x64c   :  { %4765 = vrot.lane.b32.xlu0 %v4760_v60, %s5732_s7  ;;  %v4793_v9 = vmul.f32 %v4792_v40, %v8191_v12  ;;  %v4535_v40 = vmul.f32 %v4534_v15, %v8213_v62 }
 0x64d   :  { %4471 = vrot.lane.b32.xlu1 %v4467_v49, %s5731_s16  ;;  %v4814_v49 = vmul.f32 %v4812_v38, %v8173_v47 }
 0x64e   :  { %v4102_v52 = vpop.permute.xlu0 %4101 }
 0x64f   :  { %v4106_v13 = vadd.f32 %v4102_v52, %v4092_v61 }
 0x650   :  { %4507 = vrot.lane.b32.xlu0 %v4502_v59, %s5731_s16  ;;  %v4515_v59 = vmul.f32 %v4514_v34, %v8191_v12 }
 0x651   :  { %v4110_v56 = vadd.f32 %v4108_v25, %v4106_v13  ;;  %4749 = vrot.lane.b32.xlu1 %v4745_v43, %s5731_s16  ;;  %v4216_v13 = vstv %s8604_s18 }
 0x652   :  { %v4128_v58 = vpop.permute.xlu0 %4127 }
 0x653   :  { %5480 = vtanh.f32 %v4110_v56  ;;  %v4132_v42 = vadd.f32 %v4128_v58, %v4116_v63 }
 0x654   :  { %4785 = vrot.lane.b32.xlu0 %v4780_v5, %s5731_s16 }
 0x655   :  { %4485 = vrot.lane.b32.xlu1 %v4481_v10, %s5732_s7  ;;  %v4218_v10 = vmul.f32 %v4216_v13, %v8135_v36 }
 0x656   :  { %v4142_v39 = vpop.permute.xlu0 %4141 }
 0x657   :  { %v4146_v31 = vadd.f32 %v4142_v39, %v4132_v42  ;;  %v4086_v24 = vpop.permute.xlu1 %4085  ;;  %v4826_v42 = vstv %s8617_s19  ;;  %s8802_s19 = sld [smem:[#allocation18 + $0x51]] }
 0x658   :  { %4521 = vrot.lane.b32.xlu0 %v4516_v7, %s5732_s7  ;;  %v4091_v46 = vadd.f32 %v4086_v24, %v8536_v53 }
 0x659   :  { %v4152_v50 = vadd.f32 %v4150_v57, %v4146_v31  ;;  %4763 = vrot.lane.b32.xlu1 %v4759_v48, %s5732_s7  ;;  %v4828_v31 = vmul.f32 %v4826_v42, %v8173_v47  ;;  %v4568_v48 = vstv %s8628_s23 }
 0x65a   :  { %v4162_v45 = vpop.permute.xlu0 %4161 }
 0x65b   :  { %v4100_v0 = vpop.permute.xlu1 %4099  ;;  %v4166_v55 = vadd.f32 %v4162_v45, %v4152_v50  ;;  %v8649_v50 = vld [vmem:[#allocation3] sm:$0xf] }
 0x65c   :  { %4799 = vrot.lane.b32.xlu0 %v4794_v6, %s5732_s7  ;;  %v4105_v19 = vadd.f32 %v4100_v0, %v4091_v46  ;;  %v4250_v46 = vstv %s8633_s25 }
 0x65d   :  { %v5481_v44 = vpop.eup %5480  ;;  %4505 = vrot.lane.b32.xlu1 %v4501_v4, %s5731_s16  ;;  %v4252_v15 = vmul.f32 %v4250_v46, %v8173_v47 }
 0x65e   :  { %v4948_v33 = vadd.f32 %v8606_v28, %v5481_v44  ;;  %v4176_v53 = vpop.permute.xlu0 %4175  ;;  %v4109_v16 = vadd.f32 %v4108_v25, %v4105_v19  ;;  %v4548_v25 = vstv %s8599_s17  ;;  %v4183_v44 = vmul.f32 %v4182_v27, %v8167_v20  ;;  %s8786_s17 = sld [smem:[#allocation18 + $0x4e]] }
 0x65f   :  { %v4180_v51 = vadd.f32 %v4176_v53, %v4166_v55  ;;  %v4126_v8 = vpop.permute.xlu1 %4125  ;;  %v4550_v58 = vmul.f32 %v4548_v25, %v8173_v47  ;;  %v4570_v19 = vmul.f32 %v4568_v48, %v8234_v18  ;;  %v4813_v27 = vmul.f32 %v4812_v38, %v8213_v62 }
 0x660   :  { %4977 = vst.msk [vmem:[#allocation21 + $0x4] sm:$0x1] %vm4973_vm12, %v4948_v33  ;;  %4541 = vrot.lane.b32.xlu0 %v4536_v32, %s5731_s16  ;;  %5482 = vtanh.f32 %v4109_v16  ;;  %v4131_v61 = vadd.f32 %v4126_v8, %v4115_v21  ;;  %v4846_v32 = vstv %s8640_s14  ;;  %v4582_v21 = vstv %s8647_s1 }
 0x661   :  { %v4186_v60 = vadd.f32 %v4184_v54, %v4180_v51  ;;  %4783 = vrot.lane.b32.xlu1 %v4779_v22, %s5731_s16  ;;  %v4848_v8 = vmul.f32 %v4846_v32, %v8234_v18 }
 0x662   :  { %v4196_v30 = vpop.permute.xlu0 %4195 }
 0x663   :  { %v4140_v52 = vpop.permute.xlu1 %4139  ;;  %v4200_v26 = vadd.f32 %v4196_v30, %v4186_v60  ;;  %v4549_v30 = vmul.f32 %v4548_v25, %v8213_v62 }
 0x664   :  { %4819 = vrot.lane.b32.xlu0 %v4814_v49, %s5731_s16  ;;  %v4145_v43 = vadd.f32 %v4140_v52, %v4131_v61  ;;  %v4284_v49 = vstv %s8657_s26  ;;  %v4217_v52 = vmul.f32 %v4216_v13, %v8191_v12 }
 0x665   :  { %4519 = vrot.lane.b32.xlu1 %v4515_v59, %s5732_s7 }
 0x666   :  { %v4210_v56 = vpop.permute.xlu0 %4209  ;;  %v4151_v63 = vadd.f32 %v4149_v37, %v4145_v43 }
 0x667   :  { %v4214_v5 = vadd.f32 %v4210_v56, %v4200_v26  ;;  %v4160_v34 = vpop.permute.xlu1 %4159  ;;  %v4584_v26 = vmul.f32 %v4582_v21, %v8234_v18  ;;  %v4286_v56 = vmul.f32 %v4284_v49, %v8234_v18 }
 0x668   :  { %4555 = vrot.lane.b32.xlu0 %v4550_v58, %s5732_s7  ;;  %v4165_v24 = vadd.f32 %v4160_v34, %v4151_v63  ;;  %v4860_v58 = vstv %s8667_s13 }
 0x669   :  { %v4220_v39 = vadd.f32 %v4218_v10, %v4214_v5  ;;  %4797 = vrot.lane.b32.xlu1 %v4793_v9, %s5732_s7  ;;  %v4827_v5 = vmul.f32 %v4826_v42, %v8213_v62  ;;  %v4862_v10 = vmul.f32 %v4860_v58, %v8234_v18  ;;  %v4602_v9 = vstv %s8676_s22 }
 0x66a   :  { %v4230_v7 = vpop.permute.xlu0 %4229  ;;  %v5483_v57 = vpop.eup %5482 }
 0x66b   :  { %v4947_v45 = vadd.f32 %v8649_v50, %v5483_v57  ;;  %v4174_v6 = vpop.permute.xlu1 %4173  ;;  %v4234_v0 = vadd.f32 %v4230_v7, %v4220_v39  ;;  %v4569_v7 = vmul.f32 %v4568_v48, %v8250_v23 }
 0x66c   :  { %4833 = vrot.lane.b32.xlu0 %v4828_v31, %s5732_s7  ;;  %v4179_v4 = vadd.f32 %v4174_v6, %v4165_v24  ;;  %v4318_v31 = vstv %s8681_s24  ;;  %v4251_v24 = vmul.f32 %v4250_v46, %v8213_v62  ;;  %v4604_v6 = vmul.f32 %v4602_v9, %v8275_v2 }
 0x66d   :  { %4976 = vst.msk [vmem:[#allocation21] sm:$0x1] %vm4973_vm12, %v4947_v45  ;;  %4539 = vrot.lane.b32.xlu1 %v4535_v40, %s5731_s16 }
 0x66e   :  { %v4244_v55 = vpop.permute.xlu0 %4243  ;;  %v4185_v53 = vadd.f32 %v4183_v44, %v4179_v4  ;;  %v4320_v4 = vmul.f32 %v4318_v31, %v8275_v2  ;;  %v4880_v44 = vstv %s8688_s9 }
 0x66f   :  { %v4248_v33 = vadd.f32 %v4244_v55, %v4234_v0  ;;  %v4194_v16 = vpop.permute.xlu1 %4193  ;;  %v4847_v55 = vmul.f32 %v4846_v32, %v8250_v23  ;;  %v4285_v32 = vmul.f32 %v4284_v49, %v8250_v23  ;;  %v4861_v49 = vmul.f32 %v4860_v58, %v8250_v23 }
 0x670   :  { %4575 = vrot.lane.b32.xlu0 %v4570_v19, %s5731_s16  ;;  %v4199_v22 = vadd.f32 %v4194_v16, %v4185_v53 }
 0x671   :  { %v4254_v51 = vadd.f32 %v4252_v15, %v4248_v33  ;;  %4817 = vrot.lane.b32.xlu1 %v4813_v27, %s5731_s16  ;;  %v4882_v33 = vmul.f32 %v4880_v44, %v8275_v2  ;;  %v4616_v15 = vstv %s8695_s3  ;;  %v4583_v27 = vmul.f32 %v4582_v21, %v8250_v23 }
 0x672   :  { %v4264_v54 = vpop.permute.xlu0 %4263  ;;  %v4894_v21 = vstv %s8707_s6 }
 0x673   :  { %v4208_v60 = vpop.permute.xlu1 %4207  ;;  %v4268_v38 = vadd.f32 %v4264_v54, %v4254_v51  ;;  %v4352_v51 = vstv %s8700_s4 }
 0x674   :  { %4853 = vrot.lane.b32.xlu0 %v4848_v8, %s5731_s16  ;;  %v4213_v61 = vadd.f32 %v4208_v60, %v4199_v22  ;;  %v4618_v60 = vmul.f32 %v4616_v15, %v8275_v2 }
 0x675   :  { %4553 = vrot.lane.b32.xlu1 %v4549_v30, %s5732_s7 }
 0x676   :  { %v4278_v59 = vpop.permute.xlu0 %4277  ;;  %v4219_v37 = vadd.f32 %v4217_v52, %v4213_v61  ;;  %v4354_v61 = vmul.f32 %v4352_v51, %v8320_v14 }
 0x677   :  { %v4282_v43 = vadd.f32 %v4278_v59, %v4268_v38  ;;  %v4228_v25 = vpop.permute.xlu1 %4227 }
 0x678   :  { %4589 = vrot.lane.b32.xlu0 %v4584_v26, %s5732_s7  ;;  %v4233_v34 = vadd.f32 %v4228_v25, %v4219_v37 }
 0x679   :  { %v4288_v13 = vadd.f32 %v4286_v56, %v4282_v43  ;;  %4831 = vrot.lane.b32.xlu1 %v4827_v5, %s5732_s7  ;;  %v4896_v43 = vmul.f32 %v4894_v21, %v8275_v2  ;;  %v4636_v56 = vstv %s8714_s5  ;;  %v4603_v5 = vmul.f32 %v4602_v9, %v8291_v11 }
 0x67a   :  { %v4298_v63 = vpop.permute.xlu0 %4297 }
 0x67b   :  { %v4242_v39 = vpop.permute.xlu1 %4241  ;;  %v4302_v42 = vadd.f32 %v4298_v63, %v4288_v13  ;;  %v4319_v63 = vmul.f32 %v4318_v31, %v8291_v11 }
 0x67c   :  { %4867 = vrot.lane.b32.xlu0 %v4862_v10, %s5732_s7  ;;  %v4247_v57 = vadd.f32 %v4242_v39, %v4233_v34  ;;  %v4386_v10 = vstv %s8722_s27  ;;  %v4638_v39 = vmul.f32 %v4636_v56, %v8320_v14 }
 0x67d   :  { %4573 = vrot.lane.b32.xlu1 %v4569_v7, %s5731_s16  ;;  %v4392_v7 = vstv %s8724_s28 }
 0x67e   :  { %v4312_v45 = vpop.permute.xlu0 %4311  ;;  %v4253_v0 = vadd.f32 %v4251_v24, %v4247_v57  ;;  %v4914_v24 = vstv %s8728_s29 }
 0x67f   :  { %v4316_v40 = vadd.f32 %v4312_v45, %v4302_v42  ;;  %v4262_v48 = vpop.permute.xlu1 %4261  ;;  %v4881_v45 = vmul.f32 %v4880_v44, %v8291_v11  ;;  %v4617_v44 = vmul.f32 %v4616_v15, %v8291_v11  ;;  %v4426_v15 = vstv %s8751_s0 }
 0x680   :  { %4609 = vrot.lane.b32.xlu0 %v4604_v6, %s5731_s16  ;;  %v4267_v53 = vadd.f32 %v4262_v48, %v4253_v0  ;;  %v4394_v6 = vmul.f32 %v4392_v7, %v7994_v29  ;;  %v4916_v0 = vmul.f32 %v4914_v24, %v8320_v14 }
 0x681   :  { %v4322_v46 = vadd.f32 %v4320_v4, %v4316_v40  ;;  %4851 = vrot.lane.b32.xlu1 %v4847_v55, %s5731_s16  ;;  %v4650_v55 = vstv %s8735_s30 }
 0x682   :  { %v4332_v19 = vpop.permute.xlu0 %4331 }
 0x683   :  { %v4276_v16 = vpop.permute.xlu1 %4275  ;;  %v4336_v54 = vadd.f32 %v4332_v19, %v4322_v46  ;;  %v4670_v19 = vstv %s8739_s8 }
 0x684   :  { %4887 = vrot.lane.b32.xlu0 %v4882_v33, %s5731_s16  ;;  %v4281_v8 = vadd.f32 %v4276_v16, %v4267_v53  ;;  %v4671_v53 = vmul.f32 %v4670_v19, %v8079_v41  ;;  %v4353_v16 = vmul.f32 %v4352_v51, %v8345_v1 }
 0x685   :  { %4587 = vrot.lane.b32.xlu1 %v4583_v27, %s5732_s7 }
 0x686   :  { %v4346_v22 = vpop.permute.xlu0 %4345  ;;  %v4287_v38 = vadd.f32 %v4285_v32, %v4281_v8 }
 0x687   :  { %v4350_v30 = vadd.f32 %v4346_v22, %v4336_v54  ;;  %v4296_v52 = vpop.permute.xlu1 %4295  ;;  %v4652_v54 = vmul.f32 %v4650_v55, %v8320_v14  ;;  %v4928_v22 = vstv %s8747_s15 }
 0x688   :  { %4623 = vrot.lane.b32.xlu0 %v4618_v60, %s5732_s7  ;;  %v4301_v37 = vadd.f32 %v4296_v52, %v4287_v38 }
 0x689   :  { %v4356_v59 = vadd.f32 %v4354_v61, %v4350_v30  ;;  %4865 = vrot.lane.b32.xlu1 %v4861_v49, %s5732_s7  ;;  %v4895_v30 = vmul.f32 %v4894_v21, %v8291_v11  ;;  %v4930_v61 = vmul.f32 %v4928_v22, %v8320_v14  ;;  %v4428_v49 = vmul.f32 %v4426_v15, %v8042_v17 }
 0x68a   :  { %v4366_v26 = vpop.permute.xlu0 %4365 }
 0x68b   :  { %v4310_v25 = vpop.permute.xlu1 %4309  ;;  %v4370_v58 = vadd.f32 %v4366_v26, %v4356_v59  ;;  %v4637_v26 = vmul.f32 %v4636_v56, %v8345_v1 }
 0x68c   :  { %4901 = vrot.lane.b32.xlu0 %v4896_v43, %s5732_s7  ;;  %v4315_v13 = vadd.f32 %v4310_v25, %v4301_v37 }
 0x68d   :  { %4607 = vrot.lane.b32.xlu1 %v4603_v5, %s5731_s16 }
 0x68e   :  { %v4380_v34 = vpop.permute.xlu0 %4379  ;;  %v4321_v57 = vadd.f32 %v4319_v63, %v4315_v13  ;;  %v4393_v13 = vmul.f32 %v4392_v7, %v8079_v41  ;;  %v4651_v7 = vmul.f32 %v4650_v55, %v8345_v1 }
 0x68f   :  { %v4384_v42 = vadd.f32 %v4380_v34, %v4370_v58  ;;  %v4330_v9 = vpop.permute.xlu1 %4329 }
 0x690   :  { %4643 = vrot.lane.b32.xlu0 %v4638_v39, %s5731_s16  ;;  %v4335_v4 = vadd.f32 %v4330_v9, %v4321_v57  ;;  %v4915_v39 = vmul.f32 %v4914_v24, %v8345_v1  ;;  %v4427_v24 = vmul.f32 %v4426_v15, %v8121_v3  ;;  %v4738_v15 = vstv %s8786_s17 }
 0x691   :  { %v4388_v31 = vadd.f32 %v4386_v10, %v4384_v42  ;;  %4885 = vrot.lane.b32.xlu1 %v4881_v45, %s5731_s16  ;;  %v4672_v45 = vmul.f32 %v4670_v19, %v7994_v29 }
 0x692   :  { %v4406_v40 = vpop.permute.xlu0 %4405 }
 0x693   :  { %5484 = vtanh.f32 %v4388_v31  ;;  %v4410_v48 = vadd.f32 %v4406_v40, %v4394_v6  ;;  %v4344_v46 = vpop.permute.xlu1 %4343  ;;  %v4929_v40 = vmul.f32 %v4928_v22, %v8345_v1 }
 0x694   :  { %4921 = vrot.lane.b32.xlu0 %v4916_v0, %s5731_s16  ;;  %v4349_v33 = vadd.f32 %v4344_v46, %v4335_v4  ;;  %v4704_v0 = vstv %s8777_s2  ;;  %v4460_v4 = vstv %s8779_s12 }
 0x695   :  { %4621 = vrot.lane.b32.xlu1 %v4617_v44, %s5732_s7  ;;  %v4705_v22 = vmul.f32 %v4704_v0, %v8121_v3 }
 0x696   :  { %v4682_v27 = vpop.permute.xlu0 %4681  ;;  %v4355_v32 = vadd.f32 %v4353_v16, %v4349_v33  ;;  %v4462_v16 = vmul.f32 %v4460_v4, %v8095_v35 }
 0x697   :  { %v4687_v8 = vadd.f32 %v4682_v27, %v4671_v53  ;;  %v4364_v60 = vpop.permute.xlu1 %4363  ;;  %v4706_v53 = vmul.f32 %v4704_v0, %v8042_v17 }
 0x698   :  { %4657 = vrot.lane.b32.xlu0 %v4652_v54, %s5732_s7  ;;  %v4369_v51 = vadd.f32 %v4364_v60, %v4355_v32 }
 0x699   :  { %4899 = vrot.lane.b32.xlu1 %v4895_v30, %s5732_s7 }
 0x69a   :  { %v4420_v38 = vpop.permute.xlu0 %4419 }
 0x69b   :  { %v4424_v52 = vadd.f32 %v4420_v38, %v4410_v48  ;;  %v4378_v59 = vpop.permute.xlu1 %4377 }
 0x69c   :  { %4935 = vrot.lane.b32.xlu0 %v4930_v61, %s5732_s7  ;;  %v4383_v37 = vadd.f32 %v4378_v59, %v4369_v51 }
 0x69d   :  { %v5485_v43 = vpop.eup %5484  ;;  %v4430_v25 = vadd.f32 %v4428_v49, %v4424_v52  ;;  %4641 = vrot.lane.b32.xlu1 %v4637_v26, %s5731_s16  ;;  %v4740_v49 = vmul.f32 %v4738_v15, %v8095_v35 }
 0x69e   :  { %v4952_v5 = vrot.slane %v5485_v43, 7  ;;  %v4698_v21 = vpop.permute.xlu0 %4697  ;;  %v4387_v58 = vadd.f32 %v4386_v10, %v4383_v37 }
 0x69f   :  { %v4404_v34 = vpop.permute.xlu1 %4403 }
 0x6a0   :  { %v4956_v63 = vadd.f32 %v8606_v28, %v4952_v5  ;;  %5486 = vtanh.f32 %v4387_v58  ;;  %v4409_v56 = vadd.f32 %v4404_v34, %v4393_v13 }
 0x6a1   :  { %4919 = vrot.lane.b32.xlu1 %v4915_v39, %s5731_s16  ;;  %s8799_s16 = sld [smem:[#allocation18 + $0x39]] }
 0x6a2   :  { %4982 = vst.msk [vmem:[#allocation21 + $0x4] sm:$0x2] %vm4978_vm13, %v4956_v63  ;;  %v4440_v10 = vpop.permute.xlu0 %4439 }
 0x6a3   :  { %v4444_v42 = vadd.f32 %v4440_v10, %v4430_v25  ;;  %v4418_v41 = vpop.permute.xlu1 %4417 }
 0x6a4   :  { %v4423_v57 = vadd.f32 %v4418_v41, %v4409_v56 }
 0x6a5   :  { %4655 = vrot.lane.b32.xlu1 %v4651_v7, %s5732_s7 }
 0x6a6   :  { %v4718_v9 = vpop.permute.xlu0 %4717  ;;  %v4429_v31 = vadd.f32 %v4427_v24, %v4423_v57 }
 0x6a7   :  { %v4684_v6 = vpop.permute.xlu1 %4683 }
 0x6a8   :  { %v4688_v48 = vadd.f32 %v4684_v6, %v4672_v45 }
 0x6a9   :  { %4933 = vrot.lane.b32.xlu1 %v4929_v40, %s5732_s7  ;;  %s5733_s7 = smov [#allocation22]  }
 0x6aa   :  { %v4454_v55 = vpop.permute.xlu0 %4453  ;;  %v5487_v46 = vpop.eup %5486  ;;  %v4702_v44 = vadd.f32 %v4698_v21, %v4688_v48  ;;  %s5010_s18 = sshll.u32 %s5733_s7, 4  ;;  %s5011_s18 = int_to_ptr.vmem [resolvable:$true] %s5010_s18 }
 0x6ab   :  { %v4458_v33 = vadd.f32 %v4454_v55, %v4444_v42  ;;  %v4951_v27 = vrot.slane %v5487_v46, 7  ;;  %v4696_v29 = vpop.permute.xlu1 %4695  ;;  %s5654_s23 = scalar_lea.vmem %s5011_s18, 128  ;;  %p5659_p1 = scmp.lt.s32.totalorder %s5011_s18, %s5011_s18 }
 0x6ac   :  { %v4701_v19 = vadd.f32 %v4696_v29, %v4687_v8  ;;  %v4708_v54 = vadd.f32 %v4706_v53, %v4702_v44  ;;  %p5655_p0 = scmp.ne.s32.totalorder %s5011_s18, %s5654_s23  ;;  %p5660_p2 = scmp.lt.s32.totalorder %s5654_s23, %s5654_s23 }
 0x6ad   :  { %v4464_v32 = vadd.f32 %v4462_v16, %v4458_v33  ;;  %v4955_v60 = vadd.f32 %v8649_v50, %v4951_v27 }
 0x6ae   :  { %v4732_v30 = vpop.permute.xlu0 %4731  ;;  %v4722_v38 = vadd.f32 %v4718_v9, %v4708_v54  ;;  %v4707_v61 = vadd.f32 %v4705_v22, %v4701_v19  ;;  %p5661_p3 = por %p5660_p2, %p5659_p1 }
 0x6af   :  { %4981 = vst.msk [vmem:[#allocation21] sm:$0x2] %vm4978_vm13, %v4955_v60  ;;  %v4438_v51 = vpop.permute.xlu1 %4437 }
 0x6b0   :  { %v4736_v17 = vadd.f32 %v4732_v30, %v4722_v38  ;;  %v4443_v52 = vadd.f32 %v4438_v51, %v4429_v31  ;;  %p5662_p4 = pnand %p5661_p3, %p5655_p0 }
 0x6b2   :  { %v4474_v8 = vpop.permute.xlu0 %4473  ;;  %v4742_v59 = vadd.f32 %v4740_v49, %v4736_v17 }
 0x6b3   :  { %v4716_v3 = vpop.permute.xlu1 %4715 }
 0x6b4   :  { %5665 = shalt.err (!%p5662_p4)
}
 0x6b5   :  { %s5666_s1 = scalar_lea.hbm %s8907_s11, 128 }
 0x6b6   :  { %p5667_p5 = scmp.ne.s32.totalorder %s8907_s11, %s5666_s1  ;;  %p5670_p6 = scmp.lt.u32.totalorder %s5666_s1, %s8907_s11 }
 0x6b8   :  { %p5672_p7 = pnand %p5670_p6, %p5667_p5 }
 0x6ba   :  { %5675 = shalt.err (!%p5672_p7)
}
 0x6bb   :  { %5016 = dma.vmem_to_hbm [thread:$0]  %s5011_s18, 128, %s8907_s11, [#allocation23], %s5720_s20, %s5720_s20, %s5721_s21   ;;  %v4721_v35 = vadd.f32 %v4716_v3, %v4707_v61  ;;  %v4752_v26 = vpop.permute.xlu0 %4751  ;;  %v4452_v43 = vpop.permute.xlu1 %4451  ;;  %v4478_v25 = vadd.f32 %v4474_v8, %v4464_v32  ;;  %v4461_v21 = vmul.f32 %v4460_v4, %v8167_v20  ;;  %v4739_v7 = vmul.f32 %v4738_v15, %v8167_v20 }
 0x6bc   :  { %v4494_v37 = vstv %s8799_s16  ;;  %v4457_v5 = vadd.f32 %v4452_v43, %v4443_v52  ;;  %v4772_v56 = vstv %s8802_s19  ;;  %v4756_v10 = vadd.f32 %v4752_v26, %v4742_v59  ;;  %s8825_s11 = sld [smem:[#allocation18 + $0x3c]]  ;;  %s8835_s6 = sld [smem:[#allocation18 + $0x3f]] }
 0x6bd   :  { %v4496_v34 = vmul.f32 %v4494_v37, %v8135_v36  ;;  %v4774_v45 = vmul.f32 %v4772_v56, %v8135_v36  ;;  %s8827_s4 = sld [smem:[#allocation18 + $0x54]]  ;;  %v4495_v33 = vmul.f32 %v4494_v37, %v8191_v12  ;;  %v4773_v30 = vmul.f32 %v4772_v56, %v8191_v12  ;;  %s8837_s5 = sld [smem:[#allocation18 + $0x57]] }
 0x6be   :  { %v4463_v63 = vadd.f32 %v4461_v21, %v4457_v5  ;;  %s8845_s27 = sld [smem:[#allocation18 + $0x42]]  ;;  %s8855_s29 = sld [smem:[#allocation18 + $0x45]] }
 0x6bf   :  { %v4488_v58 = vpop.permute.xlu0 %4487  ;;  %v4730_v39 = vpop.permute.xlu1 %4729  ;;  %s8847_s28 = sld [smem:[#allocation18 + $0x5a]]  ;;  %s8857_s30 = sld [smem:[#allocation18 + $0x5d]] }
 0x6c0   :  { %v4492_v13 = vadd.f32 %v4488_v58, %v4478_v25  ;;  %v4735_v42 = vadd.f32 %v4730_v39, %v4721_v35  ;;  %s8865_s8 = sld [smem:[#allocation19 + $0x2]]  ;;  %s8867_s15 = sld [smem:[#allocation19 + $0x3]] }
 0x6c1   :  { %s5734_s0 = smov [#allocation21]  }
 0x6c2   :  { %v4498_v41 = vadd.f32 %v4496_v34, %v4492_v13  ;;  %v4741_v9 = vadd.f32 %v4739_v7, %v4735_v42  ;;  %v4528_v46 = vstv %s8825_s11  ;;  %v4562_v26 = vstv %s8835_s6  ;;  %s4998_s2 = sshll.u32 %s5734_s0, 4  ;;  %s4999_s2 = int_to_ptr.vmem [resolvable:$true] %s4998_s2 }
 0x6c3   :  { %v4766_v57 = vpop.permute.xlu0 %4765  ;;  %v4472_v31 = vpop.permute.xlu1 %4471  ;;  %v4530_v29 = vmul.f32 %v4528_v46, %v8173_v47  ;;  %v4806_v54 = vstv %s8827_s4  ;;  %v4529_v37 = vmul.f32 %v4528_v46, %v8213_v62  ;;  %v4564_v58 = vmul.f32 %v4562_v26, %v8234_v18  ;;  %s5676_s12 = scalar_lea.vmem %s4999_s2, 128  ;;  %p5681_p9 = scmp.lt.s32.totalorder %s4999_s2, %s4999_s2 }
 0x6c4   :  { %v4770_v24 = vadd.f32 %v4766_v57, %v4756_v10  ;;  %v4477_v48 = vadd.f32 %v4472_v31, %v4463_v63  ;;  %v4808_v51 = vmul.f32 %v4806_v54, %v8173_v47  ;;  %v4840_v63 = vstv %s8837_s5  ;;  %p5677_p8 = scmp.ne.s32.totalorder %s4999_s2, %s5676_s12  ;;  %p5682_p10 = scmp.lt.s32.totalorder %s5676_s12, %s5676_s12 }
 0x6c5   :  { %v4807_v10 = vmul.f32 %v4806_v54, %v8213_v62  ;;  %v4842_v57 = vmul.f32 %v4840_v63, %v8234_v18 }
 0x6c6   :  { %v4776_v6 = vadd.f32 %v4774_v45, %v4770_v24  ;;  %p5683_p11 = por %p5682_p10, %p5681_p9 }
 0x6c7   :  { %v4508_v40 = vpop.permute.xlu0 %4507  ;;  %v4750_v0 = vpop.permute.xlu1 %4749 }
 0x6c8   :  { %v4512_v20 = vadd.f32 %v4508_v40, %v4498_v41  ;;  %v4755_v36 = vadd.f32 %v4750_v0, %v4741_v9  ;;  %p5684_p12 = pnand %p5683_p11, %p5677_p8 }
 0x6cb   :  { %v4786_v4 = vpop.permute.xlu0 %4785  ;;  %v4486_v55 = vpop.permute.xlu1 %4485 }
 0x6cc   :  { %v4491_v44 = vadd.f32 %v4486_v55, %v4477_v48  ;;  %v4790_v32 = vadd.f32 %v4786_v4, %v4776_v6  ;;  %v4596_v4 = vstv %s8845_s27  ;;  %v4563_v55 = vmul.f32 %v4562_v26, %v8250_v23 }
 0x6ce   :  { %v4497_v27 = vadd.f32 %v4495_v33, %v4491_v44  ;;  %v4598_v33 = vmul.f32 %v4596_v4, %v8275_v2 }
 0x6cf   :  { %v4522_v53 = vpop.permute.xlu0 %4521  ;;  %v4764_v19 = vpop.permute.xlu1 %4763 }
 0x6d0   :  { %v4526_v16 = vadd.f32 %v4522_v53, %v4512_v20  ;;  %v4769_v22 = vadd.f32 %v4764_v19, %v4755_v36  ;;  %v4874_v36 = vstv %s8847_s28  ;;  %v4841_v19 = vmul.f32 %v4840_v63, %v8250_v23 }
 0x6d2   :  { %v4532_v60 = vadd.f32 %v4530_v29, %v4526_v16  ;;  %v4775_v61 = vadd.f32 %v4773_v30, %v4769_v22 }
 0x6d3   :  { %v4800_v15 = vpop.permute.xlu0 %4799  ;;  %v4506_v17 = vpop.permute.xlu1 %4505 }
 0x6d4   :  { %v4804_v38 = vadd.f32 %v4800_v15, %v4790_v32  ;;  %v4511_v3 = vadd.f32 %v4506_v17, %v4497_v27 }
 0x6d6   :  { %v4810_v52 = vadd.f32 %v4808_v51, %v4804_v38 }
 0x6d7   :  { %v4542_v49 = vpop.permute.xlu0 %4541  ;;  %v4784_v8 = vpop.permute.xlu1 %4783 }
 0x6d8   :  { %v4546_v12 = vadd.f32 %v4542_v49, %v4532_v60  ;;  %v4789_v47 = vadd.f32 %v4784_v8, %v4775_v61  ;;  %v4876_v60 = vmul.f32 %v4874_v36, %v8275_v2  ;;  %v4630_v49 = vstv %s8855_s29 }
 0x6db   :  { %v4820_v59 = vpop.permute.xlu0 %4819  ;;  %v4520_v35 = vpop.permute.xlu1 %4519 }
 0x6dc   :  { %v4525_v43 = vadd.f32 %v4520_v35, %v4511_v3  ;;  %v4824_v34 = vadd.f32 %v4820_v59, %v4810_v52  ;;  %v4597_v59 = vmul.f32 %v4596_v4, %v8291_v11 }
 0x6de   :  { %v4531_v21 = vadd.f32 %v4529_v37, %v4525_v43  ;;  %v4908_v37 = vstv %s8857_s30 }
 0x6df   :  { %v4556_v25 = vpop.permute.xlu0 %4555  ;;  %v4798_v13 = vpop.permute.xlu1 %4797 }
 0x6e0   :  { %v4560_v5 = vadd.f32 %v4556_v25, %v4546_v12  ;;  %v4803_v39 = vadd.f32 %v4798_v13, %v4789_v47  ;;  %v4632_v12 = vmul.f32 %v4630_v49, %v8320_v14 }
 0x6e2   :  { %v4566_v56 = vadd.f32 %v4564_v58, %v4560_v5  ;;  %v4809_v7 = vadd.f32 %v4807_v10, %v4803_v39 }
 0x6e3   :  { %v4834_v42 = vpop.permute.xlu0 %4833  ;;  %v4540_v24 = vpop.permute.xlu1 %4539 }
 0x6e4   :  { %v4838_v41 = vadd.f32 %v4834_v42, %v4824_v34  ;;  %v4545_v40 = vadd.f32 %v4540_v24, %v4531_v21  ;;  %v4875_v21 = vmul.f32 %v4874_v36, %v8291_v11  ;;  %v4910_v34 = vmul.f32 %v4908_v37, %v8320_v14 }
 0x6e6   :  { %v4844_v9 = vadd.f32 %v4842_v57, %v4838_v41 }
 0x6e7   :  { %v4576_v45 = vpop.permute.xlu0 %4575  ;;  %v4818_v31 = vpop.permute.xlu1 %4817 }
 0x6e8   :  { %v4580_v62 = vadd.f32 %v4576_v45, %v4566_v56  ;;  %v4823_v18 = vadd.f32 %v4818_v31, %v4809_v7  ;;  %v4664_v45 = vstv %s8865_s8 }
 0x6eb   :  { %v4854_v6 = vpop.permute.xlu0 %4853  ;;  %v4554_v0 = vpop.permute.xlu1 %4553 }
 0x6ec   :  { %v4559_v48 = vadd.f32 %v4554_v0, %v4545_v40  ;;  %v4858_v16 = vadd.f32 %v4854_v6, %v4844_v9  ;;  %v4631_v9 = vmul.f32 %v4630_v49, %v8345_v1 }
 0x6ee   :  { %v4565_v44 = vadd.f32 %v4563_v55, %v4559_v48  ;;  %v4909_v55 = vmul.f32 %v4908_v37, %v8345_v1 }
 0x6ef   :  { %v4590_v46 = vpop.permute.xlu0 %4589  ;;  %v4832_v53 = vpop.permute.xlu1 %4831 }
 0x6f0   :  { %v4594_v20 = vadd.f32 %v4590_v46, %v4580_v62  ;;  %v4837_v27 = vadd.f32 %v4832_v53, %v4823_v18  ;;  %v4942_v46 = vstv %s8867_s15 }
 0x6f2   :  { %v4600_v29 = vadd.f32 %v4598_v33, %v4594_v20  ;;  %v4843_v22 = vadd.f32 %v4841_v19, %v4837_v27 }
 0x6f3   :  { %v4868_v54 = vpop.permute.xlu0 %4867  ;;  %v4574_v30 = vpop.permute.xlu1 %4573 }
 0x6f4   :  { %v4872_v32 = vadd.f32 %v4868_v54, %v4858_v16  ;;  %v4579_v17 = vadd.f32 %v4574_v30, %v4565_v44 }
 0x6f6   :  { %v4878_v15 = vadd.f32 %v4876_v60, %v4872_v32 }
 0x6f7   :  { %v4610_v38 = vpop.permute.xlu0 %4609  ;;  %v4852_v61 = vpop.permute.xlu1 %4851 }
 0x6f8   :  { %v4614_v23 = vadd.f32 %v4610_v38, %v4600_v29  ;;  %v4857_v2 = vadd.f32 %v4852_v61, %v4843_v22 }
 0x6fb   :  { %v4888_v51 = vpop.permute.xlu0 %4887  ;;  %v4588_v52 = vpop.permute.xlu1 %4587 }
 0x6fc   :  { %v4593_v8 = vadd.f32 %v4588_v52, %v4579_v17  ;;  %v4892_v25 = vadd.f32 %v4888_v51, %v4878_v15 }
 0x6fe   :  { %v4599_v26 = vadd.f32 %v4597_v59, %v4593_v8 }
 0x6ff   :  { %v4624_v3 = vpop.permute.xlu0 %4623  ;;  %v4866_v43 = vpop.permute.xlu1 %4865 }
 0x700   :  { %v4628_v35 = vadd.f32 %v4624_v3, %v4614_v23  ;;  %v4871_v47 = vadd.f32 %v4866_v43, %v4857_v2 }
 0x702   :  { %v4634_v5 = vadd.f32 %v4632_v12, %v4628_v35  ;;  %v4877_v63 = vadd.f32 %v4875_v21, %v4871_v47 }
 0x703   :  { %v4902_v58 = vpop.permute.xlu0 %4901  ;;  %v4608_v39 = vpop.permute.xlu1 %4607 }
 0x704   :  { %v4906_v13 = vadd.f32 %v4902_v58, %v4892_v25  ;;  %v4613_v7 = vadd.f32 %v4608_v39, %v4599_v26 }
 0x706   :  { %v4912_v56 = vadd.f32 %v4910_v34, %v4906_v13 }
 0x707   :  { %v4644_v10 = vpop.permute.xlu0 %4643  ;;  %v4886_v42 = vpop.permute.xlu1 %4885 }
 0x708   :  { %v4648_v24 = vadd.f32 %v4644_v10, %v4634_v5  ;;  %v4891_v14 = vadd.f32 %v4886_v42, %v4877_v63 }
 0x70b   :  { %v4922_v41 = vpop.permute.xlu0 %4921  ;;  %v4622_v57 = vpop.permute.xlu1 %4621 }
 0x70c   :  { %v4627_v11 = vadd.f32 %v4622_v57, %v4613_v7  ;;  %v4926_v4 = vadd.f32 %v4922_v41, %v4912_v56 }
 0x70e   :  { %v4633_v40 = vadd.f32 %v4631_v9, %v4627_v11 }
 0x70f   :  { %v4658_v31 = vpop.permute.xlu0 %4657  ;;  %v4900_v0 = vpop.permute.xlu1 %4899 }
 0x710   :  { %v4662_v6 = vadd.f32 %v4658_v31, %v4648_v24  ;;  %v4905_v48 = vadd.f32 %v4900_v0, %v4891_v14 }
 0x712   :  { %v4666_v62 = vadd.f32 %v4664_v45, %v4662_v6  ;;  %v4911_v44 = vadd.f32 %v4909_v55, %v4905_v48 }
 0x713   :  { %v4936_v18 = vpop.permute.xlu0 %4935  ;;  %v4642_v33 = vpop.permute.xlu1 %4641 }
 0x714   :  { %5488 = vtanh.f32 %v4666_v62  ;;  %v4940_v20 = vadd.f32 %v4936_v18, %v4926_v4  ;;  %v4647_v16 = vadd.f32 %v4642_v33, %v4633_v40 }
 0x716   :  { %v4944_v53 = vadd.f32 %v4942_v46, %v4940_v20 }
 0x717   :  { %v4920_v36 = vpop.permute.xlu1 %4919 }
 0x718   :  { %5490 = vtanh.f32 %v4944_v53  ;;  %v4925_v32 = vadd.f32 %v4920_v36, %v4911_v44 }
 0x71b   :  { %v4656_v27 = vpop.permute.xlu1 %4655 }
 0x71c   :  { %v4661_v19 = vadd.f32 %v4656_v27, %v4647_v16 }
 0x71e   :  { %v5489_v29 = vpop.eup %5488  ;;  %v4665_v22 = vadd.f32 %v4664_v45, %v4661_v19 }
 0x71f   :  { %v4960_v54 = vrot.slane %v5489_v29, 6  ;;  %v4934_v30 = vpop.permute.xlu1 %4933 }
 0x720   :  { %5492 = vtanh.f32 %v4665_v22  ;;  %v4939_v15 = vadd.f32 %v4934_v30, %v4925_v32 }
 0x721   :  { %v4964_v60 = vadd.f32 %v8606_v28, %v4960_v54 }
 0x722   :  { %v5491_v1 = vpop.eup %5490  ;;  %v4943_v61 = vadd.f32 %v4942_v46, %v4939_v15 }
 0x723   :  { %4987 = vst.msk [vmem:[#allocation21 + $0x4] sm:$0x4] %vm4983_vm14, %v4964_v60  ;;  %v4968_v38 = vrot.slane %v5491_v1, 5 }
 0x724   :  { %5494 = vtanh.f32 %v4943_v61 }
 0x725   :  { %v4972_v51 = vadd.f32 %v8606_v28, %v4968_v38 }
 0x727   :  { %4992 = vst.msk [vmem:[#allocation21 + $0x4] sm:$0x8] %vm4988_vm15, %v4972_v51 }
 0x72a   :  { %v5493_v17 = vpop.eup %5492 }
 0x72b   :  { %v4959_v52 = vrot.slane %v5493_v17, 6 }
 0x72d   :  { %v4963_v49 = vadd.f32 %v8649_v50, %v4959_v52 }
 0x72e   :  { %v5495_v23 = vpop.eup %5494 }
 0x72f   :  { %4986 = vst.msk [vmem:[#allocation21] sm:$0x4] %vm4983_vm14, %v4963_v49  ;;  %v4967_v8 = vrot.slane %v5495_v23, 5 }
 0x731   :  { %v4971_v59 = vadd.f32 %v8649_v50, %v4967_v8 }
 0x733   :  { %4991 = vst.msk [vmem:[#allocation21] sm:$0x8] %vm4988_vm15, %v4971_v59 }
 0x734   :  { %5687 = shalt.err (!%p5684_p12)
}
 0x735   :  { %s5688_s7 = scalar_lea.hbm %s8906_s10, 128 }
 0x736   :  { %p5689_p13 = scmp.ne.s32.totalorder %s8906_s10, %s5688_s7  ;;  %p5692_p0 = scmp.lt.u32.totalorder %s5688_s7, %s8906_s10 }
 0x738   :  { %p5694_p1 = pnand %p5692_p0, %p5689_p13 }
 0x73a   :  { %5697 = shalt.err (!%p5694_p1)
}
 0x73b   :  { %5004 = dma.vmem_to_hbm [thread:$0]  %s4999_s2, 128, %s8906_s10, [#allocation5], %s5720_s20, %s5720_s20, %s5721_s21  }
 0x73c   :  { %5712 = dma.done.wait [#allocation5], 128  }
 0x73d   :  { %5713 = vsyncadd [#allocation5], 4294967168 }
 0x73e   :  { %5714 = dma.done.wait [#allocation23], 128  }
 0x73f   :  { %5715 = vsyncadd [#allocation23], 4294967168 }
 0x740   :  { %5023 = vsyncpa [#allocation4], 1 }
 0x741   :  { %5024 = vsyncpa [#allocation8], 1 }
 0x742   :  { %5025 = vsyncpa [#allocation5], 1 }
 0x743   :  { %5026 = vsyncpa [#allocation23], 1 }
 0x744   :  { %5027 = vsyncpa [#allocation6], 1 }
 0x745   :  { %5028 = vsyncpa [#allocation11], 1 }
 0x746   :  { %5029 = vsyncpa [#allocation14], 1 }
 0x747   :  { %5030 = vsyncpa [#allocation17], 1 }
 0x748   :  { %5031 = vsyncpa [#allocation20], 1 }

</bundles_post_ra>
